<compile_context>
chip_gen: v5e
topology: v5e:2x2
jax: 0.10.0
libtpu: 0.0.40
codegen_flags: <defaults>
</compile_context>

<pallas_src>
import functools

import jax
import jax.numpy as jnp
from jax.experimental import pallas as pl
from jax.experimental.pallas import tpu as pltpu


def _round_up(x, m):
    return ((x + m - 1) // m) * m


def _nbytes(*arrays):
    return int(sum(a.size * jnp.dtype(a.dtype).itemsize for a in arrays))


# ---------------------------------------------------------------------------
# Conv2d(kernel=4, stride=2, padding=1) + ReLU, fused Pallas kernel.
# ---------------------------------------------------------------------------
def _conv_kernel(y_ref, w_ref, b_ref, o_ref, *, rows, wo1):
    """One image.

    y_ref: [1, (Ho+1)*(Wo+1)+1, 4*Cin]  bf16  (padded + space-to-depth'd + row-flattened)
    w_ref: [2, 2, 4*Cin, Cout]          bf16
    b_ref: [1, Cout]                    f32
    o_ref: [1, rows, Cout]              bf16, rows = Ho*(Wo+1)
    """
    cout = w_ref.shape[-1]
    acc = jnp.zeros((rows, cout), jnp.float32)
    for ai in range(2):
        for aj in range(2):
            shift = ai * wo1 + aj
            lhs = y_ref[0, shift:shift + rows, :]          # contiguous bf16 row window
            acc += jnp.dot(lhs, w_ref[ai, aj],             # bf16 x bf16 -> f32 on MXU
                           preferred_element_type=jnp.float32)
    acc = jnp.maximum(acc + b_ref[...], 0.0)               # f32 bias + ReLU epilogue
    o_ref[0] = acc.astype(o_ref.dtype)


def conv4x4_s2_relu(x_nhwc, w4, b):
    """x: [B,H,W,Cin] bf16, w4: [2,2,4Cin,Cout] bf16, b: [Cout] f32 -> [B,H/2,W/2,Cout] bf16."""
    B, H, W, Cin = x_nhwc.shape
    assert H % 2 == 0 and W % 2 == 0
    Ho, Wo = H // 2, W // 2
    fourC = 4 * Cin
    Cout = w4.shape[-1]

    # pad=1 + space-to-depth: stride-2 4x4 conv -> stride-1 2x2 conv over 4*Cin channels.
    # One fused XLA copy of the un-expanded activation (no 16x im2col matrix in HBM).
    xp = jnp.pad(x_nhwc, ((0, 0), (1, 1), (1, 1), (0, 0)))
    y = xp.reshape(B, Ho + 1, 2, Wo + 1, 2, Cin)
    y = y.transpose(0, 1, 3, 2, 4, 5).reshape(B, (Ho + 1) * (Wo + 1), fourC)
    y = jnp.pad(y, ((0, 0), (0, 1), (0, 0)))               # +1 junk row for the (1,1) shift
    rows_in = y.shape[1]
    rows_out = Ho * (Wo + 1)                                # valid outputs + 1 junk column/row

    b2 = b.reshape(1, Cout)
    out = pl.pallas_call(
        functools.partial(_conv_kernel, rows=rows_out, wo1=Wo + 1),
        out_shape=jax.ShapeDtypeStruct((B, rows_out, Cout), jnp.bfloat16),
        grid=(B,),
        in_specs=[
            pl.BlockSpec((1, rows_in, fourC), lambda i: (i, 0, 0)),
            pl.BlockSpec((2, 2, fourC, Cout), lambda i: (0, 0, 0, 0)),
            pl.BlockSpec((1, Cout), lambda i: (0, 0)),
        ],
        out_specs=pl.BlockSpec((1, rows_out, Cout), lambda i: (i, 0, 0)),
        compiler_params=pltpu.CompilerParams(dimension_semantics=("parallel",)),
        cost_estimate=pl.CostEstimate(
            flops=2 * B * 4 * rows_out * fourC * Cout,
            transcendentals=0,
            bytes_accessed=_nbytes(y, w4, b2) + B * rows_out * Cout * 2),
    )(y, w4, b2)

    # Strip the junk column; under jit XLA fuses this slice into the next layer's pad copy.
    out = out.reshape(B, Ho, Wo + 1, Cout)[:, :, :Wo, :]
    return out


# ---------------------------------------------------------------------------
# Dense layer: (M, N)-tiled fused matmul + bias.
# ---------------------------------------------------------------------------
def _dense_kernel(x_ref, w_ref, b_ref, o_ref):
    acc = jnp.dot(x_ref[...], w_ref[...], preferred_element_type=jnp.float32)
    o_ref[...] = (acc + b_ref[...]).astype(o_ref.dtype)


def dense(x, w, b, *, tn=128, tm_max=512):
    """x: [M, K] bf16, w: [K, N] bf16, b: [N] f32 -> [M, N] f32."""
    M, K = x.shape
    Kw, N = w.shape
    assert K == Kw
    if N % tn != 0:
        tn = N
    tm = min(tm_max, _round_up(M, 8))       # no wasteful pad-to-128 for tiny batches
    m_pad = _round_up(M, tm)
    x_p = x if m_pad == M else jnp.pad(x, ((0, m_pad - M), (0, 0)))
    b2 = b.reshape(1, N)
    out = pl.pallas_call(
        _dense_kernel,
        out_shape=jax.ShapeDtypeStruct((m_pad, N), jnp.float32),
        grid=(m_pad // tm, N // tn),
        in_specs=[
            pl.BlockSpec((tm, K), lambda i, j: (i, 0)),
            pl.BlockSpec((K, tn), lambda i, j: (0, j)),
            pl.BlockSpec((1, tn), lambda i, j: (0, j)),
        ],
        out_specs=pl.BlockSpec((tm, tn), lambda i, j: (i, j)),
        compiler_params=pltpu.CompilerParams(
            dimension_semantics=("parallel", "parallel")),
        cost_estimate=pl.CostEstimate(
            flops=2 * m_pad * K * N,
            transcendentals=0,
            bytes_accessed=_nbytes(x_p, w, b2) + m_pad * N * 4),
    )(x_p, w, b2)
    return out if m_pad == M else out[:M]


# ---------------------------------------------------------------------------
# Parameters (PyTorch layouts) and one-time kernel-friendly preparation.
# ---------------------------------------------------------------------------
def init_torch_params(key, input_channels=3, latent_size=1024):
    """Parameters in the PyTorch layouts (Conv2d: [Cout,Cin,4,4]; Linear: [out,in]).
    Note: biases use the same normal(1/sqrt(fan_in)) init as weights (demo init only)."""
    ks = jax.random.split(key, 10)

    def w(k, shape, fan_in):
        return jax.random.normal(k, shape, jnp.float32) * (1.0 / (fan_in ** 0.5))

    chans = [input_channels, 32, 64, 128, 256]
    params = {"conv": []}
    for li in range(4):
        cin, cout = chans[li], chans[li + 1]
        params["conv"].append({
            "w": w(ks[2 * li], (cout, cin, 4, 4), cin * 16),
            "b": w(ks[2 * li + 1], (cout,), cin * 16),
        })
    params["dense_w"] = w(ks[8], (latent_size, 256 * 4 * 4), 256 * 4 * 4)
    params["dense_b"] = w(ks[9], (latent_size,), 256 * 4 * 4)
    return params


def prepare_params(torch_params):
    """One-time layout transform (NOT in the hot path):
    conv weights -> [2, 2, 4*Cin, Cout] matching the space-to-depth feature order,
    dense weight -> [in, out] with columns permuted from torch's (C,H,W) flatten to the
    kernel's NHWC (H,W,C) flatten.  Weights cast to bf16 (MXU operands); biases stay f32."""
    prepared = {"conv": []}
    for layer in torch_params["conv"]:
        w = layer["w"]                                   # [Cout, Cin, 4, 4]
        cout, cin = w.shape[0], w.shape[1]
        w4 = (w.reshape(cout, cin, 2, 2, 2, 2)           # (co, c, ai, ri, aj, rj)
                .transpose(2, 4, 3, 5, 1, 0)             # (ai, aj, ri, rj, c, co)
                .reshape(2, 2, 4 * cin, cout)
                .astype(jnp.bfloat16))
        prepared["conv"].append({"w4": w4, "b": layer["b"]})
    dw = torch_params["dense_w"]                          # [latent, 256*4*4], in-index (c,h,w)
    latent = dw.shape[0]
    dw = (dw.reshape(latent, 256, 4, 4)                   # (o, c, h, w)
            .transpose(2, 3, 1, 0)                        # (h, w, c, o)
            .reshape(4 * 4 * 256, latent)
            .astype(jnp.bfloat16))
    prepared["dense_w"] = dw
    prepared["dense_b"] = torch_params["dense_b"]
    return prepared


# ---------------------------------------------------------------------------
# ObservationEncoder forward
# ---------------------------------------------------------------------------
@jax.jit
def observation_encoder_forward(params, observation_batch):
    """observation_batch: [batch, seq, C, H, W] (H = W = 64) -> [batch, seq, latent] f32."""
    B, S = observation_batch.shape[:2]
    x = observation_batch.reshape(B * S, *observation_batch.shape[2:])
    x = x.transpose(0, 2, 3, 1).astype(jnp.bfloat16)      # NCHW -> NHWC, once, in bf16
    for layer in params["conv"]:
        x = conv4x4_s2_relu(x, layer["w4"], layer["b"])   # NHWC bf16
    feats = x.reshape(B * S, -1)                          # NHWC flatten (weight is pre-permuted)
    assert feats.shape[1] == params["dense_w"].shape[0]
    out = dense(feats, params["dense_w"], params["dense_b"])
    return out.reshape(B, S, -1)


# ---------------------------------------------------------------------------
# Pure-XLA reference (mirrors the same bf16 casting points) for validation.
# ---------------------------------------------------------------------------
def _reference_forward(torch_params, observation_batch):
    B, S = observation_batch.shape[:2]
    x = observation_batch.reshape(B * S, *observation_batch.shape[2:])
    x = x.transpose(0, 2, 3, 1).astype(jnp.bfloat16)      # NHWC
    for layer in torch_params["conv"]:
        w_hwio = jnp.transpose(layer["w"], (2, 3, 1, 0)).astype(jnp.bfloat16)
        y = jax.lax.conv_general_dilated(
            x, w_hwio, window_strides=(2, 2), padding=((1, 1), (1, 1)),
            dimension_numbers=("NHWC", "HWIO", "NHWC"),
            preferred_element_type=jnp.float32)
        x = jnp.maximum(y + layer["b"][None, None, None, :], 0.0).astype(jnp.bfloat16)
    # torch nn.Flatten order: (C, H, W)
    feats = x.astype(jnp.float32).transpose(0, 3, 1, 2).reshape(B * S, -1)
    w = torch_params["dense_w"].astype(jnp.bfloat16).astype(jnp.float32)
    out = feats @ w.T + torch_params["dense_b"]
    return out.reshape(B, S, -1)


if __name__ == "__main__":
    key = jax.random.PRNGKey(0)
    k_param, k_input = jax.random.split(key)

    BATCH, SEQ, C, H, W = 2, 2, 3, 64, 64   # H = W = 64 is required by the 256*4*4 Linear
    LATENT = 256                            # small latent for the demo (multiple of 128)

    torch_params = init_torch_params(k_param, input_channels=C, latent_size=LATENT)
    params = prepare_params(torch_params)   # one-time weight layout transform
    obs = jax.random.normal(k_input, (BATCH, SEQ, C, H, W), jnp.float32)

    encoded = observation_encoder_forward(params, obs)
    encoded = jax.block_until_ready(encoded)

    assert encoded.shape == (BATCH, SEQ, LATENT), encoded.shape
    assert encoded.dtype == jnp.float32

    ref = jax.block_until_ready(_reference_forward(torch_params, obs))
    max_err = float(jnp.max(jnp.abs(encoded - ref)))
    assert max_err < 5e-2, f"mismatch vs XLA reference: max |err| = {max_err}"

    print("KERNEL_OK")
</pallas_src>

<mosaic_0001>
module attributes {stable_mosaic.version = 11 : i64} {
  func.func @_conv_kernel(%arg0: i32, %arg1: memref<1x1090x12xbf16, #tpu.memory_space<vmem>>, %arg2: memref<2x2x12x32xbf16, #tpu.memory_space<vmem>>, %arg3: memref<1x32xf32, #tpu.memory_space<vmem>>, %arg4: memref<1x1056x32xbf16, #tpu.memory_space<vmem>>) attributes {dimension_semantics = [#tpu.dimension_semantics<parallel>], iteration_bounds = array<i64: 4>, scalar_prefetch = 0 : i64, scratch_operands = 0 : i64, tpu.core_type = #tpu.core_type<tc>, window_params = [{transform_indices = @transform_0, window_bounds = array<i64: 1, 1090, 12>}, {pipeline_mode = #tpu.pipeline_mode<synchronous>, transform_indices = @transform_1, window_bounds = array<i64: 2, 2, 12, 32>}, {pipeline_mode = #tpu.pipeline_mode<synchronous>, transform_indices = @transform_2, window_bounds = array<i64: 1, 32>}, {transform_indices = @transform_3, window_bounds = array<i64: 1, 1056, 32>}]} {
    %cst = arith.constant 0.000000e+00 : f32
    %0 = vector.broadcast %cst : f32 to vector<1056x32xf32>
    %c0 = arith.constant 0 : index
    %c0_0 = arith.constant 0 : index
    %c0_1 = arith.constant 0 : index
    %1 = vector.load %arg1[%c0, %c0_0, %c0_1] : memref<1x1090x12xbf16, #tpu.memory_space<vmem>>, vector<1x1056x12xbf16>
    %2 = vector.shape_cast %1 : vector<1x1056x12xbf16> to vector<1056x12xbf16>
    %c0_2 = arith.constant 0 : index
    %c0_3 = arith.constant 0 : index
    %c0_4 = arith.constant 0 : index
    %c0_5 = arith.constant 0 : index
    %3 = vector.load %arg2[%c0_2, %c0_3, %c0_4, %c0_5] : memref<2x2x12x32xbf16, #tpu.memory_space<vmem>>, vector<1x1x12x32xbf16>
    %4 = vector.shape_cast %3 : vector<1x1x12x32xbf16> to vector<12x32xbf16>
    %cst_6 = arith.constant dense<0.000000e+00> : vector<1056x32xf32>
    %5 = tpu.matmul %2, %4, %cst_6 {dimension_numbers = #tpu.dot_dimension_numbers<[1], [0], [0], [1], [0, 0, 1, 1], [], []>} : vector<1056x12xbf16>, vector<12x32xbf16>, vector<1056x32xf32> -> vector<1056x32xf32>
    %6 = arith.addf %0, %5 : vector<1056x32xf32>
    %c0_7 = arith.constant 0 : index
    %c1 = arith.constant 1 : index
    %c0_8 = arith.constant 0 : index
    %7 = vector.load %arg1[%c0_7, %c1, %c0_8] : memref<1x1090x12xbf16, #tpu.memory_space<vmem>>, vector<1x1056x12xbf16>
    %8 = vector.shape_cast %7 : vector<1x1056x12xbf16> to vector<1056x12xbf16>
    %c0_9 = arith.constant 0 : index
    %c1_10 = arith.constant 1 : index
    %c0_11 = arith.constant 0 : index
    %c0_12 = arith.constant 0 : index
    %9 = vector.load %arg2[%c0_9, %c1_10, %c0_11, %c0_12] : memref<2x2x12x32xbf16, #tpu.memory_space<vmem>>, vector<1x1x12x32xbf16>
    %10 = vector.shape_cast %9 : vector<1x1x12x32xbf16> to vector<12x32xbf16>
    %cst_13 = arith.constant dense<0.000000e+00> : vector<1056x32xf32>
    %11 = tpu.matmul %8, %10, %cst_13 {dimension_numbers = #tpu.dot_dimension_numbers<[1], [0], [0], [1], [0, 0, 1, 1], [], []>} : vector<1056x12xbf16>, vector<12x32xbf16>, vector<1056x32xf32> -> vector<1056x32xf32>
    %12 = arith.addf %6, %11 : vector<1056x32xf32>
    %c0_14 = arith.constant 0 : index
    %c33 = arith.constant 33 : index
    %c0_15 = arith.constant 0 : index
    %13 = vector.load %arg1[%c0_14, %c33, %c0_15] : memref<1x1090x12xbf16, #tpu.memory_space<vmem>>, vector<1x1056x12xbf16>
    %14 = vector.shape_cast %13 : vector<1x1056x12xbf16> to vector<1056x12xbf16>
    %c1_16 = arith.constant 1 : index
    %c0_17 = arith.constant 0 : index
    %c0_18 = arith.constant 0 : index
    %c0_19 = arith.constant 0 : index
    %15 = vector.load %arg2[%c1_16, %c0_17, %c0_18, %c0_19] : memref<2x2x12x32xbf16, #tpu.memory_space<vmem>>, vector<1x1x12x32xbf16>
    %16 = vector.shape_cast %15 : vector<1x1x12x32xbf16> to vector<12x32xbf16>
    %cst_20 = arith.constant dense<0.000000e+00> : vector<1056x32xf32>
    %17 = tpu.matmul %14, %16, %cst_20 {dimension_numbers = #tpu.dot_dimension_numbers<[1], [0], [0], [1], [0, 0, 1, 1], [], []>} : vector<1056x12xbf16>, vector<12x32xbf16>, vector<1056x32xf32> -> vector<1056x32xf32>
    %18 = arith.addf %12, %17 : vector<1056x32xf32>
    %c0_21 = arith.constant 0 : index
    %c34 = arith.constant 34 : index
    %c0_22 = arith.constant 0 : index
    %19 = vector.load %arg1[%c0_21, %c34, %c0_22] : memref<1x1090x12xbf16, #tpu.memory_space<vmem>>, vector<1x1056x12xbf16>
    %20 = vector.shape_cast %19 : vector<1x1056x12xbf16> to vector<1056x12xbf16>
    %c1_23 = arith.constant 1 : index
    %c1_24 = arith.constant 1 : index
    %c0_25 = arith.constant 0 : index
    %c0_26 = arith.constant 0 : index
    %21 = vector.load %arg2[%c1_23, %c1_24, %c0_25, %c0_26] : memref<2x2x12x32xbf16, #tpu.memory_space<vmem>>, vector<1x1x12x32xbf16>
    %22 = vector.shape_cast %21 : vector<1x1x12x32xbf16> to vector<12x32xbf16>
    %cst_27 = arith.constant dense<0.000000e+00> : vector<1056x32xf32>
    %23 = tpu.matmul %20, %22, %cst_27 {dimension_numbers = #tpu.dot_dimension_numbers<[1], [0], [0], [1], [0, 0, 1, 1], [], []>} : vector<1056x12xbf16>, vector<12x32xbf16>, vector<1056x32xf32> -> vector<1056x32xf32>
    %24 = arith.addf %18, %23 : vector<1056x32xf32>
    %c0_28 = arith.constant 0 : index
    %c0_29 = arith.constant 0 : index
    %25 = vector.load %arg3[%c0_28, %c0_29] : memref<1x32xf32, #tpu.memory_space<vmem>>, vector<1x32xf32>
    %26 = vector.broadcast %25 : vector<1x32xf32> to vector<1056x32xf32>
    %27 = arith.addf %24, %26 : vector<1056x32xf32>
    %cst_30 = arith.constant 0.000000e+00 : f32
    %28 = vector.broadcast %cst_30 : f32 to vector<1056x32xf32>
    %29 = arith.maximumf %27, %28 : vector<1056x32xf32>
    %30 = arith.truncf %29 : vector<1056x32xf32> to vector<1056x32xbf16>
    %c0_31 = arith.constant 0 : index
    %c0_32 = arith.constant 0 : index
    %c0_33 = arith.constant 0 : index
    %31 = vector.load %arg4[%c0_31, %c0_32, %c0_33] : memref<1x1056x32xbf16, #tpu.memory_space<vmem>>, vector<1x1056x32xbf16>
    %32 = vector.shape_cast %31 : vector<1x1056x32xbf16> to vector<1056x32xbf16>
    %33 = vector.shape_cast %30 : vector<1056x32xbf16> to vector<1x1056x32xbf16>
    tpu.vector_store %arg4[%c0_31, %c0_32, %c0_33], %33 {strides = array<i32>} : memref<1x1056x32xbf16, #tpu.memory_space<vmem>>, vector<1x1056x32xbf16>,
    return
  }
  func.func @transform_0(%arg0: i32) -> (i32, i32, i32) {
    %c0_i32 = arith.constant 0 : i32
    %c0_i32_0 = arith.constant 0 : i32
    %c0_i32_1 = arith.constant 0 : i32
    return %arg0, %c0_i32, %c0_i32_0 : i32, i32, i32
  }
  func.func @transform_1(%arg0: i32) -> (i32, i32, i32, i32) {
    %c0_i32 = arith.constant 0 : i32
    %c0_i32_0 = arith.constant 0 : i32
    %c0_i32_1 = arith.constant 0 : i32
    %c0_i32_2 = arith.constant 0 : i32
    %c0_i32_3 = arith.constant 0 : i32
    return %c0_i32, %c0_i32_0, %c0_i32_1, %c0_i32_2 : i32, i32, i32, i32
  }
  func.func @transform_2(%arg0: i32) -> (i32, i32) {
    %c0_i32 = arith.constant 0 : i32
    %c0_i32_0 = arith.constant 0 : i32
    %c0_i32_1 = arith.constant 0 : i32
    return %c0_i32, %c0_i32_0 : i32, i32
  }
  func.func @transform_3(%arg0: i32) -> (i32, i32, i32) {
    %c0_i32 = arith.constant 0 : i32
    %c0_i32_0 = arith.constant 0 : i32
    %c0_i32_1 = arith.constant 0 : i32
    return %arg0, %c0_i32, %c0_i32_0 : i32, i32, i32
  }
}

module attributes {stable_mosaic.version = 11 : i64} {
  func.func @_conv_kernel(%arg0: i32, %arg1: memref<1x290x128xbf16, #tpu.memory_space<vmem>>, %arg2: memref<2x2x128x64xbf16, #tpu.memory_space<vmem>>, %arg3: memref<1x64xf32, #tpu.memory_space<vmem>>, %arg4: memref<1x272x64xbf16, #tpu.memory_space<vmem>>) attributes {dimension_semantics = [#tpu.dimension_semantics<parallel>], iteration_bounds = array<i64: 4>, scalar_prefetch = 0 : i64, scratch_operands = 0 : i64, tpu.core_type = #tpu.core_type<tc>, window_params = [{transform_indices = @transform_0, window_bounds = array<i64: 1, 290, 128>}, {pipeline_mode = #tpu.pipeline_mode<synchronous>, transform_indices = @transform_1, window_bounds = array<i64: 2, 2, 128, 64>}, {pipeline_mode = #tpu.pipeline_mode<synchronous>, transform_indices = @transform_2, window_bounds = array<i64: 1, 64>}, {transform_indices = @transform_3, window_bounds = array<i64: 1, 272, 64>}]} {
    %cst = arith.constant 0.000000e+00 : f32
    %0 = vector.broadcast %cst : f32 to vector<272x64xf32>
    %c0 = arith.constant 0 : index
    %c0_0 = arith.constant 0 : index
    %c0_1 = arith.constant 0 : index
    %1 = vector.load %arg1[%c0, %c0_0, %c0_1] : memref<1x290x128xbf16, #tpu.memory_space<vmem>>, vector<1x272x128xbf16>
    %2 = vector.shape_cast %1 : vector<1x272x128xbf16> to vector<272x128xbf16>
    %c0_2 = arith.constant 0 : index
    %c0_3 = arith.constant 0 : index
    %c0_4 = arith.constant 0 : index
    %c0_5 = arith.constant 0 : index
    %3 = vector.load %arg2[%c0_2, %c0_3, %c0_4, %c0_5] : memref<2x2x128x64xbf16, #tpu.memory_space<vmem>>, vector<1x1x128x64xbf16>
    %4 = vector.shape_cast %3 : vector<1x1x128x64xbf16> to vector<128x64xbf16>
    %cst_6 = arith.constant dense<0.000000e+00> : vector<272x64xf32>
    %5 = tpu.matmul %2, %4, %cst_6 {dimension_numbers = #tpu.dot_dimension_numbers<[1], [0], [0], [1], [0, 0, 1, 1], [], []>} : vector<272x128xbf16>, vector<128x64xbf16>, vector<272x64xf32> -> vector<272x64xf32>
    %6 = arith.addf %0, %5 : vector<272x64xf32>
    %c0_7 = arith.constant 0 : index
    %c1 = arith.constant 1 : index
    %c0_8 = arith.constant 0 : index
    %7 = vector.load %arg1[%c0_7, %c1, %c0_8] : memref<1x290x128xbf16, #tpu.memory_space<vmem>>, vector<1x272x128xbf16>
    %8 = vector.shape_cast %7 : vector<1x272x128xbf16> to vector<272x128xbf16>
    %c0_9 = arith.constant 0 : index
    %c1_10 = arith.constant 1 : index
    %c0_11 = arith.constant 0 : index
    %c0_12 = arith.constant 0 : index
    %9 = vector.load %arg2[%c0_9, %c1_10, %c0_11, %c0_12] : memref<2x2x128x64xbf16, #tpu.memory_space<vmem>>, vector<1x1x128x64xbf16>
    %10 = vector.shape_cast %9 : vector<1x1x128x64xbf16> to vector<128x64xbf16>
    %cst_13 = arith.constant dense<0.000000e+00> : vector<272x64xf32>
    %11 = tpu.matmul %8, %10, %cst_13 {dimension_numbers = #tpu.dot_dimension_numbers<[1], [0], [0], [1], [0, 0, 1, 1], [], []>} : vector<272x128xbf16>, vector<128x64xbf16>, vector<272x64xf32> -> vector<272x64xf32>
    %12 = arith.addf %6, %11 : vector<272x64xf32>
    %c0_14 = arith.constant 0 : index
    %c17 = arith.constant 17 : index
    %c0_15 = arith.constant 0 : index
    %13 = vector.load %arg1[%c0_14, %c17, %c0_15] : memref<1x290x128xbf16, #tpu.memory_space<vmem>>, vector<1x272x128xbf16>
    %14 = vector.shape_cast %13 : vector<1x272x128xbf16> to vector<272x128xbf16>
    %c1_16 = arith.constant 1 : index
    %c0_17 = arith.constant 0 : index
    %c0_18 = arith.constant 0 : index
    %c0_19 = arith.constant 0 : index
    %15 = vector.load %arg2[%c1_16, %c0_17, %c0_18, %c0_19] : memref<2x2x128x64xbf16, #tpu.memory_space<vmem>>, vector<1x1x128x64xbf16>
    %16 = vector.shape_cast %15 : vector<1x1x128x64xbf16> to vector<128x64xbf16>
    %cst_20 = arith.constant dense<0.000000e+00> : vector<272x64xf32>
    %17 = tpu.matmul %14, %16, %cst_20 {dimension_numbers = #tpu.dot_dimension_numbers<[1], [0], [0], [1], [0, 0, 1, 1], [], []>} : vector<272x128xbf16>, vector<128x64xbf16>, vector<272x64xf32> -> vector<272x64xf32>
    %18 = arith.addf %12, %17 : vector<272x64xf32>
    %c0_21 = arith.constant 0 : index
    %c18 = arith.constant 18 : index
    %c0_22 = arith.constant 0 : index
    %19 = vector.load %arg1[%c0_21, %c18, %c0_22] : memref<1x290x128xbf16, #tpu.memory_space<vmem>>, vector<1x272x128xbf16>
    %20 = vector.shape_cast %19 : vector<1x272x128xbf16> to vector<272x128xbf16>
    %c1_23 = arith.constant 1 : index
    %c1_24 = arith.constant 1 : index
    %c0_25 = arith.constant 0 : index
    %c0_26 = arith.constant 0 : index
    %21 = vector.load %arg2[%c1_23, %c1_24, %c0_25, %c0_26] : memref<2x2x128x64xbf16, #tpu.memory_space<vmem>>, vector<1x1x128x64xbf16>
    %22 = vector.shape_cast %21 : vector<1x1x128x64xbf16> to vector<128x64xbf16>
    %cst_27 = arith.constant dense<0.000000e+00> : vector<272x64xf32>
    %23 = tpu.matmul %20, %22, %cst_27 {dimension_numbers = #tpu.dot_dimension_numbers<[1], [0], [0], [1], [0, 0, 1, 1], [], []>} : vector<272x128xbf16>, vector<128x64xbf16>, vector<272x64xf32> -> vector<272x64xf32>
    %24 = arith.addf %18, %23 : vector<272x64xf32>
    %c0_28 = arith.constant 0 : index
    %c0_29 = arith.constant 0 : index
    %25 = vector.load %arg3[%c0_28, %c0_29] : memref<1x64xf32, #tpu.memory_space<vmem>>, vector<1x64xf32>
    %26 = vector.broadcast %25 : vector<1x64xf32> to vector<272x64xf32>
    %27 = arith.addf %24, %26 : vector<272x64xf32>
    %cst_30 = arith.constant 0.000000e+00 : f32
    %28 = vector.broadcast %cst_30 : f32 to vector<272x64xf32>
    %29 = arith.maximumf %27, %28 : vector<272x64xf32>
    %30 = arith.truncf %29 : vector<272x64xf32> to vector<272x64xbf16>
    %c0_31 = arith.constant 0 : index
    %c0_32 = arith.constant 0 : index
    %c0_33 = arith.constant 0 : index
    %31 = vector.load %arg4[%c0_31, %c0_32, %c0_33] : memref<1x272x64xbf16, #tpu.memory_space<vmem>>, vector<1x272x64xbf16>
    %32 = vector.shape_cast %31 : vector<1x272x64xbf16> to vector<272x64xbf16>
    %33 = vector.shape_cast %30 : vector<272x64xbf16> to vector<1x272x64xbf16>
    tpu.vector_store %arg4[%c0_31, %c0_32, %c0_33], %33 {strides = array<i32>} : memref<1x272x64xbf16, #tpu.memory_space<vmem>>, vector<1x272x64xbf16>,
    return
  }
  func.func @transform_0(%arg0: i32) -> (i32, i32, i32) {
    %c0_i32 = arith.constant 0 : i32
    %c0_i32_0 = arith.constant 0 : i32
    %c0_i32_1 = arith.constant 0 : i32
    return %arg0, %c0_i32, %c0_i32_0 : i32, i32, i32
  }
  func.func @transform_1(%arg0: i32) -> (i32, i32, i32, i32) {
    %c0_i32 = arith.constant 0 : i32
    %c0_i32_0 = arith.constant 0 : i32
    %c0_i32_1 = arith.constant 0 : i32
    %c0_i32_2 = arith.constant 0 : i32
    %c0_i32_3 = arith.constant 0 : i32
    return %c0_i32, %c0_i32_0, %c0_i32_1, %c0_i32_2 : i32, i32, i32, i32
  }
  func.func @transform_2(%arg0: i32) -> (i32, i32) {
    %c0_i32 = arith.constant 0 : i32
    %c0_i32_0 = arith.constant 0 : i32
    %c0_i32_1 = arith.constant 0 : i32
    return %c0_i32, %c0_i32_0 : i32, i32
  }
  func.func @transform_3(%arg0: i32) -> (i32, i32, i32) {
    %c0_i32 = arith.constant 0 : i32
    %c0_i32_0 = arith.constant 0 : i32
    %c0_i32_1 = arith.constant 0 : i32
    return %arg0, %c0_i32, %c0_i32_0 : i32, i32, i32
  }
}

module attributes {stable_mosaic.version = 11 : i64} {
  func.func @_conv_kernel(%arg0: i32, %arg1: memref<1x82x256xbf16, #tpu.memory_space<vmem>>, %arg2: memref<2x2x256x128xbf16, #tpu.memory_space<vmem>>, %arg3: memref<1x128xf32, #tpu.memory_space<vmem>>, %arg4: memref<1x72x128xbf16, #tpu.memory_space<vmem>>) attributes {dimension_semantics = [#tpu.dimension_semantics<parallel>], iteration_bounds = array<i64: 4>, scalar_prefetch = 0 : i64, scratch_operands = 0 : i64, tpu.core_type = #tpu.core_type<tc>, window_params = [{transform_indices = @transform_0, window_bounds = array<i64: 1, 82, 256>}, {pipeline_mode = #tpu.pipeline_mode<synchronous>, transform_indices = @transform_1, window_bounds = array<i64: 2, 2, 256, 128>}, {pipeline_mode = #tpu.pipeline_mode<synchronous>, transform_indices = @transform_2, window_bounds = array<i64: 1, 128>}, {transform_indices = @transform_3, window_bounds = array<i64: 1, 72, 128>}]} {
    %cst = arith.constant 0.000000e+00 : f32
    %0 = vector.broadcast %cst : f32 to vector<72x128xf32>
    %c0 = arith.constant 0 : index
    %c0_0 = arith.constant 0 : index
    %c0_1 = arith.constant 0 : index
    %1 = vector.load %arg1[%c0, %c0_0, %c0_1] : memref<1x82x256xbf16, #tpu.memory_space<vmem>>, vector<1x72x256xbf16>
    %2 = vector.shape_cast %1 : vector<1x72x256xbf16> to vector<72x256xbf16>
    %c0_2 = arith.constant 0 : index
    %c0_3 = arith.constant 0 : index
    %c0_4 = arith.constant 0 : index
    %c0_5 = arith.constant 0 : index
    %3 = vector.load %arg2[%c0_2, %c0_3, %c0_4, %c0_5] : memref<2x2x256x128xbf16, #tpu.memory_space<vmem>>, vector<1x1x256x128xbf16>
    %4 = vector.shape_cast %3 : vector<1x1x256x128xbf16> to vector<256x128xbf16>
    %cst_6 = arith.constant dense<0.000000e+00> : vector<72x128xf32>
    %5 = tpu.matmul %2, %4, %cst_6 {dimension_numbers = #tpu.dot_dimension_numbers<[1], [0], [0], [1], [0, 0, 1, 1], [], []>} : vector<72x256xbf16>, vector<256x128xbf16>, vector<72x128xf32> -> vector<72x128xf32>
    %6 = arith.addf %0, %5 : vector<72x128xf32>
    %c0_7 = arith.constant 0 : index
    %c1 = arith.constant 1 : index
    %c0_8 = arith.constant 0 : index
    %7 = vector.load %arg1[%c0_7, %c1, %c0_8] : memref<1x82x256xbf16, #tpu.memory_space<vmem>>, vector<1x72x256xbf16>
    %8 = vector.shape_cast %7 : vector<1x72x256xbf16> to vector<72x256xbf16>
    %c0_9 = arith.constant 0 : index
    %c1_10 = arith.constant 1 : index
    %c0_11 = arith.constant 0 : index
    %c0_12 = arith.constant 0 : index
    %9 = vector.load %arg2[%c0_9, %c1_10, %c0_11, %c0_12] : memref<2x2x256x128xbf16, #tpu.memory_space<vmem>>, vector<1x1x256x128xbf16>
    %10 = vector.shape_cast %9 : vector<1x1x256x128xbf16> to vector<256x128xbf16>
    %cst_13 = arith.constant dense<0.000000e+00> : vector<72x128xf32>
    %11 = tpu.matmul %8, %10, %cst_13 {dimension_numbers = #tpu.dot_dimension_numbers<[1], [0], [0], [1], [0, 0, 1, 1], [], []>} : vector<72x256xbf16>, vector<256x128xbf16>, vector<72x128xf32> -> vector<72x128xf32>
    %12 = arith.addf %6, %11 : vector<72x128xf32>
    %c0_14 = arith.constant 0 : index
    %c9 = arith.constant 9 : index
    %c0_15 = arith.constant 0 : index
    %13 = vector.load %arg1[%c0_14, %c9, %c0_15] : memref<1x82x256xbf16, #tpu.memory_space<vmem>>, vector<1x72x256xbf16>
    %14 = vector.shape_cast %13 : vector<1x72x256xbf16> to vector<72x256xbf16>
    %c1_16 = arith.constant 1 : index
    %c0_17 = arith.constant 0 : index
    %c0_18 = arith.constant 0 : index
    %c0_19 = arith.constant 0 : index
    %15 = vector.load %arg2[%c1_16, %c0_17, %c0_18, %c0_19] : memref<2x2x256x128xbf16, #tpu.memory_space<vmem>>, vector<1x1x256x128xbf16>
    %16 = vector.shape_cast %15 : vector<1x1x256x128xbf16> to vector<256x128xbf16>
    %cst_20 = arith.constant dense<0.000000e+00> : vector<72x128xf32>
    %17 = tpu.matmul %14, %16, %cst_20 {dimension_numbers = #tpu.dot_dimension_numbers<[1], [0], [0], [1], [0, 0, 1, 1], [], []>} : vector<72x256xbf16>, vector<256x128xbf16>, vector<72x128xf32> -> vector<72x128xf32>
    %18 = arith.addf %12, %17 : vector<72x128xf32>
    %c0_21 = arith.constant 0 : index
    %c10 = arith.constant 10 : index
    %c0_22 = arith.constant 0 : index
    %19 = vector.load %arg1[%c0_21, %c10, %c0_22] : memref<1x82x256xbf16, #tpu.memory_space<vmem>>, vector<1x72x256xbf16>
    %20 = vector.shape_cast %19 : vector<1x72x256xbf16> to vector<72x256xbf16>
    %c1_23 = arith.constant 1 : index
    %c1_24 = arith.constant 1 : index
    %c0_25 = arith.constant 0 : index
    %c0_26 = arith.constant 0 : index
    %21 = vector.load %arg2[%c1_23, %c1_24, %c0_25, %c0_26] : memref<2x2x256x128xbf16, #tpu.memory_space<vmem>>, vector<1x1x256x128xbf16>
    %22 = vector.shape_cast %21 : vector<1x1x256x128xbf16> to vector<256x128xbf16>
    %cst_27 = arith.constant dense<0.000000e+00> : vector<72x128xf32>
    %23 = tpu.matmul %20, %22, %cst_27 {dimension_numbers = #tpu.dot_dimension_numbers<[1], [0], [0], [1], [0, 0, 1, 1], [], []>} : vector<72x256xbf16>, vector<256x128xbf16>, vector<72x128xf32> -> vector<72x128xf32>
    %24 = arith.addf %18, %23 : vector<72x128xf32>
    %c0_28 = arith.constant 0 : index
    %c0_29 = arith.constant 0 : index
    %25 = vector.load %arg3[%c0_28, %c0_29] : memref<1x128xf32, #tpu.memory_space<vmem>>, vector<1x128xf32>
    %26 = vector.broadcast %25 : vector<1x128xf32> to vector<72x128xf32>
    %27 = arith.addf %24, %26 : vector<72x128xf32>
    %cst_30 = arith.constant 0.000000e+00 : f32
    %28 = vector.broadcast %cst_30 : f32 to vector<72x128xf32>
    %29 = arith.maximumf %27, %28 : vector<72x128xf32>
    %30 = arith.truncf %29 : vector<72x128xf32> to vector<72x128xbf16>
    %c0_31 = arith.constant 0 : index
    %c0_32 = arith.constant 0 : index
    %c0_33 = arith.constant 0 : index
    %31 = vector.load %arg4[%c0_31, %c0_32, %c0_33] : memref<1x72x128xbf16, #tpu.memory_space<vmem>>, vector<1x72x128xbf16>
    %32 = vector.shape_cast %31 : vector<1x72x128xbf16> to vector<72x128xbf16>
    %33 = vector.shape_cast %30 : vector<72x128xbf16> to vector<1x72x128xbf16>
    tpu.vector_store %arg4[%c0_31, %c0_32, %c0_33], %33 {strides = array<i32>} : memref<1x72x128xbf16, #tpu.memory_space<vmem>>, vector<1x72x128xbf16>,
    return
  }
  func.func @transform_0(%arg0: i32) -> (i32, i32, i32) {
    %c0_i32 = arith.constant 0 : i32
    %c0_i32_0 = arith.constant 0 : i32
    %c0_i32_1 = arith.constant 0 : i32
    return %arg0, %c0_i32, %c0_i32_0 : i32, i32, i32
  }
  func.func @transform_1(%arg0: i32) -> (i32, i32, i32, i32) {
    %c0_i32 = arith.constant 0 : i32
    %c0_i32_0 = arith.constant 0 : i32
    %c0_i32_1 = arith.constant 0 : i32
    %c0_i32_2 = arith.constant 0 : i32
    %c0_i32_3 = arith.constant 0 : i32
    return %c0_i32, %c0_i32_0, %c0_i32_1, %c0_i32_2 : i32, i32, i32, i32
  }
  func.func @transform_2(%arg0: i32) -> (i32, i32) {
    %c0_i32 = arith.constant 0 : i32
    %c0_i32_0 = arith.constant 0 : i32
    %c0_i32_1 = arith.constant 0 : i32
    return %c0_i32, %c0_i32_0 : i32, i32
  }
  func.func @transform_3(%arg0: i32) -> (i32, i32, i32) {
    %c0_i32 = arith.constant 0 : i32
    %c0_i32_0 = arith.constant 0 : i32
    %c0_i32_1 = arith.constant 0 : i32
    return %arg0, %c0_i32, %c0_i32_0 : i32, i32, i32
  }
}

module attributes {stable_mosaic.version = 11 : i64} {
  func.func @_conv_kernel(%arg0: i32, %arg1: memref<1x26x512xbf16, #tpu.memory_space<vmem>>, %arg2: memref<2x2x512x256xbf16, #tpu.memory_space<vmem>>, %arg3: memref<1x256xf32, #tpu.memory_space<vmem>>, %arg4: memref<1x20x256xbf16, #tpu.memory_space<vmem>>) attributes {dimension_semantics = [#tpu.dimension_semantics<parallel>], iteration_bounds = array<i64: 4>, scalar_prefetch = 0 : i64, scratch_operands = 0 : i64, tpu.core_type = #tpu.core_type<tc>, window_params = [{transform_indices = @transform_0, window_bounds = array<i64: 1, 26, 512>}, {pipeline_mode = #tpu.pipeline_mode<synchronous>, transform_indices = @transform_1, window_bounds = array<i64: 2, 2, 512, 256>}, {pipeline_mode = #tpu.pipeline_mode<synchronous>, transform_indices = @transform_2, window_bounds = array<i64: 1, 256>}, {transform_indices = @transform_3, window_bounds = array<i64: 1, 20, 256>}]} {
    %cst = arith.constant 0.000000e+00 : f32
    %0 = vector.broadcast %cst : f32 to vector<20x256xf32>
    %c0 = arith.constant 0 : index
    %c0_0 = arith.constant 0 : index
    %c0_1 = arith.constant 0 : index
    %1 = vector.load %arg1[%c0, %c0_0, %c0_1] : memref<1x26x512xbf16, #tpu.memory_space<vmem>>, vector<1x20x512xbf16>
    %2 = vector.shape_cast %1 : vector<1x20x512xbf16> to vector<20x512xbf16>
    %c0_2 = arith.constant 0 : index
    %c0_3 = arith.constant 0 : index
    %c0_4 = arith.constant 0 : index
    %c0_5 = arith.constant 0 : index
    %3 = vector.load %arg2[%c0_2, %c0_3, %c0_4, %c0_5] : memref<2x2x512x256xbf16, #tpu.memory_space<vmem>>, vector<1x1x512x256xbf16>
    %4 = vector.shape_cast %3 : vector<1x1x512x256xbf16> to vector<512x256xbf16>
    %cst_6 = arith.constant dense<0.000000e+00> : vector<20x256xf32>
    %5 = tpu.matmul %2, %4, %cst_6 {dimension_numbers = #tpu.dot_dimension_numbers<[1], [0], [0], [1], [0, 0, 1, 1], [], []>} : vector<20x512xbf16>, vector<512x256xbf16>, vector<20x256xf32> -> vector<20x256xf32>
    %6 = arith.addf %0, %5 : vector<20x256xf32>
    %c0_7 = arith.constant 0 : index
    %c1 = arith.constant 1 : index
    %c0_8 = arith.constant 0 : index
    %7 = vector.load %arg1[%c0_7, %c1, %c0_8] : memref<1x26x512xbf16, #tpu.memory_space<vmem>>, vector<1x20x512xbf16>
    %8 = vector.shape_cast %7 : vector<1x20x512xbf16> to vector<20x512xbf16>
    %c0_9 = arith.constant 0 : index
    %c1_10 = arith.constant 1 : index
    %c0_11 = arith.constant 0 : index
    %c0_12 = arith.constant 0 : index
    %9 = vector.load %arg2[%c0_9, %c1_10, %c0_11, %c0_12] : memref<2x2x512x256xbf16, #tpu.memory_space<vmem>>, vector<1x1x512x256xbf16>
    %10 = vector.shape_cast %9 : vector<1x1x512x256xbf16> to vector<512x256xbf16>
    %cst_13 = arith.constant dense<0.000000e+00> : vector<20x256xf32>
    %11 = tpu.matmul %8, %10, %cst_13 {dimension_numbers = #tpu.dot_dimension_numbers<[1], [0], [0], [1], [0, 0, 1, 1], [], []>} : vector<20x512xbf16>, vector<512x256xbf16>, vector<20x256xf32> -> vector<20x256xf32>
    %12 = arith.addf %6, %11 : vector<20x256xf32>
    %c0_14 = arith.constant 0 : index
    %c5 = arith.constant 5 : index
    %c0_15 = arith.constant 0 : index
    %13 = vector.load %arg1[%c0_14, %c5, %c0_15] : memref<1x26x512xbf16, #tpu.memory_space<vmem>>, vector<1x20x512xbf16>
    %14 = vector.shape_cast %13 : vector<1x20x512xbf16> to vector<20x512xbf16>
    %c1_16 = arith.constant 1 : index
    %c0_17 = arith.constant 0 : index
    %c0_18 = arith.constant 0 : index
    %c0_19 = arith.constant 0 : index
    %15 = vector.load %arg2[%c1_16, %c0_17, %c0_18, %c0_19] : memref<2x2x512x256xbf16, #tpu.memory_space<vmem>>, vector<1x1x512x256xbf16>
    %16 = vector.shape_cast %15 : vector<1x1x512x256xbf16> to vector<512x256xbf16>
    %cst_20 = arith.constant dense<0.000000e+00> : vector<20x256xf32>
    %17 = tpu.matmul %14, %16, %cst_20 {dimension_numbers = #tpu.dot_dimension_numbers<[1], [0], [0], [1], [0, 0, 1, 1], [], []>} : vector<20x512xbf16>, vector<512x256xbf16>, vector<20x256xf32> -> vector<20x256xf32>
    %18 = arith.addf %12, %17 : vector<20x256xf32>
    %c0_21 = arith.constant 0 : index
    %c6 = arith.constant 6 : index
    %c0_22 = arith.constant 0 : index
    %19 = vector.load %arg1[%c0_21, %c6, %c0_22] : memref<1x26x512xbf16, #tpu.memory_space<vmem>>, vector<1x20x512xbf16>
    %20 = vector.shape_cast %19 : vector<1x20x512xbf16> to vector<20x512xbf16>
    %c1_23 = arith.constant 1 : index
    %c1_24 = arith.constant 1 : index
    %c0_25 = arith.constant 0 : index
    %c0_26 = arith.constant 0 : index
    %21 = vector.load %arg2[%c1_23, %c1_24, %c0_25, %c0_26] : memref<2x2x512x256xbf16, #tpu.memory_space<vmem>>, vector<1x1x512x256xbf16>
    %22 = vector.shape_cast %21 : vector<1x1x512x256xbf16> to vector<512x256xbf16>
    %cst_27 = arith.constant dense<0.000000e+00> : vector<20x256xf32>
    %23 = tpu.matmul %20, %22, %cst_27 {dimension_numbers = #tpu.dot_dimension_numbers<[1], [0], [0], [1], [0, 0, 1, 1], [], []>} : vector<20x512xbf16>, vector<512x256xbf16>, vector<20x256xf32> -> vector<20x256xf32>
    %24 = arith.addf %18, %23 : vector<20x256xf32>
    %c0_28 = arith.constant 0 : index
    %c0_29 = arith.constant 0 : index
    %25 = vector.load %arg3[%c0_28, %c0_29] : memref<1x256xf32, #tpu.memory_space<vmem>>, vector<1x256xf32>
    %26 = vector.broadcast %25 : vector<1x256xf32> to vector<20x256xf32>
    %27 = arith.addf %24, %26 : vector<20x256xf32>
    %cst_30 = arith.constant 0.000000e+00 : f32
    %28 = vector.broadcast %cst_30 : f32 to vector<20x256xf32>
    %29 = arith.maximumf %27, %28 : vector<20x256xf32>
    %30 = arith.truncf %29 : vector<20x256xf32> to vector<20x256xbf16>
    %c0_31 = arith.constant 0 : index
    %c0_32 = arith.constant 0 : index
    %c0_33 = arith.constant 0 : index
    %31 = vector.load %arg4[%c0_31, %c0_32, %c0_33] : memref<1x20x256xbf16, #tpu.memory_space<vmem>>, vector<1x20x256xbf16>
    %32 = vector.shape_cast %31 : vector<1x20x256xbf16> to vector<20x256xbf16>
    %33 = vector.shape_cast %30 : vector<20x256xbf16> to vector<1x20x256xbf16>
    tpu.vector_store %arg4[%c0_31, %c0_32, %c0_33], %33 {strides = array<i32>} : memref<1x20x256xbf16, #tpu.memory_space<vmem>>, vector<1x20x256xbf16>,
    return
  }
  func.func @transform_0(%arg0: i32) -> (i32, i32, i32) {
    %c0_i32 = arith.constant 0 : i32
    %c0_i32_0 = arith.constant 0 : i32
    %c0_i32_1 = arith.constant 0 : i32
    return %arg0, %c0_i32, %c0_i32_0 : i32, i32, i32
  }
  func.func @transform_1(%arg0: i32) -> (i32, i32, i32, i32) {
    %c0_i32 = arith.constant 0 : i32
    %c0_i32_0 = arith.constant 0 : i32
    %c0_i32_1 = arith.constant 0 : i32
    %c0_i32_2 = arith.constant 0 : i32
    %c0_i32_3 = arith.constant 0 : i32
    return %c0_i32, %c0_i32_0, %c0_i32_1, %c0_i32_2 : i32, i32, i32, i32
  }
  func.func @transform_2(%arg0: i32) -> (i32, i32) {
    %c0_i32 = arith.constant 0 : i32
    %c0_i32_0 = arith.constant 0 : i32
    %c0_i32_1 = arith.constant 0 : i32
    return %c0_i32, %c0_i32_0 : i32, i32
  }
  func.func @transform_3(%arg0: i32) -> (i32, i32, i32) {
    %c0_i32 = arith.constant 0 : i32
    %c0_i32_0 = arith.constant 0 : i32
    %c0_i32_1 = arith.constant 0 : i32
    return %arg0, %c0_i32, %c0_i32_0 : i32, i32, i32
  }
}

module attributes {stable_mosaic.version = 11 : i64} {
  func.func @_dense_kernel(%arg0: i32, %arg1: i32, %arg2: memref<8x4096xbf16, #tpu.memory_space<vmem>>, %arg3: memref<4096x128xbf16, #tpu.memory_space<vmem>>, %arg4: memref<1x128xf32, #tpu.memory_space<vmem>>, %arg5: memref<8x128xf32, #tpu.memory_space<vmem>>) attributes {dimension_semantics = [#tpu.dimension_semantics<parallel>, #tpu.dimension_semantics<parallel>], iteration_bounds = array<i64: 1, 2>, scalar_prefetch = 0 : i64, scratch_operands = 0 : i64, tpu.core_type = #tpu.core_type<tc>, window_params = [{transform_indices = @transform_0, window_bounds = array<i64: 8, 4096>}, {transform_indices = @transform_1, window_bounds = array<i64: 4096, 128>}, {transform_indices = @transform_2, window_bounds = array<i64: 1, 128>}, {transform_indices = @transform_3, window_bounds = array<i64: 8, 128>}]} {
    %c0 = arith.constant 0 : index
    %c0_0 = arith.constant 0 : index
    %0 = vector.load %arg2[%c0, %c0_0] : memref<8x4096xbf16, #tpu.memory_space<vmem>>, vector<8x4096xbf16>
    %c0_1 = arith.constant 0 : index
    %c0_2 = arith.constant 0 : index
    %1 = vector.load %arg3[%c0_1, %c0_2] : memref<4096x128xbf16, #tpu.memory_space<vmem>>, vector<4096x128xbf16>
    %cst = arith.constant dense<0.000000e+00> : vector<8x128xf32>
    %2 = tpu.matmul %0, %1, %cst {dimension_numbers = #tpu.dot_dimension_numbers<[1], [0], [0], [1], [0, 0, 1, 1], [], []>} : vector<8x4096xbf16>, vector<4096x128xbf16>, vector<8x128xf32> -> vector<8x128xf32>
    %c0_3 = arith.constant 0 : index
    %c0_4 = arith.constant 0 : index
    %3 = vector.load %arg4[%c0_3, %c0_4] : memref<1x128xf32, #tpu.memory_space<vmem>>, vector<1x128xf32>
    %4 = vector.broadcast %3 : vector<1x128xf32> to vector<8x128xf32>
    %5 = arith.addf %2, %4 : vector<8x128xf32>
    %c0_5 = arith.constant 0 : index
    %c0_6 = arith.constant 0 : index
    %6 = vector.load %arg5[%c0_5, %c0_6] : memref<8x128xf32, #tpu.memory_space<vmem>>, vector<8x128xf32>
    tpu.vector_store %arg5[%c0_5, %c0_6], %5 {strides = array<i32>} : memref<8x128xf32, #tpu.memory_space<vmem>>, vector<8x128xf32>,
    return
  }
  func.func @transform_0(%arg0: i32, %arg1: i32) -> (i32, i32) {
    %c0_i32 = arith.constant 0 : i32
    %c0_i32_0 = arith.constant 0 : i32
    return %arg0, %c0_i32 : i32, i32
  }
  func.func @transform_1(%arg0: i32, %arg1: i32) -> (i32, i32) {
    %c0_i32 = arith.constant 0 : i32
    %c0_i32_0 = arith.constant 0 : i32
    return %c0_i32, %arg1 : i32, i32
  }
  func.func @transform_2(%arg0: i32, %arg1: i32) -> (i32, i32) {
    %c0_i32 = arith.constant 0 : i32
    %c0_i32_0 = arith.constant 0 : i32
    return %c0_i32, %arg1 : i32, i32
  }
  func.func @transform_3(%arg0: i32, %arg1: i32) -> (i32, i32) {
    %c0_i32 = arith.constant 0 : i32
    return %arg0, %arg1 : i32, i32
  }
}

</mosaic_0001>

<bundles_post_ra>
// kernel: observation_encoder_forward.5
= control target key start
LH: loop header
LB: loop body
LE: loop exit
PB: predicated region body
PF: predicated region fallthrough
CT: control target
= control target key end

     0   :  { %s6291_s12 = smov 0   ;;  %s7648_s0 = inlined_call_operand.vmem [shape: bf16[4,1090,12], index: 0, kind: input, shape index: {}]   ;;  %s7649_s1 = inlined_call_operand.vmem [shape: bf16[2,2,12,32], index: 1, kind: input, shape index: {}]   ;;  %s7650_s2 = inlined_call_operand.vmem [shape: f32[1,32], index: 2, kind: input, shape index: {}]   ;;  %s7651_s3 = inlined_call_operand.vmem [shape: bf16[4,1056,32], index: 3, kind: output, shape index: {}]  }
   0x1 LB: > { %s5286_s13 = sadd.s32 4294967295, %s6269_s12   ;;  %p5290_p0 = scmp.ge.s32.totalorder %s6269_s12, 1  ;;  %s6269_s12 = sphi %s6291_s12, %s13_s12  }
   0x2   : > { %p137_p1 = scmp.lt.s32.totalorder %s6269_s12, 5 }
   0x4   : > { %p138_p2 = pnand %p5290_p0, %p137_p1 }
   0x5   : > { %p161_p3 = scmp.lt.s32.totalorder (!%p138_p2), %s5286_s13, 3 }
   0x6   : > { %141 = sbr.rel (%p138_p2) target bundleno = 1218 (0x4c2), region = 32 }
   0xb   : > { %v5631_v0 = vld [vmem:[%s7649_s1] sm:$0xf]  ;;  %v6171_v1 = vld [vmem:[%s7649_s1] sm:$0x30]  ;;  %vm1380_vm0 = vcmask 1045504   ;;  %s7653_s13 = smov (!%p161_p3, %s5286_s13), 3 }
   0xc   : > { %v5632_v2 = vor.u32 %v6171_v1, %v5631_v0  ;;  %v6035_v3 = vld [vmem:[%s7649_s1 + $0x18] sm:$0xf]  ;;  %v6239_v4 = vld [vmem:[%s7649_s1 + $0x18] sm:$0x30]  ;;  %v5963_v6 = vld [vmem:[%s7649_s1 + $0x10] sm:$0xf] }
   0xd   : > { %v6036_v5 = vor.u32 %v6239_v4, %v6035_v3  ;;  %v6238_v7 = vld [vmem:[%s7649_s1 + $0x10] sm:$0x30]  ;;  %v5561_v10 = vld [vmem:[%s7649_s1 + $0x8] sm:$0xf]  ;;  %v6172_v11 = vld [vmem:[%s7649_s1 + $0x8] sm:$0x30] }
   0xe   : > { %v1861_v8 = vsel %vm1380_vm0, %v5632_v2, 0  ;;  %v5964_v9 = vor.u32 %v6238_v7, %v5963_v6  ;;  %s6248_s30 = smul.u32 548, %s7653_s13  ;;  %v5562_v13 = vor.u32 %v6172_v11, %v5561_v10  ;;  %vm1181_vm1 = vcmask 97280  }
   0xf   : > { %1870 = vmatpush.bf16.msra.mxu1 %v1861_v8  ;;  %v4225_v12 = vsel %vm1380_vm0, %v6036_v5, 0  ;;  %vm3887_vm2 = vcmask 1046528   ;;  %vm643_vm3 = vsmask.f32 7424  ;;  %s6249_s9 = smul.u32 528, %s7653_s13  ;;  %vm5098_vm4 = vcmask 257024  }
  0x10   : > { %4234 = vmatpush.bf16.msra.mxu3 %v4225_v12  ;;  %v3407_v14 = vsel %vm1380_vm0, %v5964_v9, 0  ;;  %s6332_s6 = scalar_lea.vmem %s7648_s0, %s6248_s30  ;;  %v1382_v15 = vsel %vm1380_vm0, %v5562_v13, 0 }
  0x11   : > { %3416 = vmatpush.bf16.msra.mxu2 %v3407_v14  ;;  %v6105_v16 = vld [vmem:[%s6332_s6] sm:$0xff]  ;;  %v6245_v17 = vld [vmem:[%s6332_s6 + $0x10] sm:$0xf0]  ;;  %v6173_v18 = vld [vmem:[%s6332_s6 + $0x18] sm:$0xff]  ;;  %1391 = vmatpush.bf16.msra.mxu0 %v1382_v15  ;;  %s6438_s14 = scalar_lea.vmem %s7651_s3, %s6249_s9 }
  0x12   : > { %v6246_v19 = vld [vmem:[%s6332_s6 + $0x10] sm:$0xe]  ;;  %v6106_v21 = vld [vmem:[%s6332_s6 + $0x8] sm:$0xff]  ;;  %v647_v22 = vshll.u32 %v6105_v16, 16  ;;  %5633 = vmatmul.msk.bf16.vlgmr.msra.gmra.mxu1 %vm1181_vm1, %v6105_v16  ;;  %v3889_v24 = vrot.slane %v6173_v18, 1  ;;  %v2679_v27 = vshll.u32 %v6173_v18, 16 }
  0x13   : > { %v6244_v20 = vld [vmem:[%s6332_s6 + $0x10] sm:$0xff]   ;;  %v6247_v23 = vor.u32 %v6246_v19, %v6245_v17  ;;  %v645_v28 = vshrl.u32 %v6105_v16, 16  ;;  %v652_v29 = vshll.u32 %v6106_v21, 16  ;;  %v6174_v41 = vld [vmem:[%s6332_s6 + $0x20] sm:$0xff]  ;;  %v656_v42 = vshrl.u32 %v6106_v21, 16  ;;  %v6108_v54 = vld [vmem:[%s6332_s6 + $0x18] sm:$0xff] }
  0x14   : > { %v2672_v25 = vshrl.u32 %v6244_v20, 16  ;;  %v2674_v26 = vshll.u32 %v6244_v20, 16  ;;  %v649_v31 = vrot.slane %v647_v22, 1  ;;  %v2681_v33 = vrot.slane %v2679_v27, 1  ;;  %v6107_v40 = vld [vmem:[%s6332_s6 + $0x10] sm:$0xff]  ;;  %v6175_v55 = vld [vmem:[%s6332_s6 + $0x28] sm:$0xff] }
  0x15   : > { %v3888_v30 = vrot.slane %v6247_v23, 1  ;;  %v654_v34 = vrot.slane %v652_v29, 1  ;;  %v660_v43 = vshll.u32 %v6107_v40, 16  ;;  %v2683_v44 = vshrl.u32 %v6173_v18, 16  ;;  %v6109_v4 = vld [vmem:[%s6332_s6 + $0x20] sm:$0xff]  ;;  %v6176_v5 = vld [vmem:[%s6332_s6 + $0x30] sm:$0xff] }
  0x16   : > { %v2676_v32 = vrot.slane %v2674_v26, 1  ;;  %v650_v36 = vor.u32 %v649_v31, %v645_v28  ;;  %v2687_v45 = vshll.u32 %v6174_v41, 16  ;;  %v3891_v46 = vrot.slane %v6174_v41, 1  ;;  %v6110_v18 = vld [vmem:[%s6332_s6 + $0x28] sm:$0xff]  ;;  %v6177_v19 = vld [vmem:[%s6332_s6 + $0x38] sm:$0xff] }
  0x17   : > { %v3890_v35 = vsel %vm3887_vm2, %v3888_v30, %v3889_v24  ;;  %v658_v47 = vor.u32 %v656_v42, %v654_v34  ;;  %v662_v48 = vrot.slane %v660_v43, 1  ;;  %v2685_v49 = vor.u32 %v2683_v44, %v2681_v33 }
  0x18   : > { %6037 = vmatmul.msk.bf16.vlgmr.msra.gmra.mxu3 %vm1181_vm1, %v3890_v35  ;;  %v2677_v37 = vor.u32 %v2676_v32, %v2672_v25  ;;  %v655_v38 = vsel %vm643_vm3, %v650_v36, %v654_v34  ;;  %v2689_v50 = vrot.slane %v2687_v45, 1  ;;  %v3892_v51 = vsel %vm3887_vm2, %v3889_v24, %v3891_v46  ;;  %v6111_v32 = vld [vmem:[%s6332_s6 + $0x30] sm:$0xff] }
  0x19   : > { %5563 = vmatmul.msk.bf16.vlgmr.msra.gmra.mxu0 %vm1181_vm1, %v655_v38  ;;  %v663_v52 = vsel %vm643_vm3, %v658_v47, %v662_v48  ;;  %v664_v56 = vshrl.u32 %v6107_v40, 16  ;;  %v668_v57 = vshll.u32 %v6108_v54, 16  ;;  %v2691_v58 = vshrl.u32 %v6174_v41, 16  ;;  %v6179_v47 = vld [vmem:[%s6332_s6 + $0x48] sm:$0xff] }
  0x1a   : > { %v2682_v39 = vsel %vm643_vm3, %v2677_v37, %v2681_v33  ;;  %v2690_v53 = vsel %vm643_vm3, %v2685_v49, %v2689_v50  ;;  %v2695_v59 = vshll.u32 %v6175_v55, 16  ;;  %v3893_v60 = vrot.slane %v6175_v55, 1  ;;  %v6178_v33 = vld [vmem:[%s6332_s6 + $0x40] sm:$0xff] }
  0x1b   : > { %5965 = vmatmul.msk.bf16.vlgmr.msra.gmra.mxu2 %vm1181_vm1, %v2682_v39  ;;  %v666_v61 = vor.u32 %v664_v56, %v662_v48  ;;  %v670_v62 = vrot.slane %v668_v57, 1  ;;  %v2693_v63 = vor.u32 %v2691_v58, %v2689_v50  ;;  %v672_v6 = vshrl.u32 %v6108_v54, 16 }
  0x1c   : > { %v2697_v0 = vrot.slane %v2695_v59, 1  ;;  %v3894_v1 = vsel %vm3887_vm2, %v3891_v46, %v3893_v60  ;;  %v676_v7 = vshll.u32 %v6109_v4, 16  ;;  %v2699_v8 = vshrl.u32 %v6175_v55, 16  ;;  %v6112_v46 = vld [vmem:[%s6332_s6 + $0x38] sm:$0xff] }
  0x1d   : > { %v671_v2 = vsel %vm643_vm3, %v666_v61, %v670_v62  ;;  %v2703_v9 = vshll.u32 %v6176_v5, 16  ;;  %v3895_v10 = vrot.slane %v6176_v5, 1  ;;  %v674_v11 = vor.u32 %v672_v6, %v670_v62  ;;  %v6180_v61 = vld [vmem:[%s6332_s6 + $0x50] sm:$0xff] }
  0x1e   : > { %v2698_v3 = vsel %vm643_vm3, %v2693_v63, %v2697_v0  ;;  %v678_v12 = vrot.slane %v676_v7, 1  ;;  %v2701_v13 = vor.u32 %v2699_v8, %v2697_v0  ;;  %v680_v20 = vshrl.u32 %v6109_v4, 16 }
  0x1f   : > { %v2705_v14 = vrot.slane %v2703_v9, 1  ;;  %v3896_v15 = vsel %vm3887_vm2, %v3893_v60, %v3895_v10  ;;  %v2707_v22 = vshrl.u32 %v6176_v5, 16  ;;  %v2711_v23 = vshll.u32 %v6177_v19, 16  ;;  %v6113_v60 = vld [vmem:[%s6332_s6 + $0x40] sm:$0xff] }
  0x20   : > { %v679_v16 = vsel %vm643_vm3, %v674_v11, %v678_v12  ;;  %v3897_v24 = vrot.slane %v6177_v19, 1  ;;  %v682_v25 = vor.u32 %v680_v20, %v678_v12  ;;  %v688_v34 = vshrl.u32 %v6110_v18, 16  ;;  %v6181_v11 = vld [vmem:[%s6332_s6 + $0x58] sm:$0xff] }
  0x21   : > { %v2706_v17 = vsel %vm643_vm3, %v2701_v13, %v2705_v14  ;;  %v2709_v27 = vor.u32 %v2707_v22, %v2705_v14  ;;  %v2713_v28 = vrot.slane %v2711_v23, 1  ;;  %v692_v35 = vshll.u32 %v6111_v32, 16 }
  0x22   : > { %5634 = vmatmul.msk.bf16.gmra.mxu1 %vm1181_vm1, %v6106_v21  ;;  %v684_v21 = vshll.u32 %v6110_v18, 16  ;;  %v3898_v29 = vsel %vm3887_vm2, %v3895_v10, %v3897_v24  ;;  %v2715_v36 = vshrl.u32 %v6177_v19, 16  ;;  %v2719_v37 = vshll.u32 %v6178_v33, 16  ;;  %v6114_v10 = vld [vmem:[%s6332_s6 + $0x48] sm:$0xff] }
  0x23   : > { %v2714_v31 = vsel %vm643_vm3, %v2709_v27, %v2713_v28  ;;  %v3899_v38 = vrot.slane %v6178_v33, 1  ;;  %v696_v48 = vshrl.u32 %v6111_v32, 16  ;;  %v700_v49 = vshll.u32 %v6112_v46, 16 }
  0x24   : > { %v686_v26 = vrot.slane %v684_v21, 1  ;;  %v2717_v41 = vor.u32 %v2715_v36, %v2713_v28  ;;  %v2721_v42 = vrot.slane %v2719_v37, 1  ;;  %v2723_v50 = vshrl.u32 %v6178_v33, 16  ;;  %v6427_v33 = vld [vmem:[%s7650_s2] ss:$0 sm:$0xff] }
  0x25   : > { %v3900_v43 = vsel %vm3887_vm2, %v3897_v24, %v3899_v38  ;;  %v704_v62 = vshrl.u32 %v6112_v46, 16  ;;  %v708_v63 = vshll.u32 %v6113_v60, 16  ;;  %v2731_v0 = vshrl.u32 %v6179_v47, 16 }
  0x26   : > { %v687_v30 = vsel %vm643_vm3, %v682_v25, %v686_v26  ;;  %v690_v39 = vor.u32 %v688_v34, %v686_v26  ;;  %v2722_v45 = vsel %vm643_vm3, %v2717_v41, %v2721_v42  ;;  %v2725_v55 = vor.u32 %v2723_v50, %v2721_v42 }
  0x27   : > { %v712_v12 = vshrl.u32 %v6113_v60, 16  ;;  %v716_v13 = vshll.u32 %v6114_v10, 16 }
  0x28   : > { %6038 = vmatmul.msk.bf16.gmra.mxu3 %vm1181_vm1, %v3892_v51  ;;  %v2727_v51 = vshll.u32 %v6179_v47, 16 }
  0x29   : > { %5564 = vmatmul.msk.bf16.gmra.mxu0 %vm1181_vm1, %v663_v52  ;;  %v3901_v52 = vrot.slane %v6179_v47, 1  ;;  %v718_v19 = vrot.slane %v716_v13, 1 }
  0x2a   : > { %v2729_v56 = vrot.slane %v2727_v51, 1 }
  0x2b   : > { %5966 = vmatmul.msk.bf16.gmra.mxu2 %vm1181_vm1, %v2690_v53  ;;  %v3902_v57 = vsel %vm3887_vm2, %v3899_v38, %v3901_v52  ;;  %v2747_v38 = vshrl.u32 %v6181_v11, 16 }
  0x2c   : > { %v2730_v59 = vsel %vm643_vm3, %v2725_v55, %v2729_v56  ;;  %v2733_v5 = vor.u32 %v2731_v0, %v2729_v56 }
  0x32   : > { %5635 = vmatmul.msk.bf16.gmra.mxu1 %vm1181_vm1, %v6107_v40  ;;  %v694_v40 = vrot.slane %v692_v35, 1  ;;  %v720_v35 = vshrl.u32 %v6114_v10, 16 }
  0x34   : > { %v695_v44 = vsel %vm643_vm3, %v690_v39, %v694_v40  ;;  %v698_v53 = vor.u32 %v696_v48, %v694_v40 }
  0x38   : > { %6039 = vmatmul.msk.bf16.gmra.mxu3 %vm1181_vm1, %v3894_v1  ;;  %v2735_v1 = vshll.u32 %v6180_v61, 16 }
  0x39   : > { %5565 = vmatmul.msk.bf16.gmra.mxu0 %vm1181_vm1, %v671_v2  ;;  %v3903_v2 = vrot.slane %v6180_v61, 1 }
  0x3a   : > { %v2737_v6 = vrot.slane %v2735_v1, 1 }
  0x3b   : > { %5967 = vmatmul.msk.bf16.gmra.mxu2 %vm1181_vm1, %v2698_v3  ;;  %v3904_v7 = vsel %vm3887_vm2, %v3901_v52, %v3903_v2 }
  0x3c   : > { %v2738_v9 = vsel %vm643_vm3, %v2733_v5, %v2737_v6 }
  0x42   : > { %5636 = vmatmul.msk.bf16.gmra.mxu1 %vm1181_vm1, %v6108_v54  ;;  %v702_v54 = vrot.slane %v700_v49, 1 }
  0x44   : > { %v703_v58 = vsel %vm643_vm3, %v698_v53, %v702_v54  ;;  %v706_v3 = vor.u32 %v704_v62, %v702_v54  ;;  %v6116_v62 = vld [vmem:[%s6332_s6 + $0x58] sm:$0xff] }
  0x48   : > { %6040 = vmatmul.msk.bf16.gmra.mxu3 %vm1181_vm1, %v3896_v15  ;;  %v2739_v15 = vshrl.u32 %v6180_v61, 16 }
  0x49   : > { %5566 = vmatmul.msk.bf16.gmra.mxu0 %vm1181_vm1, %v679_v16  ;;  %v2743_v16 = vshll.u32 %v6181_v11, 16 }
  0x4a   : > { %v2741_v20 = vor.u32 %v2739_v15, %v2737_v6  ;;  %v732_v6 = vshll.u32 %v6116_v62, 16 }
  0x4b   : > { %5968 = vmatmul.msk.bf16.gmra.mxu2 %vm1181_vm1, %v2706_v17  ;;  %v3905_v17 = vrot.slane %v6181_v11, 1  ;;  %v2745_v21 = vrot.slane %v2743_v16, 1 }
  0x4c   : > { %v734_v15 = vrot.slane %v732_v6, 1 }
  0x4d   : > { %v3906_v22 = vsel %vm3887_vm2, %v3903_v2, %v3905_v17  ;;  %v2746_v25 = vsel %vm643_vm3, %v2741_v20, %v2745_v21 }
  0x52   : > { %5637 = vmatmul.msk.bf16.gmra.mxu1 %vm1181_vm1, %v6109_v4  ;;  %v710_v4 = vrot.slane %v708_v63, 1  ;;  %v6450_v63 = vld [vmem:[%s6332_s6 + $0x68] sm:$0xff] }
  0x53   : > { %v3909_v11 = vrot.slane %v6450_v63, 1 }
  0x54   : > { %v711_v8 = vsel %vm643_vm3, %v706_v3, %v710_v4 }
  0x58   : > { %6041 = vmatmul.msk.bf16.gmra.mxu3 %vm1181_vm1, %v3898_v29  ;;  %v6115_v29 = vld [vmem:[%s6332_s6 + $0x50] sm:$0xff] }
  0x59   : > { %5567 = vmatmul.msk.bf16.gmra.mxu0 %vm1181_vm1, %v687_v30  ;;  %v6422_v30 = vld [vmem:[%s6332_s6 + $0x60] sm:$0xff]  ;;  %v724_v36 = vshll.u32 %v6115_v29, 16  ;;  %v728_v5 = vshrl.u32 %v6115_v29, 16 }
  0x5a   : > { %v2751_v39 = vshll.u32 %v6422_v30, 16  ;;  %v3907_v41 = vrot.slane %v6422_v30, 1 }
  0x5b   : > { %5969 = vmatmul.msk.bf16.gmra.mxu2 %vm1181_vm1, %v2714_v31 }
  0x5c   : > { %v2753_v47 = vrot.slane %v2751_v39, 1  ;;  %v3908_v50 = vsel %vm3887_vm2, %v3905_v17, %v3907_v41  ;;  %v3910_v20 = vsel %vm3887_vm2, %v3907_v41, %v3909_v11 }
  0x62   : > { %5638 = vmatmul.msk.bf16.gmra.mxu1 %vm1181_vm1, %v6110_v18  ;;  %v714_v18 = vor.u32 %v712_v12, %v710_v4 }
  0x64   : > { %v719_v24 = vsel %vm643_vm3, %v714_v18, %v718_v19 }
  0x68   : > { %6042 = vmatmul.msk.bf16.gmra.mxu3 %vm1181_vm1, %v3900_v43 }
  0x69   : > { %5568 = vmatmul.msk.bf16.gmra.mxu0 %vm1181_vm1, %v695_v44  ;;  %v722_v44 = vor.u32 %v720_v35, %v718_v19 }
  0x6b   : > { %5970 = vmatmul.msk.bf16.gmra.mxu2 %vm1181_vm1, %v2722_v45  ;;  %v726_v45 = vrot.slane %v724_v36, 1 }
  0x6d   : > { %v727_v55 = vsel %vm643_vm3, %v722_v44, %v726_v45 }
  0x72   : > { %5639 = vmatmul.msk.bf16.gmra.mxu1 %vm1181_vm1, %v6111_v32 }
  0x78   : > { %6043 = vmatmul.msk.bf16.gmra.mxu3 %vm1181_vm1, %v3902_v57 }
  0x79   : > { %5569 = vmatmul.msk.bf16.gmra.mxu0 %vm1181_vm1, %v703_v58 }
  0x7b   : > { %5971 = vmatmul.msk.bf16.gmra.mxu2 %vm1181_vm1, %v2730_v59 }
  0x82   : > { %5640 = vmatmul.msk.bf16.gmra.mxu1 %vm1181_vm1, %v6112_v46  ;;  %v2749_v46 = vor.u32 %v2747_v38, %v2745_v21 }
  0x84   : > { %v2754_v56 = vsel %vm643_vm3, %v2749_v46, %v2753_v47 }
  0x88   : > { %6044 = vmatmul.msk.bf16.gmra.mxu3 %vm1181_vm1, %v3904_v7 }
  0x89   : > { %5570 = vmatmul.msk.bf16.gmra.mxu0 %vm1181_vm1, %v711_v8  ;;  %v2755_v8 = vshrl.u32 %v6422_v30, 16 }
  0x8b   : > { %5972 = vmatmul.msk.bf16.gmra.mxu2 %vm1181_vm1, %v2738_v9  ;;  %v2759_v9 = vshll.u32 %v6450_v63, 16  ;;  %v2757_v16 = vor.u32 %v2755_v8, %v2753_v47 }
  0x8d   : > { %v2761_v17 = vrot.slane %v2759_v9, 1 }
  0x8f   : > { %v1872_v14 = vpop.f32.mrf.mxu1 }
  0x92   : > { %5641 = vmatmul.msk.bf16.gmra.mxu1 %vm1181_vm1, %v6113_v60 }
  0x96   : > { %v1393_v23 = vpop.f32.mrf.mxu0 }
  0x97   : > { %v1874_v26 = vpop.f32.mrf.mxu1  ;;  %v1873_v27 = vadd.f32 %v1872_v14, %v1393_v23  ;;  %v730_v14 = vor.u32 %v728_v5, %v726_v45 }
  0x98   : > { %6045 = vmatmul.msk.bf16.gmra.mxu3 %vm1181_vm1, %v3906_v22 }
  0x99   : > { %5571 = vmatmul.msk.bf16.gmra.mxu0 %vm1181_vm1, %v719_v24 }
  0x9b   : > { %5973 = vmatmul.msk.bf16.gmra.mxu2 %vm1181_vm1, %v2746_v25  ;;  %v4236_v28 = vpop.f32.mrf.mxu3  ;;  %v735_v25 = vsel %vm643_vm3, %v730_v14, %v734_v15 }
  0x9e   : > { %v3418_v31 = vpop.f32.mrf.mxu2  ;;  %v1395_v34 = vpop.f32.mrf.mxu0 }
  0x9f   : > { %v3748_v32 = vadd.f32 %v3418_v31, %v1873_v27  ;;  %v1877_v37 = vpop.f32.mrf.mxu1  ;;  %v1875_v49 = vadd.f32 %v1874_v26, %v1395_v34  ;;  %v2762_v26 = vsel %vm643_vm3, %v2757_v16, %v2761_v17  ;;  %v6470_v34 = vld [vmem:[%s6332_s6 + $0x70] sm:$0xff] }
  0xa0   : > { %v2767_v44 = vshll.u32 %v6470_v34, 16  ;;  %v3911_v46 = vrot.slane %v6470_v34, 1 }
  0xa1   : > { %v4566_v40 = vadd.f32 %v4236_v28, %v3748_v32  ;;  %v6117_v32 = vld [vmem:[%s6332_s6 + $0x60] sm:$0xff] }
  0xa2   : > { %5642 = vmatmul.msk.bf16.gmra.mxu1 %vm1181_vm1, %v6114_v10  ;;  %v740_v41 = vshll.u32 %v6117_v32, 16 }
  0xa3   : > { %v4702_v42 = vadd.f32 %v6427_v33, %v4566_v40  ;;  %v4238_v43 = vpop.f32.mrf.mxu3  ;;  %v736_v40 = vshrl.u32 %v6116_v62, 16 }
  0xa5   : > { %v4834_v48 = vmax.f32 %v4702_v42, 0.0 }
  0xa6   : > { %v3420_v51 = vpop.f32.mrf.mxu2  ;;  %v1398_v54 = vpop.f32.mrf.mxu0 }
  0xa7   : > { %v4966_v52 = vpack.c.bf16 %v4834_v48, %v4834_v48  ;;  %v3749_v53 = vadd.f32 %v3420_v51, %v1875_v49  ;;  %v1879_v57 = vpop.f32.mrf.mxu1  ;;  %v1878_v60 = vadd.f32 %v1877_v37, %v1398_v54  ;;  %v738_v49 = vor.u32 %v736_v40, %v734_v15 }
  0xa8   : > { %6046 = vmatmul.msk.bf16.gmra.mxu3 %vm1181_vm1, %v3908_v50  ;;  %v742_v50 = vrot.slane %v740_v41, 1 }
  0xa9   : > { %5099 = vst.msk [vmem:[%s6438_s14] sm:$0xf] %vm5098_vm4, %v4966_v52  ;;  %v4567_v58 = vadd.f32 %v4238_v43, %v3749_v53  ;;  %5572 = vmatmul.msk.bf16.gmra.mxu0 %vm1181_vm1, %v727_v55  ;;  %v2763_v43 = vshrl.u32 %v6450_v63, 16  ;;  %v2769_v52 = vrot.slane %v2767_v44, 1  ;;  %v3912_v55 = vsel %vm3887_vm2, %v3909_v11, %v3911_v46 }
  0xab   : > { %v4703_v59 = vadd.f32 %v6427_v33, %v4567_v58  ;;  %5974 = vmatmul.msk.bf16.gmra.mxu2 %vm1181_vm1, %v2754_v56  ;;  %v4241_v61 = vpop.f32.mrf.mxu3  ;;  %v2765_v51 = vor.u32 %v2763_v43, %v2761_v17 }
  0xad   : > { %v4835_v0 = vmax.f32 %v4703_v59, 0.0 }
  0xae   : > { %v3423_v1 = vpop.f32.mrf.mxu2  ;;  %v1400_v4 = vpop.f32.mrf.mxu0 }
  0xaf   : > { %v4967_v2 = vpack.c.bf16 %v4835_v0, %v4835_v0  ;;  %v3750_v3 = vadd.f32 %v3423_v1, %v1878_v60  ;;  %v1882_v7 = vpop.f32.mrf.mxu1  ;;  %v1880_v19 = vadd.f32 %v1879_v57, %v1400_v4  ;;  %v743_v60 = vsel %vm643_vm3, %v738_v49, %v742_v50  ;;  %v6490_v4 = vld [vmem:[%s6332_s6 + $0x78] sm:$0xff] }
  0xb0   : > { %v2775_v14 = vshll.u32 %v6490_v4, 16  ;;  %v3913_v16 = vrot.slane %v6490_v4, 1 }
  0xb1   : > { %5100 = vst.msk [vmem:[%s6438_s14 + $0x4] sm:$0xf] %vm5098_vm4, %v4967_v2  ;;  %v4568_v10 = vadd.f32 %v4241_v61, %v3750_v3  ;;  %v2770_v61 = vsel %vm643_vm3, %v2765_v51, %v2769_v52  ;;  %v6118_v3 = vld [vmem:[%s6332_s6 + $0x68] sm:$0xff] }
  0xb2   : > { %5643 = vmatmul.msk.bf16.gmra.mxu1 %vm1181_vm1, %v6115_v29  ;;  %v748_v11 = vshll.u32 %v6118_v3, 16 }
  0xb3   : > { %v4704_v12 = vadd.f32 %v6427_v33, %v4568_v10  ;;  %v4243_v13 = vpop.f32.mrf.mxu3  ;;  %v744_v10 = vshrl.u32 %v6117_v32, 16 }
  0xb5   : > { %v4836_v18 = vmax.f32 %v4704_v12, 0.0 }
  0xb6   : > { %v3425_v21 = vpop.f32.mrf.mxu2  ;;  %v1403_v24 = vpop.f32.mrf.mxu0 }
  0xb7   : > { %v4968_v22 = vpack.c.bf16 %v4836_v18, %v4836_v18  ;;  %v3751_v23 = vadd.f32 %v3425_v21, %v1880_v19  ;;  %v1884_v27 = vpop.f32.mrf.mxu1  ;;  %v1883_v30 = vadd.f32 %v1882_v7, %v1403_v24  ;;  %v746_v19 = vor.u32 %v744_v10, %v742_v50 }
  0xb8   : > { %6047 = vmatmul.msk.bf16.gmra.mxu3 %vm1181_vm1, %v3910_v20  ;;  %v750_v20 = vrot.slane %v748_v11, 1 }
  0xb9   : > { %5101 = vst.msk [vmem:[%s6438_s14 + $0x8] sm:$0xf] %vm5098_vm4, %v4968_v22  ;;  %v4569_v28 = vadd.f32 %v4243_v13, %v3751_v23  ;;  %5573 = vmatmul.msk.bf16.gmra.mxu0 %vm1181_vm1, %v735_v25  ;;  %v2771_v13 = vshrl.u32 %v6470_v34, 16  ;;  %v2777_v22 = vrot.slane %v2775_v14, 1  ;;  %v3914_v25 = vsel %vm3887_vm2, %v3911_v46, %v3913_v16 }
  0xbb   : > { %v4705_v29 = vadd.f32 %v6427_v33, %v4569_v28  ;;  %5975 = vmatmul.msk.bf16.gmra.mxu2 %vm1181_vm1, %v2762_v26  ;;  %v4246_v31 = vpop.f32.mrf.mxu3  ;;  %v2773_v21 = vor.u32 %v2771_v13, %v2769_v52 }
  0xbd   : > { %v4837_v35 = vmax.f32 %v4705_v29, 0.0 }
  0xbe   : > { %v3428_v36 = vpop.f32.mrf.mxu2  ;;  %v1405_v39 = vpop.f32.mrf.mxu0 }
  0xbf   : > { %v4969_v37 = vpack.c.bf16 %v4837_v35, %v4837_v35  ;;  %v3752_v38 = vadd.f32 %v3428_v36, %v1883_v30  ;;  %v1887_v42 = vpop.f32.mrf.mxu1  ;;  %v1885_v54 = vadd.f32 %v1884_v27, %v1405_v39  ;;  %v751_v30 = vsel %vm643_vm3, %v746_v19, %v750_v20  ;;  %v6510_v39 = vld [vmem:[%s6332_s6 + $0x80] sm:$0xff] }
  0xc0   : > { %v2783_v49 = vshll.u32 %v6510_v39, 16  ;;  %v3915_v51 = vrot.slane %v6510_v39, 1 }
  0xc1   : > { %5102 = vst.msk [vmem:[%s6438_s14 + $0xc] sm:$0xf] %vm5098_vm4, %v4969_v37  ;;  %v4570_v45 = vadd.f32 %v4246_v31, %v3752_v38  ;;  %v2778_v31 = vsel %vm643_vm3, %v2773_v21, %v2777_v22  ;;  %v6119_v38 = vld [vmem:[%s6332_s6 + $0x70] sm:$0xff] }
  0xc2   : > { %5644 = vmatmul.msk.bf16.gmra.mxu1 %vm1181_vm1, %v6116_v62  ;;  %v756_v46 = vshll.u32 %v6119_v38, 16 }
  0xc3   : > { %v4706_v47 = vadd.f32 %v6427_v33, %v4570_v45  ;;  %v4248_v48 = vpop.f32.mrf.mxu3  ;;  %v752_v45 = vshrl.u32 %v6118_v3, 16 }
  0xc5   : > { %v4838_v53 = vmax.f32 %v4706_v47, 0.0 }
  0xc6   : > { %v3430_v56 = vpop.f32.mrf.mxu2  ;;  %v1408_v59 = vpop.f32.mrf.mxu0 }
  0xc7   : > { %v4970_v57 = vpack.c.bf16 %v4838_v53, %v4838_v53  ;;  %v3753_v58 = vadd.f32 %v3430_v56, %v1885_v54  ;;  %v1889_v62 = vpop.f32.mrf.mxu1  ;;  %v1888_v1 = vadd.f32 %v1887_v42, %v1408_v59  ;;  %v754_v54 = vor.u32 %v752_v45, %v750_v20 }
  0xc8   : > { %6048 = vmatmul.msk.bf16.gmra.mxu3 %vm1181_vm1, %v3912_v55  ;;  %v758_v55 = vrot.slane %v756_v46, 1 }
  0xc9   : > { %5103 = vst.msk [vmem:[%s6438_s14 + $0x10] sm:$0xf] %vm5098_vm4, %v4970_v57  ;;  %v4571_v63 = vadd.f32 %v4248_v48, %v3753_v58  ;;  %5574 = vmatmul.msk.bf16.gmra.mxu0 %vm1181_vm1, %v743_v60  ;;  %v2779_v48 = vshrl.u32 %v6490_v4, 16  ;;  %v2785_v57 = vrot.slane %v2783_v49, 1  ;;  %v3916_v60 = vsel %vm3887_vm2, %v3913_v16, %v3915_v51 }
  0xcb   : > { %v4707_v0 = vadd.f32 %v6427_v33, %v4571_v63  ;;  %5976 = vmatmul.msk.bf16.gmra.mxu2 %vm1181_vm1, %v2770_v61  ;;  %v4251_v2 = vpop.f32.mrf.mxu3  ;;  %v2781_v56 = vor.u32 %v2779_v48, %v2777_v22 }
  0xcd   : > { %v4839_v5 = vmax.f32 %v4707_v0, 0.0 }
  0xce   : > { %v3433_v6 = vpop.f32.mrf.mxu2  ;;  %v1410_v9 = vpop.f32.mrf.mxu0 }
  0xcf   : > { %v4971_v7 = vpack.c.bf16 %v4839_v5, %v4839_v5  ;;  %v3754_v8 = vadd.f32 %v3433_v6, %v1888_v1  ;;  %v1892_v12 = vpop.f32.mrf.mxu1  ;;  %v1890_v24 = vadd.f32 %v1889_v62, %v1410_v9  ;;  %v759_v1 = vsel %vm643_vm3, %v754_v54, %v758_v55  ;;  %v6530_v9 = vld [vmem:[%s6332_s6 + $0x88] sm:$0xff] }
  0xd0   : > { %v2791_v19 = vshll.u32 %v6530_v9, 16  ;;  %v3917_v21 = vrot.slane %v6530_v9, 1 }
  0xd1   : > { %5104 = vst.msk [vmem:[%s6438_s14 + $0x14] sm:$0xf] %vm5098_vm4, %v4971_v7  ;;  %v4572_v15 = vadd.f32 %v4251_v2, %v3754_v8  ;;  %v2786_v2 = vsel %vm643_vm3, %v2781_v56, %v2785_v57  ;;  %v6120_v8 = vld [vmem:[%s6332_s6 + $0x78] sm:$0xff] }
  0xd2   : > { %5645 = vmatmul.msk.bf16.gmra.mxu1 %vm1181_vm1, %v6117_v32  ;;  %v764_v16 = vshll.u32 %v6120_v8, 16 }
  0xd3   : > { %v4708_v17 = vadd.f32 %v6427_v33, %v4572_v15  ;;  %v4253_v18 = vpop.f32.mrf.mxu3  ;;  %v760_v15 = vshrl.u32 %v6119_v38, 16 }
  0xd5   : > { %v4840_v23 = vmax.f32 %v4708_v17, 0.0 }
  0xd6   : > { %v3435_v26 = vpop.f32.mrf.mxu2  ;;  %v1413_v29 = vpop.f32.mrf.mxu0 }
  0xd7   : > { %v4972_v27 = vpack.c.bf16 %v4840_v23, %v4840_v23  ;;  %v3755_v28 = vadd.f32 %v3435_v26, %v1890_v24  ;;  %v1894_v32 = vpop.f32.mrf.mxu1  ;;  %v1893_v36 = vadd.f32 %v1892_v12, %v1413_v29  ;;  %v762_v24 = vor.u32 %v760_v15, %v758_v55 }
  0xd8   : > { %6049 = vmatmul.msk.bf16.gmra.mxu3 %vm1181_vm1, %v3914_v25  ;;  %v766_v25 = vrot.slane %v764_v16, 1 }
  0xd9   : > { %5105 = vst.msk [vmem:[%s6438_s14 + $0x18] sm:$0xf] %vm5098_vm4, %v4972_v27  ;;  %v4573_v34 = vadd.f32 %v4253_v18, %v3755_v28  ;;  %5575 = vmatmul.msk.bf16.gmra.mxu0 %vm1181_vm1, %v751_v30  ;;  %v2787_v18 = vshrl.u32 %v6510_v39, 16  ;;  %v2793_v27 = vrot.slane %v2791_v19, 1  ;;  %v3918_v30 = vsel %vm3887_vm2, %v3915_v51, %v3917_v21 }
  0xdb   : > { %v4709_v35 = vadd.f32 %v6427_v33, %v4573_v34  ;;  %5977 = vmatmul.msk.bf16.gmra.mxu2 %vm1181_vm1, %v2778_v31  ;;  %v4256_v37 = vpop.f32.mrf.mxu3  ;;  %v2789_v26 = vor.u32 %v2787_v18, %v2785_v57 }
  0xdd   : > { %v4841_v40 = vmax.f32 %v4709_v35, 0.0 }
  0xde   : > { %v3438_v41 = vpop.f32.mrf.mxu2  ;;  %v1415_v44 = vpop.f32.mrf.mxu0 }
  0xdf   : > { %v4973_v42 = vpack.c.bf16 %v4841_v40, %v4841_v40  ;;  %v3756_v43 = vadd.f32 %v3438_v41, %v1893_v36  ;;  %v1897_v47 = vpop.f32.mrf.mxu1  ;;  %v1895_v59 = vadd.f32 %v1894_v32, %v1415_v44  ;;  %v767_v36 = vsel %vm643_vm3, %v762_v24, %v766_v25  ;;  %v6550_v44 = vld [vmem:[%s6332_s6 + $0x90] sm:$0xff] }
  0xe0   : > { %v2799_v54 = vshll.u32 %v6550_v44, 16  ;;  %v3919_v56 = vrot.slane %v6550_v44, 1 }
  0xe1   : > { %5106 = vst.msk [vmem:[%s6438_s14 + $0x1c] sm:$0xf] %vm5098_vm4, %v4973_v42  ;;  %v4574_v50 = vadd.f32 %v4256_v37, %v3756_v43  ;;  %v2794_v37 = vsel %vm643_vm3, %v2789_v26, %v2793_v27  ;;  %v6121_v43 = vld [vmem:[%s6332_s6 + $0x80] sm:$0xff] }
  0xe2   : > { %5646 = vmatmul.msk.bf16.gmra.mxu1 %vm1181_vm1, %v6118_v3  ;;  %v772_v51 = vshll.u32 %v6121_v43, 16 }
  0xe3   : > { %v4710_v52 = vadd.f32 %v6427_v33, %v4574_v50  ;;  %v4258_v53 = vpop.f32.mrf.mxu3  ;;  %v768_v50 = vshrl.u32 %v6120_v8, 16 }
  0xe5   : > { %v4842_v58 = vmax.f32 %v4710_v52, 0.0 }
  0xe6   : > { %v3440_v61 = vpop.f32.mrf.mxu2  ;;  %v1418_v0 = vpop.f32.mrf.mxu0 }
  0xe7   : > { %v4974_v62 = vpack.c.bf16 %v4842_v58, %v4842_v58  ;;  %v3757_v63 = vadd.f32 %v3440_v61, %v1895_v59  ;;  %v1899_v3 = vpop.f32.mrf.mxu1  ;;  %v1898_v6 = vadd.f32 %v1897_v47, %v1418_v0  ;;  %v770_v59 = vor.u32 %v768_v50, %v766_v25 }
  0xe8   : > { %6050 = vmatmul.msk.bf16.gmra.mxu3 %vm1181_vm1, %v3916_v60  ;;  %v774_v60 = vrot.slane %v772_v51, 1 }
  0xe9   : > { %5107 = vst.msk [vmem:[%s6438_s14 + $0x20] sm:$0xf] %vm5098_vm4, %v4974_v62  ;;  %v4575_v4 = vadd.f32 %v4258_v53, %v3757_v63  ;;  %5576 = vmatmul.msk.bf16.gmra.mxu0 %vm1181_vm1, %v759_v1  ;;  %v2795_v53 = vshrl.u32 %v6530_v9, 16  ;;  %v2801_v62 = vrot.slane %v2799_v54, 1  ;;  %v3920_v1 = vsel %vm3887_vm2, %v3917_v21, %v3919_v56 }
  0xeb   : > { %v4711_v5 = vadd.f32 %v6427_v33, %v4575_v4  ;;  %5978 = vmatmul.msk.bf16.gmra.mxu2 %vm1181_vm1, %v2786_v2  ;;  %v4261_v7 = vpop.f32.mrf.mxu3  ;;  %v2797_v61 = vor.u32 %v2795_v53, %v2793_v27 }
  0xed   : > { %v4843_v10 = vmax.f32 %v4711_v5, 0.0 }
  0xee   : > { %v3443_v11 = vpop.f32.mrf.mxu2  ;;  %v1420_v14 = vpop.f32.mrf.mxu0 }
  0xef   : > { %v4975_v12 = vpack.c.bf16 %v4843_v10, %v4843_v10  ;;  %v3758_v13 = vadd.f32 %v3443_v11, %v1898_v6  ;;  %v1902_v17 = vpop.f32.mrf.mxu1  ;;  %v1900_v29 = vadd.f32 %v1899_v3, %v1420_v14  ;;  %v775_v6 = vsel %vm643_vm3, %v770_v59, %v774_v60  ;;  %v6570_v14 = vld [vmem:[%s6332_s6 + $0x98] sm:$0xff] }
  0xf0   : > { %v2807_v24 = vshll.u32 %v6570_v14, 16  ;;  %v3921_v26 = vrot.slane %v6570_v14, 1 }
  0xf1   : > { %5108 = vst.msk [vmem:[%s6438_s14 + $0x24] sm:$0xf] %vm5098_vm4, %v4975_v12  ;;  %v4576_v20 = vadd.f32 %v4261_v7, %v3758_v13  ;;  %v2802_v7 = vsel %vm643_vm3, %v2797_v61, %v2801_v62  ;;  %v6122_v13 = vld [vmem:[%s6332_s6 + $0x88] sm:$0xff] }
  0xf2   : > { %5647 = vmatmul.msk.bf16.gmra.mxu1 %vm1181_vm1, %v6119_v38  ;;  %v780_v21 = vshll.u32 %v6122_v13, 16 }
  0xf3   : > { %v4712_v22 = vadd.f32 %v6427_v33, %v4576_v20  ;;  %v4263_v23 = vpop.f32.mrf.mxu3  ;;  %v776_v20 = vshrl.u32 %v6121_v43, 16 }
  0xf5   : > { %v4844_v28 = vmax.f32 %v4712_v22, 0.0 }
  0xf6   : > { %v3445_v31 = vpop.f32.mrf.mxu2  ;;  %v1423_v35 = vpop.f32.mrf.mxu0 }
  0xf7   : > { %v4976_v32 = vpack.c.bf16 %v4844_v28, %v4844_v28  ;;  %v3759_v34 = vadd.f32 %v3445_v31, %v1900_v29  ;;  %v1904_v38 = vpop.f32.mrf.mxu1  ;;  %v1903_v41 = vadd.f32 %v1902_v17, %v1423_v35  ;;  %v778_v29 = vor.u32 %v776_v20, %v774_v60 }
  0xf8   : > { %6051 = vmatmul.msk.bf16.gmra.mxu3 %vm1181_vm1, %v3918_v30  ;;  %v782_v30 = vrot.slane %v780_v21, 1 }
  0xf9   : > { %5109 = vst.msk [vmem:[%s6438_s14 + $0x28] sm:$0xf] %vm5098_vm4, %v4976_v32  ;;  %v4577_v39 = vadd.f32 %v4263_v23, %v3759_v34  ;;  %5577 = vmatmul.msk.bf16.gmra.mxu0 %vm1181_vm1, %v767_v36  ;;  %v2803_v23 = vshrl.u32 %v6550_v44, 16  ;;  %v2809_v32 = vrot.slane %v2807_v24, 1  ;;  %v3922_v36 = vsel %vm3887_vm2, %v3919_v56, %v3921_v26 }
  0xfb   : > { %v4713_v40 = vadd.f32 %v6427_v33, %v4577_v39  ;;  %5979 = vmatmul.msk.bf16.gmra.mxu2 %vm1181_vm1, %v2794_v37  ;;  %v4266_v42 = vpop.f32.mrf.mxu3  ;;  %v2805_v31 = vor.u32 %v2803_v23, %v2801_v62 }
  0xfd   : > { %v4845_v45 = vmax.f32 %v4713_v40, 0.0 }
  0xfe   : > { %v3448_v46 = vpop.f32.mrf.mxu2  ;;  %v1425_v49 = vpop.f32.mrf.mxu0 }
  0xff   : > { %v4977_v47 = vpack.c.bf16 %v4845_v45, %v4845_v45  ;;  %v3760_v48 = vadd.f32 %v3448_v46, %v1903_v41  ;;  %v1907_v52 = vpop.f32.mrf.mxu1  ;;  %v1905_v0 = vadd.f32 %v1904_v38, %v1425_v49  ;;  %v783_v41 = vsel %vm643_vm3, %v778_v29, %v782_v30  ;;  %v6590_v49 = vld [vmem:[%s6332_s6 + $0xa0] sm:$0xff] }
 0x100   : > { %v2815_v59 = vshll.u32 %v6590_v49, 16  ;;  %v3923_v61 = vrot.slane %v6590_v49, 1 }
 0x101   : > { %5110 = vst.msk [vmem:[%s6438_s14 + $0x2c] sm:$0xf] %vm5098_vm4, %v4977_v47  ;;  %v4578_v55 = vadd.f32 %v4266_v42, %v3760_v48  ;;  %v2810_v42 = vsel %vm643_vm3, %v2805_v31, %v2809_v32  ;;  %v6123_v48 = vld [vmem:[%s6332_s6 + $0x90] sm:$0xff] }
 0x102   : > { %5648 = vmatmul.msk.bf16.gmra.mxu1 %vm1181_vm1, %v6120_v8  ;;  %v788_v56 = vshll.u32 %v6123_v48, 16 }
 0x103   : > { %v4714_v57 = vadd.f32 %v6427_v33, %v4578_v55  ;;  %v4268_v58 = vpop.f32.mrf.mxu3  ;;  %v784_v55 = vshrl.u32 %v6122_v13, 16 }
 0x105   : > { %v4846_v63 = vmax.f32 %v4714_v57, 0.0 }
 0x106   : > { %v3450_v2 = vpop.f32.mrf.mxu2  ;;  %v1428_v5 = vpop.f32.mrf.mxu0 }
 0x107   : > { %v4978_v3 = vpack.c.bf16 %v4846_v63, %v4846_v63  ;;  %v3761_v4 = vadd.f32 %v3450_v2, %v1905_v0  ;;  %v1909_v8 = vpop.f32.mrf.mxu1  ;;  %v1908_v11 = vadd.f32 %v1907_v52, %v1428_v5  ;;  %v786_v0 = vor.u32 %v784_v55, %v782_v30 }
 0x108   : > { %6052 = vmatmul.msk.bf16.gmra.mxu3 %vm1181_vm1, %v3920_v1  ;;  %v790_v1 = vrot.slane %v788_v56, 1 }
 0x109   : > { %5111 = vst.msk [vmem:[%s6438_s14 + $0x30] sm:$0xf] %vm5098_vm4, %v4978_v3  ;;  %v4579_v9 = vadd.f32 %v4268_v58, %v3761_v4  ;;  %5578 = vmatmul.msk.bf16.gmra.mxu0 %vm1181_vm1, %v775_v6  ;;  %v2811_v58 = vshrl.u32 %v6570_v14, 16  ;;  %v2817_v3 = vrot.slane %v2815_v59, 1  ;;  %v3924_v6 = vsel %vm3887_vm2, %v3921_v26, %v3923_v61 }
 0x10b   : > { %v4715_v10 = vadd.f32 %v6427_v33, %v4579_v9  ;;  %5980 = vmatmul.msk.bf16.gmra.mxu2 %vm1181_vm1, %v2802_v7  ;;  %v4271_v12 = vpop.f32.mrf.mxu3  ;;  %v2813_v2 = vor.u32 %v2811_v58, %v2809_v32 }
 0x10d   : > { %v4847_v15 = vmax.f32 %v4715_v10, 0.0 }
 0x10e   : > { %v3453_v16 = vpop.f32.mrf.mxu2  ;;  %v1430_v19 = vpop.f32.mrf.mxu0 }
 0x10f   : > { %v4979_v17 = vpack.c.bf16 %v4847_v15, %v4847_v15  ;;  %v3762_v18 = vadd.f32 %v3453_v16, %v1908_v11  ;;  %v1912_v22 = vpop.f32.mrf.mxu1  ;;  %v1910_v35 = vadd.f32 %v1909_v8, %v1430_v19  ;;  %v791_v11 = vsel %vm643_vm3, %v786_v0, %v790_v1  ;;  %v6610_v19 = vld [vmem:[%s6332_s6 + $0xa8] sm:$0xff] }
 0x110   : > { %v2823_v29 = vshll.u32 %v6610_v19, 16  ;;  %v3925_v31 = vrot.slane %v6610_v19, 1 }
 0x111   : > { %5112 = vst.msk [vmem:[%s6438_s14 + $0x34] sm:$0xf] %vm5098_vm4, %v4979_v17  ;;  %v4580_v25 = vadd.f32 %v4271_v12, %v3762_v18  ;;  %v2818_v12 = vsel %vm643_vm3, %v2813_v2, %v2817_v3  ;;  %v6124_v18 = vld [vmem:[%s6332_s6 + $0x98] sm:$0xff] }
 0x112   : > { %5649 = vmatmul.msk.bf16.gmra.mxu1 %vm1181_vm1, %v6121_v43  ;;  %v796_v26 = vshll.u32 %v6124_v18, 16 }
 0x113   : > { %v4716_v27 = vadd.f32 %v6427_v33, %v4580_v25  ;;  %v4273_v28 = vpop.f32.mrf.mxu3  ;;  %v792_v25 = vshrl.u32 %v6123_v48, 16 }
 0x115   : > { %v4848_v34 = vmax.f32 %v4716_v27, 0.0 }
 0x116   : > { %v3455_v37 = vpop.f32.mrf.mxu2  ;;  %v1433_v40 = vpop.f32.mrf.mxu0 }
 0x117   : > { %v4980_v38 = vpack.c.bf16 %v4848_v34, %v4848_v34  ;;  %v3763_v39 = vadd.f32 %v3455_v37, %v1910_v35  ;;  %v1914_v43 = vpop.f32.mrf.mxu1  ;;  %v1913_v46 = vadd.f32 %v1912_v22, %v1433_v40  ;;  %v794_v35 = vor.u32 %v792_v25, %v790_v1 }
 0x118   : > { %6053 = vmatmul.msk.bf16.gmra.mxu3 %vm1181_vm1, %v3922_v36  ;;  %v798_v36 = vrot.slane %v796_v26, 1 }
 0x119   : > { %5113 = vst.msk [vmem:[%s6438_s14 + $0x38] sm:$0xf] %vm5098_vm4, %v4980_v38  ;;  %v4581_v44 = vadd.f32 %v4273_v28, %v3763_v39  ;;  %5579 = vmatmul.msk.bf16.gmra.mxu0 %vm1181_vm1, %v783_v41  ;;  %v2819_v28 = vshrl.u32 %v6590_v49, 16  ;;  %v2825_v38 = vrot.slane %v2823_v29, 1  ;;  %v3926_v41 = vsel %vm3887_vm2, %v3923_v61, %v3925_v31 }
 0x11b   : > { %v4717_v45 = vadd.f32 %v6427_v33, %v4581_v44  ;;  %5981 = vmatmul.msk.bf16.gmra.mxu2 %vm1181_vm1, %v2810_v42  ;;  %v4276_v47 = vpop.f32.mrf.mxu3  ;;  %v2821_v37 = vor.u32 %v2819_v28, %v2817_v3 }
 0x11d   : > { %v4849_v50 = vmax.f32 %v4717_v45, 0.0 }
 0x11e   : > { %v3458_v51 = vpop.f32.mrf.mxu2  ;;  %v1435_v54 = vpop.f32.mrf.mxu0 }
 0x11f   : > { %v4981_v52 = vpack.c.bf16 %v4849_v50, %v4849_v50  ;;  %v3764_v53 = vadd.f32 %v3458_v51, %v1913_v46  ;;  %v1917_v57 = vpop.f32.mrf.mxu1  ;;  %v1915_v5 = vadd.f32 %v1914_v43, %v1435_v54  ;;  %v799_v46 = vsel %vm643_vm3, %v794_v35, %v798_v36  ;;  %v6630_v54 = vld [vmem:[%s6332_s6 + $0xb0] sm:$0xff] }
 0x120   : > { %v2831_v0 = vshll.u32 %v6630_v54, 16  ;;  %v3927_v2 = vrot.slane %v6630_v54, 1 }
 0x121   : > { %5114 = vst.msk [vmem:[%s6438_s14 + $0x3c] sm:$0xf] %vm5098_vm4, %v4981_v52  ;;  %v4582_v60 = vadd.f32 %v4276_v47, %v3764_v53  ;;  %v2826_v47 = vsel %vm643_vm3, %v2821_v37, %v2825_v38  ;;  %v6125_v53 = vld [vmem:[%s6332_s6 + $0xa0] sm:$0xff] }
 0x122   : > { %5650 = vmatmul.msk.bf16.gmra.mxu1 %vm1181_vm1, %v6122_v13  ;;  %v804_v61 = vshll.u32 %v6125_v53, 16 }
 0x123   : > { %v4718_v62 = vadd.f32 %v6427_v33, %v4582_v60  ;;  %v4278_v63 = vpop.f32.mrf.mxu3  ;;  %v800_v60 = vshrl.u32 %v6124_v18, 16 }
 0x125   : > { %v4850_v4 = vmax.f32 %v4718_v62, 0.0 }
 0x126   : > { %v3460_v7 = vpop.f32.mrf.mxu2  ;;  %v1438_v10 = vpop.f32.mrf.mxu0 }
 0x127   : > { %v4982_v8 = vpack.c.bf16 %v4850_v4, %v4850_v4  ;;  %v3765_v9 = vadd.f32 %v3460_v7, %v1915_v5  ;;  %v1919_v13 = vpop.f32.mrf.mxu1  ;;  %v1918_v16 = vadd.f32 %v1917_v57, %v1438_v10  ;;  %v802_v5 = vor.u32 %v800_v60, %v798_v36 }
 0x128   : > { %6054 = vmatmul.msk.bf16.gmra.mxu3 %vm1181_vm1, %v3924_v6  ;;  %v806_v6 = vrot.slane %v804_v61, 1 }
 0x129   : > { %5115 = vst.msk [vmem:[%s6438_s14 + $0x40] sm:$0xf] %vm5098_vm4, %v4982_v8  ;;  %v4583_v14 = vadd.f32 %v4278_v63, %v3765_v9  ;;  %5580 = vmatmul.msk.bf16.gmra.mxu0 %vm1181_vm1, %v791_v11  ;;  %v2827_v63 = vshrl.u32 %v6610_v19, 16  ;;  %v2833_v8 = vrot.slane %v2831_v0, 1  ;;  %v3928_v11 = vsel %vm3887_vm2, %v3925_v31, %v3927_v2 }
 0x12b   : > { %v4719_v15 = vadd.f32 %v6427_v33, %v4583_v14  ;;  %5982 = vmatmul.msk.bf16.gmra.mxu2 %vm1181_vm1, %v2818_v12  ;;  %v4281_v17 = vpop.f32.mrf.mxu3  ;;  %v2829_v7 = vor.u32 %v2827_v63, %v2825_v38 }
 0x12d   : > { %v4851_v20 = vmax.f32 %v4719_v15, 0.0 }
 0x12e   : > { %v3463_v21 = vpop.f32.mrf.mxu2  ;;  %v1440_v24 = vpop.f32.mrf.mxu0 }
 0x12f   : > { %v4983_v22 = vpack.c.bf16 %v4851_v20, %v4851_v20  ;;  %v3766_v23 = vadd.f32 %v3463_v21, %v1918_v16  ;;  %v1922_v27 = vpop.f32.mrf.mxu1  ;;  %v1920_v40 = vadd.f32 %v1919_v13, %v1440_v24  ;;  %v807_v16 = vsel %vm643_vm3, %v802_v5, %v806_v6  ;;  %v6650_v24 = vld [vmem:[%s6332_s6 + $0xb8] sm:$0xff] }
 0x130   : > { %v2839_v35 = vshll.u32 %v6650_v24, 16  ;;  %v3929_v37 = vrot.slane %v6650_v24, 1 }
 0x131   : > { %5116 = vst.msk [vmem:[%s6438_s14 + $0x44] sm:$0xf] %vm5098_vm4, %v4983_v22  ;;  %v4584_v30 = vadd.f32 %v4281_v17, %v3766_v23  ;;  %v2834_v17 = vsel %vm643_vm3, %v2829_v7, %v2833_v8  ;;  %v6126_v23 = vld [vmem:[%s6332_s6 + $0xa8] sm:$0xff] }
 0x132   : > { %5651 = vmatmul.msk.bf16.gmra.mxu1 %vm1181_vm1, %v6123_v48  ;;  %v812_v31 = vshll.u32 %v6126_v23, 16 }
 0x133   : > { %v4720_v32 = vadd.f32 %v6427_v33, %v4584_v30  ;;  %v4283_v34 = vpop.f32.mrf.mxu3  ;;  %v808_v30 = vshrl.u32 %v6125_v53, 16 }
 0x135   : > { %v4852_v39 = vmax.f32 %v4720_v32, 0.0 }
 0x136   : > { %v3465_v42 = vpop.f32.mrf.mxu2  ;;  %v1443_v45 = vpop.f32.mrf.mxu0 }
 0x137   : > { %v4984_v43 = vpack.c.bf16 %v4852_v39, %v4852_v39  ;;  %v3767_v44 = vadd.f32 %v3465_v42, %v1920_v40  ;;  %v1924_v48 = vpop.f32.mrf.mxu1  ;;  %v1923_v51 = vadd.f32 %v1922_v27, %v1443_v45  ;;  %v810_v40 = vor.u32 %v808_v30, %v806_v6 }
 0x138   : > { %6055 = vmatmul.msk.bf16.gmra.mxu3 %vm1181_vm1, %v3926_v41  ;;  %v814_v41 = vrot.slane %v812_v31, 1 }
 0x139   : > { %5117 = vst.msk [vmem:[%s6438_s14 + $0x48] sm:$0xf] %vm5098_vm4, %v4984_v43  ;;  %v4585_v49 = vadd.f32 %v4283_v34, %v3767_v44  ;;  %5581 = vmatmul.msk.bf16.gmra.mxu0 %vm1181_vm1, %v799_v46  ;;  %v2835_v34 = vshrl.u32 %v6630_v54, 16  ;;  %v2841_v43 = vrot.slane %v2839_v35, 1  ;;  %v3930_v46 = vsel %vm3887_vm2, %v3927_v2, %v3929_v37 }
 0x13b   : > { %v4721_v50 = vadd.f32 %v6427_v33, %v4585_v49  ;;  %5983 = vmatmul.msk.bf16.gmra.mxu2 %vm1181_vm1, %v2826_v47  ;;  %v4286_v52 = vpop.f32.mrf.mxu3  ;;  %v2837_v42 = vor.u32 %v2835_v34, %v2833_v8 }
 0x13d   : > { %v4853_v55 = vmax.f32 %v4721_v50, 0.0 }
 0x13e   : > { %v3468_v56 = vpop.f32.mrf.mxu2  ;;  %v1445_v59 = vpop.f32.mrf.mxu0 }
 0x13f   : > { %v4985_v57 = vpack.c.bf16 %v4853_v55, %v4853_v55  ;;  %v3768_v58 = vadd.f32 %v3468_v56, %v1923_v51  ;;  %v1927_v62 = vpop.f32.mrf.mxu1  ;;  %v1925_v10 = vadd.f32 %v1924_v48, %v1445_v59  ;;  %v815_v51 = vsel %vm643_vm3, %v810_v40, %v814_v41  ;;  %v6670_v59 = vld [vmem:[%s6332_s6 + $0xc0] sm:$0xff] }
 0x140   : > { %v2847_v5 = vshll.u32 %v6670_v59, 16  ;;  %v3931_v7 = vrot.slane %v6670_v59, 1 }
 0x141   : > { %5118 = vst.msk [vmem:[%s6438_s14 + $0x4c] sm:$0xf] %vm5098_vm4, %v4985_v57  ;;  %v4586_v1 = vadd.f32 %v4286_v52, %v3768_v58  ;;  %v2842_v52 = vsel %vm643_vm3, %v2837_v42, %v2841_v43  ;;  %v6127_v58 = vld [vmem:[%s6332_s6 + $0xb0] sm:$0xff] }
 0x142   : > { %5652 = vmatmul.msk.bf16.gmra.mxu1 %vm1181_vm1, %v6124_v18  ;;  %v820_v2 = vshll.u32 %v6127_v58, 16 }
 0x143   : > { %v4722_v3 = vadd.f32 %v6427_v33, %v4586_v1  ;;  %v4288_v4 = vpop.f32.mrf.mxu3  ;;  %v816_v1 = vshrl.u32 %v6126_v23, 16 }
 0x145   : > { %v4854_v9 = vmax.f32 %v4722_v3, 0.0 }
 0x146   : > { %v3470_v12 = vpop.f32.mrf.mxu2  ;;  %v1448_v15 = vpop.f32.mrf.mxu0 }
 0x147   : > { %v4986_v13 = vpack.c.bf16 %v4854_v9, %v4854_v9  ;;  %v3769_v14 = vadd.f32 %v3470_v12, %v1925_v10  ;;  %v1929_v18 = vpop.f32.mrf.mxu1  ;;  %v1928_v21 = vadd.f32 %v1927_v62, %v1448_v15  ;;  %v818_v10 = vor.u32 %v816_v1, %v814_v41 }
 0x148   : > { %6056 = vmatmul.msk.bf16.gmra.mxu3 %vm1181_vm1, %v3928_v11  ;;  %v822_v11 = vrot.slane %v820_v2, 1 }
 0x149   : > { %5119 = vst.msk [vmem:[%s6438_s14 + $0x50] sm:$0xf] %vm5098_vm4, %v4986_v13  ;;  %v4587_v19 = vadd.f32 %v4288_v4, %v3769_v14  ;;  %5582 = vmatmul.msk.bf16.gmra.mxu0 %vm1181_vm1, %v807_v16  ;;  %v2843_v4 = vshrl.u32 %v6650_v24, 16  ;;  %v2849_v13 = vrot.slane %v2847_v5, 1  ;;  %v3932_v16 = vsel %vm3887_vm2, %v3929_v37, %v3931_v7  ;;  %v6689_v24 = vld [vmem:[%s7650_s2] ss:$0 sm:$0xff] }
 0x14b   : > { %v4723_v20 = vadd.f32 %v6427_v33, %v4587_v19  ;;  %5984 = vmatmul.msk.bf16.gmra.mxu2 %vm1181_vm1, %v2834_v17  ;;  %v4291_v22 = vpop.f32.mrf.mxu3  ;;  %v2845_v12 = vor.u32 %v2843_v4, %v2841_v43 }
 0x14d   : > { %v4855_v25 = vmax.f32 %v4723_v20, 0.0 }
 0x14e   : > { %v3473_v26 = vpop.f32.mrf.mxu2  ;;  %v1450_v29 = vpop.f32.mrf.mxu0 }
 0x14f   : > { %v4987_v27 = vpack.c.bf16 %v4855_v25, %v4855_v25  ;;  %v3770_v28 = vadd.f32 %v3473_v26, %v1928_v21  ;;  %v1932_v32 = vpop.f32.mrf.mxu1  ;;  %v1930_v45 = vadd.f32 %v1929_v18, %v1450_v29  ;;  %v2850_v21 = vsel %vm643_vm3, %v2845_v12, %v2849_v13  ;;  %v6695_v29 = vld [vmem:[%s6332_s6 + $0xc8] sm:$0xff] }
 0x150   : > { %v2855_v40 = vshll.u32 %v6695_v29, 16  ;;  %v3933_v42 = vrot.slane %v6695_v29, 1 }
 0x151   : > { %5120 = vst.msk [vmem:[%s6438_s14 + $0x54] sm:$0xf] %vm5098_vm4, %v4987_v27  ;;  %v4588_v36 = vadd.f32 %v4291_v22, %v3770_v28  ;;  %v6128_v28 = vld [vmem:[%s6332_s6 + $0xb8] sm:$0xff] }
 0x152   : > { %5653 = vmatmul.msk.bf16.gmra.mxu1 %vm1181_vm1, %v6125_v53  ;;  %v828_v37 = vshll.u32 %v6128_v28, 16 }
 0x153   : > { %v4724_v38 = vadd.f32 %v6427_v33, %v4588_v36  ;;  %v4293_v39 = vpop.f32.mrf.mxu3  ;;  %v824_v36 = vshrl.u32 %v6127_v58, 16 }
 0x155   : > { %v4856_v44 = vmax.f32 %v4724_v38, 0.0 }
 0x156   : > { %v3475_v47 = vpop.f32.mrf.mxu2  ;;  %v1453_v50 = vpop.f32.mrf.mxu0 }
 0x157   : > { %v4988_v48 = vpack.c.bf16 %v4856_v44, %v4856_v44  ;;  %v3771_v49 = vadd.f32 %v3475_v47, %v1930_v45  ;;  %v1934_v53 = vpop.f32.mrf.mxu1  ;;  %v1933_v56 = vadd.f32 %v1932_v32, %v1453_v50  ;;  %v826_v45 = vor.u32 %v824_v36, %v822_v11 }
 0x158   : > { %6057 = vmatmul.msk.bf16.gmra.mxu3 %vm1181_vm1, %v3930_v46  ;;  %v830_v46 = vrot.slane %v828_v37, 1 }
 0x159   : > { %5121 = vst.msk [vmem:[%s6438_s14 + $0x58] sm:$0xf] %vm5098_vm4, %v4988_v48  ;;  %v4589_v54 = vadd.f32 %v4293_v39, %v3771_v49  ;;  %5583 = vmatmul.msk.bf16.gmra.mxu0 %vm1181_vm1, %v815_v51  ;;  %v2851_v39 = vshrl.u32 %v6670_v59, 16  ;;  %v2857_v48 = vrot.slane %v2855_v40, 1  ;;  %v3934_v51 = vsel %vm3887_vm2, %v3931_v7, %v3933_v42 }
 0x15b   : > { %v4725_v55 = vadd.f32 %v6427_v33, %v4589_v54  ;;  %5985 = vmatmul.msk.bf16.gmra.mxu2 %vm1181_vm1, %v2842_v52  ;;  %v4296_v57 = vpop.f32.mrf.mxu3  ;;  %v2853_v47 = vor.u32 %v2851_v39, %v2849_v13 }
 0x15d   : > { %v4857_v60 = vmax.f32 %v4725_v55, 0.0 }
 0x15e   : > { %v3478_v61 = vpop.f32.mrf.mxu2  ;;  %v1455_v0 = vpop.f32.mrf.mxu0 }
 0x15f   : > { %v4989_v62 = vpack.c.bf16 %v4857_v60, %v4857_v60  ;;  %v3772_v63 = vadd.f32 %v3478_v61, %v1933_v56  ;;  %v1937_v3 = vpop.f32.mrf.mxu1  ;;  %v1935_v15 = vadd.f32 %v1934_v53, %v1455_v0  ;;  %v831_v56 = vsel %vm643_vm3, %v826_v45, %v830_v46  ;;  %v6715_v0 = vld [vmem:[%s6332_s6 + $0xd0] sm:$0xff] }
 0x160   : > { %v3935_v12 = vrot.slane %v6715_v0, 1 }
 0x161   : > { %5122 = vst.msk [vmem:[%s6438_s14 + $0x5c] sm:$0xf] %vm5098_vm4, %v4989_v62  ;;  %v4590_v6 = vadd.f32 %v4296_v57, %v3772_v63  ;;  %v2858_v57 = vsel %vm643_vm3, %v2853_v47, %v2857_v48  ;;  %v6129_v63 = vld [vmem:[%s6332_s6 + $0xc0] sm:$0xff] }
 0x162   : > { %5654 = vmatmul.msk.bf16.gmra.mxu1 %vm1181_vm1, %v6126_v23  ;;  %v836_v7 = vshll.u32 %v6129_v63, 16 }
 0x163   : > { %v4726_v8 = vadd.f32 %v6427_v33, %v4590_v6  ;;  %v4298_v9 = vpop.f32.mrf.mxu3  ;;  %v823_v33 = vsel %vm643_vm3, %v818_v10, %v822_v11  ;;  %v832_v6 = vshrl.u32 %v6128_v28, 16  ;;  %v2863_v10 = vshll.u32 %v6715_v0, 16 }
 0x165   : > { %v4858_v14 = vmax.f32 %v4726_v8, 0.0 }
 0x166   : > { %v3480_v17 = vpop.f32.mrf.mxu2  ;;  %v1458_v20 = vpop.f32.mrf.mxu0 }
 0x167   : > { %v4990_v18 = vpack.c.bf16 %v4858_v14, %v4858_v14  ;;  %v3773_v19 = vadd.f32 %v3480_v17, %v1935_v15  ;;  %v1939_v22 = vpop.f32.mrf.mxu1  ;;  %v1938_v26 = vadd.f32 %v1937_v3, %v1458_v20  ;;  %v834_v15 = vor.u32 %v832_v6, %v830_v46 }
 0x168   : > { %6058 = vmatmul.msk.bf16.gmra.mxu3 %vm1181_vm1, %v3932_v16  ;;  %v838_v16 = vrot.slane %v836_v7, 1 }
 0x169   : > { %5123 = vst.msk [vmem:[%s6438_s14 + $0x60] sm:$0xf] %vm5098_vm4, %v4990_v18  ;;  %v4591_v23 = vadd.f32 %v4298_v9, %v3773_v19  ;;  %5584 = vmatmul.msk.bf16.gmra.mxu0 %vm1181_vm1, %v823_v33  ;;  %v2859_v9 = vshrl.u32 %v6695_v29, 16  ;;  %v2865_v18 = vrot.slane %v2863_v10, 1  ;;  %v3936_v33 = vsel %vm3887_vm2, %v3933_v42, %v3935_v12 }
 0x16b   : > { %v4727_v25 = vadd.f32 %v6689_v24, %v4591_v23  ;;  %5986 = vmatmul.msk.bf16.gmra.mxu2 %vm1181_vm1, %v2850_v21  ;;  %v4301_v27 = vpop.f32.mrf.mxu3  ;;  %v2861_v17 = vor.u32 %v2859_v9, %v2857_v48 }
 0x16d   : > { %v4859_v30 = vmax.f32 %v4727_v25, 0.0 }
 0x16e   : > { %v3483_v31 = vpop.f32.mrf.mxu2  ;;  %v1460_v35 = vpop.f32.mrf.mxu0 }
 0x16f   : > { %v4991_v32 = vpack.c.bf16 %v4859_v30, %v4859_v30  ;;  %v3774_v34 = vadd.f32 %v3483_v31, %v1938_v26  ;;  %v1942_v38 = vpop.f32.mrf.mxu1  ;;  %v1940_v50 = vadd.f32 %v1939_v22, %v1460_v35  ;;  %v839_v26 = vsel %vm643_vm3, %v834_v15, %v838_v16  ;;  %v6735_v35 = vld [vmem:[%s6332_s6 + $0xd8] sm:$0xff] }
 0x170   : > { %v2871_v45 = vshll.u32 %v6735_v35, 16  ;;  %v3937_v47 = vrot.slane %v6735_v35, 1 }
 0x171   : > { %5124 = vst.msk [vmem:[%s6438_s14 + $0x64] sm:$0xf] %vm5098_vm4, %v4991_v32  ;;  %v4592_v41 = vadd.f32 %v4301_v27, %v3774_v34  ;;  %v2866_v27 = vsel %vm643_vm3, %v2861_v17, %v2865_v18  ;;  %v6130_v34 = vld [vmem:[%s6332_s6 + $0xc8] sm:$0xff] }
 0x172   : > { %5655 = vmatmul.msk.bf16.gmra.mxu1 %vm1181_vm1, %v6127_v58  ;;  %v844_v42 = vshll.u32 %v6130_v34, 16 }
 0x173   : > { %v4728_v43 = vadd.f32 %v6689_v24, %v4592_v41  ;;  %v4303_v44 = vpop.f32.mrf.mxu3  ;;  %v840_v41 = vshrl.u32 %v6129_v63, 16 }
 0x175   : > { %v4860_v49 = vmax.f32 %v4728_v43, 0.0 }
 0x176   : > { %v3485_v52 = vpop.f32.mrf.mxu2  ;;  %v1463_v55 = vpop.f32.mrf.mxu0 }
 0x177   : > { %v4992_v53 = vpack.c.bf16 %v4860_v49, %v4860_v49  ;;  %v3775_v54 = vadd.f32 %v3485_v52, %v1940_v50  ;;  %v1944_v58 = vpop.f32.mrf.mxu1  ;;  %v1943_v61 = vadd.f32 %v1942_v38, %v1463_v55  ;;  %v842_v50 = vor.u32 %v840_v41, %v838_v16 }
 0x178   : > { %6059 = vmatmul.msk.bf16.gmra.mxu3 %vm1181_vm1, %v3934_v51  ;;  %v846_v51 = vrot.slane %v844_v42, 1 }
 0x179   : > { %5125 = vst.msk [vmem:[%s6438_s14 + $0x68] sm:$0xf] %vm5098_vm4, %v4992_v53  ;;  %v4593_v59 = vadd.f32 %v4303_v44, %v3775_v54  ;;  %5585 = vmatmul.msk.bf16.gmra.mxu0 %vm1181_vm1, %v831_v56  ;;  %v2867_v44 = vshrl.u32 %v6715_v0, 16  ;;  %v2873_v53 = vrot.slane %v2871_v45, 1  ;;  %v3938_v56 = vsel %vm3887_vm2, %v3935_v12, %v3937_v47 }
 0x17b   : > { %v4729_v60 = vadd.f32 %v6689_v24, %v4593_v59  ;;  %5987 = vmatmul.msk.bf16.gmra.mxu2 %vm1181_vm1, %v2858_v57  ;;  %v4306_v62 = vpop.f32.mrf.mxu3  ;;  %v2869_v52 = vor.u32 %v2867_v44, %v2865_v18 }
 0x17d   : > { %v4861_v1 = vmax.f32 %v4729_v60, 0.0 }
 0x17e   : > { %v3488_v2 = vpop.f32.mrf.mxu2  ;;  %v1465_v5 = vpop.f32.mrf.mxu0 }
 0x17f   : > { %v4993_v3 = vpack.c.bf16 %v4861_v1, %v4861_v1  ;;  %v3776_v4 = vadd.f32 %v3488_v2, %v1943_v61  ;;  %v1947_v8 = vpop.f32.mrf.mxu1  ;;  %v1945_v20 = vadd.f32 %v1944_v58, %v1465_v5  ;;  %v847_v61 = vsel %vm643_vm3, %v842_v50, %v846_v51  ;;  %v6755_v5 = vld [vmem:[%s6332_s6 + $0xe0] sm:$0xff] }
 0x180   : > { %v2879_v15 = vshll.u32 %v6755_v5, 16  ;;  %v3939_v17 = vrot.slane %v6755_v5, 1 }
 0x181   : > { %5126 = vst.msk [vmem:[%s6438_s14 + $0x6c] sm:$0xf] %vm5098_vm4, %v4993_v3  ;;  %v4594_v11 = vadd.f32 %v4306_v62, %v3776_v4  ;;  %v2874_v62 = vsel %vm643_vm3, %v2869_v52, %v2873_v53  ;;  %v6131_v4 = vld [vmem:[%s6332_s6 + $0xd0] sm:$0xff] }
 0x182   : > { %5656 = vmatmul.msk.bf16.gmra.mxu1 %vm1181_vm1, %v6128_v28  ;;  %v852_v12 = vshll.u32 %v6131_v4, 16 }
 0x183   : > { %v4730_v13 = vadd.f32 %v6689_v24, %v4594_v11  ;;  %v4308_v14 = vpop.f32.mrf.mxu3  ;;  %v848_v11 = vshrl.u32 %v6130_v34, 16 }
 0x185   : > { %v4862_v19 = vmax.f32 %v4730_v13, 0.0 }
 0x186   : > { %v3490_v21 = vpop.f32.mrf.mxu2  ;;  %v1468_v25 = vpop.f32.mrf.mxu0 }
 0x187   : > { %v4994_v22 = vpack.c.bf16 %v4862_v19, %v4862_v19  ;;  %v3777_v23 = vadd.f32 %v3490_v21, %v1945_v20  ;;  %v1949_v28 = vpop.f32.mrf.mxu1  ;;  %v1948_v31 = vadd.f32 %v1947_v8, %v1468_v25  ;;  %v850_v20 = vor.u32 %v848_v11, %v846_v51 }
 0x188   : > { %6060 = vmatmul.msk.bf16.gmra.mxu3 %vm1181_vm1, %v3936_v33  ;;  %v854_v33 = vrot.slane %v852_v12, 1 }
 0x189   : > { %5127 = vst.msk [vmem:[%s6438_s14 + $0x70] sm:$0xf] %vm5098_vm4, %v4994_v22  ;;  %v4595_v29 = vadd.f32 %v4308_v14, %v3777_v23  ;;  %5586 = vmatmul.msk.bf16.gmra.mxu0 %vm1181_vm1, %v839_v26  ;;  %v2875_v14 = vshrl.u32 %v6735_v35, 16  ;;  %v2881_v22 = vrot.slane %v2879_v15, 1  ;;  %v3940_v26 = vsel %vm3887_vm2, %v3937_v47, %v3939_v17 }
 0x18b   : > { %v4731_v30 = vadd.f32 %v6689_v24, %v4595_v29  ;;  %5988 = vmatmul.msk.bf16.gmra.mxu2 %vm1181_vm1, %v2866_v27  ;;  %v4311_v32 = vpop.f32.mrf.mxu3  ;;  %v2877_v21 = vor.u32 %v2875_v14, %v2873_v53 }
 0x18d   : > { %v4863_v36 = vmax.f32 %v4731_v30, 0.0 }
 0x18e   : > { %v3493_v37 = vpop.f32.mrf.mxu2  ;;  %v1470_v40 = vpop.f32.mrf.mxu0 }
 0x18f   : > { %v4995_v38 = vpack.c.bf16 %v4863_v36, %v4863_v36  ;;  %v3778_v39 = vadd.f32 %v3493_v37, %v1948_v31  ;;  %v1952_v43 = vpop.f32.mrf.mxu1  ;;  %v1950_v55 = vadd.f32 %v1949_v28, %v1470_v40  ;;  %v855_v31 = vsel %vm643_vm3, %v850_v20, %v854_v33  ;;  %v6775_v40 = vld [vmem:[%s6332_s6 + $0xe8] sm:$0xff] }
 0x190   : > { %v2887_v50 = vshll.u32 %v6775_v40, 16  ;;  %v3941_v52 = vrot.slane %v6775_v40, 1 }
 0x191   : > { %5128 = vst.msk [vmem:[%s6438_s14 + $0x74] sm:$0xf] %vm5098_vm4, %v4995_v38  ;;  %v4596_v46 = vadd.f32 %v4311_v32, %v3778_v39  ;;  %v2882_v32 = vsel %vm643_vm3, %v2877_v21, %v2881_v22  ;;  %v6132_v39 = vld [vmem:[%s6332_s6 + $0xd8] sm:$0xff] }
 0x192   : > { %5657 = vmatmul.msk.bf16.gmra.mxu1 %vm1181_vm1, %v6129_v63  ;;  %v860_v47 = vshll.u32 %v6132_v39, 16 }
 0x193   : > { %v4732_v48 = vadd.f32 %v6689_v24, %v4596_v46  ;;  %v4313_v49 = vpop.f32.mrf.mxu3  ;;  %v856_v46 = vshrl.u32 %v6131_v4, 16 }
 0x195   : > { %v4864_v54 = vmax.f32 %v4732_v48, 0.0 }
 0x196   : > { %v3495_v57 = vpop.f32.mrf.mxu2  ;;  %v1473_v60 = vpop.f32.mrf.mxu0 }
 0x197   : > { %v4996_v58 = vpack.c.bf16 %v4864_v54, %v4864_v54  ;;  %v3779_v59 = vadd.f32 %v3495_v57, %v1950_v55  ;;  %v1954_v63 = vpop.f32.mrf.mxu1  ;;  %v1953_v2 = vadd.f32 %v1952_v43, %v1473_v60  ;;  %v858_v55 = vor.u32 %v856_v46, %v854_v33 }
 0x198   : > { %6061 = vmatmul.msk.bf16.gmra.mxu3 %vm1181_vm1, %v3938_v56  ;;  %v862_v56 = vrot.slane %v860_v47, 1 }
 0x199   : > { %5129 = vst.msk [vmem:[%s6438_s14 + $0x78] sm:$0xf] %vm5098_vm4, %v4996_v58  ;;  %v4597_v0 = vadd.f32 %v4313_v49, %v3779_v59  ;;  %5587 = vmatmul.msk.bf16.gmra.mxu0 %vm1181_vm1, %v847_v61  ;;  %v2883_v49 = vshrl.u32 %v6755_v5, 16  ;;  %v2889_v58 = vrot.slane %v2887_v50, 1  ;;  %v3942_v61 = vsel %vm3887_vm2, %v3939_v17, %v3941_v52 }
 0x19b   : > { %v4733_v1 = vadd.f32 %v6689_v24, %v4597_v0  ;;  %5989 = vmatmul.msk.bf16.gmra.mxu2 %vm1181_vm1, %v2874_v62  ;;  %v4316_v3 = vpop.f32.mrf.mxu3  ;;  %v2885_v57 = vor.u32 %v2883_v49, %v2881_v22 }
 0x19d   : > { %v4865_v6 = vmax.f32 %v4733_v1, 0.0 }
 0x19e   : > { %v3498_v7 = vpop.f32.mrf.mxu2  ;;  %v1475_v10 = vpop.f32.mrf.mxu0 }
 0x19f   : > { %v4997_v8 = vpack.c.bf16 %v4865_v6, %v4865_v6  ;;  %v3780_v9 = vadd.f32 %v3498_v7, %v1953_v2  ;;  %v1957_v13 = vpop.f32.mrf.mxu1  ;;  %v1955_v25 = vadd.f32 %v1954_v63, %v1475_v10  ;;  %v863_v2 = vsel %vm643_vm3, %v858_v55, %v862_v56  ;;  %v6795_v10 = vld [vmem:[%s6332_s6 + $0xf0] sm:$0xff] }
 0x1a0   : > { %v2895_v20 = vshll.u32 %v6795_v10, 16  ;;  %v3943_v21 = vrot.slane %v6795_v10, 1 }
 0x1a1   : > { %5130 = vst.msk [vmem:[%s6438_s14 + $0x7c] sm:$0xf] %vm5098_vm4, %v4997_v8  ;;  %v4598_v16 = vadd.f32 %v4316_v3, %v3780_v9  ;;  %v2890_v3 = vsel %vm643_vm3, %v2885_v57, %v2889_v58  ;;  %v6133_v9 = vld [vmem:[%s6332_s6 + $0xe0] sm:$0xff] }
 0x1a2   : > { %5658 = vmatmul.msk.bf16.gmra.mxu1 %vm1181_vm1, %v6130_v34  ;;  %v868_v17 = vshll.u32 %v6133_v9, 16 }
 0x1a3   : > { %v4734_v18 = vadd.f32 %v6689_v24, %v4598_v16  ;;  %v4318_v19 = vpop.f32.mrf.mxu3  ;;  %v864_v16 = vshrl.u32 %v6132_v39, 16 }
 0x1a5   : > { %v4866_v23 = vmax.f32 %v4734_v18, 0.0 }
 0x1a6   : > { %v3500_v27 = vpop.f32.mrf.mxu2  ;;  %v1478_v30 = vpop.f32.mrf.mxu0 }
 0x1a7   : > { %v4998_v28 = vpack.c.bf16 %v4866_v23, %v4866_v23  ;;  %v3781_v29 = vadd.f32 %v3500_v27, %v1955_v25  ;;  %v1959_v34 = vpop.f32.mrf.mxu1  ;;  %v1958_v37 = vadd.f32 %v1957_v13, %v1478_v30  ;;  %v866_v25 = vor.u32 %v864_v16, %v862_v56 }
 0x1a8   : > { %6062 = vmatmul.msk.bf16.gmra.mxu3 %vm1181_vm1, %v3940_v26  ;;  %v870_v26 = vrot.slane %v868_v17, 1 }
 0x1a9   : > { %5131 = vst.msk [vmem:[%s6438_s14 + $0x80] sm:$0xf] %vm5098_vm4, %v4998_v28  ;;  %v4599_v35 = vadd.f32 %v4318_v19, %v3781_v29  ;;  %5588 = vmatmul.msk.bf16.gmra.mxu0 %vm1181_vm1, %v855_v31  ;;  %v2891_v19 = vshrl.u32 %v6775_v40, 16  ;;  %v2897_v28 = vrot.slane %v2895_v20, 1  ;;  %v3944_v31 = vsel %vm3887_vm2, %v3941_v52, %v3943_v21 }
 0x1ab   : > { %v4735_v36 = vadd.f32 %v6689_v24, %v4599_v35  ;;  %5990 = vmatmul.msk.bf16.gmra.mxu2 %vm1181_vm1, %v2882_v32  ;;  %v4321_v38 = vpop.f32.mrf.mxu3  ;;  %v2893_v27 = vor.u32 %v2891_v19, %v2889_v58 }
 0x1ad   : > { %v4867_v41 = vmax.f32 %v4735_v36, 0.0 }
 0x1ae   : > { %v3503_v42 = vpop.f32.mrf.mxu2  ;;  %v1480_v45 = vpop.f32.mrf.mxu0 }
 0x1af   : > { %v4999_v43 = vpack.c.bf16 %v4867_v41, %v4867_v41  ;;  %v3782_v44 = vadd.f32 %v3503_v42, %v1958_v37  ;;  %v1962_v48 = vpop.f32.mrf.mxu1  ;;  %v1960_v60 = vadd.f32 %v1959_v34, %v1480_v45  ;;  %v871_v37 = vsel %vm643_vm3, %v866_v25, %v870_v26  ;;  %v6815_v45 = vld [vmem:[%s6332_s6 + $0xf8] sm:$0xff] }
 0x1b0   : > { %v2903_v55 = vshll.u32 %v6815_v45, 16  ;;  %v3945_v57 = vrot.slane %v6815_v45, 1 }
 0x1b1   : > { %5132 = vst.msk [vmem:[%s6438_s14 + $0x84] sm:$0xf] %vm5098_vm4, %v4999_v43  ;;  %v4600_v51 = vadd.f32 %v4321_v38, %v3782_v44  ;;  %v2898_v38 = vsel %vm643_vm3, %v2893_v27, %v2897_v28  ;;  %v6134_v44 = vld [vmem:[%s6332_s6 + $0xe8] sm:$0xff] }
 0x1b2   : > { %5659 = vmatmul.msk.bf16.gmra.mxu1 %vm1181_vm1, %v6131_v4  ;;  %v876_v52 = vshll.u32 %v6134_v44, 16 }
 0x1b3   : > { %v4736_v53 = vadd.f32 %v6689_v24, %v4600_v51  ;;  %v4323_v54 = vpop.f32.mrf.mxu3  ;;  %v872_v51 = vshrl.u32 %v6133_v9, 16 }
 0x1b5   : > { %v4868_v59 = vmax.f32 %v4736_v53, 0.0 }
 0x1b6   : > { %v3505_v62 = vpop.f32.mrf.mxu2  ;;  %v1483_v1 = vpop.f32.mrf.mxu0 }
 0x1b7   : > { %v5000_v63 = vpack.c.bf16 %v4868_v59, %v4868_v59  ;;  %v3783_v0 = vadd.f32 %v3505_v62, %v1960_v60  ;;  %v1964_v4 = vpop.f32.mrf.mxu1  ;;  %v1963_v7 = vadd.f32 %v1962_v48, %v1483_v1  ;;  %v874_v60 = vor.u32 %v872_v51, %v870_v26 }
 0x1b8   : > { %6063 = vmatmul.msk.bf16.gmra.mxu3 %vm1181_vm1, %v3942_v61  ;;  %v878_v61 = vrot.slane %v876_v52, 1 }
 0x1b9   : > { %5133 = vst.msk [vmem:[%s6438_s14 + $0x88] sm:$0xf] %vm5098_vm4, %v5000_v63  ;;  %v4601_v5 = vadd.f32 %v4323_v54, %v3783_v0  ;;  %5589 = vmatmul.msk.bf16.gmra.mxu0 %vm1181_vm1, %v863_v2  ;;  %v2899_v54 = vshrl.u32 %v6795_v10, 16  ;;  %v2905_v63 = vrot.slane %v2903_v55, 1  ;;  %v3946_v2 = vsel %vm3887_vm2, %v3943_v21, %v3945_v57 }
 0x1bb   : > { %v4737_v6 = vadd.f32 %v6689_v24, %v4601_v5  ;;  %5991 = vmatmul.msk.bf16.gmra.mxu2 %vm1181_vm1, %v2890_v3  ;;  %v4326_v8 = vpop.f32.mrf.mxu3  ;;  %v2901_v62 = vor.u32 %v2899_v54, %v2897_v28 }
 0x1bd   : > { %v4869_v11 = vmax.f32 %v4737_v6, 0.0 }
 0x1be   : > { %v3508_v12 = vpop.f32.mrf.mxu2  ;;  %v1485_v15 = vpop.f32.mrf.mxu0 }
 0x1bf   : > { %v5001_v13 = vpack.c.bf16 %v4869_v11, %v4869_v11  ;;  %v3784_v14 = vadd.f32 %v3508_v12, %v1963_v7  ;;  %v1967_v18 = vpop.f32.mrf.mxu1  ;;  %v1965_v30 = vadd.f32 %v1964_v4, %v1485_v15  ;;  %v879_v7 = vsel %vm643_vm3, %v874_v60, %v878_v61  ;;  %v6835_v15 = vld [vmem:[%s6332_s6 + $0x100] sm:$0xff] }
 0x1c0   : > { %v2911_v25 = vshll.u32 %v6835_v15, 16  ;;  %v3947_v27 = vrot.slane %v6835_v15, 1 }
 0x1c1   : > { %5134 = vst.msk [vmem:[%s6438_s14 + $0x8c] sm:$0xf] %vm5098_vm4, %v5001_v13  ;;  %v4602_v33 = vadd.f32 %v4326_v8, %v3784_v14  ;;  %v2906_v8 = vsel %vm643_vm3, %v2901_v62, %v2905_v63  ;;  %v6135_v14 = vld [vmem:[%s6332_s6 + $0xf0] sm:$0xff] }
 0x1c2   : > { %5660 = vmatmul.msk.bf16.gmra.mxu1 %vm1181_vm1, %v6132_v39  ;;  %v884_v21 = vshll.u32 %v6135_v14, 16 }
 0x1c3   : > { %v4738_v22 = vadd.f32 %v6689_v24, %v4602_v33  ;;  %v4328_v23 = vpop.f32.mrf.mxu3  ;;  %v880_v33 = vshrl.u32 %v6134_v44, 16 }
 0x1c5   : > { %v4870_v29 = vmax.f32 %v4738_v22, 0.0 }
 0x1c6   : > { %v3510_v32 = vpop.f32.mrf.mxu2  ;;  %v1488_v36 = vpop.f32.mrf.mxu0 }
 0x1c7   : > { %v5002_v34 = vpack.c.bf16 %v4870_v29, %v4870_v29  ;;  %v3785_v35 = vadd.f32 %v3510_v32, %v1965_v30  ;;  %v1969_v39 = vpop.f32.mrf.mxu1  ;;  %v1968_v42 = vadd.f32 %v1967_v18, %v1488_v36  ;;  %v882_v30 = vor.u32 %v880_v33, %v878_v61 }
 0x1c8   : > { %6064 = vmatmul.msk.bf16.gmra.mxu3 %vm1181_vm1, %v3944_v31  ;;  %v886_v31 = vrot.slane %v884_v21, 1 }
 0x1c9   : > { %5135 = vst.msk [vmem:[%s6438_s14 + $0x90] sm:$0xf] %vm5098_vm4, %v5002_v34  ;;  %v4603_v40 = vadd.f32 %v4328_v23, %v3785_v35  ;;  %5590 = vmatmul.msk.bf16.gmra.mxu0 %vm1181_vm1, %v871_v37  ;;  %v2907_v23 = vshrl.u32 %v6815_v45, 16  ;;  %v2913_v34 = vrot.slane %v2911_v25, 1  ;;  %v3948_v37 = vsel %vm3887_vm2, %v3945_v57, %v3947_v27 }
 0x1cb   : > { %v4739_v41 = vadd.f32 %v6689_v24, %v4603_v40  ;;  %5992 = vmatmul.msk.bf16.gmra.mxu2 %vm1181_vm1, %v2898_v38  ;;  %v4331_v43 = vpop.f32.mrf.mxu3  ;;  %v2909_v32 = vor.u32 %v2907_v23, %v2905_v63 }
 0x1cd   : > { %v4871_v46 = vmax.f32 %v4739_v41, 0.0 }
 0x1ce   : > { %v3513_v47 = vpop.f32.mrf.mxu2  ;;  %v1490_v50 = vpop.f32.mrf.mxu0 }
 0x1cf   : > { %v5003_v48 = vpack.c.bf16 %v4871_v46, %v4871_v46  ;;  %v3786_v49 = vadd.f32 %v3513_v47, %v1968_v42  ;;  %v1972_v53 = vpop.f32.mrf.mxu1  ;;  %v1970_v1 = vadd.f32 %v1969_v39, %v1490_v50  ;;  %v887_v42 = vsel %vm643_vm3, %v882_v30, %v886_v31  ;;  %v6855_v50 = vld [vmem:[%s6332_s6 + $0x108] sm:$0xff] }
 0x1d0   : > { %v2919_v60 = vshll.u32 %v6855_v50, 16  ;;  %v3949_v62 = vrot.slane %v6855_v50, 1 }
 0x1d1   : > { %5136 = vst.msk [vmem:[%s6438_s14 + $0x94] sm:$0xf] %vm5098_vm4, %v5003_v48  ;;  %v4604_v56 = vadd.f32 %v4331_v43, %v3786_v49  ;;  %v2914_v43 = vsel %vm643_vm3, %v2909_v32, %v2913_v34  ;;  %v6136_v49 = vld [vmem:[%s6332_s6 + $0xf8] sm:$0xff] }
 0x1d2   : > { %5661 = vmatmul.msk.bf16.gmra.mxu1 %vm1181_vm1, %v6133_v9  ;;  %v892_v57 = vshll.u32 %v6136_v49, 16 }
 0x1d3   : > { %v4740_v58 = vadd.f32 %v6689_v24, %v4604_v56  ;;  %v4333_v59 = vpop.f32.mrf.mxu3  ;;  %v888_v56 = vshrl.u32 %v6135_v14, 16 }
 0x1d5   : > { %v4872_v0 = vmax.f32 %v4740_v58, 0.0 }
 0x1d6   : > { %v3515_v3 = vpop.f32.mrf.mxu2  ;;  %v1493_v6 = vpop.f32.mrf.mxu0 }
 0x1d7   : > { %v5004_v4 = vpack.c.bf16 %v4872_v0, %v4872_v0  ;;  %v3787_v5 = vadd.f32 %v3515_v3, %v1970_v1  ;;  %v1974_v9 = vpop.f32.mrf.mxu1  ;;  %v1973_v12 = vadd.f32 %v1972_v53, %v1493_v6  ;;  %v890_v1 = vor.u32 %v888_v56, %v886_v31 }
 0x1d8   : > { %6065 = vmatmul.msk.bf16.gmra.mxu3 %vm1181_vm1, %v3946_v2  ;;  %v894_v2 = vrot.slane %v892_v57, 1 }
 0x1d9   : > { %5137 = vst.msk [vmem:[%s6438_s14 + $0x98] sm:$0xf] %vm5098_vm4, %v5004_v4  ;;  %v4605_v10 = vadd.f32 %v4333_v59, %v3787_v5  ;;  %5591 = vmatmul.msk.bf16.gmra.mxu0 %vm1181_vm1, %v879_v7  ;;  %v2915_v59 = vshrl.u32 %v6835_v15, 16  ;;  %v2921_v4 = vrot.slane %v2919_v60, 1  ;;  %v3950_v7 = vsel %vm3887_vm2, %v3947_v27, %v3949_v62 }
 0x1db   : > { %v4741_v11 = vadd.f32 %v6689_v24, %v4605_v10  ;;  %5993 = vmatmul.msk.bf16.gmra.mxu2 %vm1181_vm1, %v2906_v8  ;;  %v4336_v13 = vpop.f32.mrf.mxu3  ;;  %v2917_v3 = vor.u32 %v2915_v59, %v2913_v34 }
 0x1dd   : > { %v4873_v16 = vmax.f32 %v4741_v11, 0.0 }
 0x1de   : > { %v3518_v17 = vpop.f32.mrf.mxu2  ;;  %v1495_v20 = vpop.f32.mrf.mxu0 }
 0x1df   : > { %v5005_v18 = vpack.c.bf16 %v4873_v16, %v4873_v16  ;;  %v3788_v19 = vadd.f32 %v3518_v17, %v1973_v12  ;;  %v1977_v22 = vpop.f32.mrf.mxu1  ;;  %v1975_v36 = vadd.f32 %v1974_v9, %v1495_v20  ;;  %v895_v12 = vsel %vm643_vm3, %v890_v1, %v894_v2  ;;  %v6875_v20 = vld [vmem:[%s6332_s6 + $0x110] sm:$0xff] }
 0x1e0   : > { %v2927_v30 = vshll.u32 %v6875_v20, 16  ;;  %v3951_v32 = vrot.slane %v6875_v20, 1 }
 0x1e1   : > { %5138 = vst.msk [vmem:[%s6438_s14 + $0x9c] sm:$0xf] %vm5098_vm4, %v5005_v18  ;;  %v4606_v26 = vadd.f32 %v4336_v13, %v3788_v19  ;;  %v2922_v13 = vsel %vm643_vm3, %v2917_v3, %v2921_v4  ;;  %v6137_v19 = vld [vmem:[%s6332_s6 + $0x100] sm:$0xff] }
 0x1e2   : > { %5662 = vmatmul.msk.bf16.gmra.mxu1 %vm1181_vm1, %v6134_v44  ;;  %v900_v27 = vshll.u32 %v6137_v19, 16 }
 0x1e3   : > { %v4742_v28 = vadd.f32 %v6689_v24, %v4606_v26  ;;  %v4338_v29 = vpop.f32.mrf.mxu3  ;;  %v896_v26 = vshrl.u32 %v6136_v49, 16 }
 0x1e5   : > { %v4874_v35 = vmax.f32 %v4742_v28, 0.0 }
 0x1e6   : > { %v3520_v38 = vpop.f32.mrf.mxu2  ;;  %v1498_v41 = vpop.f32.mrf.mxu0 }
 0x1e7   : > { %v5006_v39 = vpack.c.bf16 %v4874_v35, %v4874_v35  ;;  %v3789_v40 = vadd.f32 %v3520_v38, %v1975_v36  ;;  %v1979_v44 = vpop.f32.mrf.mxu1  ;;  %v1978_v47 = vadd.f32 %v1977_v22, %v1498_v41  ;;  %v898_v36 = vor.u32 %v896_v26, %v894_v2 }
 0x1e8   : > { %6066 = vmatmul.msk.bf16.gmra.mxu3 %vm1181_vm1, %v3948_v37  ;;  %v902_v37 = vrot.slane %v900_v27, 1 }
 0x1e9   : > { %5139 = vst.msk [vmem:[%s6438_s14 + $0xa0] sm:$0xf] %vm5098_vm4, %v5006_v39  ;;  %v4607_v45 = vadd.f32 %v4338_v29, %v3789_v40  ;;  %5592 = vmatmul.msk.bf16.gmra.mxu0 %vm1181_vm1, %v887_v42  ;;  %v2923_v29 = vshrl.u32 %v6855_v50, 16  ;;  %v2929_v39 = vrot.slane %v2927_v30, 1  ;;  %v3952_v42 = vsel %vm3887_vm2, %v3949_v62, %v3951_v32 }
 0x1eb   : > { %v4743_v46 = vadd.f32 %v6689_v24, %v4607_v45  ;;  %5994 = vmatmul.msk.bf16.gmra.mxu2 %vm1181_vm1, %v2914_v43  ;;  %v4341_v48 = vpop.f32.mrf.mxu3  ;;  %v2925_v38 = vor.u32 %v2923_v29, %v2921_v4 }
 0x1ed   : > { %v4875_v51 = vmax.f32 %v4743_v46, 0.0 }
 0x1ee   : > { %v3523_v52 = vpop.f32.mrf.mxu2  ;;  %v1500_v55 = vpop.f32.mrf.mxu0 }
 0x1ef   : > { %v5007_v53 = vpack.c.bf16 %v4875_v51, %v4875_v51  ;;  %v3790_v54 = vadd.f32 %v3523_v52, %v1978_v47  ;;  %v1982_v58 = vpop.f32.mrf.mxu1  ;;  %v1980_v6 = vadd.f32 %v1979_v44, %v1500_v55  ;;  %v903_v47 = vsel %vm643_vm3, %v898_v36, %v902_v37  ;;  %v6895_v55 = vld [vmem:[%s6332_s6 + $0x118] sm:$0xff] }
 0x1f0   : > { %v2935_v1 = vshll.u32 %v6895_v55, 16  ;;  %v3953_v3 = vrot.slane %v6895_v55, 1 }
 0x1f1   : > { %5140 = vst.msk [vmem:[%s6438_s14 + $0xa4] sm:$0xf] %vm5098_vm4, %v5007_v53  ;;  %v4608_v61 = vadd.f32 %v4341_v48, %v3790_v54  ;;  %v2930_v48 = vsel %vm643_vm3, %v2925_v38, %v2929_v39  ;;  %v6138_v54 = vld [vmem:[%s6332_s6 + $0x108] sm:$0xff] }
 0x1f2   : > { %5663 = vmatmul.msk.bf16.gmra.mxu1 %vm1181_vm1, %v6135_v14  ;;  %v908_v62 = vshll.u32 %v6138_v54, 16 }
 0x1f3   : > { %v4744_v63 = vadd.f32 %v6689_v24, %v4608_v61  ;;  %v4343_v0 = vpop.f32.mrf.mxu3  ;;  %v904_v61 = vshrl.u32 %v6137_v19, 16 }
 0x1f5   : > { %v4876_v5 = vmax.f32 %v4744_v63, 0.0 }
 0x1f6   : > { %v3525_v8 = vpop.f32.mrf.mxu2  ;;  %v1503_v11 = vpop.f32.mrf.mxu0 }
 0x1f7   : > { %v5008_v9 = vpack.c.bf16 %v4876_v5, %v4876_v5  ;;  %v3791_v10 = vadd.f32 %v3525_v8, %v1980_v6  ;;  %v1984_v14 = vpop.f32.mrf.mxu1  ;;  %v1983_v17 = vadd.f32 %v1982_v58, %v1503_v11  ;;  %v906_v6 = vor.u32 %v904_v61, %v902_v37 }
 0x1f8   : > { %6067 = vmatmul.msk.bf16.gmra.mxu3 %vm1181_vm1, %v3950_v7  ;;  %v910_v7 = vrot.slane %v908_v62, 1 }
 0x1f9   : > { %5141 = vst.msk [vmem:[%s6438_s14 + $0xa8] sm:$0xf] %vm5098_vm4, %v5008_v9  ;;  %v4609_v15 = vadd.f32 %v4343_v0, %v3791_v10  ;;  %5593 = vmatmul.msk.bf16.gmra.mxu0 %vm1181_vm1, %v895_v12  ;;  %v2931_v0 = vshrl.u32 %v6875_v20, 16  ;;  %v2937_v9 = vrot.slane %v2935_v1, 1  ;;  %v3954_v12 = vsel %vm3887_vm2, %v3951_v32, %v3953_v3 }
 0x1fb   : > { %v4745_v16 = vadd.f32 %v6689_v24, %v4609_v15  ;;  %5995 = vmatmul.msk.bf16.gmra.mxu2 %vm1181_vm1, %v2922_v13  ;;  %v4346_v18 = vpop.f32.mrf.mxu3  ;;  %v2933_v8 = vor.u32 %v2931_v0, %v2929_v39 }
 0x1fd   : > { %v4877_v33 = vmax.f32 %v4745_v16, 0.0 }
 0x1fe   : > { %v3528_v21 = vpop.f32.mrf.mxu2  ;;  %v1505_v25 = vpop.f32.mrf.mxu0 }
 0x1ff   : > { %v5009_v22 = vpack.c.bf16 %v4877_v33, %v4877_v33  ;;  %v3792_v23 = vadd.f32 %v3528_v21, %v1983_v17  ;;  %v1987_v28 = vpop.f32.mrf.mxu1  ;;  %v1985_v41 = vadd.f32 %v1984_v14, %v1505_v25  ;;  %v911_v17 = vsel %vm643_vm3, %v906_v6, %v910_v7  ;;  %v6915_v25 = vld [vmem:[%s6332_s6 + $0x120] sm:$0xff] }
 0x200   : > { %v2943_v36 = vshll.u32 %v6915_v25, 16  ;;  %v3955_v38 = vrot.slane %v6915_v25, 1 }
 0x201   : > { %5142 = vst.msk [vmem:[%s6438_s14 + $0xac] sm:$0xf] %vm5098_vm4, %v5009_v22  ;;  %v4610_v31 = vadd.f32 %v4346_v18, %v3792_v23  ;;  %v2938_v18 = vsel %vm643_vm3, %v2933_v8, %v2937_v9  ;;  %v6139_v23 = vld [vmem:[%s6332_s6 + $0x110] sm:$0xff] }
 0x202   : > { %5664 = vmatmul.msk.bf16.gmra.mxu1 %vm1181_vm1, %v6136_v49  ;;  %v916_v32 = vshll.u32 %v6139_v23, 16 }
 0x203   : > { %v4746_v34 = vadd.f32 %v6689_v24, %v4610_v31  ;;  %v4348_v35 = vpop.f32.mrf.mxu3  ;;  %v912_v31 = vshrl.u32 %v6138_v54, 16 }
 0x205   : > { %v4878_v40 = vmax.f32 %v4746_v34, 0.0 }
 0x206   : > { %v3530_v43 = vpop.f32.mrf.mxu2  ;;  %v1508_v46 = vpop.f32.mrf.mxu0 }
 0x207   : > { %v5010_v44 = vpack.c.bf16 %v4878_v40, %v4878_v40  ;;  %v3793_v45 = vadd.f32 %v3530_v43, %v1985_v41  ;;  %v1989_v49 = vpop.f32.mrf.mxu1  ;;  %v1988_v52 = vadd.f32 %v1987_v28, %v1508_v46  ;;  %v914_v41 = vor.u32 %v912_v31, %v910_v7 }
 0x208   : > { %6068 = vmatmul.msk.bf16.gmra.mxu3 %vm1181_vm1, %v3952_v42  ;;  %v918_v42 = vrot.slane %v916_v32, 1 }
 0x209   : > { %5143 = vst.msk [vmem:[%s6438_s14 + $0xb0] sm:$0xf] %vm5098_vm4, %v5010_v44  ;;  %v4611_v50 = vadd.f32 %v4348_v35, %v3793_v45  ;;  %5594 = vmatmul.msk.bf16.gmra.mxu0 %vm1181_vm1, %v903_v47  ;;  %v2939_v35 = vshrl.u32 %v6895_v55, 16  ;;  %v2945_v44 = vrot.slane %v2943_v36, 1  ;;  %v3956_v47 = vsel %vm3887_vm2, %v3953_v3, %v3955_v38 }
 0x20b   : > { %v4747_v51 = vadd.f32 %v6689_v24, %v4611_v50  ;;  %5996 = vmatmul.msk.bf16.gmra.mxu2 %vm1181_vm1, %v2930_v48  ;;  %v4351_v53 = vpop.f32.mrf.mxu3  ;;  %v2941_v43 = vor.u32 %v2939_v35, %v2937_v9 }
 0x20d   : > { %v4879_v56 = vmax.f32 %v4747_v51, 0.0 }
 0x20e   : > { %v3533_v57 = vpop.f32.mrf.mxu2  ;;  %v1510_v60 = vpop.f32.mrf.mxu0 }
 0x20f   : > { %v5011_v58 = vpack.c.bf16 %v4879_v56, %v4879_v56  ;;  %v3794_v59 = vadd.f32 %v3533_v57, %v1988_v52  ;;  %v1992_v63 = vpop.f32.mrf.mxu1  ;;  %v1990_v11 = vadd.f32 %v1989_v49, %v1510_v60  ;;  %v919_v52 = vsel %vm643_vm3, %v914_v41, %v918_v42  ;;  %v6935_v60 = vld [vmem:[%s6332_s6 + $0x128] sm:$0xff] }
 0x210   : > { %v2951_v6 = vshll.u32 %v6935_v60, 16  ;;  %v3957_v8 = vrot.slane %v6935_v60, 1 }
 0x211   : > { %5144 = vst.msk [vmem:[%s6438_s14 + $0xb4] sm:$0xf] %vm5098_vm4, %v5011_v58  ;;  %v4612_v2 = vadd.f32 %v4351_v53, %v3794_v59  ;;  %v2946_v53 = vsel %vm643_vm3, %v2941_v43, %v2945_v44  ;;  %v6140_v59 = vld [vmem:[%s6332_s6 + $0x118] sm:$0xff] }
 0x212   : > { %5665 = vmatmul.msk.bf16.gmra.mxu1 %vm1181_vm1, %v6137_v19  ;;  %v924_v3 = vshll.u32 %v6140_v59, 16 }
 0x213   : > { %v4748_v4 = vadd.f32 %v6689_v24, %v4612_v2  ;;  %v4353_v5 = vpop.f32.mrf.mxu3  ;;  %v920_v2 = vshrl.u32 %v6139_v23, 16 }
 0x215   : > { %v4880_v10 = vmax.f32 %v4748_v4, 0.0 }
 0x216   : > { %v3535_v13 = vpop.f32.mrf.mxu2  ;;  %v1513_v16 = vpop.f32.mrf.mxu0 }
 0x217   : > { %v5012_v14 = vpack.c.bf16 %v4880_v10, %v4880_v10  ;;  %v3795_v15 = vadd.f32 %v3535_v13, %v1990_v11  ;;  %v1994_v19 = vpop.f32.mrf.mxu1  ;;  %v1993_v21 = vadd.f32 %v1992_v63, %v1513_v16  ;;  %v922_v11 = vor.u32 %v920_v2, %v918_v42 }
 0x218   : > { %6069 = vmatmul.msk.bf16.gmra.mxu3 %vm1181_vm1, %v3954_v12  ;;  %v926_v12 = vrot.slane %v924_v3, 1 }
 0x219   : > { %5145 = vst.msk [vmem:[%s6438_s14 + $0xb8] sm:$0xf] %vm5098_vm4, %v5012_v14  ;;  %v4613_v20 = vadd.f32 %v4353_v5, %v3795_v15  ;;  %5595 = vmatmul.msk.bf16.gmra.mxu0 %vm1181_vm1, %v911_v17  ;;  %v2947_v5 = vshrl.u32 %v6915_v25, 16  ;;  %v2953_v14 = vrot.slane %v2951_v6, 1  ;;  %v3958_v17 = vsel %vm3887_vm2, %v3955_v38, %v3957_v8  ;;  %v6954_v25 = vld [vmem:[%s7650_s2] ss:$0 sm:$0xff] }
 0x21b   : > { %v4749_v33 = vadd.f32 %v6689_v24, %v4613_v20  ;;  %5997 = vmatmul.msk.bf16.gmra.mxu2 %vm1181_vm1, %v2938_v18  ;;  %v4356_v22 = vpop.f32.mrf.mxu3  ;;  %v2949_v13 = vor.u32 %v2947_v5, %v2945_v44 }
 0x21d   : > { %v4881_v26 = vmax.f32 %v4749_v33, 0.0 }
 0x21e   : > { %v3538_v27 = vpop.f32.mrf.mxu2  ;;  %v1515_v30 = vpop.f32.mrf.mxu0 }
 0x21f   : > { %v5013_v28 = vpack.c.bf16 %v4881_v26, %v4881_v26  ;;  %v3796_v29 = vadd.f32 %v3538_v27, %v1993_v21  ;;  %v1997_v34 = vpop.f32.mrf.mxu1  ;;  %v1995_v46 = vadd.f32 %v1994_v19, %v1515_v30  ;;  %v2954_v21 = vsel %vm643_vm3, %v2949_v13, %v2953_v14  ;;  %v6960_v30 = vld [vmem:[%s6332_s6 + $0x130] sm:$0xff] }
 0x220   : > { %v2959_v41 = vshll.u32 %v6960_v30, 16  ;;  %v3959_v43 = vrot.slane %v6960_v30, 1 }
 0x221   : > { %5146 = vst.msk [vmem:[%s6438_s14 + $0xbc] sm:$0xf] %vm5098_vm4, %v5013_v28  ;;  %v4614_v37 = vadd.f32 %v4356_v22, %v3796_v29  ;;  %v6141_v29 = vld [vmem:[%s6332_s6 + $0x120] sm:$0xff] }
 0x222   : > { %5666 = vmatmul.msk.bf16.gmra.mxu1 %vm1181_vm1, %v6138_v54  ;;  %v932_v38 = vshll.u32 %v6141_v29, 16 }
 0x223   : > { %v4750_v39 = vadd.f32 %v6689_v24, %v4614_v37  ;;  %v4358_v40 = vpop.f32.mrf.mxu3  ;;  %v928_v37 = vshrl.u32 %v6140_v59, 16 }
 0x225   : > { %v4882_v45 = vmax.f32 %v4750_v39, 0.0 }
 0x226   : > { %v3540_v48 = vpop.f32.mrf.mxu2  ;;  %v1518_v51 = vpop.f32.mrf.mxu0 }
 0x227   : > { %v5014_v49 = vpack.c.bf16 %v4882_v45, %v4882_v45  ;;  %v3797_v50 = vadd.f32 %v3540_v48, %v1995_v46  ;;  %v1999_v54 = vpop.f32.mrf.mxu1  ;;  %v1998_v57 = vadd.f32 %v1997_v34, %v1518_v51  ;;  %v930_v46 = vor.u32 %v928_v37, %v926_v12 }
 0x228   : > { %6070 = vmatmul.msk.bf16.gmra.mxu3 %vm1181_vm1, %v3956_v47  ;;  %v934_v47 = vrot.slane %v932_v38, 1 }
 0x229   : > { %5147 = vst.msk [vmem:[%s6438_s14 + $0xc0] sm:$0xf] %vm5098_vm4, %v5014_v49  ;;  %v4615_v55 = vadd.f32 %v4358_v40, %v3797_v50  ;;  %5596 = vmatmul.msk.bf16.gmra.mxu0 %vm1181_vm1, %v919_v52  ;;  %v2955_v40 = vshrl.u32 %v6935_v60, 16  ;;  %v2961_v49 = vrot.slane %v2959_v41, 1  ;;  %v3960_v52 = vsel %vm3887_vm2, %v3957_v8, %v3959_v43 }
 0x22b   : > { %v4751_v56 = vadd.f32 %v6689_v24, %v4615_v55  ;;  %5998 = vmatmul.msk.bf16.gmra.mxu2 %vm1181_vm1, %v2946_v53  ;;  %v4361_v58 = vpop.f32.mrf.mxu3  ;;  %v2957_v48 = vor.u32 %v2955_v40, %v2953_v14 }
 0x22d   : > { %v4883_v61 = vmax.f32 %v4751_v56, 0.0 }
 0x22e   : > { %v3543_v62 = vpop.f32.mrf.mxu2  ;;  %v1520_v1 = vpop.f32.mrf.mxu0 }
 0x22f   : > { %v5015_v63 = vpack.c.bf16 %v4883_v61, %v4883_v61  ;;  %v3798_v0 = vadd.f32 %v3543_v62, %v1998_v57  ;;  %v2002_v4 = vpop.f32.mrf.mxu1  ;;  %v2000_v16 = vadd.f32 %v1999_v54, %v1520_v1  ;;  %v935_v57 = vsel %vm643_vm3, %v930_v46, %v934_v47  ;;  %v6980_v1 = vld [vmem:[%s6332_s6 + $0x138] sm:$0xff] }
 0x230   : > { %v3961_v13 = vrot.slane %v6980_v1, 1 }
 0x231   : > { %5148 = vst.msk [vmem:[%s6438_s14 + $0xc4] sm:$0xf] %vm5098_vm4, %v5015_v63  ;;  %v4616_v7 = vadd.f32 %v4361_v58, %v3798_v0  ;;  %v2962_v58 = vsel %vm643_vm3, %v2957_v48, %v2961_v49  ;;  %v6142_v0 = vld [vmem:[%s6332_s6 + $0x128] sm:$0xff] }
 0x232   : > { %5667 = vmatmul.msk.bf16.gmra.mxu1 %vm1181_vm1, %v6139_v23  ;;  %v940_v8 = vshll.u32 %v6142_v0, 16 }
 0x233   : > { %v4752_v9 = vadd.f32 %v6689_v24, %v4616_v7  ;;  %v4363_v10 = vpop.f32.mrf.mxu3  ;;  %v927_v24 = vsel %vm643_vm3, %v922_v11, %v926_v12  ;;  %v936_v7 = vshrl.u32 %v6141_v29, 16  ;;  %v2967_v11 = vshll.u32 %v6980_v1, 16 }
 0x235   : > { %v4884_v15 = vmax.f32 %v4752_v9, 0.0 }
 0x236   : > { %v3545_v18 = vpop.f32.mrf.mxu2  ;;  %v1523_v33 = vpop.f32.mrf.mxu0 }
 0x237   : > { %v5016_v19 = vpack.c.bf16 %v4884_v15, %v4884_v15  ;;  %v3799_v20 = vadd.f32 %v3545_v18, %v2000_v16  ;;  %v2004_v22 = vpop.f32.mrf.mxu1  ;;  %v2003_v27 = vadd.f32 %v2002_v4, %v1523_v33  ;;  %v938_v16 = vor.u32 %v936_v7, %v934_v47 }
 0x238   : > { %6071 = vmatmul.msk.bf16.gmra.mxu3 %vm1181_vm1, %v3958_v17  ;;  %v942_v17 = vrot.slane %v940_v8, 1 }
 0x239   : > { %5149 = vst.msk [vmem:[%s6438_s14 + $0xc8] sm:$0xf] %vm5098_vm4, %v5016_v19  ;;  %v4617_v23 = vadd.f32 %v4363_v10, %v3799_v20  ;;  %5597 = vmatmul.msk.bf16.gmra.mxu0 %vm1181_vm1, %v927_v24  ;;  %v2963_v10 = vshrl.u32 %v6960_v30, 16  ;;  %v2969_v19 = vrot.slane %v2967_v11, 1  ;;  %v3962_v24 = vsel %vm3887_vm2, %v3959_v43, %v3961_v13 }
 0x23b   : > { %v4753_v26 = vadd.f32 %v6954_v25, %v4617_v23  ;;  %5999 = vmatmul.msk.bf16.gmra.mxu2 %vm1181_vm1, %v2954_v21  ;;  %v4366_v28 = vpop.f32.mrf.mxu3  ;;  %v2965_v18 = vor.u32 %v2963_v10, %v2961_v49 }
 0x23d   : > { %v4885_v31 = vmax.f32 %v4753_v26, 0.0 }
 0x23e   : > { %v3548_v32 = vpop.f32.mrf.mxu2  ;;  %v1525_v36 = vpop.f32.mrf.mxu0 }
 0x23f   : > { %v5017_v34 = vpack.c.bf16 %v4885_v31, %v4885_v31  ;;  %v3800_v35 = vadd.f32 %v3548_v32, %v2003_v27  ;;  %v2007_v39 = vpop.f32.mrf.mxu1  ;;  %v2005_v51 = vadd.f32 %v2004_v22, %v1525_v36  ;;  %v943_v27 = vsel %vm643_vm3, %v938_v16, %v942_v17  ;;  %v7000_v36 = vld [vmem:[%s6332_s6 + $0x140] sm:$0xff] }
 0x240   : > { %v2975_v46 = vshll.u32 %v7000_v36, 16  ;;  %v3963_v48 = vrot.slane %v7000_v36, 1 }
 0x241   : > { %5150 = vst.msk [vmem:[%s6438_s14 + $0xcc] sm:$0xf] %vm5098_vm4, %v5017_v34  ;;  %v4618_v42 = vadd.f32 %v4366_v28, %v3800_v35  ;;  %v2970_v28 = vsel %vm643_vm3, %v2965_v18, %v2969_v19  ;;  %v6143_v35 = vld [vmem:[%s6332_s6 + $0x130] sm:$0xff] }
 0x242   : > { %5668 = vmatmul.msk.bf16.gmra.mxu1 %vm1181_vm1, %v6140_v59  ;;  %v948_v43 = vshll.u32 %v6143_v35, 16 }
 0x243   : > { %v4754_v44 = vadd.f32 %v6954_v25, %v4618_v42  ;;  %v4368_v45 = vpop.f32.mrf.mxu3  ;;  %v944_v42 = vshrl.u32 %v6142_v0, 16 }
 0x245   : > { %v4886_v50 = vmax.f32 %v4754_v44, 0.0 }
 0x246   : > { %v3550_v53 = vpop.f32.mrf.mxu2  ;;  %v1528_v56 = vpop.f32.mrf.mxu0 }
 0x247   : > { %v5018_v54 = vpack.c.bf16 %v4886_v50, %v4886_v50  ;;  %v3801_v55 = vadd.f32 %v3550_v53, %v2005_v51  ;;  %v2009_v59 = vpop.f32.mrf.mxu1  ;;  %v2008_v62 = vadd.f32 %v2007_v39, %v1528_v56  ;;  %v946_v51 = vor.u32 %v944_v42, %v942_v17 }
 0x248   : > { %6072 = vmatmul.msk.bf16.gmra.mxu3 %vm1181_vm1, %v3960_v52  ;;  %v950_v52 = vrot.slane %v948_v43, 1 }
 0x249   : > { %5151 = vst.msk [vmem:[%s6438_s14 + $0xd0] sm:$0xf] %vm5098_vm4, %v5018_v54  ;;  %v4619_v60 = vadd.f32 %v4368_v45, %v3801_v55  ;;  %5598 = vmatmul.msk.bf16.gmra.mxu0 %vm1181_vm1, %v935_v57  ;;  %v2971_v45 = vshrl.u32 %v6980_v1, 16  ;;  %v2977_v54 = vrot.slane %v2975_v46, 1  ;;  %v3964_v57 = vsel %vm3887_vm2, %v3961_v13, %v3963_v48 }
 0x24b   : > { %v4755_v61 = vadd.f32 %v6954_v25, %v4619_v60  ;;  %6000 = vmatmul.msk.bf16.gmra.mxu2 %vm1181_vm1, %v2962_v58  ;;  %v4371_v63 = vpop.f32.mrf.mxu3  ;;  %v2973_v53 = vor.u32 %v2971_v45, %v2969_v19 }
 0x24d   : > { %v4887_v2 = vmax.f32 %v4755_v61, 0.0 }
 0x24e   : > { %v3553_v3 = vpop.f32.mrf.mxu2  ;;  %v1530_v6 = vpop.f32.mrf.mxu0 }
 0x24f   : > { %v5019_v4 = vpack.c.bf16 %v4887_v2, %v4887_v2  ;;  %v3802_v5 = vadd.f32 %v3553_v3, %v2008_v62  ;;  %v2012_v9 = vpop.f32.mrf.mxu1  ;;  %v2010_v33 = vadd.f32 %v2009_v59, %v1530_v6  ;;  %v951_v62 = vsel %vm643_vm3, %v946_v51, %v950_v52  ;;  %v7020_v6 = vld [vmem:[%s6332_s6 + $0x148] sm:$0xff] }
 0x250   : > { %v2983_v16 = vshll.u32 %v7020_v6, 16  ;;  %v3965_v18 = vrot.slane %v7020_v6, 1 }
 0x251   : > { %5152 = vst.msk [vmem:[%s6438_s14 + $0xd4] sm:$0xf] %vm5098_vm4, %v5019_v4  ;;  %v4620_v12 = vadd.f32 %v4371_v63, %v3802_v5  ;;  %v2978_v63 = vsel %vm643_vm3, %v2973_v53, %v2977_v54  ;;  %v6144_v5 = vld [vmem:[%s6332_s6 + $0x138] sm:$0xff] }
 0x252   : > { %5669 = vmatmul.msk.bf16.gmra.mxu1 %vm1181_vm1, %v6141_v29  ;;  %v956_v13 = vshll.u32 %v6144_v5, 16 }
 0x253   : > { %v4756_v14 = vadd.f32 %v6954_v25, %v4620_v12  ;;  %v4373_v15 = vpop.f32.mrf.mxu3  ;;  %v952_v12 = vshrl.u32 %v6143_v35, 16 }
 0x255   : > { %v4888_v20 = vmax.f32 %v4756_v14, 0.0 }
 0x256   : > { %v3555_v21 = vpop.f32.mrf.mxu2  ;;  %v1533_v26 = vpop.f32.mrf.mxu0 }
 0x257   : > { %v5020_v22 = vpack.c.bf16 %v4888_v20, %v4888_v20  ;;  %v3803_v23 = vadd.f32 %v3555_v21, %v2010_v33  ;;  %v2014_v29 = vpop.f32.mrf.mxu1  ;;  %v2013_v32 = vadd.f32 %v2012_v9, %v1533_v26  ;;  %v954_v33 = vor.u32 %v952_v12, %v950_v52 }
 0x258   : > { %6073 = vmatmul.msk.bf16.gmra.mxu3 %vm1181_vm1, %v3962_v24  ;;  %v958_v24 = vrot.slane %v956_v13, 1 }
 0x259   : > { %5153 = vst.msk [vmem:[%s6438_s14 + $0xd8] sm:$0xf] %vm5098_vm4, %v5020_v22  ;;  %v4621_v30 = vadd.f32 %v4373_v15, %v3803_v23  ;;  %5599 = vmatmul.msk.bf16.gmra.mxu0 %vm1181_vm1, %v943_v27  ;;  %v2979_v15 = vshrl.u32 %v7000_v36, 16  ;;  %v2985_v22 = vrot.slane %v2983_v16, 1  ;;  %v3966_v27 = vsel %vm3887_vm2, %v3963_v48, %v3965_v18 }
 0x25b   : > { %v4757_v31 = vadd.f32 %v6954_v25, %v4621_v30  ;;  %6001 = vmatmul.msk.bf16.gmra.mxu2 %vm1181_vm1, %v2970_v28  ;;  %v4376_v34 = vpop.f32.mrf.mxu3  ;;  %v2981_v21 = vor.u32 %v2979_v15, %v2977_v54 }
 0x25d   : > { %v4889_v37 = vmax.f32 %v4757_v31, 0.0 }
 0x25e   : > { %v3558_v38 = vpop.f32.mrf.mxu2  ;;  %v1535_v41 = vpop.f32.mrf.mxu0 }
 0x25f   : > { %v5021_v39 = vpack.c.bf16 %v4889_v37, %v4889_v37  ;;  %v3804_v40 = vadd.f32 %v3558_v38, %v2013_v32  ;;  %v2017_v44 = vpop.f32.mrf.mxu1  ;;  %v2015_v56 = vadd.f32 %v2014_v29, %v1535_v41  ;;  %v959_v32 = vsel %vm643_vm3, %v954_v33, %v958_v24  ;;  %v7040_v41 = vld [vmem:[%s6332_s6 + $0x150] sm:$0xff] }
 0x260   : > { %v2991_v51 = vshll.u32 %v7040_v41, 16  ;;  %v3967_v53 = vrot.slane %v7040_v41, 1 }
 0x261   : > { %5154 = vst.msk [vmem:[%s6438_s14 + $0xdc] sm:$0xf] %vm5098_vm4, %v5021_v39  ;;  %v4622_v47 = vadd.f32 %v4376_v34, %v3804_v40  ;;  %v2986_v34 = vsel %vm643_vm3, %v2981_v21, %v2985_v22  ;;  %v6145_v40 = vld [vmem:[%s6332_s6 + $0x140] sm:$0xff] }
 0x262   : > { %5670 = vmatmul.msk.bf16.gmra.mxu1 %vm1181_vm1, %v6142_v0  ;;  %v964_v48 = vshll.u32 %v6145_v40, 16 }
 0x263   : > { %v4758_v49 = vadd.f32 %v6954_v25, %v4622_v47  ;;  %v4378_v50 = vpop.f32.mrf.mxu3  ;;  %v960_v47 = vshrl.u32 %v6144_v5, 16 }
 0x265   : > { %v4890_v55 = vmax.f32 %v4758_v49, 0.0 }
 0x266   : > { %v3560_v58 = vpop.f32.mrf.mxu2  ;;  %v1538_v61 = vpop.f32.mrf.mxu0 }
 0x267   : > { %v5022_v59 = vpack.c.bf16 %v4890_v55, %v4890_v55  ;;  %v3805_v60 = vadd.f32 %v3560_v58, %v2015_v56  ;;  %v2019_v0 = vpop.f32.mrf.mxu1  ;;  %v2018_v3 = vadd.f32 %v2017_v44, %v1538_v61  ;;  %v962_v56 = vor.u32 %v960_v47, %v958_v24 }
 0x268   : > { %6074 = vmatmul.msk.bf16.gmra.mxu3 %vm1181_vm1, %v3964_v57  ;;  %v966_v57 = vrot.slane %v964_v48, 1 }
 0x269   : > { %5155 = vst.msk [vmem:[%s6438_s14 + $0xe0] sm:$0xf] %vm5098_vm4, %v5022_v59  ;;  %v4623_v1 = vadd.f32 %v4378_v50, %v3805_v60  ;;  %5600 = vmatmul.msk.bf16.gmra.mxu0 %vm1181_vm1, %v951_v62  ;;  %v2987_v50 = vshrl.u32 %v7020_v6, 16  ;;  %v2993_v59 = vrot.slane %v2991_v51, 1  ;;  %v3968_v62 = vsel %vm3887_vm2, %v3965_v18, %v3967_v53 }
 0x26b   : > { %v4759_v2 = vadd.f32 %v6954_v25, %v4623_v1  ;;  %6002 = vmatmul.msk.bf16.gmra.mxu2 %vm1181_vm1, %v2978_v63  ;;  %v4381_v4 = vpop.f32.mrf.mxu3  ;;  %v2989_v58 = vor.u32 %v2987_v50, %v2985_v22 }
 0x26d   : > { %v4891_v7 = vmax.f32 %v4759_v2, 0.0 }
 0x26e   : > { %v3563_v8 = vpop.f32.mrf.mxu2  ;;  %v1540_v11 = vpop.f32.mrf.mxu0 }
 0x26f   : > { %v5023_v9 = vpack.c.bf16 %v4891_v7, %v4891_v7  ;;  %v3806_v10 = vadd.f32 %v3563_v8, %v2018_v3  ;;  %v2022_v14 = vpop.f32.mrf.mxu1  ;;  %v2020_v26 = vadd.f32 %v2019_v0, %v1540_v11  ;;  %v967_v3 = vsel %vm643_vm3, %v962_v56, %v966_v57  ;;  %v7060_v11 = vld [vmem:[%s6332_s6 + $0x158] sm:$0xff] }
 0x270   : > { %v2999_v33 = vshll.u32 %v7060_v11, 16  ;;  %v3969_v21 = vrot.slane %v7060_v11, 1 }
 0x271   : > { %5156 = vst.msk [vmem:[%s6438_s14 + $0xe4] sm:$0xf] %vm5098_vm4, %v5023_v9  ;;  %v4624_v17 = vadd.f32 %v4381_v4, %v3806_v10  ;;  %v2994_v4 = vsel %vm643_vm3, %v2989_v58, %v2993_v59  ;;  %v6146_v10 = vld [vmem:[%s6332_s6 + $0x148] sm:$0xff] }
 0x272   : > { %5671 = vmatmul.msk.bf16.gmra.mxu1 %vm1181_vm1, %v6143_v35  ;;  %v972_v18 = vshll.u32 %v6146_v10, 16 }
 0x273   : > { %v4760_v19 = vadd.f32 %v6954_v25, %v4624_v17  ;;  %v4383_v20 = vpop.f32.mrf.mxu3  ;;  %v968_v17 = vshrl.u32 %v6145_v40, 16 }
 0x275   : > { %v4892_v23 = vmax.f32 %v4760_v19, 0.0 }
 0x276   : > { %v3565_v28 = vpop.f32.mrf.mxu2  ;;  %v1543_v31 = vpop.f32.mrf.mxu0 }
 0x277   : > { %v5024_v29 = vpack.c.bf16 %v4892_v23, %v4892_v23  ;;  %v3807_v30 = vadd.f32 %v3565_v28, %v2020_v26  ;;  %v2024_v35 = vpop.f32.mrf.mxu1  ;;  %v2023_v38 = vadd.f32 %v2022_v14, %v1543_v31  ;;  %v970_v26 = vor.u32 %v968_v17, %v966_v57 }
 0x278   : > { %6075 = vmatmul.msk.bf16.gmra.mxu3 %vm1181_vm1, %v3966_v27  ;;  %v974_v27 = vrot.slane %v972_v18, 1 }
 0x279   : > { %5157 = vst.msk [vmem:[%s6438_s14 + $0xe8] sm:$0xf] %vm5098_vm4, %v5024_v29  ;;  %v4625_v36 = vadd.f32 %v4383_v20, %v3807_v30  ;;  %5601 = vmatmul.msk.bf16.gmra.mxu0 %vm1181_vm1, %v959_v32  ;;  %v2995_v20 = vshrl.u32 %v7040_v41, 16  ;;  %v3001_v29 = vrot.slane %v2999_v33, 1  ;;  %v3970_v32 = vsel %vm3887_vm2, %v3967_v53, %v3969_v21 }
 0x27b   : > { %v4761_v37 = vadd.f32 %v6954_v25, %v4625_v36  ;;  %6003 = vmatmul.msk.bf16.gmra.mxu2 %vm1181_vm1, %v2986_v34  ;;  %v4386_v39 = vpop.f32.mrf.mxu3  ;;  %v2997_v28 = vor.u32 %v2995_v20, %v2993_v59 }
 0x27d   : > { %v4893_v42 = vmax.f32 %v4761_v37, 0.0 }
 0x27e   : > { %v3568_v43 = vpop.f32.mrf.mxu2  ;;  %v1545_v46 = vpop.f32.mrf.mxu0 }
 0x27f   : > { %v5025_v44 = vpack.c.bf16 %v4893_v42, %v4893_v42  ;;  %v3808_v45 = vadd.f32 %v3568_v43, %v2023_v38  ;;  %v2027_v49 = vpop.f32.mrf.mxu1  ;;  %v2025_v61 = vadd.f32 %v2024_v35, %v1545_v46  ;;  %v975_v38 = vsel %vm643_vm3, %v970_v26, %v974_v27  ;;  %v7080_v46 = vld [vmem:[%s6332_s6 + $0x160] sm:$0xff] }
 0x280   : > { %v3007_v56 = vshll.u32 %v7080_v46, 16  ;;  %v3971_v58 = vrot.slane %v7080_v46, 1 }
 0x281   : > { %5158 = vst.msk [vmem:[%s6438_s14 + $0xec] sm:$0xf] %vm5098_vm4, %v5025_v44  ;;  %v4626_v52 = vadd.f32 %v4386_v39, %v3808_v45  ;;  %v3002_v39 = vsel %vm643_vm3, %v2997_v28, %v3001_v29  ;;  %v6147_v45 = vld [vmem:[%s6332_s6 + $0x150] sm:$0xff] }
 0x282   : > { %5672 = vmatmul.msk.bf16.gmra.mxu1 %vm1181_vm1, %v6144_v5  ;;  %v980_v53 = vshll.u32 %v6147_v45, 16 }
 0x283   : > { %v4762_v54 = vadd.f32 %v6954_v25, %v4626_v52  ;;  %v4388_v55 = vpop.f32.mrf.mxu3  ;;  %v976_v52 = vshrl.u32 %v6146_v10, 16 }
 0x285   : > { %v4894_v60 = vmax.f32 %v4762_v54, 0.0 }
 0x286   : > { %v3570_v63 = vpop.f32.mrf.mxu2  ;;  %v1548_v2 = vpop.f32.mrf.mxu0 }
 0x287   : > { %v5026_v0 = vpack.c.bf16 %v4894_v60, %v4894_v60  ;;  %v3809_v1 = vadd.f32 %v3570_v63, %v2025_v61  ;;  %v2029_v5 = vpop.f32.mrf.mxu1  ;;  %v2028_v8 = vadd.f32 %v2027_v49, %v1548_v2  ;;  %v978_v61 = vor.u32 %v976_v52, %v974_v27 }
 0x288   : > { %6076 = vmatmul.msk.bf16.gmra.mxu3 %vm1181_vm1, %v3968_v62  ;;  %v982_v62 = vrot.slane %v980_v53, 1 }
 0x289   : > { %5159 = vst.msk [vmem:[%s6438_s14 + $0xf0] sm:$0xf] %vm5098_vm4, %v5026_v0  ;;  %v4627_v6 = vadd.f32 %v4388_v55, %v3809_v1  ;;  %5602 = vmatmul.msk.bf16.gmra.mxu0 %vm1181_vm1, %v967_v3  ;;  %v3003_v55 = vshrl.u32 %v7060_v11, 16  ;;  %v3009_v0 = vrot.slane %v3007_v56, 1  ;;  %v3972_v3 = vsel %vm3887_vm2, %v3969_v21, %v3971_v58 }
 0x28b   : > { %v4763_v7 = vadd.f32 %v6954_v25, %v4627_v6  ;;  %6004 = vmatmul.msk.bf16.gmra.mxu2 %vm1181_vm1, %v2994_v4  ;;  %v4391_v9 = vpop.f32.mrf.mxu3  ;;  %v3005_v63 = vor.u32 %v3003_v55, %v3001_v29 }
 0x28d   : > { %v4895_v12 = vmax.f32 %v4763_v7, 0.0 }
 0x28e   : > { %v3573_v13 = vpop.f32.mrf.mxu2  ;;  %v1550_v16 = vpop.f32.mrf.mxu0 }
 0x28f   : > { %v5027_v14 = vpack.c.bf16 %v4895_v12, %v4895_v12  ;;  %v3810_v15 = vadd.f32 %v3573_v13, %v2028_v8  ;;  %v2032_v19 = vpop.f32.mrf.mxu1  ;;  %v2030_v31 = vadd.f32 %v2029_v5, %v1550_v16  ;;  %v983_v8 = vsel %vm643_vm3, %v978_v61, %v982_v62  ;;  %v7100_v16 = vld [vmem:[%s6332_s6 + $0x168] sm:$0xff] }
 0x290   : > { %v3015_v26 = vshll.u32 %v7100_v16, 16  ;;  %v3973_v28 = vrot.slane %v7100_v16, 1 }
 0x291   : > { %5160 = vst.msk [vmem:[%s6438_s14 + $0xf4] sm:$0xf] %vm5098_vm4, %v5027_v14  ;;  %v4628_v24 = vadd.f32 %v4391_v9, %v3810_v15  ;;  %v3010_v9 = vsel %vm643_vm3, %v3005_v63, %v3009_v0  ;;  %v6148_v15 = vld [vmem:[%s6332_s6 + $0x158] sm:$0xff] }
 0x292   : > { %5673 = vmatmul.msk.bf16.gmra.mxu1 %vm1181_vm1, %v6145_v40  ;;  %v988_v21 = vshll.u32 %v6148_v15, 16 }
 0x293   : > { %v4764_v22 = vadd.f32 %v6954_v25, %v4628_v24  ;;  %v4393_v23 = vpop.f32.mrf.mxu3  ;;  %v984_v24 = vshrl.u32 %v6147_v45, 16 }
 0x295   : > { %v4896_v30 = vmax.f32 %v4764_v22, 0.0 }
 0x296   : > { %v3575_v34 = vpop.f32.mrf.mxu2  ;;  %v1553_v37 = vpop.f32.mrf.mxu0 }
 0x297   : > { %v5028_v35 = vpack.c.bf16 %v4896_v30, %v4896_v30  ;;  %v3811_v36 = vadd.f32 %v3575_v34, %v2030_v31  ;;  %v2034_v40 = vpop.f32.mrf.mxu1  ;;  %v2033_v43 = vadd.f32 %v2032_v19, %v1553_v37  ;;  %v986_v31 = vor.u32 %v984_v24, %v982_v62 }
 0x298   : > { %6077 = vmatmul.msk.bf16.gmra.mxu3 %vm1181_vm1, %v3970_v32  ;;  %v990_v32 = vrot.slane %v988_v21, 1 }
 0x299   : > { %5161 = vst.msk [vmem:[%s6438_s14 + $0xf8] sm:$0xf] %vm5098_vm4, %v5028_v35  ;;  %v4629_v41 = vadd.f32 %v4393_v23, %v3811_v36  ;;  %5603 = vmatmul.msk.bf16.gmra.mxu0 %vm1181_vm1, %v975_v38  ;;  %v3011_v23 = vshrl.u32 %v7080_v46, 16  ;;  %v3017_v35 = vrot.slane %v3015_v26, 1  ;;  %v3974_v38 = vsel %vm3887_vm2, %v3971_v58, %v3973_v28 }
 0x29b   : > { %v4765_v42 = vadd.f32 %v6954_v25, %v4629_v41  ;;  %6005 = vmatmul.msk.bf16.gmra.mxu2 %vm1181_vm1, %v3002_v39  ;;  %v4396_v44 = vpop.f32.mrf.mxu3  ;;  %v3013_v34 = vor.u32 %v3011_v23, %v3009_v0 }
 0x29d   : > { %v4897_v47 = vmax.f32 %v4765_v42, 0.0 }
 0x29e   : > { %v3578_v48 = vpop.f32.mrf.mxu2  ;;  %v1555_v51 = vpop.f32.mrf.mxu0 }
 0x29f   : > { %v5029_v49 = vpack.c.bf16 %v4897_v47, %v4897_v47  ;;  %v3812_v50 = vadd.f32 %v3578_v48, %v2033_v43  ;;  %v2037_v54 = vpop.f32.mrf.mxu1  ;;  %v2035_v2 = vadd.f32 %v2034_v40, %v1555_v51  ;;  %v991_v43 = vsel %vm643_vm3, %v986_v31, %v990_v32  ;;  %v7120_v51 = vld [vmem:[%s6332_s6 + $0x170] sm:$0xff] }
 0x2a0   : > { %v3023_v61 = vshll.u32 %v7120_v51, 16  ;;  %v3975_v63 = vrot.slane %v7120_v51, 1 }
 0x2a1   : > { %5162 = vst.msk [vmem:[%s6438_s14 + $0xfc] sm:$0xf] %vm5098_vm4, %v5029_v49  ;;  %v4630_v57 = vadd.f32 %v4396_v44, %v3812_v50  ;;  %v3018_v44 = vsel %vm643_vm3, %v3013_v34, %v3017_v35  ;;  %v6149_v50 = vld [vmem:[%s6332_s6 + $0x160] sm:$0xff] }
 0x2a2   : > { %5674 = vmatmul.msk.bf16.gmra.mxu1 %vm1181_vm1, %v6146_v10  ;;  %v996_v58 = vshll.u32 %v6149_v50, 16 }
 0x2a3   : > { %v4766_v59 = vadd.f32 %v6954_v25, %v4630_v57  ;;  %v4398_v60 = vpop.f32.mrf.mxu3  ;;  %v992_v57 = vshrl.u32 %v6148_v15, 16 }
 0x2a5   : > { %v4898_v1 = vmax.f32 %v4766_v59, 0.0 }
 0x2a6   : > { %v3580_v4 = vpop.f32.mrf.mxu2  ;;  %v1558_v7 = vpop.f32.mrf.mxu0 }
 0x2a7   : > { %v5030_v5 = vpack.c.bf16 %v4898_v1, %v4898_v1  ;;  %v3813_v6 = vadd.f32 %v3580_v4, %v2035_v2  ;;  %v2039_v10 = vpop.f32.mrf.mxu1  ;;  %v2038_v13 = vadd.f32 %v2037_v54, %v1558_v7  ;;  %v994_v2 = vor.u32 %v992_v57, %v990_v32 }
 0x2a8   : > { %6078 = vmatmul.msk.bf16.gmra.mxu3 %vm1181_vm1, %v3972_v3  ;;  %v998_v3 = vrot.slane %v996_v58, 1 }
 0x2a9   : > { %5163 = vst.msk [vmem:[%s6438_s14 + $0x100] sm:$0xf] %vm5098_vm4, %v5030_v5  ;;  %v4631_v11 = vadd.f32 %v4398_v60, %v3813_v6  ;;  %5604 = vmatmul.msk.bf16.gmra.mxu0 %vm1181_vm1, %v983_v8  ;;  %v3019_v60 = vshrl.u32 %v7100_v16, 16  ;;  %v3025_v5 = vrot.slane %v3023_v61, 1  ;;  %v3976_v8 = vsel %vm3887_vm2, %v3973_v28, %v3975_v63 }
 0x2ab   : > { %v4767_v12 = vadd.f32 %v6954_v25, %v4631_v11  ;;  %6006 = vmatmul.msk.bf16.gmra.mxu2 %vm1181_vm1, %v3010_v9  ;;  %v4401_v14 = vpop.f32.mrf.mxu3  ;;  %v3021_v4 = vor.u32 %v3019_v60, %v3017_v35 }
 0x2ad   : > { %v4899_v17 = vmax.f32 %v4767_v12, 0.0 }
 0x2ae   : > { %v3583_v18 = vpop.f32.mrf.mxu2  ;;  %v1560_v33 = vpop.f32.mrf.mxu0 }
 0x2af   : > { %v5031_v19 = vpack.c.bf16 %v4899_v17, %v4899_v17  ;;  %v3814_v20 = vadd.f32 %v3583_v18, %v2038_v13  ;;  %v2042_v22 = vpop.f32.mrf.mxu1  ;;  %v2040_v37 = vadd.f32 %v2039_v10, %v1560_v33  ;;  %v999_v13 = vsel %vm643_vm3, %v994_v2, %v998_v3  ;;  %v7140_v33 = vld [vmem:[%s6332_s6 + $0x178] sm:$0xff] }
 0x2b0   : > { %v3031_v31 = vshll.u32 %v7140_v33, 16  ;;  %v3977_v34 = vrot.slane %v7140_v33, 1 }
 0x2b1   : > { %5164 = vst.msk [vmem:[%s6438_s14 + $0x104] sm:$0xf] %vm5098_vm4, %v5031_v19  ;;  %v4632_v27 = vadd.f32 %v4401_v14, %v3814_v20  ;;  %v3026_v14 = vsel %vm643_vm3, %v3021_v4, %v3025_v5  ;;  %v6150_v20 = vld [vmem:[%s6332_s6 + $0x168] sm:$0xff] }
 0x2b2   : > { %5675 = vmatmul.msk.bf16.gmra.mxu1 %vm1181_vm1, %v6147_v45  ;;  %v1004_v28 = vshll.u32 %v6150_v20, 16 }
 0x2b3   : > { %v4768_v29 = vadd.f32 %v6954_v25, %v4632_v27  ;;  %v4403_v30 = vpop.f32.mrf.mxu3  ;;  %v1000_v27 = vshrl.u32 %v6149_v50, 16 }
 0x2b5   : > { %v4900_v36 = vmax.f32 %v4768_v29, 0.0 }
 0x2b6   : > { %v3585_v39 = vpop.f32.mrf.mxu2  ;;  %v1563_v42 = vpop.f32.mrf.mxu0 }
 0x2b7   : > { %v5032_v40 = vpack.c.bf16 %v4900_v36, %v4900_v36  ;;  %v3815_v41 = vadd.f32 %v3585_v39, %v2040_v37  ;;  %v2044_v45 = vpop.f32.mrf.mxu1  ;;  %v2043_v48 = vadd.f32 %v2042_v22, %v1563_v42  ;;  %v1002_v37 = vor.u32 %v1000_v27, %v998_v3 }
 0x2b8   : > { %6079 = vmatmul.msk.bf16.gmra.mxu3 %vm1181_vm1, %v3974_v38  ;;  %v1006_v38 = vrot.slane %v1004_v28, 1 }
 0x2b9   : > { %5165 = vst.msk [vmem:[%s6438_s14 + $0x108] sm:$0xf] %vm5098_vm4, %v5032_v40  ;;  %v4633_v46 = vadd.f32 %v4403_v30, %v3815_v41  ;;  %5605 = vmatmul.msk.bf16.gmra.mxu0 %vm1181_vm1, %v991_v43  ;;  %v3027_v30 = vshrl.u32 %v7120_v51, 16  ;;  %v3033_v40 = vrot.slane %v3031_v31, 1  ;;  %v3978_v43 = vsel %vm3887_vm2, %v3975_v63, %v3977_v34 }
 0x2bb   : > { %v4769_v47 = vadd.f32 %v6954_v25, %v4633_v46  ;;  %6007 = vmatmul.msk.bf16.gmra.mxu2 %vm1181_vm1, %v3018_v44  ;;  %v4406_v49 = vpop.f32.mrf.mxu3  ;;  %v3029_v39 = vor.u32 %v3027_v30, %v3025_v5 }
 0x2bd   : > { %v4901_v52 = vmax.f32 %v4769_v47, 0.0 }
 0x2be   : > { %v3588_v53 = vpop.f32.mrf.mxu2  ;;  %v1565_v56 = vpop.f32.mrf.mxu0 }
 0x2bf   : > { %v5033_v54 = vpack.c.bf16 %v4901_v52, %v4901_v52  ;;  %v3816_v55 = vadd.f32 %v3588_v53, %v2043_v48  ;;  %v2047_v59 = vpop.f32.mrf.mxu1  ;;  %v2045_v7 = vadd.f32 %v2044_v45, %v1565_v56  ;;  %v1007_v48 = vsel %vm643_vm3, %v1002_v37, %v1006_v38  ;;  %v7160_v56 = vld [vmem:[%s6332_s6 + $0x180] sm:$0xff] }
 0x2c0   : > { %v3039_v2 = vshll.u32 %v7160_v56, 16  ;;  %v3979_v4 = vrot.slane %v7160_v56, 1 }
 0x2c1   : > { %5166 = vst.msk [vmem:[%s6438_s14 + $0x10c] sm:$0xf] %vm5098_vm4, %v5033_v54  ;;  %v4634_v62 = vadd.f32 %v4406_v49, %v3816_v55  ;;  %v3034_v49 = vsel %vm643_vm3, %v3029_v39, %v3033_v40  ;;  %v6151_v55 = vld [vmem:[%s6332_s6 + $0x170] sm:$0xff] }
 0x2c2   : > { %5676 = vmatmul.msk.bf16.gmra.mxu1 %vm1181_vm1, %v6148_v15  ;;  %v1012_v63 = vshll.u32 %v6151_v55, 16 }
 0x2c3   : > { %v4770_v0 = vadd.f32 %v6954_v25, %v4634_v62  ;;  %v4408_v1 = vpop.f32.mrf.mxu3  ;;  %v1008_v62 = vshrl.u32 %v6150_v20, 16 }
 0x2c5   : > { %v4902_v6 = vmax.f32 %v4770_v0, 0.0 }
 0x2c6   : > { %v3590_v9 = vpop.f32.mrf.mxu2  ;;  %v1568_v12 = vpop.f32.mrf.mxu0 }
 0x2c7   : > { %v5034_v10 = vpack.c.bf16 %v4902_v6, %v4902_v6  ;;  %v3817_v11 = vadd.f32 %v3590_v9, %v2045_v7  ;;  %v2049_v15 = vpop.f32.mrf.mxu1  ;;  %v2048_v18 = vadd.f32 %v2047_v59, %v1568_v12  ;;  %v1010_v7 = vor.u32 %v1008_v62, %v1006_v38 }
 0x2c8   : > { %6080 = vmatmul.msk.bf16.gmra.mxu3 %vm1181_vm1, %v3976_v8  ;;  %v1014_v8 = vrot.slane %v1012_v63, 1 }
 0x2c9   : > { %5167 = vst.msk [vmem:[%s6438_s14 + $0x110] sm:$0xf] %vm5098_vm4, %v5034_v10  ;;  %v4635_v16 = vadd.f32 %v4408_v1, %v3817_v11  ;;  %5606 = vmatmul.msk.bf16.gmra.mxu0 %vm1181_vm1, %v999_v13  ;;  %v3035_v1 = vshrl.u32 %v7140_v33, 16  ;;  %v3041_v10 = vrot.slane %v3039_v2, 1  ;;  %v3980_v13 = vsel %vm3887_vm2, %v3977_v34, %v3979_v4 }
 0x2cb   : > { %v4771_v17 = vadd.f32 %v6954_v25, %v4635_v16  ;;  %6008 = vmatmul.msk.bf16.gmra.mxu2 %vm1181_vm1, %v3026_v14  ;;  %v4411_v19 = vpop.f32.mrf.mxu3  ;;  %v3037_v9 = vor.u32 %v3035_v1, %v3033_v40 }
 0x2cd   : > { %v4903_v24 = vmax.f32 %v4771_v17, 0.0 }
 0x2ce   : > { %v3593_v21 = vpop.f32.mrf.mxu2  ;;  %v1570_v26 = vpop.f32.mrf.mxu0 }
 0x2cf   : > { %v5035_v22 = vpack.c.bf16 %v4903_v24, %v4903_v24  ;;  %v3818_v23 = vadd.f32 %v3593_v21, %v2048_v18  ;;  %v2052_v29 = vpop.f32.mrf.mxu1  ;;  %v2050_v42 = vadd.f32 %v2049_v15, %v1570_v26  ;;  %v1015_v18 = vsel %vm643_vm3, %v1010_v7, %v1014_v8  ;;  %v7180_v26 = vld [vmem:[%s6332_s6 + $0x188] sm:$0xff] }
 0x2d0   : > { %v3047_v37 = vshll.u32 %v7180_v26, 16  ;;  %v3981_v39 = vrot.slane %v7180_v26, 1 }
 0x2d1   : > { %5168 = vst.msk [vmem:[%s6438_s14 + $0x114] sm:$0xf] %vm5098_vm4, %v5035_v22  ;;  %v4636_v32 = vadd.f32 %v4411_v19, %v3818_v23  ;;  %v3042_v19 = vsel %vm643_vm3, %v3037_v9, %v3041_v10  ;;  %v6152_v23 = vld [vmem:[%s6332_s6 + $0x178] sm:$0xff] }
 0x2d2   : > { %5677 = vmatmul.msk.bf16.gmra.mxu1 %vm1181_vm1, %v6149_v50  ;;  %v1020_v34 = vshll.u32 %v6152_v23, 16 }
 0x2d3   : > { %v4772_v35 = vadd.f32 %v6954_v25, %v4636_v32  ;;  %v4413_v36 = vpop.f32.mrf.mxu3  ;;  %v1016_v32 = vshrl.u32 %v6151_v55, 16 }
 0x2d5   : > { %v4904_v41 = vmax.f32 %v4772_v35, 0.0 }
 0x2d6   : > { %v3595_v44 = vpop.f32.mrf.mxu2  ;;  %v1573_v47 = vpop.f32.mrf.mxu0 }
 0x2d7   : > { %v5036_v45 = vpack.c.bf16 %v4904_v41, %v4904_v41  ;;  %v3819_v46 = vadd.f32 %v3595_v44, %v2050_v42  ;;  %v2054_v50 = vpop.f32.mrf.mxu1  ;;  %v2053_v53 = vadd.f32 %v2052_v29, %v1573_v47  ;;  %v1018_v42 = vor.u32 %v1016_v32, %v1014_v8 }
 0x2d8   : > { %6081 = vmatmul.msk.bf16.gmra.mxu3 %vm1181_vm1, %v3978_v43  ;;  %v1022_v43 = vrot.slane %v1020_v34, 1 }
 0x2d9   : > { %5169 = vst.msk [vmem:[%s6438_s14 + $0x118] sm:$0xf] %vm5098_vm4, %v5036_v45  ;;  %v4637_v51 = vadd.f32 %v4413_v36, %v3819_v46  ;;  %5607 = vmatmul.msk.bf16.gmra.mxu0 %vm1181_vm1, %v1007_v48  ;;  %v3043_v36 = vshrl.u32 %v7160_v56, 16  ;;  %v3049_v45 = vrot.slane %v3047_v37, 1  ;;  %v3982_v48 = vsel %vm3887_vm2, %v3979_v4, %v3981_v39 }
 0x2db   : > { %v4773_v52 = vadd.f32 %v6954_v25, %v4637_v51  ;;  %6009 = vmatmul.msk.bf16.gmra.mxu2 %vm1181_vm1, %v3034_v49  ;;  %v4416_v54 = vpop.f32.mrf.mxu3  ;;  %v3045_v44 = vor.u32 %v3043_v36, %v3041_v10 }
 0x2dd   : > { %v4905_v57 = vmax.f32 %v4773_v52, 0.0 }
 0x2de   : > { %v3598_v58 = vpop.f32.mrf.mxu2  ;;  %v1575_v61 = vpop.f32.mrf.mxu0 }
 0x2df   : > { %v5037_v59 = vpack.c.bf16 %v4905_v57, %v4905_v57  ;;  %v3820_v60 = vadd.f32 %v3598_v58, %v2053_v53  ;;  %v2057_v0 = vpop.f32.mrf.mxu1  ;;  %v2055_v12 = vadd.f32 %v2054_v50, %v1575_v61  ;;  %v1023_v53 = vsel %vm643_vm3, %v1018_v42, %v1022_v43  ;;  %v7200_v61 = vld [vmem:[%s6332_s6 + $0x190] sm:$0xff] }
 0x2e0   : > { %v3055_v7 = vshll.u32 %v7200_v61, 16  ;;  %v3983_v9 = vrot.slane %v7200_v61, 1 }
 0x2e1   : > { %5170 = vst.msk [vmem:[%s6438_s14 + $0x11c] sm:$0xf] %vm5098_vm4, %v5037_v59  ;;  %v4638_v3 = vadd.f32 %v4416_v54, %v3820_v60  ;;  %v3050_v54 = vsel %vm643_vm3, %v3045_v44, %v3049_v45  ;;  %v6153_v60 = vld [vmem:[%s6332_s6 + $0x180] sm:$0xff] }
 0x2e2   : > { %5678 = vmatmul.msk.bf16.gmra.mxu1 %vm1181_vm1, %v6150_v20  ;;  %v1028_v4 = vshll.u32 %v6153_v60, 16 }
 0x2e3   : > { %v4774_v5 = vadd.f32 %v6954_v25, %v4638_v3  ;;  %v4418_v6 = vpop.f32.mrf.mxu3  ;;  %v1024_v3 = vshrl.u32 %v6152_v23, 16 }
 0x2e5   : > { %v4906_v11 = vmax.f32 %v4774_v5, 0.0 }
 0x2e6   : > { %v3600_v14 = vpop.f32.mrf.mxu2  ;;  %v1578_v17 = vpop.f32.mrf.mxu0 }
 0x2e7   : > { %v5038_v15 = vpack.c.bf16 %v4906_v11, %v4906_v11  ;;  %v3821_v16 = vadd.f32 %v3600_v14, %v2055_v12  ;;  %v2059_v20 = vpop.f32.mrf.mxu1  ;;  %v2058_v21 = vadd.f32 %v2057_v0, %v1578_v17  ;;  %v1026_v12 = vor.u32 %v1024_v3, %v1022_v43 }
 0x2e8   : > { %6082 = vmatmul.msk.bf16.gmra.mxu3 %vm1181_vm1, %v3980_v13  ;;  %v1030_v13 = vrot.slane %v1028_v4, 1 }
 0x2e9   : > { %5171 = vst.msk [vmem:[%s6438_s14 + $0x120] sm:$0xf] %vm5098_vm4, %v5038_v15  ;;  %v4639_v33 = vadd.f32 %v4418_v6, %v3821_v16  ;;  %5608 = vmatmul.msk.bf16.gmra.mxu0 %vm1181_vm1, %v1015_v18  ;;  %v3051_v6 = vshrl.u32 %v7180_v26, 16  ;;  %v3057_v15 = vrot.slane %v3055_v7, 1  ;;  %v3984_v18 = vsel %vm3887_vm2, %v3981_v39, %v3983_v9  ;;  %v7219_v26 = vld [vmem:[%s7650_s2] ss:$0 sm:$0xff] }
 0x2eb   : > { %v4775_v24 = vadd.f32 %v6954_v25, %v4639_v33  ;;  %6010 = vmatmul.msk.bf16.gmra.mxu2 %vm1181_vm1, %v3042_v19  ;;  %v4421_v22 = vpop.f32.mrf.mxu3  ;;  %v3053_v14 = vor.u32 %v3051_v6, %v3049_v45 }
 0x2ed   : > { %v4907_v27 = vmax.f32 %v4775_v24, 0.0 }
 0x2ee   : > { %v3603_v28 = vpop.f32.mrf.mxu2  ;;  %v1580_v31 = vpop.f32.mrf.mxu0 }
 0x2ef   : > { %v5039_v29 = vpack.c.bf16 %v4907_v27, %v4907_v27  ;;  %v3822_v30 = vadd.f32 %v3603_v28, %v2058_v21  ;;  %v2062_v35 = vpop.f32.mrf.mxu1  ;;  %v2060_v47 = vadd.f32 %v2059_v20, %v1580_v31  ;;  %v3058_v21 = vsel %vm643_vm3, %v3053_v14, %v3057_v15  ;;  %v7225_v31 = vld [vmem:[%s6332_s6 + $0x198] sm:$0xff] }
 0x2f0   : > { %v3063_v42 = vshll.u32 %v7225_v31, 16  ;;  %v3985_v44 = vrot.slane %v7225_v31, 1 }
 0x2f1   : > { %5172 = vst.msk [vmem:[%s6438_s14 + $0x124] sm:$0xf] %vm5098_vm4, %v5039_v29  ;;  %v4640_v38 = vadd.f32 %v4421_v22, %v3822_v30  ;;  %v6154_v30 = vld [vmem:[%s6332_s6 + $0x188] sm:$0xff] }
 0x2f2   : > { %5679 = vmatmul.msk.bf16.gmra.mxu1 %vm1181_vm1, %v6151_v55  ;;  %v1036_v39 = vshll.u32 %v6154_v30, 16 }
 0x2f3   : > { %v4776_v40 = vadd.f32 %v6954_v25, %v4640_v38  ;;  %v4423_v41 = vpop.f32.mrf.mxu3  ;;  %v1032_v38 = vshrl.u32 %v6153_v60, 16 }
 0x2f5   : > { %v4908_v46 = vmax.f32 %v4776_v40, 0.0 }
 0x2f6   : > { %v3605_v49 = vpop.f32.mrf.mxu2  ;;  %v1583_v52 = vpop.f32.mrf.mxu0 }
 0x2f7   : > { %v5040_v50 = vpack.c.bf16 %v4908_v46, %v4908_v46  ;;  %v3823_v51 = vadd.f32 %v3605_v49, %v2060_v47  ;;  %v2064_v55 = vpop.f32.mrf.mxu1  ;;  %v2063_v58 = vadd.f32 %v2062_v35, %v1583_v52  ;;  %v1034_v47 = vor.u32 %v1032_v38, %v1030_v13 }
 0x2f8   : > { %6083 = vmatmul.msk.bf16.gmra.mxu3 %vm1181_vm1, %v3982_v48  ;;  %v1038_v48 = vrot.slane %v1036_v39, 1 }
 0x2f9   : > { %5173 = vst.msk [vmem:[%s6438_s14 + $0x128] sm:$0xf] %vm5098_vm4, %v5040_v50  ;;  %v4641_v56 = vadd.f32 %v4423_v41, %v3823_v51  ;;  %5609 = vmatmul.msk.bf16.gmra.mxu0 %vm1181_vm1, %v1023_v53  ;;  %v3059_v41 = vshrl.u32 %v7200_v61, 16  ;;  %v3065_v50 = vrot.slane %v3063_v42, 1  ;;  %v3986_v53 = vsel %vm3887_vm2, %v3983_v9, %v3985_v44 }
 0x2fb   : > { %v4777_v57 = vadd.f32 %v6954_v25, %v4641_v56  ;;  %6011 = vmatmul.msk.bf16.gmra.mxu2 %vm1181_vm1, %v3050_v54  ;;  %v4426_v59 = vpop.f32.mrf.mxu3  ;;  %v3061_v49 = vor.u32 %v3059_v41, %v3057_v15 }
 0x2fd   : > { %v4909_v62 = vmax.f32 %v4777_v57, 0.0 }
 0x2fe   : > { %v3608_v63 = vpop.f32.mrf.mxu2  ;;  %v1585_v2 = vpop.f32.mrf.mxu0 }
 0x2ff   : > { %v5041_v0 = vpack.c.bf16 %v4909_v62, %v4909_v62  ;;  %v3824_v1 = vadd.f32 %v3608_v63, %v2063_v58  ;;  %v2067_v5 = vpop.f32.mrf.mxu1  ;;  %v2065_v17 = vadd.f32 %v2064_v55, %v1585_v2  ;;  %v1039_v58 = vsel %vm643_vm3, %v1034_v47, %v1038_v48  ;;  %v7245_v2 = vld [vmem:[%s6332_s6 + $0x1a0] sm:$0xff] }
 0x300   : > { %v3987_v14 = vrot.slane %v7245_v2, 1 }
 0x301   : > { %5174 = vst.msk [vmem:[%s6438_s14 + $0x12c] sm:$0xf] %vm5098_vm4, %v5041_v0  ;;  %v4642_v8 = vadd.f32 %v4426_v59, %v3824_v1  ;;  %v3066_v59 = vsel %vm643_vm3, %v3061_v49, %v3065_v50  ;;  %v6155_v1 = vld [vmem:[%s6332_s6 + $0x190] sm:$0xff] }
 0x302   : > { %5680 = vmatmul.msk.bf16.gmra.mxu1 %vm1181_vm1, %v6152_v23  ;;  %v1044_v9 = vshll.u32 %v6155_v1, 16 }
 0x303   : > { %v4778_v10 = vadd.f32 %v6954_v25, %v4642_v8  ;;  %v4428_v11 = vpop.f32.mrf.mxu3  ;;  %v1031_v25 = vsel %vm643_vm3, %v1026_v12, %v1030_v13  ;;  %v1040_v8 = vshrl.u32 %v6154_v30, 16  ;;  %v3071_v12 = vshll.u32 %v7245_v2, 16 }
 0x305   : > { %v4910_v16 = vmax.f32 %v4778_v10, 0.0 }
 0x306   : > { %v3610_v19 = vpop.f32.mrf.mxu2  ;;  %v1588_v24 = vpop.f32.mrf.mxu0 }
 0x307   : > { %v5042_v20 = vpack.c.bf16 %v4910_v16, %v4910_v16  ;;  %v3825_v33 = vadd.f32 %v3610_v19, %v2065_v17  ;;  %v2069_v22 = vpop.f32.mrf.mxu1  ;;  %v2068_v28 = vadd.f32 %v2067_v5, %v1588_v24  ;;  %v1042_v17 = vor.u32 %v1040_v8, %v1038_v48 }
 0x308   : > { %6084 = vmatmul.msk.bf16.gmra.mxu3 %vm1181_vm1, %v3984_v18  ;;  %v1046_v18 = vrot.slane %v1044_v9, 1 }
 0x309   : > { %5175 = vst.msk [vmem:[%s6438_s14 + $0x130] sm:$0xf] %vm5098_vm4, %v5042_v20  ;;  %v4643_v23 = vadd.f32 %v4428_v11, %v3825_v33  ;;  %5610 = vmatmul.msk.bf16.gmra.mxu0 %vm1181_vm1, %v1031_v25  ;;  %v3067_v11 = vshrl.u32 %v7225_v31, 16  ;;  %v3073_v20 = vrot.slane %v3071_v12, 1  ;;  %v3988_v25 = vsel %vm3887_vm2, %v3985_v44, %v3987_v14 }
 0x30b   : > { %v4779_v27 = vadd.f32 %v7219_v26, %v4643_v23  ;;  %6012 = vmatmul.msk.bf16.gmra.mxu2 %vm1181_vm1, %v3058_v21  ;;  %v4431_v29 = vpop.f32.mrf.mxu3  ;;  %v3069_v19 = vor.u32 %v3067_v11, %v3065_v50 }
 0x30d   : > { %v4911_v32 = vmax.f32 %v4779_v27, 0.0 }
 0x30e   : > { %v3613_v34 = vpop.f32.mrf.mxu2  ;;  %v1590_v37 = vpop.f32.mrf.mxu0 }
 0x30f   : > { %v5043_v35 = vpack.c.bf16 %v4911_v32, %v4911_v32  ;;  %v3826_v36 = vadd.f32 %v3613_v34, %v2068_v28  ;;  %v2072_v40 = vpop.f32.mrf.mxu1  ;;  %v2070_v52 = vadd.f32 %v2069_v22, %v1590_v37  ;;  %v1047_v28 = vsel %vm643_vm3, %v1042_v17, %v1046_v18  ;;  %v7265_v37 = vld [vmem:[%s6332_s6 + $0x1a8] sm:$0xff] }
 0x310   : > { %v3079_v47 = vshll.u32 %v7265_v37, 16  ;;  %v3989_v49 = vrot.slane %v7265_v37, 1 }
 0x311   : > { %5176 = vst.msk [vmem:[%s6438_s14 + $0x134] sm:$0xf] %vm5098_vm4, %v5043_v35  ;;  %v4644_v43 = vadd.f32 %v4431_v29, %v3826_v36  ;;  %v3074_v29 = vsel %vm643_vm3, %v3069_v19, %v3073_v20  ;;  %v6156_v36 = vld [vmem:[%s6332_s6 + $0x198] sm:$0xff] }
 0x312   : > { %5681 = vmatmul.msk.bf16.gmra.mxu1 %vm1181_vm1, %v6153_v60  ;;  %v1052_v44 = vshll.u32 %v6156_v36, 16 }
 0x313   : > { %v4780_v45 = vadd.f32 %v7219_v26, %v4644_v43  ;;  %v4433_v46 = vpop.f32.mrf.mxu3  ;;  %v1048_v43 = vshrl.u32 %v6155_v1, 16 }
 0x315   : > { %v4912_v51 = vmax.f32 %v4780_v45, 0.0 }
 0x316   : > { %v3615_v54 = vpop.f32.mrf.mxu2  ;;  %v1593_v57 = vpop.f32.mrf.mxu0 }
 0x317   : > { %v5044_v55 = vpack.c.bf16 %v4912_v51, %v4912_v51  ;;  %v3827_v56 = vadd.f32 %v3615_v54, %v2070_v52  ;;  %v2074_v60 = vpop.f32.mrf.mxu1  ;;  %v2073_v63 = vadd.f32 %v2072_v40, %v1593_v57  ;;  %v1050_v52 = vor.u32 %v1048_v43, %v1046_v18 }
 0x318   : > { %6085 = vmatmul.msk.bf16.gmra.mxu3 %vm1181_vm1, %v3986_v53  ;;  %v1054_v53 = vrot.slane %v1052_v44, 1 }
 0x319   : > { %5177 = vst.msk [vmem:[%s6438_s14 + $0x138] sm:$0xf] %vm5098_vm4, %v5044_v55  ;;  %v4645_v61 = vadd.f32 %v4433_v46, %v3827_v56  ;;  %5611 = vmatmul.msk.bf16.gmra.mxu0 %vm1181_vm1, %v1039_v58  ;;  %v3075_v46 = vshrl.u32 %v7245_v2, 16  ;;  %v3081_v55 = vrot.slane %v3079_v47, 1  ;;  %v3990_v58 = vsel %vm3887_vm2, %v3987_v14, %v3989_v49 }
 0x31b   : > { %v4781_v62 = vadd.f32 %v7219_v26, %v4645_v61  ;;  %6013 = vmatmul.msk.bf16.gmra.mxu2 %vm1181_vm1, %v3066_v59  ;;  %v4436_v0 = vpop.f32.mrf.mxu3  ;;  %v3077_v54 = vor.u32 %v3075_v46, %v3073_v20 }
 0x31d   : > { %v4913_v3 = vmax.f32 %v4781_v62, 0.0 }
 0x31e   : > { %v3618_v4 = vpop.f32.mrf.mxu2  ;;  %v1595_v7 = vpop.f32.mrf.mxu0 }
 0x31f   : > { %v5045_v5 = vpack.c.bf16 %v4913_v3, %v4913_v3  ;;  %v3828_v6 = vadd.f32 %v3618_v4, %v2073_v63  ;;  %v2077_v10 = vpop.f32.mrf.mxu1  ;;  %v2075_v24 = vadd.f32 %v2074_v60, %v1595_v7  ;;  %v1055_v63 = vsel %vm643_vm3, %v1050_v52, %v1054_v53  ;;  %v7285_v7 = vld [vmem:[%s6332_s6 + $0x1b0] sm:$0xff] }
 0x320   : > { %v3087_v17 = vshll.u32 %v7285_v7, 16  ;;  %v3991_v19 = vrot.slane %v7285_v7, 1 }
 0x321   : > { %5178 = vst.msk [vmem:[%s6438_s14 + $0x13c] sm:$0xf] %vm5098_vm4, %v5045_v5  ;;  %v4646_v13 = vadd.f32 %v4436_v0, %v3828_v6  ;;  %v3082_v0 = vsel %vm643_vm3, %v3077_v54, %v3081_v55  ;;  %v6157_v6 = vld [vmem:[%s6332_s6 + $0x1a0] sm:$0xff] }
 0x322   : > { %5682 = vmatmul.msk.bf16.gmra.mxu1 %vm1181_vm1, %v6154_v30  ;;  %v1060_v14 = vshll.u32 %v6157_v6, 16 }
 0x323   : > { %v4782_v15 = vadd.f32 %v7219_v26, %v4646_v13  ;;  %v4438_v16 = vpop.f32.mrf.mxu3  ;;  %v1056_v13 = vshrl.u32 %v6156_v36, 16 }
 0x325   : > { %v4914_v33 = vmax.f32 %v4782_v15, 0.0 }
 0x326   : > { %v3620_v21 = vpop.f32.mrf.mxu2  ;;  %v1598_v27 = vpop.f32.mrf.mxu0 }
 0x327   : > { %v5046_v22 = vpack.c.bf16 %v4914_v33, %v4914_v33  ;;  %v3829_v23 = vadd.f32 %v3620_v21, %v2075_v24  ;;  %v2079_v30 = vpop.f32.mrf.mxu1  ;;  %v2078_v34 = vadd.f32 %v2077_v10, %v1598_v27  ;;  %v1058_v24 = vor.u32 %v1056_v13, %v1054_v53 }
 0x328   : > { %6086 = vmatmul.msk.bf16.gmra.mxu3 %vm1181_vm1, %v3988_v25  ;;  %v1062_v25 = vrot.slane %v1060_v14, 1 }
 0x329   : > { %5179 = vst.msk [vmem:[%s6438_s14 + $0x140] sm:$0xf] %vm5098_vm4, %v5046_v22  ;;  %v4647_v31 = vadd.f32 %v4438_v16, %v3829_v23  ;;  %5612 = vmatmul.msk.bf16.gmra.mxu0 %vm1181_vm1, %v1047_v28  ;;  %v3083_v16 = vshrl.u32 %v7265_v37, 16  ;;  %v3089_v22 = vrot.slane %v3087_v17, 1  ;;  %v3992_v28 = vsel %vm3887_vm2, %v3989_v49, %v3991_v19 }
 0x32b   : > { %v4783_v32 = vadd.f32 %v7219_v26, %v4647_v31  ;;  %6014 = vmatmul.msk.bf16.gmra.mxu2 %vm1181_vm1, %v3074_v29  ;;  %v4441_v35 = vpop.f32.mrf.mxu3  ;;  %v3085_v21 = vor.u32 %v3083_v16, %v3081_v55 }
 0x32d   : > { %v4915_v38 = vmax.f32 %v4783_v32, 0.0 }
 0x32e   : > { %v3623_v39 = vpop.f32.mrf.mxu2  ;;  %v1600_v42 = vpop.f32.mrf.mxu0 }
 0x32f   : > { %v5047_v40 = vpack.c.bf16 %v4915_v38, %v4915_v38  ;;  %v3830_v41 = vadd.f32 %v3623_v39, %v2078_v34  ;;  %v2082_v45 = vpop.f32.mrf.mxu1  ;;  %v2080_v57 = vadd.f32 %v2079_v30, %v1600_v42  ;;  %v1063_v34 = vsel %vm643_vm3, %v1058_v24, %v1062_v25  ;;  %v7305_v42 = vld [vmem:[%s6332_s6 + $0x1b8] sm:$0xff] }
 0x330   : > { %v3095_v52 = vshll.u32 %v7305_v42, 16  ;;  %v3993_v54 = vrot.slane %v7305_v42, 1 }
 0x331   : > { %5180 = vst.msk [vmem:[%s6438_s14 + $0x144] sm:$0xf] %vm5098_vm4, %v5047_v40  ;;  %v4648_v48 = vadd.f32 %v4441_v35, %v3830_v41  ;;  %v3090_v35 = vsel %vm643_vm3, %v3085_v21, %v3089_v22  ;;  %v6158_v41 = vld [vmem:[%s6332_s6 + $0x1a8] sm:$0xff] }
 0x332   : > { %5683 = vmatmul.msk.bf16.gmra.mxu1 %vm1181_vm1, %v6155_v1  ;;  %v1068_v49 = vshll.u32 %v6158_v41, 16 }
 0x333   : > { %v4784_v50 = vadd.f32 %v7219_v26, %v4648_v48  ;;  %v4443_v51 = vpop.f32.mrf.mxu3  ;;  %v1064_v48 = vshrl.u32 %v6157_v6, 16 }
 0x335   : > { %v4916_v56 = vmax.f32 %v4784_v50, 0.0 }
 0x336   : > { %v3625_v59 = vpop.f32.mrf.mxu2  ;;  %v1603_v62 = vpop.f32.mrf.mxu0 }
 0x337   : > { %v5048_v60 = vpack.c.bf16 %v4916_v56, %v4916_v56  ;;  %v3831_v61 = vadd.f32 %v3625_v59, %v2080_v57  ;;  %v2084_v1 = vpop.f32.mrf.mxu1  ;;  %v2083_v4 = vadd.f32 %v2082_v45, %v1603_v62  ;;  %v1066_v57 = vor.u32 %v1064_v48, %v1062_v25 }
 0x338   : > { %6087 = vmatmul.msk.bf16.gmra.mxu3 %vm1181_vm1, %v3990_v58  ;;  %v1070_v58 = vrot.slane %v1068_v49, 1 }
 0x339   : > { %5181 = vst.msk [vmem:[%s6438_s14 + $0x148] sm:$0xf] %vm5098_vm4, %v5048_v60  ;;  %v4649_v2 = vadd.f32 %v4443_v51, %v3831_v61  ;;  %5613 = vmatmul.msk.bf16.gmra.mxu0 %vm1181_vm1, %v1055_v63  ;;  %v3091_v51 = vshrl.u32 %v7285_v7, 16  ;;  %v3097_v60 = vrot.slane %v3095_v52, 1  ;;  %v3994_v63 = vsel %vm3887_vm2, %v3991_v19, %v3993_v54 }
 0x33b   : > { %v4785_v3 = vadd.f32 %v7219_v26, %v4649_v2  ;;  %6015 = vmatmul.msk.bf16.gmra.mxu2 %vm1181_vm1, %v3082_v0  ;;  %v4446_v5 = vpop.f32.mrf.mxu3  ;;  %v3093_v59 = vor.u32 %v3091_v51, %v3089_v22 }
 0x33d   : > { %v4917_v8 = vmax.f32 %v4785_v3, 0.0 }
 0x33e   : > { %v3628_v9 = vpop.f32.mrf.mxu2  ;;  %v1605_v12 = vpop.f32.mrf.mxu0 }
 0x33f   : > { %v5049_v10 = vpack.c.bf16 %v4917_v8, %v4917_v8  ;;  %v3832_v11 = vadd.f32 %v3628_v9, %v2083_v4  ;;  %v2087_v15 = vpop.f32.mrf.mxu1  ;;  %v2085_v27 = vadd.f32 %v2084_v1, %v1605_v12  ;;  %v1071_v4 = vsel %vm643_vm3, %v1066_v57, %v1070_v58  ;;  %v7325_v12 = vld [vmem:[%s6332_s6 + $0x1c0] sm:$0xff] }
 0x340   : > { %v3103_v24 = vshll.u32 %v7325_v12, 16  ;;  %v3995_v21 = vrot.slane %v7325_v12, 1 }
 0x341   : > { %5182 = vst.msk [vmem:[%s6438_s14 + $0x14c] sm:$0xf] %vm5098_vm4, %v5049_v10  ;;  %v4650_v18 = vadd.f32 %v4446_v5, %v3832_v11  ;;  %v3098_v5 = vsel %vm643_vm3, %v3093_v59, %v3097_v60  ;;  %v6159_v11 = vld [vmem:[%s6332_s6 + $0x1b0] sm:$0xff] }
 0x342   : > { %5684 = vmatmul.msk.bf16.gmra.mxu1 %vm1181_vm1, %v6156_v36  ;;  %v1076_v19 = vshll.u32 %v6159_v11, 16 }
 0x343   : > { %v4786_v20 = vadd.f32 %v7219_v26, %v4650_v18  ;;  %v4448_v33 = vpop.f32.mrf.mxu3  ;;  %v1072_v18 = vshrl.u32 %v6158_v41, 16 }
 0x345   : > { %v4918_v23 = vmax.f32 %v4786_v20, 0.0 }
 0x346   : > { %v3630_v29 = vpop.f32.mrf.mxu2  ;;  %v1608_v32 = vpop.f32.mrf.mxu0 }
 0x347   : > { %v5050_v30 = vpack.c.bf16 %v4918_v23, %v4918_v23  ;;  %v3833_v31 = vadd.f32 %v3630_v29, %v2085_v27  ;;  %v2089_v36 = vpop.f32.mrf.mxu1  ;;  %v2088_v39 = vadd.f32 %v2087_v15, %v1608_v32  ;;  %v1074_v27 = vor.u32 %v1072_v18, %v1070_v58 }
 0x348   : > { %6088 = vmatmul.msk.bf16.gmra.mxu3 %vm1181_vm1, %v3992_v28  ;;  %v1078_v28 = vrot.slane %v1076_v19, 1 }
 0x349   : > { %5183 = vst.msk [vmem:[%s6438_s14 + $0x150] sm:$0xf] %vm5098_vm4, %v5050_v30  ;;  %v4651_v37 = vadd.f32 %v4448_v33, %v3833_v31  ;;  %5614 = vmatmul.msk.bf16.gmra.mxu0 %vm1181_vm1, %v1063_v34  ;;  %v3099_v33 = vshrl.u32 %v7305_v42, 16  ;;  %v3105_v30 = vrot.slane %v3103_v24, 1  ;;  %v3996_v34 = vsel %vm3887_vm2, %v3993_v54, %v3995_v21 }
 0x34b   : > { %v4787_v38 = vadd.f32 %v7219_v26, %v4651_v37  ;;  %6016 = vmatmul.msk.bf16.gmra.mxu2 %vm1181_vm1, %v3090_v35  ;;  %v4451_v40 = vpop.f32.mrf.mxu3  ;;  %v3101_v29 = vor.u32 %v3099_v33, %v3097_v60 }
 0x34d   : > { %v4919_v43 = vmax.f32 %v4787_v38, 0.0 }
 0x34e   : > { %v3633_v44 = vpop.f32.mrf.mxu2  ;;  %v1610_v47 = vpop.f32.mrf.mxu0 }
 0x34f   : > { %v5051_v45 = vpack.c.bf16 %v4919_v43, %v4919_v43  ;;  %v3834_v46 = vadd.f32 %v3633_v44, %v2088_v39  ;;  %v2092_v50 = vpop.f32.mrf.mxu1  ;;  %v2090_v62 = vadd.f32 %v2089_v36, %v1610_v47  ;;  %v1079_v39 = vsel %vm643_vm3, %v1074_v27, %v1078_v28  ;;  %v7345_v47 = vld [vmem:[%s6332_s6 + $0x1c8] sm:$0xff] }
 0x350   : > { %v3111_v57 = vshll.u32 %v7345_v47, 16  ;;  %v3997_v59 = vrot.slane %v7345_v47, 1 }
 0x351   : > { %5184 = vst.msk [vmem:[%s6438_s14 + $0x154] sm:$0xf] %vm5098_vm4, %v5051_v45  ;;  %v4652_v53 = vadd.f32 %v4451_v40, %v3834_v46  ;;  %v3106_v40 = vsel %vm643_vm3, %v3101_v29, %v3105_v30  ;;  %v6160_v46 = vld [vmem:[%s6332_s6 + $0x1b8] sm:$0xff] }
 0x352   : > { %5685 = vmatmul.msk.bf16.gmra.mxu1 %vm1181_vm1, %v6157_v6  ;;  %v1084_v54 = vshll.u32 %v6160_v46, 16 }
 0x353   : > { %v4788_v55 = vadd.f32 %v7219_v26, %v4652_v53  ;;  %v4453_v56 = vpop.f32.mrf.mxu3  ;;  %v1080_v53 = vshrl.u32 %v6159_v11, 16 }
 0x355   : > { %v4920_v61 = vmax.f32 %v4788_v55, 0.0 }
 0x356   : > { %v3635_v0 = vpop.f32.mrf.mxu2  ;;  %v1613_v3 = vpop.f32.mrf.mxu0 }
 0x357   : > { %v5052_v1 = vpack.c.bf16 %v4920_v61, %v4920_v61  ;;  %v3835_v2 = vadd.f32 %v3635_v0, %v2090_v62  ;;  %v2094_v6 = vpop.f32.mrf.mxu1  ;;  %v2093_v9 = vadd.f32 %v2092_v50, %v1613_v3  ;;  %v1082_v62 = vor.u32 %v1080_v53, %v1078_v28 }
 0x358   : > { %6089 = vmatmul.msk.bf16.gmra.mxu3 %vm1181_vm1, %v3994_v63  ;;  %v1086_v63 = vrot.slane %v1084_v54, 1 }
 0x359   : > { %5185 = vst.msk [vmem:[%s6438_s14 + $0x158] sm:$0xf] %vm5098_vm4, %v5052_v1  ;;  %v4653_v7 = vadd.f32 %v4453_v56, %v3835_v2  ;;  %5615 = vmatmul.msk.bf16.gmra.mxu0 %vm1181_vm1, %v1071_v4  ;;  %v3107_v56 = vshrl.u32 %v7325_v12, 16  ;;  %v3113_v1 = vrot.slane %v3111_v57, 1  ;;  %v3998_v4 = vsel %vm3887_vm2, %v3995_v21, %v3997_v59 }
 0x35b   : > { %v4789_v8 = vadd.f32 %v7219_v26, %v4653_v7  ;;  %6017 = vmatmul.msk.bf16.gmra.mxu2 %vm1181_vm1, %v3098_v5  ;;  %v4456_v10 = vpop.f32.mrf.mxu3  ;;  %v3109_v0 = vor.u32 %v3107_v56, %v3105_v30 }
 0x35d   : > { %v4921_v13 = vmax.f32 %v4789_v8, 0.0 }
 0x35e   : > { %v3638_v14 = vpop.f32.mrf.mxu2  ;;  %v1615_v17 = vpop.f32.mrf.mxu0 }
 0x35f   : > { %v5053_v15 = vpack.c.bf16 %v4921_v13, %v4921_v13  ;;  %v3836_v16 = vadd.f32 %v3638_v14, %v2093_v9  ;;  %v2097_v20 = vpop.f32.mrf.mxu1  ;;  %v2095_v32 = vadd.f32 %v2094_v6, %v1615_v17  ;;  %v1087_v9 = vsel %vm643_vm3, %v1082_v62, %v1086_v63  ;;  %v7365_v17 = vld [vmem:[%s6332_s6 + $0x1d0] sm:$0xff] }
 0x360   : > { %v3119_v27 = vshll.u32 %v7365_v17, 16  ;;  %v3999_v29 = vrot.slane %v7365_v17, 1 }
 0x361   : > { %5186 = vst.msk [vmem:[%s6438_s14 + $0x15c] sm:$0xf] %vm5098_vm4, %v5053_v15  ;;  %v4654_v25 = vadd.f32 %v4456_v10, %v3836_v16  ;;  %v3114_v10 = vsel %vm643_vm3, %v3109_v0, %v3113_v1  ;;  %v6161_v16 = vld [vmem:[%s6332_s6 + $0x1c0] sm:$0xff] }
 0x362   : > { %5686 = vmatmul.msk.bf16.gmra.mxu1 %vm1181_vm1, %v6158_v41  ;;  %v1092_v21 = vshll.u32 %v6161_v16, 16 }
 0x363   : > { %v4790_v22 = vadd.f32 %v7219_v26, %v4654_v25  ;;  %v4458_v23 = vpop.f32.mrf.mxu3  ;;  %v1088_v25 = vshrl.u32 %v6160_v46, 16 }
 0x365   : > { %v4922_v31 = vmax.f32 %v4790_v22, 0.0 }
 0x366   : > { %v3640_v35 = vpop.f32.mrf.mxu2  ;;  %v1618_v38 = vpop.f32.mrf.mxu0 }
 0x367   : > { %v5054_v36 = vpack.c.bf16 %v4922_v31, %v4922_v31  ;;  %v3837_v37 = vadd.f32 %v3640_v35, %v2095_v32  ;;  %v2099_v41 = vpop.f32.mrf.mxu1  ;;  %v2098_v44 = vadd.f32 %v2097_v20, %v1618_v38  ;;  %v1090_v32 = vor.u32 %v1088_v25, %v1086_v63 }
 0x368   : > { %6090 = vmatmul.msk.bf16.gmra.mxu3 %vm1181_vm1, %v3996_v34  ;;  %v1094_v34 = vrot.slane %v1092_v21, 1 }
 0x369   : > { %5187 = vst.msk [vmem:[%s6438_s14 + $0x160] sm:$0xf] %vm5098_vm4, %v5054_v36  ;;  %v4655_v42 = vadd.f32 %v4458_v23, %v3837_v37  ;;  %5616 = vmatmul.msk.bf16.gmra.mxu0 %vm1181_vm1, %v1079_v39  ;;  %v3115_v23 = vshrl.u32 %v7345_v47, 16  ;;  %v3121_v36 = vrot.slane %v3119_v27, 1  ;;  %v4000_v39 = vsel %vm3887_vm2, %v3997_v59, %v3999_v29 }
 0x36b   : > { %v4791_v43 = vadd.f32 %v7219_v26, %v4655_v42  ;;  %6018 = vmatmul.msk.bf16.gmra.mxu2 %vm1181_vm1, %v3106_v40  ;;  %v4461_v45 = vpop.f32.mrf.mxu3  ;;  %v3117_v35 = vor.u32 %v3115_v23, %v3113_v1 }
 0x36d   : > { %v4923_v48 = vmax.f32 %v4791_v43, 0.0 }
 0x36e   : > { %v3643_v49 = vpop.f32.mrf.mxu2  ;;  %v1620_v52 = vpop.f32.mrf.mxu0 }
 0x36f   : > { %v5055_v50 = vpack.c.bf16 %v4923_v48, %v4923_v48  ;;  %v3838_v51 = vadd.f32 %v3643_v49, %v2098_v44  ;;  %v2102_v55 = vpop.f32.mrf.mxu1  ;;  %v2100_v3 = vadd.f32 %v2099_v41, %v1620_v52  ;;  %v1095_v44 = vsel %vm643_vm3, %v1090_v32, %v1094_v34  ;;  %v7385_v52 = vld [vmem:[%s6332_s6 + $0x1d8] sm:$0xff] }
 0x370   : > { %v3127_v62 = vshll.u32 %v7385_v52, 16  ;;  %v4001_v0 = vrot.slane %v7385_v52, 1 }
 0x371   : > { %5188 = vst.msk [vmem:[%s6438_s14 + $0x164] sm:$0xf] %vm5098_vm4, %v5055_v50  ;;  %v4656_v58 = vadd.f32 %v4461_v45, %v3838_v51  ;;  %v3122_v45 = vsel %vm643_vm3, %v3117_v35, %v3121_v36  ;;  %v6162_v51 = vld [vmem:[%s6332_s6 + $0x1c8] sm:$0xff] }
 0x372   : > { %5687 = vmatmul.msk.bf16.gmra.mxu1 %vm1181_vm1, %v6159_v11  ;;  %v1100_v59 = vshll.u32 %v6162_v51, 16 }
 0x373   : > { %v4792_v60 = vadd.f32 %v7219_v26, %v4656_v58  ;;  %v4463_v61 = vpop.f32.mrf.mxu3  ;;  %v1096_v58 = vshrl.u32 %v6161_v16, 16 }
 0x375   : > { %v4924_v2 = vmax.f32 %v4792_v60, 0.0 }
 0x376   : > { %v3645_v5 = vpop.f32.mrf.mxu2  ;;  %v1623_v8 = vpop.f32.mrf.mxu0 }
 0x377   : > { %v5056_v6 = vpack.c.bf16 %v4924_v2, %v4924_v2  ;;  %v3839_v7 = vadd.f32 %v3645_v5, %v2100_v3  ;;  %v2104_v11 = vpop.f32.mrf.mxu1  ;;  %v2103_v14 = vadd.f32 %v2102_v55, %v1623_v8  ;;  %v1098_v3 = vor.u32 %v1096_v58, %v1094_v34 }
 0x378   : > { %6091 = vmatmul.msk.bf16.gmra.mxu3 %vm1181_vm1, %v3998_v4  ;;  %v1102_v4 = vrot.slane %v1100_v59, 1 }
 0x379   : > { %5189 = vst.msk [vmem:[%s6438_s14 + $0x168] sm:$0xf] %vm5098_vm4, %v5056_v6  ;;  %v4657_v12 = vadd.f32 %v4463_v61, %v3839_v7  ;;  %5617 = vmatmul.msk.bf16.gmra.mxu0 %vm1181_vm1, %v1087_v9  ;;  %v3123_v61 = vshrl.u32 %v7365_v17, 16  ;;  %v3129_v6 = vrot.slane %v3127_v62, 1  ;;  %v4002_v9 = vsel %vm3887_vm2, %v3999_v29, %v4001_v0 }
 0x37b   : > { %v4793_v13 = vadd.f32 %v7219_v26, %v4657_v12  ;;  %6019 = vmatmul.msk.bf16.gmra.mxu2 %vm1181_vm1, %v3114_v10  ;;  %v4466_v15 = vpop.f32.mrf.mxu3  ;;  %v3125_v5 = vor.u32 %v3123_v61, %v3121_v36 }
 0x37d   : > { %v4925_v18 = vmax.f32 %v4793_v13, 0.0 }
 0x37e   : > { %v3648_v19 = vpop.f32.mrf.mxu2  ;;  %v1625_v24 = vpop.f32.mrf.mxu0 }
 0x37f   : > { %v5057_v20 = vpack.c.bf16 %v4925_v18, %v4925_v18  ;;  %v3840_v33 = vadd.f32 %v3648_v19, %v2103_v14  ;;  %v2107_v22 = vpop.f32.mrf.mxu1  ;;  %v2105_v38 = vadd.f32 %v2104_v11, %v1625_v24  ;;  %v1103_v14 = vsel %vm643_vm3, %v1098_v3, %v1102_v4  ;;  %v7405_v24 = vld [vmem:[%s6332_s6 + $0x1e0] sm:$0xff] }
 0x380   : > { %v3135_v32 = vshll.u32 %v7405_v24, 16  ;;  %v4003_v35 = vrot.slane %v7405_v24, 1 }
 0x381   : > { %5190 = vst.msk [vmem:[%s6438_s14 + $0x16c] sm:$0xf] %vm5098_vm4, %v5057_v20  ;;  %v4658_v28 = vadd.f32 %v4466_v15, %v3840_v33  ;;  %v3130_v15 = vsel %vm643_vm3, %v3125_v5, %v3129_v6  ;;  %v6163_v33 = vld [vmem:[%s6332_s6 + $0x1d0] sm:$0xff] }
 0x382   : > { %5688 = vmatmul.msk.bf16.gmra.mxu1 %vm1181_vm1, %v6160_v46  ;;  %v1108_v29 = vshll.u32 %v6163_v33, 16 }
 0x383   : > { %v4794_v30 = vadd.f32 %v7219_v26, %v4658_v28  ;;  %v4468_v31 = vpop.f32.mrf.mxu3  ;;  %v1104_v28 = vshrl.u32 %v6162_v51, 16 }
 0x385   : > { %v4926_v37 = vmax.f32 %v4794_v30, 0.0 }
 0x386   : > { %v3650_v40 = vpop.f32.mrf.mxu2  ;;  %v1628_v43 = vpop.f32.mrf.mxu0 }
 0x387   : > { %v5058_v41 = vpack.c.bf16 %v4926_v37, %v4926_v37  ;;  %v3841_v42 = vadd.f32 %v3650_v40, %v2105_v38  ;;  %v2109_v46 = vpop.f32.mrf.mxu1  ;;  %v2108_v49 = vadd.f32 %v2107_v22, %v1628_v43  ;;  %v1106_v38 = vor.u32 %v1104_v28, %v1102_v4 }
 0x388   : > { %6092 = vmatmul.msk.bf16.gmra.mxu3 %vm1181_vm1, %v4000_v39  ;;  %v1110_v39 = vrot.slane %v1108_v29, 1 }
 0x389   : > { %5191 = vst.msk [vmem:[%s6438_s14 + $0x170] sm:$0xf] %vm5098_vm4, %v5058_v41  ;;  %v4659_v47 = vadd.f32 %v4468_v31, %v3841_v42  ;;  %5618 = vmatmul.msk.bf16.gmra.mxu0 %vm1181_vm1, %v1095_v44  ;;  %v3131_v31 = vshrl.u32 %v7385_v52, 16  ;;  %v3137_v41 = vrot.slane %v3135_v32, 1  ;;  %v4004_v44 = vsel %vm3887_vm2, %v4001_v0, %v4003_v35 }
 0x38b   : > { %v4795_v48 = vadd.f32 %v7219_v26, %v4659_v47  ;;  %6020 = vmatmul.msk.bf16.gmra.mxu2 %vm1181_vm1, %v3122_v45  ;;  %v4471_v50 = vpop.f32.mrf.mxu3  ;;  %v3133_v40 = vor.u32 %v3131_v31, %v3129_v6 }
 0x38d   : > { %v4927_v53 = vmax.f32 %v4795_v48, 0.0 }
 0x38e   : > { %v3653_v54 = vpop.f32.mrf.mxu2  ;;  %v1630_v57 = vpop.f32.mrf.mxu0 }
 0x38f   : > { %v5059_v55 = vpack.c.bf16 %v4927_v53, %v4927_v53  ;;  %v3842_v56 = vadd.f32 %v3653_v54, %v2108_v49  ;;  %v2112_v60 = vpop.f32.mrf.mxu1  ;;  %v2110_v8 = vadd.f32 %v2109_v46, %v1630_v57  ;;  %v1111_v49 = vsel %vm643_vm3, %v1106_v38, %v1110_v39  ;;  %v7425_v57 = vld [vmem:[%s6332_s6 + $0x1e8] sm:$0xff] }
 0x390   : > { %v3143_v3 = vshll.u32 %v7425_v57, 16  ;;  %v4005_v5 = vrot.slane %v7425_v57, 1 }
 0x391   : > { %5192 = vst.msk [vmem:[%s6438_s14 + $0x174] sm:$0xf] %vm5098_vm4, %v5059_v55  ;;  %v4660_v63 = vadd.f32 %v4471_v50, %v3842_v56  ;;  %v3138_v50 = vsel %vm643_vm3, %v3133_v40, %v3137_v41  ;;  %v6164_v56 = vld [vmem:[%s6332_s6 + $0x1d8] sm:$0xff] }
 0x392   : > { %5689 = vmatmul.msk.bf16.gmra.mxu1 %vm1181_vm1, %v6161_v16  ;;  %v1116_v0 = vshll.u32 %v6164_v56, 16 }
 0x393   : > { %v4796_v1 = vadd.f32 %v7219_v26, %v4660_v63  ;;  %v4473_v2 = vpop.f32.mrf.mxu3  ;;  %v1112_v63 = vshrl.u32 %v6163_v33, 16 }
 0x395   : > { %v4928_v7 = vmax.f32 %v4796_v1, 0.0 }
 0x396   : > { %v3655_v10 = vpop.f32.mrf.mxu2  ;;  %v1633_v13 = vpop.f32.mrf.mxu0 }
 0x397   : > { %v5060_v11 = vpack.c.bf16 %v4928_v7, %v4928_v7  ;;  %v3843_v12 = vadd.f32 %v3655_v10, %v2110_v8  ;;  %v2114_v16 = vpop.f32.mrf.mxu1  ;;  %v2113_v19 = vadd.f32 %v2112_v60, %v1633_v13  ;;  %v1114_v8 = vor.u32 %v1112_v63, %v1110_v39 }
 0x398   : > { %6093 = vmatmul.msk.bf16.gmra.mxu3 %vm1181_vm1, %v4002_v9  ;;  %v1118_v9 = vrot.slane %v1116_v0, 1 }
 0x399   : > { %5193 = vst.msk [vmem:[%s6438_s14 + $0x178] sm:$0xf] %vm5098_vm4, %v5060_v11  ;;  %v4661_v17 = vadd.f32 %v4473_v2, %v3843_v12  ;;  %5619 = vmatmul.msk.bf16.gmra.mxu0 %vm1181_vm1, %v1103_v14  ;;  %v3139_v2 = vshrl.u32 %v7405_v24, 16  ;;  %v3145_v11 = vrot.slane %v3143_v3, 1  ;;  %v4006_v14 = vsel %vm3887_vm2, %v4003_v35, %v4005_v5 }
 0x39b   : > { %v4797_v18 = vadd.f32 %v7219_v26, %v4661_v17  ;;  %6021 = vmatmul.msk.bf16.gmra.mxu2 %vm1181_vm1, %v3130_v15  ;;  %v4476_v20 = vpop.f32.mrf.mxu3  ;;  %v3141_v10 = vor.u32 %v3139_v2, %v3137_v41 }
 0x39d   : > { %v4929_v25 = vmax.f32 %v4797_v18, 0.0 }
 0x39e   : > { %v3658_v21 = vpop.f32.mrf.mxu2  ;;  %v1635_v27 = vpop.f32.mrf.mxu0 }
 0x39f   : > { %v5061_v22 = vpack.c.bf16 %v4929_v25, %v4929_v25  ;;  %v3844_v23 = vadd.f32 %v3658_v21, %v2113_v19  ;;  %v2117_v30 = vpop.f32.mrf.mxu1  ;;  %v2115_v43 = vadd.f32 %v2114_v16, %v1635_v27  ;;  %v1119_v19 = vsel %vm643_vm3, %v1114_v8, %v1118_v9  ;;  %v7445_v27 = vld [vmem:[%s6332_s6 + $0x1f0] sm:$0xff] }
 0x3a0   : > { %v3151_v38 = vshll.u32 %v7445_v27, 16  ;;  %v4007_v40 = vrot.slane %v7445_v27, 1 }
 0x3a1   : > { %5194 = vst.msk [vmem:[%s6438_s14 + $0x17c] sm:$0xf] %vm5098_vm4, %v5061_v22  ;;  %v4662_v34 = vadd.f32 %v4476_v20, %v3844_v23  ;;  %v3146_v20 = vsel %vm643_vm3, %v3141_v10, %v3145_v11  ;;  %v6165_v23 = vld [vmem:[%s6332_s6 + $0x1e0] sm:$0xff] }
 0x3a2   : > { %5690 = vmatmul.msk.bf16.gmra.mxu1 %vm1181_vm1, %v6162_v51  ;;  %v1124_v35 = vshll.u32 %v6165_v23, 16 }
 0x3a3   : > { %v4798_v36 = vadd.f32 %v7219_v26, %v4662_v34  ;;  %v4478_v37 = vpop.f32.mrf.mxu3  ;;  %v1120_v34 = vshrl.u32 %v6164_v56, 16 }
 0x3a5   : > { %v4930_v42 = vmax.f32 %v4798_v36, 0.0 }
 0x3a6   : > { %v3660_v45 = vpop.f32.mrf.mxu2  ;;  %v1638_v48 = vpop.f32.mrf.mxu0 }
 0x3a7   : > { %v5062_v46 = vpack.c.bf16 %v4930_v42, %v4930_v42  ;;  %v3845_v47 = vadd.f32 %v3660_v45, %v2115_v43  ;;  %v2119_v51 = vpop.f32.mrf.mxu1  ;;  %v2118_v54 = vadd.f32 %v2117_v30, %v1638_v48  ;;  %v1122_v43 = vor.u32 %v1120_v34, %v1118_v9 }
 0x3a8   : > { %6094 = vmatmul.msk.bf16.gmra.mxu3 %vm1181_vm1, %v4004_v44  ;;  %v1126_v44 = vrot.slane %v1124_v35, 1 }
 0x3a9   : > { %5195 = vst.msk [vmem:[%s6438_s14 + $0x180] sm:$0xf] %vm5098_vm4, %v5062_v46  ;;  %v4663_v52 = vadd.f32 %v4478_v37, %v3845_v47  ;;  %5620 = vmatmul.msk.bf16.gmra.mxu0 %vm1181_vm1, %v1111_v49  ;;  %v3147_v37 = vshrl.u32 %v7425_v57, 16  ;;  %v3153_v46 = vrot.slane %v3151_v38, 1  ;;  %v4008_v49 = vsel %vm3887_vm2, %v4005_v5, %v4007_v40 }
 0x3ab   : > { %v4799_v53 = vadd.f32 %v7219_v26, %v4663_v52  ;;  %6022 = vmatmul.msk.bf16.gmra.mxu2 %vm1181_vm1, %v3138_v50  ;;  %v4481_v55 = vpop.f32.mrf.mxu3  ;;  %v3149_v45 = vor.u32 %v3147_v37, %v3145_v11 }
 0x3ad   : > { %v4931_v58 = vmax.f32 %v4799_v53, 0.0 }
 0x3ae   : > { %v3663_v59 = vpop.f32.mrf.mxu2  ;;  %v1640_v62 = vpop.f32.mrf.mxu0 }
 0x3af   : > { %v5063_v60 = vpack.c.bf16 %v4931_v58, %v4931_v58  ;;  %v3846_v61 = vadd.f32 %v3663_v59, %v2118_v54  ;;  %v2122_v1 = vpop.f32.mrf.mxu1  ;;  %v2120_v13 = vadd.f32 %v2119_v51, %v1640_v62  ;;  %v1127_v54 = vsel %vm643_vm3, %v1122_v43, %v1126_v44  ;;  %v7465_v62 = vld [vmem:[%s6332_s6 + $0x1f8] sm:$0xff] }
 0x3b0   : > { %v3159_v8 = vshll.u32 %v7465_v62, 16  ;;  %v4009_v10 = vrot.slane %v7465_v62, 1 }
 0x3b1   : > { %5196 = vst.msk [vmem:[%s6438_s14 + $0x184] sm:$0xf] %vm5098_vm4, %v5063_v60  ;;  %v4664_v4 = vadd.f32 %v4481_v55, %v3846_v61  ;;  %v3154_v55 = vsel %vm643_vm3, %v3149_v45, %v3153_v46  ;;  %v6166_v61 = vld [vmem:[%s6332_s6 + $0x1e8] sm:$0xff] }
 0x3b2   : > { %5691 = vmatmul.msk.bf16.gmra.mxu1 %vm1181_vm1, %v6163_v33  ;;  %v1132_v5 = vshll.u32 %v6166_v61, 16 }
 0x3b3   : > { %v4800_v6 = vadd.f32 %v7219_v26, %v4664_v4  ;;  %v4483_v7 = vpop.f32.mrf.mxu3  ;;  %v1128_v4 = vshrl.u32 %v6165_v23, 16 }
 0x3b5   : > { %v4932_v12 = vmax.f32 %v4800_v6, 0.0 }
 0x3b6   : > { %v3665_v15 = vpop.f32.mrf.mxu2  ;;  %v1643_v18 = vpop.f32.mrf.mxu0 }
 0x3b7   : > { %v5064_v16 = vpack.c.bf16 %v4932_v12, %v4932_v12  ;;  %v3847_v17 = vadd.f32 %v3665_v15, %v2120_v13  ;;  %v2124_v33 = vpop.f32.mrf.mxu1  ;;  %v2123_v21 = vadd.f32 %v2122_v1, %v1643_v18  ;;  %v1130_v13 = vor.u32 %v1128_v4, %v1126_v44 }
 0x3b8   : > { %6095 = vmatmul.msk.bf16.gmra.mxu3 %vm1181_vm1, %v4006_v14  ;;  %v1134_v14 = vrot.slane %v1132_v5, 1 }
 0x3b9   : > { %5197 = vst.msk [vmem:[%s6438_s14 + $0x188] sm:$0xf] %vm5098_vm4, %v5064_v16  ;;  %v4665_v24 = vadd.f32 %v4483_v7, %v3847_v17  ;;  %5621 = vmatmul.msk.bf16.gmra.mxu0 %vm1181_vm1, %v1119_v19  ;;  %v3155_v7 = vshrl.u32 %v7445_v27, 16  ;;  %v3161_v16 = vrot.slane %v3159_v8, 1  ;;  %v4010_v19 = vsel %vm3887_vm2, %v4007_v40, %v4009_v10  ;;  %v7484_v27 = vld [vmem:[%s7650_s2] ss:$0 sm:$0xff] }
 0x3bb   : > { %v4801_v25 = vadd.f32 %v7219_v26, %v4665_v24  ;;  %6023 = vmatmul.msk.bf16.gmra.mxu2 %vm1181_vm1, %v3146_v20  ;;  %v4486_v22 = vpop.f32.mrf.mxu3  ;;  %v3157_v15 = vor.u32 %v3155_v7, %v3153_v46 }
 0x3bd   : > { %v4933_v28 = vmax.f32 %v4801_v25, 0.0 }
 0x3be   : > { %v3668_v29 = vpop.f32.mrf.mxu2  ;;  %v1645_v32 = vpop.f32.mrf.mxu0 }
 0x3bf   : > { %v5065_v30 = vpack.c.bf16 %v4933_v28, %v4933_v28  ;;  %v3848_v31 = vadd.f32 %v3668_v29, %v2123_v21  ;;  %v2127_v36 = vpop.f32.mrf.mxu1  ;;  %v2125_v48 = vadd.f32 %v2124_v33, %v1645_v32  ;;  %v3162_v21 = vsel %vm643_vm3, %v3157_v15, %v3161_v16  ;;  %v7490_v32 = vld [vmem:[%s6332_s6 + $0x200] sm:$0xff] }
 0x3c0   : > { %v3167_v43 = vshll.u32 %v7490_v32, 16  ;;  %v4011_v45 = vrot.slane %v7490_v32, 1 }
 0x3c1   : > { %5198 = vst.msk [vmem:[%s6438_s14 + $0x18c] sm:$0xf] %vm5098_vm4, %v5065_v30  ;;  %v4666_v39 = vadd.f32 %v4486_v22, %v3848_v31  ;;  %v6167_v31 = vld [vmem:[%s6332_s6 + $0x1f0] sm:$0xff] }
 0x3c2   : > { %5692 = vmatmul.msk.bf16.gmra.mxu1 %vm1181_vm1, %v6164_v56  ;;  %v1140_v40 = vshll.u32 %v6167_v31, 16 }
 0x3c3   : > { %v4802_v41 = vadd.f32 %v7219_v26, %v4666_v39  ;;  %v4488_v42 = vpop.f32.mrf.mxu3  ;;  %v1136_v39 = vshrl.u32 %v6166_v61, 16 }
 0x3c5   : > { %v4934_v47 = vmax.f32 %v4802_v41, 0.0 }
 0x3c6   : > { %v3670_v50 = vpop.f32.mrf.mxu2  ;;  %v1648_v53 = vpop.f32.mrf.mxu0 }
 0x3c7   : > { %v5066_v51 = vpack.c.bf16 %v4934_v47, %v4934_v47  ;;  %v3849_v52 = vadd.f32 %v3670_v50, %v2125_v48  ;;  %v2129_v56 = vpop.f32.mrf.mxu1  ;;  %v2128_v59 = vadd.f32 %v2127_v36, %v1648_v53  ;;  %v1138_v48 = vor.u32 %v1136_v39, %v1134_v14 }
 0x3c8   : > { %6096 = vmatmul.msk.bf16.gmra.mxu3 %vm1181_vm1, %v4008_v49  ;;  %v1142_v49 = vrot.slane %v1140_v40, 1 }
 0x3c9   : > { %5199 = vst.msk [vmem:[%s6438_s14 + $0x190] sm:$0xf] %vm5098_vm4, %v5066_v51  ;;  %v4667_v57 = vadd.f32 %v4488_v42, %v3849_v52  ;;  %5622 = vmatmul.msk.bf16.gmra.mxu0 %vm1181_vm1, %v1127_v54  ;;  %v3163_v42 = vshrl.u32 %v7465_v62, 16  ;;  %v3169_v51 = vrot.slane %v3167_v43, 1  ;;  %v4012_v54 = vsel %vm3887_vm2, %v4009_v10, %v4011_v45 }
 0x3cb   : > { %v4803_v58 = vadd.f32 %v7219_v26, %v4667_v57  ;;  %6024 = vmatmul.msk.bf16.gmra.mxu2 %vm1181_vm1, %v3154_v55  ;;  %v4491_v60 = vpop.f32.mrf.mxu3  ;;  %v3165_v50 = vor.u32 %v3163_v42, %v3161_v16 }
 0x3cd   : > { %v4935_v63 = vmax.f32 %v4803_v58, 0.0 }
 0x3ce   : > { %v3673_v0 = vpop.f32.mrf.mxu2  ;;  %v1650_v3 = vpop.f32.mrf.mxu0 }
 0x3cf   : > { %v5067_v1 = vpack.c.bf16 %v4935_v63, %v4935_v63  ;;  %v3850_v2 = vadd.f32 %v3673_v0, %v2128_v59  ;;  %v2132_v6 = vpop.f32.mrf.mxu1  ;;  %v2130_v18 = vadd.f32 %v2129_v56, %v1650_v3  ;;  %v1143_v59 = vsel %vm643_vm3, %v1138_v48, %v1142_v49  ;;  %v7510_v3 = vld [vmem:[%s6332_s6 + $0x208] sm:$0xff] }
 0x3d0   : > { %v4013_v15 = vrot.slane %v7510_v3, 1 }
 0x3d1   : > { %5200 = vst.msk [vmem:[%s6438_s14 + $0x194] sm:$0xf] %vm5098_vm4, %v5067_v1  ;;  %v4668_v9 = vadd.f32 %v4491_v60, %v3850_v2  ;;  %v3170_v60 = vsel %vm643_vm3, %v3165_v50, %v3169_v51  ;;  %v6168_v2 = vld [vmem:[%s6332_s6 + $0x1f8] sm:$0xff] }
 0x3d2   : > { %5693 = vmatmul.msk.bf16.gmra.mxu1 %vm1181_vm1, %v6165_v23  ;;  %v1148_v10 = vshll.u32 %v6168_v2, 16 }
 0x3d3   : > { %v4804_v11 = vadd.f32 %v7219_v26, %v4668_v9  ;;  %v4493_v12 = vpop.f32.mrf.mxu3  ;;  %v1135_v26 = vsel %vm643_vm3, %v1130_v13, %v1134_v14  ;;  %v1144_v9 = vshrl.u32 %v6167_v31, 16  ;;  %v3175_v13 = vshll.u32 %v7510_v3, 16 }
 0x3d5   : > { %v4936_v17 = vmax.f32 %v4804_v11, 0.0 }
 0x3d6   : > { %v3675_v20 = vpop.f32.mrf.mxu2  ;;  %v1653_v25 = vpop.f32.mrf.mxu0 }
 0x3d7   : > { %v5068_v33 = vpack.c.bf16 %v4936_v17, %v4936_v17  ;;  %v3851_v24 = vadd.f32 %v3675_v20, %v2130_v18  ;;  %v2134_v22 = vpop.f32.mrf.mxu1  ;;  %v2133_v29 = vadd.f32 %v2132_v6, %v1653_v25  ;;  %v1146_v18 = vor.u32 %v1144_v9, %v1142_v49 }
 0x3d8   : > { %6097 = vmatmul.msk.bf16.gmra.mxu3 %vm1181_vm1, %v4010_v19  ;;  %v1150_v19 = vrot.slane %v1148_v10, 1 }
 0x3d9   : > { %5201 = vst.msk [vmem:[%s6438_s14 + $0x198] sm:$0xf] %vm5098_vm4, %v5068_v33  ;;  %v4669_v23 = vadd.f32 %v4493_v12, %v3851_v24  ;;  %5623 = vmatmul.msk.bf16.gmra.mxu0 %vm1181_vm1, %v1135_v26  ;;  %v3171_v12 = vshrl.u32 %v7490_v32, 16  ;;  %v3177_v33 = vrot.slane %v3175_v13, 1  ;;  %v4014_v26 = vsel %vm3887_vm2, %v4011_v45, %v4013_v15 }
 0x3db   : > { %v4805_v28 = vadd.f32 %v7484_v27, %v4669_v23  ;;  %6025 = vmatmul.msk.bf16.gmra.mxu2 %vm1181_vm1, %v3162_v21  ;;  %v4496_v30 = vpop.f32.mrf.mxu3  ;;  %v3173_v20 = vor.u32 %v3171_v12, %v3169_v51 }
 0x3dd   : > { %v4937_v34 = vmax.f32 %v4805_v28, 0.0 }
 0x3de   : > { %v3678_v35 = vpop.f32.mrf.mxu2  ;;  %v1655_v38 = vpop.f32.mrf.mxu0 }
 0x3df   : > { %v5069_v36 = vpack.c.bf16 %v4937_v34, %v4937_v34  ;;  %v3852_v37 = vadd.f32 %v3678_v35, %v2133_v29  ;;  %v2137_v41 = vpop.f32.mrf.mxu1  ;;  %v2135_v53 = vadd.f32 %v2134_v22, %v1655_v38  ;;  %v1151_v29 = vsel %vm643_vm3, %v1146_v18, %v1150_v19  ;;  %v7530_v38 = vld [vmem:[%s6332_s6 + $0x210] sm:$0xff] }
 0x3e0   : > { %v3183_v48 = vshll.u32 %v7530_v38, 16  ;;  %v4015_v50 = vrot.slane %v7530_v38, 1 }
 0x3e1   : > { %5202 = vst.msk [vmem:[%s6438_s14 + $0x19c] sm:$0xf] %vm5098_vm4, %v5069_v36  ;;  %v4670_v44 = vadd.f32 %v4496_v30, %v3852_v37  ;;  %v3178_v30 = vsel %vm643_vm3, %v3173_v20, %v3177_v33  ;;  %v6169_v37 = vld [vmem:[%s6332_s6 + $0x200] sm:$0xff] }
 0x3e2   : > { %5694 = vmatmul.msk.bf16.gmra.mxu1 %vm1181_vm1, %v6166_v61  ;;  %v1156_v45 = vshll.u32 %v6169_v37, 16 }
 0x3e3   : > { %v4806_v46 = vadd.f32 %v7484_v27, %v4670_v44  ;;  %v4498_v47 = vpop.f32.mrf.mxu3  ;;  %v1152_v44 = vshrl.u32 %v6168_v2, 16 }
 0x3e5   : > { %v4938_v52 = vmax.f32 %v4806_v46, 0.0 }
 0x3e6   : > { %v3680_v55 = vpop.f32.mrf.mxu2  ;;  %v1658_v58 = vpop.f32.mrf.mxu0 }
 0x3e7   : > { %v5070_v56 = vpack.c.bf16 %v4938_v52, %v4938_v52  ;;  %v3853_v57 = vadd.f32 %v3680_v55, %v2135_v53  ;;  %v2139_v61 = vpop.f32.mrf.mxu1  ;;  %v2138_v0 = vadd.f32 %v2137_v41, %v1658_v58  ;;  %v1154_v53 = vor.u32 %v1152_v44, %v1150_v19 }
 0x3e8   : > { %6098 = vmatmul.msk.bf16.gmra.mxu3 %vm1181_vm1, %v4012_v54  ;;  %v1158_v54 = vrot.slane %v1156_v45, 1 }
 0x3e9   : > { %5203 = vst.msk [vmem:[%s6438_s14 + $0x1a0] sm:$0xf] %vm5098_vm4, %v5070_v56  ;;  %v4671_v62 = vadd.f32 %v4498_v47, %v3853_v57  ;;  %5624 = vmatmul.msk.bf16.gmra.mxu0 %vm1181_vm1, %v1143_v59  ;;  %v3179_v47 = vshrl.u32 %v7510_v3, 16  ;;  %v3185_v56 = vrot.slane %v3183_v48, 1  ;;  %v4016_v59 = vsel %vm3887_vm2, %v4013_v15, %v4015_v50 }
 0x3eb   : > { %v4807_v63 = vadd.f32 %v7484_v27, %v4671_v62  ;;  %6026 = vmatmul.msk.bf16.gmra.mxu2 %vm1181_vm1, %v3170_v60  ;;  %v4501_v1 = vpop.f32.mrf.mxu3  ;;  %v3181_v55 = vor.u32 %v3179_v47, %v3177_v33 }
 0x3ed   : > { %v4939_v4 = vmax.f32 %v4807_v63, 0.0 }
 0x3ee   : > { %v3683_v5 = vpop.f32.mrf.mxu2  ;;  %v1660_v8 = vpop.f32.mrf.mxu0 }
 0x3ef   : > { %v5071_v6 = vpack.c.bf16 %v4939_v4, %v4939_v4  ;;  %v3854_v7 = vadd.f32 %v3683_v5, %v2138_v0  ;;  %v2142_v11 = vpop.f32.mrf.mxu1  ;;  %v2140_v25 = vadd.f32 %v2139_v61, %v1660_v8  ;;  %v1159_v0 = vsel %vm643_vm3, %v1154_v53, %v1158_v54  ;;  %v7552_v8 = vld [vmem:[%s6332_s6 + $0x218] sm:$0xff] }
 0x3f0   : > { %v3191_v18 = vshll.u32 %v7552_v8, 16  ;;  %v4017_v20 = vrot.slane %v7552_v8, 1 }
 0x3f1   : > { %5204 = vst.msk [vmem:[%s6438_s14 + $0x1a4] sm:$0xf] %vm5098_vm4, %v5071_v6  ;;  %v4672_v14 = vadd.f32 %v4501_v1, %v3854_v7  ;;  %v3186_v1 = vsel %vm643_vm3, %v3181_v55, %v3185_v56  ;;  %v7549_v7 = vld [vmem:[%s6332_s6 + $0x208] sm:$0xff] }
 0x3f2   : > { %5695 = vmatmul.msk.bf16.gmra.mxu1 %vm1181_vm1, %v6167_v31  ;;  %v1164_v15 = vshll.u32 %v7549_v7, 16  ;;  %v1168_v53 = vshrl.u32 %v7549_v7, 16 }
 0x3f3   : > { %v4808_v16 = vadd.f32 %v7484_v27, %v4672_v14  ;;  %v4503_v17 = vpop.f32.mrf.mxu3  ;;  %v1160_v14 = vshrl.u32 %v6169_v37, 16 }
 0x3f5   : > { %v4940_v24 = vmax.f32 %v4808_v16, 0.0 }
 0x3f6   : > { %v3685_v21 = vpop.f32.mrf.mxu2  ;;  %v1663_v28 = vpop.f32.mrf.mxu0 }
 0x3f7   : > { %v5072_v22 = vpack.c.bf16 %v4940_v24, %v4940_v24  ;;  %v3855_v23 = vadd.f32 %v3685_v21, %v2140_v25  ;;  %v2144_v31 = vpop.f32.mrf.mxu1  ;;  %v2143_v35 = vadd.f32 %v2142_v11, %v1663_v28  ;;  %v1162_v25 = vor.u32 %v1160_v14, %v1158_v54 }
 0x3f8   : > { %6099 = vmatmul.msk.bf16.gmra.mxu3 %vm1181_vm1, %v4014_v26  ;;  %v1166_v26 = vrot.slane %v1164_v15, 1 }
 0x3f9   : > { %5205 = vst.msk [vmem:[%s6438_s14 + $0x1a8] sm:$0xf] %vm5098_vm4, %v5072_v22  ;;  %v4673_v32 = vadd.f32 %v4503_v17, %v3855_v23  ;;  %5625 = vmatmul.msk.bf16.gmra.mxu0 %vm1181_vm1, %v1151_v29  ;;  %v3187_v17 = vshrl.u32 %v7530_v38, 16  ;;  %v3193_v22 = vrot.slane %v3191_v18, 1  ;;  %v306_v23 = vld [vmem:[%s6332_s6 + $0x210] sm:$0x1] }
 0x3fa   : > { %v1167_v38 = vsel %vm643_vm3, %v1162_v25, %v1166_v26 }
 0x3fb   : > { %v4809_v34 = vadd.f32 %v7484_v27, %v4673_v32  ;;  %6027 = vmatmul.msk.bf16.gmra.mxu2 %vm1181_vm1, %v3178_v30  ;;  %v4506_v36 = vpop.f32.mrf.mxu3  ;;  %v3189_v21 = vor.u32 %v3187_v17, %v3185_v56  ;;  %v4018_v30 = vsel %vm3887_vm2, %v4015_v50, %v4017_v20  ;;  %v3195_v56 = vshrl.u32 %v7552_v8, 16 }
 0x3fd   : > { %v4941_v39 = vmax.f32 %v4809_v34, 0.0 }
 0x3fe   : > { %v3688_v40 = vpop.f32.mrf.mxu2  ;;  %v1665_v43 = vpop.f32.mrf.mxu0 }
 0x3ff   : > { %v5073_v41 = vpack.c.bf16 %v4941_v39, %v4941_v39  ;;  %v3856_v42 = vadd.f32 %v3688_v40, %v2143_v35  ;;  %v2147_v46 = vpop.f32.mrf.mxu1  ;;  %v2145_v58 = vadd.f32 %v2144_v31, %v1665_v43  ;;  %v2334_v31 = vld [vmem:[%s6332_s6 + $0x220] sm:$0x1]  ;;  %v575_v39 = vunpack.c.l.b16 %v306_v23 }
 0x401   : > { %5206 = vst.msk [vmem:[%s6438_s14 + $0x1ac] sm:$0xf] %vm5098_vm4, %v5073_v41  ;;  %v4674_v49 = vadd.f32 %v4506_v36, %v3856_v42  ;;  %v2603_v41 = vunpack.c.l.b16 %v2334_v31 }
 0x402   : > { %5696 = vmatmul.msk.bf16.gmra.mxu1 %vm1181_vm1, %v6168_v2 }
 0x403   : > { %v4810_v51 = vadd.f32 %v7484_v27, %v4674_v49  ;;  %v4508_v52 = vpop.f32.mrf.mxu3  ;;  %v2670_v47 = vpack.c.b16 %v2603_v41, %v2603_v41 }
 0x405   : > { %v4942_v57 = vmax.f32 %v4810_v51, 0.0 }
 0x406   : > { %v3690_v60 = vpop.f32.mrf.mxu2  ;;  %v1668_v63 = vpop.f32.mrf.mxu0 }
 0x407   : > { %v5074_v61 = vpack.c.bf16 %v4942_v57, %v4942_v57  ;;  %v3857_v62 = vadd.f32 %v3690_v60, %v2145_v58  ;;  %v2149_v2 = vpop.f32.mrf.mxu1  ;;  %v2148_v5 = vadd.f32 %v2147_v46, %v1668_v63  ;;  %v642_v46 = vpack.c.b16 %v575_v39, %v575_v39 }
 0x408   : > { %6100 = vmatmul.msk.bf16.gmra.mxu3 %vm1181_vm1, %v4016_v59  ;;  %v3199_v57 = vshll.u32 %v2670_v47, 16  ;;  %v4019_v59 = vrot.slane %v2670_v47, 1 }
 0x409   : > { %5207 = vst.msk [vmem:[%s6438_s14 + $0x1b0] sm:$0xf] %vm5098_vm4, %v5074_v61  ;;  %v4675_v3 = vadd.f32 %v4508_v52, %v3857_v62  ;;  %5626 = vmatmul.msk.bf16.gmra.mxu0 %vm1181_vm1, %v1159_v0  ;;  %v1172_v54 = vshll.u32 %v642_v46, 16  ;;  %v1170_v62 = vor.u32 %v1168_v53, %v1166_v26  ;;  %v3197_v0 = vor.u32 %v3195_v56, %v3193_v22 }
 0x40b   : > { %v4811_v4 = vadd.f32 %v7484_v27, %v4675_v3  ;;  %6028 = vmatmul.msk.bf16.gmra.mxu2 %vm1181_vm1, %v3186_v1  ;;  %v4511_v6 = vpop.f32.mrf.mxu3  ;;  %v1174_v63 = vrot.slane %v1172_v54, 1  ;;  %v3201_v1 = vrot.slane %v3199_v57, 1 }
 0x40d   : > { %v4943_v9 = vmax.f32 %v4811_v4, 0.0  ;;  %v4020_v4 = vsel %vm3887_vm2, %v4017_v20, %v4019_v59 }
 0x40e   : > { %v3693_v10 = vpop.f32.mrf.mxu2  ;;  %v1670_v13 = vpop.f32.mrf.mxu0 }
 0x40f   : > { %v5075_v11 = vpack.c.bf16 %v4943_v9, %v4943_v9  ;;  %v3858_v12 = vadd.f32 %v3693_v10, %v2148_v5  ;;  %v2152_v16 = vpop.f32.mrf.mxu1  ;;  %v2150_v29 = vadd.f32 %v2149_v2, %v1670_v13  ;;  %v1175_v10 = vsel %vm643_vm3, %v1170_v62, %v1174_v63 }
 0x411   : > { %5208 = vst.msk [vmem:[%s6438_s14 + $0x1b4] sm:$0xf] %vm5098_vm4, %v5075_v11  ;;  %v4676_v19 = vadd.f32 %v4511_v6, %v3858_v12 }
 0x412   : > { %5697 = vmatmul.msk.bf16.gmra.mxu1 %vm1181_vm1, %v6169_v37  ;;  %v3194_v37 = vsel %vm643_vm3, %v3189_v21, %v3193_v22 }
 0x413   : > { %v4812_v33 = vadd.f32 %v7484_v27, %v4676_v19  ;;  %v4513_v24 = vpop.f32.mrf.mxu3 }
 0x415   : > { %v4944_v28 = vmax.f32 %v4812_v33, 0.0 }
 0x416   : > { %v3695_v32 = vpop.f32.mrf.mxu2  ;;  %v1673_v36 = vpop.f32.mrf.mxu0 }
 0x417   : > { %v5076_v34 = vpack.c.bf16 %v4944_v28, %v4944_v28  ;;  %v3859_v35 = vadd.f32 %v3695_v32, %v2150_v29  ;;  %v2154_v40 = vpop.f32.mrf.mxu1  ;;  %v2153_v44 = vadd.f32 %v2152_v16, %v1673_v36 }
 0x418   : > { %6101 = vmatmul.msk.bf16.gmra.mxu3 %vm1181_vm1, %v4018_v30 }
 0x419   : > { %5209 = vst.msk [vmem:[%s6438_s14 + $0x1b8] sm:$0xf] %vm5098_vm4, %v5076_v34  ;;  %v4677_v42 = vadd.f32 %v4513_v24, %v3859_v35  ;;  %5627 = vmatmul.msk.bf16.gmra.mxu0 %vm1181_vm1, %v1167_v38 }
 0x41b   : > { %v4813_v43 = vadd.f32 %v7484_v27, %v4677_v42  ;;  %6029 = vmatmul.msk.bf16.gmra.mxu2 %vm1181_vm1, %v3194_v37  ;;  %v4516_v45 = vpop.f32.mrf.mxu3 }
 0x41d   : > { %v4945_v48 = vmax.f32 %v4813_v43, 0.0 }
 0x41e   : > { %v3698_v49 = vpop.f32.mrf.mxu2  ;;  %v1675_v52 = vpop.f32.mrf.mxu0 }
 0x41f   : > { %v5077_v50 = vpack.c.bf16 %v4945_v48, %v4945_v48  ;;  %v3860_v51 = vadd.f32 %v3698_v49, %v2153_v44  ;;  %v2157_v55 = vpop.f32.mrf.mxu1  ;;  %v2155_v3 = vadd.f32 %v2154_v40, %v1675_v52 }
 0x421   : > { %5210 = vst.msk [vmem:[%s6438_s14 + $0x1bc] sm:$0xf] %vm5098_vm4, %v5077_v50  ;;  %v4678_v58 = vadd.f32 %v4516_v45, %v3860_v51 }
 0x422   : > { %5698 = vmatmul.msk.bf16.gmra.mxu1 %vm1181_vm1, %v7549_v7  ;;  %v3202_v7 = vsel %vm643_vm3, %v3197_v0, %v3201_v1 }
 0x423   : > { %v4814_v60 = vadd.f32 %v7484_v27, %v4678_v58  ;;  %v4518_v61 = vpop.f32.mrf.mxu3 }
 0x425   : > { %v4946_v2 = vmax.f32 %v4814_v60, 0.0 }
 0x426   : > { %v3700_v5 = vpop.f32.mrf.mxu2  ;;  %v1678_v9 = vpop.f32.mrf.mxu0 }
 0x427   : > { %v5078_v6 = vpack.c.bf16 %v4946_v2, %v4946_v2  ;;  %v3861_v8 = vadd.f32 %v3700_v5, %v2155_v3  ;;  %v2159_v11 = vpop.f32.mrf.mxu1  ;;  %v2158_v14 = vadd.f32 %v2157_v55, %v1678_v9 }
 0x428   : > { %6102 = vmatmul.msk.bf16.gmra.mxu3 %vm1181_vm1, %v4020_v4 }
 0x429   : > { %5211 = vst.msk [vmem:[%s6438_s14 + $0x1c0] sm:$0xf] %vm5098_vm4, %v5078_v6  ;;  %v4679_v12 = vadd.f32 %v4518_v61, %v3861_v8  ;;  %5628 = vmatmul.msk.bf16.gmra.mxu0 %vm1181_vm1, %v1175_v10 }
 0x42b   : > { %v4815_v13 = vadd.f32 %v7484_v27, %v4679_v12  ;;  %6030 = vmatmul.msk.bf16.gmra.mxu2 %vm1181_vm1, %v3202_v7  ;;  %v4521_v15 = vpop.f32.mrf.mxu3 }
 0x42d   : > { %v4947_v16 = vmax.f32 %v4815_v13, 0.0 }
 0x42e   : > { %v3703_v17 = vpop.f32.mrf.mxu2  ;;  %v1680_v20 = vpop.f32.mrf.mxu0 }
 0x42f   : > { %v5079_v18 = vpack.c.bf16 %v4947_v16, %v4947_v16  ;;  %v3862_v19 = vadd.f32 %v3703_v17, %v2158_v14  ;;  %v2162_v33 = vpop.f32.mrf.mxu1  ;;  %v2160_v22 = vadd.f32 %v2159_v11, %v1680_v20 }
 0x431   : > { %5212 = vst.msk [vmem:[%s6438_s14 + $0x1c4] sm:$0xf] %vm5098_vm4, %v5079_v18  ;;  %v4680_v24 = vadd.f32 %v4521_v15, %v3862_v19 }
 0x433   : > { %v4816_v25 = vadd.f32 %v7484_v27, %v4680_v24  ;;  %v4523_v26 = vpop.f32.mrf.mxu3 }
 0x435   : > { %v4948_v21 = vmax.f32 %v4816_v25, 0.0 }
 0x436   : > { %v3705_v23 = vpop.f32.mrf.mxu2  ;;  %v1683_v30 = vpop.f32.mrf.mxu0 }
 0x437   : > { %v5080_v28 = vpack.c.bf16 %v4948_v21, %v4948_v21  ;;  %v3863_v29 = vadd.f32 %v3705_v23, %v2160_v22  ;;  %v2164_v31 = vpop.f32.mrf.mxu1  ;;  %v2163_v35 = vadd.f32 %v2162_v33, %v1683_v30 }
 0x439   : > { %5213 = vst.msk [vmem:[%s6438_s14 + $0x1c8] sm:$0xf] %vm5098_vm4, %v5080_v28  ;;  %v4681_v32 = vadd.f32 %v4523_v26, %v3863_v29 }
 0x43b   : > { %v4817_v34 = vadd.f32 %v7484_v27, %v4681_v32  ;;  %v4526_v36 = vpop.f32.mrf.mxu3 }
 0x43d   : > { %v4949_v38 = vmax.f32 %v4817_v34, 0.0 }
 0x43e   : > { %v3708_v39 = vpop.f32.mrf.mxu2  ;;  %v1685_v41 = vpop.f32.mrf.mxu0 }
 0x43f   : > { %v5081_v37 = vpack.c.bf16 %v4949_v38, %v4949_v38  ;;  %v3864_v40 = vadd.f32 %v3708_v39, %v2163_v35  ;;  %v2167_v42 = vpop.f32.mrf.mxu1  ;;  %v2165_v47 = vadd.f32 %v2164_v31, %v1685_v41 }
 0x441   : > { %5214 = vst.msk [vmem:[%s6438_s14 + $0x1cc] sm:$0xf] %vm5098_vm4, %v5081_v37  ;;  %v4682_v43 = vadd.f32 %v4526_v36, %v3864_v40 }
 0x443   : > { %v4818_v44 = vadd.f32 %v7484_v27, %v4682_v43  ;;  %v4528_v45 = vpop.f32.mrf.mxu3 }
 0x445   : > { %v4950_v46 = vmax.f32 %v4818_v44, 0.0 }
 0x446   : > { %v3710_v48 = vpop.f32.mrf.mxu2  ;;  %v1688_v51 = vpop.f32.mrf.mxu0 }
 0x447   : > { %v5082_v49 = vpack.c.bf16 %v4950_v46, %v4950_v46  ;;  %v3865_v50 = vadd.f32 %v3710_v48, %v2165_v47  ;;  %v2169_v52 = vpop.f32.mrf.mxu1  ;;  %v2168_v55 = vadd.f32 %v2167_v42, %v1688_v51 }
 0x449   : > { %5215 = vst.msk [vmem:[%s6438_s14 + $0x1d0] sm:$0xf] %vm5098_vm4, %v5082_v49  ;;  %v4683_v53 = vadd.f32 %v4528_v45, %v3865_v50 }
 0x44b   : > { %v4819_v54 = vadd.f32 %v7484_v27, %v4683_v53  ;;  %v4531_v56 = vpop.f32.mrf.mxu3 }
 0x44d   : > { %v4951_v57 = vmax.f32 %v4819_v54, 0.0 }
 0x44e   : > { %v3713_v58 = vpop.f32.mrf.mxu2  ;;  %v1690_v61 = vpop.f32.mrf.mxu0 }
 0x44f   : > { %v5083_v59 = vpack.c.bf16 %v4951_v57, %v4951_v57  ;;  %v3866_v60 = vadd.f32 %v3713_v58, %v2168_v55  ;;  %v2172_v62 = vpop.f32.mrf.mxu1  ;;  %v2170_v3 = vadd.f32 %v2169_v52, %v1690_v61 }
 0x451   : > { %5216 = vst.msk [vmem:[%s6438_s14 + $0x1d4] sm:$0xf] %vm5098_vm4, %v5083_v59  ;;  %v4684_v63 = vadd.f32 %v4531_v56, %v3866_v60 }
 0x453   : > { %v4820_v0 = vadd.f32 %v7484_v27, %v4684_v63  ;;  %v4533_v1 = vpop.f32.mrf.mxu3 }
 0x455   : > { %v4952_v2 = vmax.f32 %v4820_v0, 0.0 }
 0x456   : > { %v3715_v4 = vpop.f32.mrf.mxu2  ;;  %v1693_v8 = vpop.f32.mrf.mxu0 }
 0x457   : > { %v5084_v5 = vpack.c.bf16 %v4952_v2, %v4952_v2  ;;  %v3867_v6 = vadd.f32 %v3715_v4, %v2170_v3  ;;  %v2174_v9 = vpop.f32.mrf.mxu1  ;;  %v2173_v11 = vadd.f32 %v2172_v62, %v1693_v8 }
 0x459   : > { %5217 = vst.msk [vmem:[%s6438_s14 + $0x1d8] sm:$0xf] %vm5098_vm4, %v5084_v5  ;;  %v4685_v10 = vadd.f32 %v4533_v1, %v3867_v6 }
 0x45b   : > { %v4821_v7 = vadd.f32 %v7484_v27, %v4685_v10  ;;  %v4536_v12 = vpop.f32.mrf.mxu3 }
 0x45d   : > { %v4953_v13 = vmax.f32 %v4821_v7, 0.0 }
 0x45e   : > { %v3718_v14 = vpop.f32.mrf.mxu2  ;;  %v1695_v17 = vpop.f32.mrf.mxu0 }
 0x45f   : > { %v5085_v15 = vpack.c.bf16 %v4953_v13, %v4953_v13  ;;  %v3868_v16 = vadd.f32 %v3718_v14, %v2173_v11  ;;  %v2177_v18 = vpop.f32.mrf.mxu1  ;;  %v2175_v25 = vadd.f32 %v2174_v9, %v1695_v17 }
 0x461   : > { %5218 = vst.msk [vmem:[%s6438_s14 + $0x1dc] sm:$0xf] %vm5098_vm4, %v5085_v15  ;;  %v4686_v19 = vadd.f32 %v4536_v12, %v3868_v16 }
 0x463   : > { %v4822_v20 = vadd.f32 %v7484_v27, %v4686_v19  ;;  %v4538_v33 = vpop.f32.mrf.mxu3 }
 0x465   : > { %v4954_v24 = vmax.f32 %v4822_v20, 0.0 }
 0x466   : > { %v3720_v26 = vpop.f32.mrf.mxu2  ;;  %v1698_v23 = vpop.f32.mrf.mxu0 }
 0x467   : > { %v5086_v21 = vpack.c.bf16 %v4954_v24, %v4954_v24  ;;  %v3869_v22 = vadd.f32 %v3720_v26, %v2175_v25  ;;  %v2179_v28 = vpop.f32.mrf.mxu1  ;;  %v2178_v31 = vadd.f32 %v2177_v18, %v1698_v23 }
 0x469   : > { %5219 = vst.msk [vmem:[%s6438_s14 + $0x1e0] sm:$0xf] %vm5098_vm4, %v5086_v21  ;;  %v4687_v29 = vadd.f32 %v4538_v33, %v3869_v22 }
 0x46b   : > { %v4823_v30 = vadd.f32 %v7484_v27, %v4687_v29  ;;  %v4541_v32 = vpop.f32.mrf.mxu3 }
 0x46d   : > { %v4955_v34 = vmax.f32 %v4823_v30, 0.0 }
 0x46e   : > { %v3723_v35 = vpop.f32.mrf.mxu2  ;;  %v1700_v39 = vpop.f32.mrf.mxu0 }
 0x46f   : > { %v5087_v36 = vpack.c.bf16 %v4955_v34, %v4955_v34  ;;  %v3870_v38 = vadd.f32 %v3723_v35, %v2178_v31  ;;  %v2182_v37 = vpop.f32.mrf.mxu1  ;;  %v2180_v44 = vadd.f32 %v2179_v28, %v1700_v39 }
 0x471   : > { %5220 = vst.msk [vmem:[%s6438_s14 + $0x1e4] sm:$0xf] %vm5098_vm4, %v5087_v36  ;;  %v4688_v40 = vadd.f32 %v4541_v32, %v3870_v38 }
 0x473   : > { %v4824_v41 = vadd.f32 %v7484_v27, %v4688_v40  ;;  %v4543_v42 = vpop.f32.mrf.mxu3 }
 0x475   : > { %v4956_v43 = vmax.f32 %v4824_v41, 0.0 }
 0x476   : > { %v3725_v45 = vpop.f32.mrf.mxu2  ;;  %v1703_v48 = vpop.f32.mrf.mxu0 }
 0x477   : > { %v5088_v46 = vpack.c.bf16 %v4956_v43, %v4956_v43  ;;  %v3871_v47 = vadd.f32 %v3725_v45, %v2180_v44  ;;  %v2184_v49 = vpop.f32.mrf.mxu1  ;;  %v2183_v52 = vadd.f32 %v2182_v37, %v1703_v48 }
 0x479   : > { %5221 = vst.msk [vmem:[%s6438_s14 + $0x1e8] sm:$0xf] %vm5098_vm4, %v5088_v46  ;;  %v4689_v50 = vadd.f32 %v4543_v42, %v3871_v47 }
 0x47b   : > { %v4825_v51 = vadd.f32 %v7484_v27, %v4689_v50  ;;  %v4546_v53 = vpop.f32.mrf.mxu3 }
 0x47d   : > { %v4957_v54 = vmax.f32 %v4825_v51, 0.0 }
 0x47e   : > { %v3728_v55 = vpop.f32.mrf.mxu2  ;;  %v1705_v58 = vpop.f32.mrf.mxu0 }
 0x47f   : > { %v5089_v56 = vpack.c.bf16 %v4957_v54, %v4957_v54  ;;  %v3872_v57 = vadd.f32 %v3728_v55, %v2183_v52  ;;  %v2187_v60 = vpop.f32.mrf.mxu1  ;;  %v2185_v0 = vadd.f32 %v2184_v49, %v1705_v58 }
 0x481   : > { %5222 = vst.msk [vmem:[%s6438_s14 + $0x1ec] sm:$0xf] %vm5098_vm4, %v5089_v56  ;;  %v4690_v59 = vadd.f32 %v4546_v53, %v3872_v57 }
 0x483   : > { %v4826_v61 = vadd.f32 %v7484_v27, %v4690_v59  ;;  %v4548_v62 = vpop.f32.mrf.mxu3 }
 0x485   : > { %v4958_v63 = vmax.f32 %v4826_v61, 0.0 }
 0x486   : > { %v3730_v1 = vpop.f32.mrf.mxu2  ;;  %v1708_v4 = vpop.f32.mrf.mxu0 }
 0x487   : > { %v5090_v2 = vpack.c.bf16 %v4958_v63, %v4958_v63  ;;  %v3873_v3 = vadd.f32 %v3730_v1, %v2185_v0  ;;  %v2188_v8 = vadd.f32 %v2187_v60, %v1708_v4  ;;  %v2189_v10 = vpop.f32.mrf.mxu1 }
 0x489   : > { %5223 = vst.msk [vmem:[%s6438_s14 + $0x1f0] sm:$0xf] %vm5098_vm4, %v5090_v2  ;;  %v4691_v5 = vadd.f32 %v4548_v62, %v3873_v3 }
 0x48b   : > { %v4827_v6 = vadd.f32 %v7484_v27, %v4691_v5  ;;  %v4551_v9 = vpop.f32.mrf.mxu3 }
 0x48d   : > { %v4959_v7 = vmax.f32 %v4827_v6, 0.0 }
 0x48e   : > { %v3733_v11 = vpop.f32.mrf.mxu2  ;;  %v1710_v14 = vpop.f32.mrf.mxu0 }
 0x48f   : > { %v5091_v12 = vpack.c.bf16 %v4959_v7, %v4959_v7  ;;  %v3874_v13 = vadd.f32 %v3733_v11, %v2188_v8  ;;  %v2190_v19 = vadd.f32 %v2189_v10, %v1710_v14  ;;  %v2192_v20 = vpop.f32.mrf.mxu1 }
 0x491   : > { %5224 = vst.msk [vmem:[%s6438_s14 + $0x1f4] sm:$0xf] %vm5098_vm4, %v5091_v12  ;;  %v4692_v15 = vadd.f32 %v4551_v9, %v3874_v13 }
 0x493   : > { %v4828_v16 = vadd.f32 %v7484_v27, %v4692_v15  ;;  %v4553_v17 = vpop.f32.mrf.mxu3 }
 0x495   : > { %v4960_v18 = vmax.f32 %v4828_v16, 0.0 }
 0x496   : > { %v3735_v33 = vpop.f32.mrf.mxu2  ;;  %v1713_v26 = vpop.f32.mrf.mxu0 }
 0x497   : > { %v5092_v24 = vpack.c.bf16 %v4960_v18, %v4960_v18  ;;  %v3875_v25 = vadd.f32 %v3735_v33, %v2190_v19  ;;  %v2193_v23 = vadd.f32 %v2192_v20, %v1713_v26  ;;  %v2194_v35 = vpop.f32.mrf.mxu1 }
 0x499   : > { %5225 = vst.msk [vmem:[%s6438_s14 + $0x1f8] sm:$0xf] %vm5098_vm4, %v5092_v24  ;;  %v4693_v21 = vadd.f32 %v4553_v17, %v3875_v25 }
 0x49b   : > { %v4829_v22 = vadd.f32 %v7484_v27, %v4693_v21  ;;  %v4556_v28 = vpop.f32.mrf.mxu3 }
 0x49d   : > { %v4961_v29 = vmax.f32 %v4829_v22, 0.0 }
 0x49e   : > { %v3738_v30 = vpop.f32.mrf.mxu2  ;;  %v1715_v34 = vpop.f32.mrf.mxu0 }
 0x49f   : > { %v5093_v31 = vpack.c.bf16 %v4961_v29, %v4961_v29  ;;  %v3876_v32 = vadd.f32 %v3738_v30, %v2193_v23  ;;  %v2195_v40 = vadd.f32 %v2194_v35, %v1715_v34  ;;  %v2197_v46 = vpop.f32.mrf.mxu1 }
 0x4a1   : > { %5226 = vst.msk [vmem:[%s6438_s14 + $0x1fc] sm:$0xf] %vm5098_vm4, %v5093_v31  ;;  %v4694_v36 = vadd.f32 %v4556_v28, %v3876_v32 }
 0x4a3   : > { %v4830_v38 = vadd.f32 %v7484_v27, %v4694_v36  ;;  %v4558_v39 = vpop.f32.mrf.mxu3 }
 0x4a5   : > { %v4962_v37 = vmax.f32 %v4830_v38, 0.0 }
 0x4a6   : > { %v3740_v41 = vpop.f32.mrf.mxu2  ;;  %v1718_v44 = vpop.f32.mrf.mxu0 }
 0x4a7   : > { %v5094_v42 = vpack.c.bf16 %v4962_v37, %v4962_v37  ;;  %v3877_v43 = vadd.f32 %v3740_v41, %v2195_v40  ;;  %v2198_v48 = vadd.f32 %v2197_v46, %v1718_v44  ;;  %v2199_v57 = vpop.f32.mrf.mxu1 }
 0x4a9   : > { %5227 = vst.msk [vmem:[%s6438_s14 + $0x200] sm:$0xf] %vm5098_vm4, %v5094_v42  ;;  %v4695_v45 = vadd.f32 %v4558_v39, %v3877_v43 }
 0x4ab   : > { %v4831_v47 = vadd.f32 %v7484_v27, %v4695_v45  ;;  %v4561_v50 = vpop.f32.mrf.mxu3 }
 0x4ad   : > { %v4963_v49 = vmax.f32 %v4831_v47, 0.0 }
 0x4ae   : > { %v3743_v51 = vpop.f32.mrf.mxu2  ;;  %v1720_v55 = vpop.f32.mrf.mxu0 }
 0x4af   : > { %v5095_v52 = vpack.c.bf16 %v4963_v49, %v4963_v49  ;;  %v3878_v53 = vadd.f32 %v3743_v51, %v2198_v48  ;;  %v2200_v59 = vadd.f32 %v2199_v57, %v1720_v55 }
 0x4b1   : > { %5228 = vst.msk [vmem:[%s6438_s14 + $0x204] sm:$0xf] %vm5098_vm4, %v5095_v52  ;;  %v4696_v54 = vadd.f32 %v4561_v50, %v3878_v53 }
 0x4b3   : > { %v4832_v56 = vadd.f32 %v7484_v27, %v4696_v54  ;;  %v4563_v63 = vpop.f32.mrf.mxu3 }
 0x4b5   : > { %v4964_v58 = vmax.f32 %v4832_v56, 0.0 }
 0x4b6   : > { %v3745_v60 = vpop.f32.mrf.mxu2 }
 0x4b7   : > { %v5096_v61 = vpack.c.bf16 %v4964_v58, %v4964_v58  ;;  %v3879_v62 = vadd.f32 %v3745_v60, %v2200_v59 }
 0x4b9   : > { %5229 = vst.msk [vmem:[%s6438_s14 + $0x208] sm:$0xf] %vm5098_vm4, %v5096_v61  ;;  %v4697_v0 = vadd.f32 %v4563_v63, %v3879_v62 }
 0x4bb   : > { %v4833_v1 = vadd.f32 %v7484_v27, %v4697_v0 }
 0x4bd   : > { %v4965_v2 = vmax.f32 %v4833_v1, 0.0 }
 0x4bf   : > { %v5097_v3 = vpack.c.bf16 %v4965_v2, %v4965_v2 }
 0x4c1   : > { %5230 = vst.msk [vmem:[%s6438_s14 + $0x20c] sm:$0xf] %vm5098_vm4, %v5097_v3 }
 0x4c2 PF: > { %s13_s12 = sadd.s32 1, %s6269_s12  }
 0x4c3   : > { %p10_p4 = scmp.ge.s32.totalorder %s13_s12, 6  }
 0x4c5   :  { %12 = sbr.rel (!%p10_p4) target bundleno = 1 (0x1), region = 65 }

// kernel: observation_encoder_forward.6
= control target key start
LH: loop header
LB: loop body
LE: loop exit
PB: predicated region body
PF: predicated region fallthrough
CT: control target
= control target key end

     0   :  { %s2135_s12 = smov 0   ;;  %s2529_s0 = inlined_call_operand.vmem [shape: bf16[4,290,128], index: 0, kind: input, shape index: {}]   ;;  %s2530_s1 = inlined_call_operand.vmem [shape: bf16[2,2,128,64], index: 1, kind: input, shape index: {}]   ;;  %s2531_s2 = inlined_call_operand.vmem [shape: f32[1,64], index: 2, kind: input, shape index: {}]   ;;  %s2532_s3 = inlined_call_operand.vmem [shape: bf16[4,272,64], index: 3, kind: output, shape index: {}]  }
   0x1 LB: > { %s1705_s13 = sadd.s32 4294967295, %s2113_s12   ;;  %p1709_p0 = scmp.ge.s32.totalorder %s2113_s12, 1  ;;  %s2113_s12 = sphi %s2135_s12, %s13_s12  }
   0x2   : > { %p137_p1 = scmp.lt.s32.totalorder %s2113_s12, 5 }
   0x4   : > { %p138_p2 = pnand %p1709_p0, %p137_p1 }
   0x5   : > { %p161_p3 = scmp.lt.s32.totalorder (!%p138_p2), %s1705_s13, 3 }
   0x6   : > { %141 = sbr.rel (%p138_p2) target bundleno = 452 (0x1c4), region = 32 }
   0xb   : > { %v2054_v0 = vld [vmem:[%s2530_s1 + $0x78] sm:$0xff]  ;;  %v2053_v4 = vld [vmem:[%s2530_s1 + $0x70] sm:$0xff]  ;;  %s2534_s13 = smov (!%p161_p3, %s1705_s13), 3  ;;  %v2052_v8 = vld [vmem:[%s2530_s1 + $0x68] sm:$0xff]  ;;  %vm327_vm0 = vsmask.f32 7424 }
   0xc   : > { %v2046_v1 = vld [vmem:[%s2530_s1 + $0x38] sm:$0xff]  ;;  %533 = vmatpush.bf16.msra.mxu0 %v2054_v0  ;;  %v2045_v5 = vld [vmem:[%s2530_s1 + $0x30] sm:$0xff]  ;;  %v2044_v9 = vld [vmem:[%s2530_s1 + $0x28] sm:$0xff]  ;;  %s2095_s11 = smul.u32 148, %s2534_s13  ;;  %vm1280_vm1 = vcmask 1046528   ;;  %vm1615_vm2 = vcmask 519168  }
   0xd   : > { %v2078_v2 = vld [vmem:[%s2530_s1 + $0xb8] sm:$0xff]  ;;  %692 = vmatpush.bf16.msra.mxu1 %v2046_v1  ;;  %v2077_v6 = vld [vmem:[%s2530_s1 + $0xb0] sm:$0xff]  ;;  %v2076_v10 = vld [vmem:[%s2530_s1 + $0xa8] sm:$0xff]  ;;  %s2096_s8 = smul.u32 136, %s2534_s13 }
   0xe   : > { %v2086_v3 = vld [vmem:[%s2530_s1 + $0xf8] sm:$0xff]  ;;  %1131 = vmatpush.bf16.msra.mxu2 %v2078_v2  ;;  %v2085_v7 = vld [vmem:[%s2530_s1 + $0xf0] sm:$0xff]  ;;  %v2084_v11 = vld [vmem:[%s2530_s1 + $0xe8] sm:$0xff]  ;;  %s2197_s24 = scalar_lea.vmem %s2529_s0, %s2095_s11 }
   0xf   : > { %1381 = vmatpush.bf16.msra.mxu3 %v2086_v3  ;;  %v2051_v12 = vld [vmem:[%s2530_s1 + $0x60] sm:$0xff]  ;;  %v2050_v16 = vld [vmem:[%s2530_s1 + $0x58] sm:$0xff]  ;;  %v2091_v21 = vld [vmem:[%s2197_s24 + $0x8] sm:$0xff]   ;;  %s2320_s11 = scalar_lea.vmem %s2532_s3, %s2096_s8 }
  0x10   : > { %534 = vmatpush.bf16.msra.mxu0 %v2053_v4  ;;  %v2043_v13 = vld [vmem:[%s2530_s1 + $0x20] sm:$0xff]  ;;  %v2042_v17 = vld [vmem:[%s2530_s1 + $0x18] sm:$0xff]  ;;  %v2049_v22 = vld [vmem:[%s2530_s1 + $0x50] sm:$0xff]  ;;  %v929_v29 = vshll.u32 %v2091_v21, 16  ;;  %v927_v39 = vshrl.u32 %v2091_v21, 16 }
  0x11   : > { %693 = vmatpush.bf16.msra.mxu1 %v2045_v5  ;;  %v2075_v14 = vld [vmem:[%s2530_s1 + $0xa0] sm:$0xff]  ;;  %v2074_v19 = vld [vmem:[%s2530_s1 + $0x98] sm:$0xff]  ;;  %v2041_v23 = vld [vmem:[%s2530_s1 + $0x10] sm:$0xff] }
  0x12   : > { %1132 = vmatpush.bf16.msra.mxu2 %v2077_v6  ;;  %v2083_v15 = vld [vmem:[%s2530_s1 + $0xe0] sm:$0xff]  ;;  %v2082_v20 = vld [vmem:[%s2530_s1 + $0xd8] sm:$0xff]  ;;  %v2220_v24 = vld [vmem:[%s2197_s24 + $0x8] sm:$0xff]  ;;  %v931_v40 = vrot.slane %v929_v29, 1 }
  0x13   : > { %1382 = vmatpush.bf16.msra.mxu3 %v2085_v7  ;;  %v2022_v18 = vld [vmem:[%s2197_s24] sm:$0xff]  ;;  %v2073_v26 = vld [vmem:[%s2530_s1 + $0x90] sm:$0xff]  ;;  %v2092_v30 = vld [vmem:[%s2197_s24 + $0x8] sm:$0xf0]  ;;  %v336_v36 = vshll.u32 %v2220_v24, 16  ;;  %v340_v58 = vshrl.u32 %v2220_v24, 16 }
  0x14   : > { %535 = vmatpush.bf16.msra.mxu0 %v2052_v8  ;;  %v331_v25 = vshll.u32 %v2022_v18, 16  ;;  %v2081_v27 = vld [vmem:[%s2530_s1 + $0xd0] sm:$0xff]  ;;  %v2093_v31 = vld [vmem:[%s2197_s24 + $0x8] sm:$0xe]  ;;  %v329_v34 = vshrl.u32 %v2022_v18, 16  ;;  %v2047_v43 = vld [vmem:[%s2530_s1 + $0x40] sm:$0xff]  ;;  %v932_v49 = vor.u32 %v931_v40, %v927_v39 }
  0x15   : > { %694 = vmatpush.bf16.msra.mxu1 %v2044_v9  ;;  %v2055_v28 = vld [vmem:[%s2197_s24 + $0x10] sm:$0xff]  ;;  %v2048_v32 = vld [vmem:[%s2530_s1 + $0x48] sm:$0xff]  ;;  %v2094_v42 = vor.u32 %v2093_v31, %v2092_v30  ;;  %v2039_v44 = vld [vmem:[%s2530_s1] sm:$0xff]  ;;  %v338_v46 = vrot.slane %v336_v36, 1 }
  0x16   : > { %1133 = vmatpush.bf16.msra.mxu2 %v2076_v10  ;;  %v2040_v33 = vld [vmem:[%s2530_s1 + $0x8] sm:$0xff]  ;;  %v333_v35 = vrot.slane %v331_v25, 1  ;;  %v934_v41 = vshll.u32 %v2055_v28, 16  ;;  %v2071_v47 = vld [vmem:[%s2530_s1 + $0x80] sm:$0xff]  ;;  %v1282_v52 = vrot.slane %v2055_v28, 1  ;;  %v2024_v56 = vld [vmem:[%s2197_s24 + $0x10] sm:$0xff] }
  0x17   : > { %1383 = vmatpush.bf16.msra.mxu3 %v2084_v11  ;;  %v2072_v37 = vld [vmem:[%s2530_s1 + $0x88] sm:$0xff]  ;;  %v2079_v48 = vld [vmem:[%s2530_s1 + $0xc0] sm:$0xff]  ;;  %v1281_v51 = vrot.slane %v2094_v42, 1  ;;  %v2056_v57 = vld [vmem:[%s2197_s24 + $0x18] sm:$0xff]  ;;  %v344_v59 = vshll.u32 %v2024_v56, 16  ;;  %v938_v60 = vshrl.u32 %v2055_v28, 16  ;;  %v342_v62 = vor.u32 %v340_v58, %v338_v46 }
  0x18   : > { %536 = vmatpush.bf16.msra.mxu0 %v2051_v12  ;;  %v2080_v38 = vld [vmem:[%s2530_s1 + $0xc8] sm:$0xff]  ;;  %v334_v45 = vor.u32 %v333_v35, %v329_v34  ;;  %v936_v50 = vrot.slane %v934_v41, 1  ;;  %v942_v61 = vshll.u32 %v2056_v57, 16  ;;  %v1284_v2 = vrot.slane %v2056_v57, 1  ;;  %v2025_v6 = vld [vmem:[%s2197_s24 + $0x18] sm:$0xff]  ;;  %v2057_v7 = vld [vmem:[%s2197_s24 + $0x20] sm:$0xff] }
  0x19   : > { %695 = vmatpush.bf16.msra.mxu1 %v2043_v13  ;;  %v1283_v55 = vsel %vm1280_vm1, %v1281_v51, %v1282_v52  ;;  %v346_v63 = vrot.slane %v344_v59, 1  ;;  %v348_v8 = vshrl.u32 %v2024_v56, 16  ;;  %v352_v9 = vshll.u32 %v2025_v6, 16  ;;  %v2058_v21 = vld [vmem:[%s2197_s24 + $0x28] sm:$0xff]  ;;  %v2059_v35 = vld [vmem:[%s2197_s24 + $0x30] sm:$0xff] }
  0x1a   : > { %1134 = vmatpush.bf16.msra.mxu2 %v2075_v14  ;;  %v339_v53 = vsel %vm327_vm0, %v334_v45, %v338_v46  ;;  %v937_v54 = vsel %vm327_vm0, %v932_v49, %v936_v50  ;;  %v940_v0 = vor.u32 %v938_v60, %v936_v50  ;;  %v944_v1 = vrot.slane %v942_v61, 1  ;;  %v2027_v34 = vld [vmem:[%s2197_s24 + $0x28] sm:$0xff]  ;;  %v2060_v49 = vld [vmem:[%s2197_s24 + $0x38] sm:$0xff] }
  0x1b   : > { %1384 = vmatpush.bf16.msra.mxu3 %v2083_v15  ;;  %v347_v3 = vsel %vm327_vm0, %v342_v62, %v346_v63  ;;  %v1285_v5 = vsel %vm1280_vm1, %v1282_v52, %v1284_v2  ;;  %v946_v10 = vshrl.u32 %v2056_v57, 16  ;;  %v950_v11 = vshll.u32 %v2057_v7, 16  ;;  %v2029_v62 = vld [vmem:[%s2197_s24 + $0x38] sm:$0xff] }
  0x1c   : > { %537 = vmatpush.bf16.msra.mxu0 %v2050_v16  ;;  %v945_v4 = vsel %vm327_vm0, %v940_v0, %v944_v1  ;;  %v350_v12 = vor.u32 %v348_v8, %v346_v63  ;;  %v354_v13 = vrot.slane %v352_v9, 1  ;;  %v1286_v16 = vrot.slane %v2057_v7, 1  ;;  %v2061_v63 = vld [vmem:[%s2197_s24 + $0x40] sm:$0xff] }
  0x1d   : > { %696 = vmatpush.bf16.msra.mxu1 %v2042_v17  ;;  %v948_v14 = vor.u32 %v946_v10, %v944_v1  ;;  %v952_v15 = vrot.slane %v950_v11, 1  ;;  %v958_v25 = vshll.u32 %v2058_v21, 16  ;;  %v1288_v30 = vrot.slane %v2058_v21, 1 }
  0x1e   : > { %1135 = vmatpush.bf16.msra.mxu2 %v2074_v19  ;;  %v355_v17 = vsel %vm327_vm0, %v350_v12, %v354_v13  ;;  %v1287_v19 = vsel %vm1280_vm1, %v1284_v2, %v1286_v16  ;;  %v966_v39 = vshll.u32 %v2059_v35, 16  ;;  %v372_v50 = vshrl.u32 %v2027_v34, 16  ;;  %v2030_v12 = vld [vmem:[%s2197_s24 + $0x40] sm:$0xff] }
  0x1f   : > { %1385 = vmatpush.bf16.msra.mxu3 %v2082_v20  ;;  %v2026_v20 = vld [vmem:[%s2197_s24 + $0x20] sm:$0xff]  ;;  %v960_v29 = vrot.slane %v958_v25, 1  ;;  %v970_v52 = vshrl.u32 %v2059_v35, 16  ;;  %v1292_v58 = vrot.slane %v2060_v49, 1  ;;  %v384_v1 = vshll.u32 %v2029_v62, 16 }
  0x20   : > { %538 = vmatpush.bf16.msra.mxu0 %v2049_v22  ;;  %v356_v22 = vshrl.u32 %v2025_v6, 16  ;;  %v364_v36 = vshrl.u32 %v2026_v20, 16  ;;  %v978_v2 = vshrl.u32 %v2060_v49, 16  ;;  %v1294_v8 = vrot.slane %v2061_v63, 1 }
  0x21   : > { %697 = vmatpush.bf16.msra.mxu1 %v2041_v23  ;;  %v360_v23 = vshll.u32 %v2026_v20, 16 }
  0x22   : > { %1136 = vmatpush.bf16.msra.mxu2 %v2073_v26  ;;  %v358_v26 = vor.u32 %v356_v22, %v354_v13  ;;  %v1295_v11 = vsel %vm1280_vm1, %v1292_v58, %v1294_v8  ;;  %v2062_v13 = vld [vmem:[%s2197_s24 + $0x48] sm:$0xff] }
  0x23   : > { %1386 = vmatpush.bf16.msra.mxu3 %v2081_v27  ;;  %v362_v27 = vrot.slane %v360_v23, 1  ;;  %v1296_v22 = vrot.slane %v2062_v13, 1 }
  0x24   : > { %539 = vmatpush.bf16.msra.mxu0 %v2048_v32 }
  0x25   : > { %698 = vmatpush.bf16.msra.mxu1 %v2040_v33  ;;  %v363_v31 = vsel %vm327_vm0, %v358_v26, %v362_v27  ;;  %v1289_v33 = vsel %vm1280_vm1, %v1286_v16, %v1288_v30  ;;  %v366_v40 = vor.u32 %v364_v36, %v362_v27  ;;  %v986_v16 = vshrl.u32 %v2061_v63, 16  ;;  %v2031_v26 = vld [vmem:[%s2197_s24 + $0x48] sm:$0xff]  ;;  %v2063_v27 = vld [vmem:[%s2197_s24 + $0x50] sm:$0xff] }
  0x26   : > { %1137 = vmatpush.bf16.msra.mxu2 %v2072_v37  ;;  %v368_v37 = vshll.u32 %v2027_v34, 16  ;;  %v1297_v25 = vsel %vm1280_vm1, %v1294_v8, %v1296_v22  ;;  %v1298_v36 = vrot.slane %v2063_v27, 1 }
  0x27   : > { %1387 = vmatpush.bf16.msra.mxu3 %v2080_v38  ;;  %v962_v38 = vshrl.u32 %v2058_v21, 16 }
  0x28   : > { %540 = vmatpush.bf16.msra.mxu0 %v2047_v43  ;;  %v370_v41 = vrot.slane %v368_v37, 1  ;;  %v968_v43 = vrot.slane %v966_v39, 1 }
  0x29   : > { %699 = vmatpush.bf16.msra.mxu1 %v2039_v44  ;;  %v964_v42 = vor.u32 %v962_v38, %v960_v29  ;;  %v1290_v44 = vrot.slane %v2059_v35, 1 }
  0x2a   : > { %1138 = vmatpush.bf16.msra.mxu2 %v2071_v47  ;;  %v371_v45 = vsel %vm327_vm0, %v366_v40, %v370_v41 }
  0x2b   : > { %1388 = vmatpush.bf16.msra.mxu3 %v2079_v48  ;;  %541 = vmatmul.bf16.vlgmr.msra.gmra.mxu0 %v339_v53  ;;  %v969_v46 = vsel %vm327_vm0, %v964_v42, %v968_v43  ;;  %v1291_v47 = vsel %vm1280_vm1, %v1288_v30, %v1290_v44  ;;  %v2028_v48 = vld [vmem:[%s2197_s24 + $0x30] sm:$0xff]  ;;  %v974_v53 = vshll.u32 %v2060_v49, 16  ;;  %v1293_v61 = vsel %vm1280_vm1, %v1290_v44, %v1292_v58  ;;  %v2305_v44 = vld [vmem:[%s2197_s24 + $0x58] sm:$0xff] }
  0x2c   : > { %700 = vmatmul.bf16.vlgmr.msra.gmra.mxu1 %v2022_v18  ;;  %v953_v18 = vsel %vm327_vm0, %v948_v14, %v952_v15  ;;  %v376_v51 = vshll.u32 %v2028_v48, 16  ;;  %v380_v0 = vshrl.u32 %v2028_v48, 16  ;;  %v388_v14 = vshrl.u32 %v2029_v62, 16 }
  0x2d   : > { %1139 = vmatmul.bf16.vlgmr.msra.gmra.mxu2 %v937_v54  ;;  %v374_v54 = vor.u32 %v372_v50, %v370_v41  ;;  %v976_v57 = vrot.slane %v974_v53, 1  ;;  %v994_v30 = vshrl.u32 %v2062_v13, 16  ;;  %v1299_v41 = vsel %vm1280_vm1, %v1296_v22, %v1298_v36 }
  0x2e   : > { %1389 = vmatmul.bf16.vlgmr.msra.gmra.mxu3 %v1283_v55  ;;  %v378_v55 = vrot.slane %v376_v51, 1  ;;  %v404_v51 = vshrl.u32 %v2031_v26, 16  ;;  %v1002_v53 = vshrl.u32 %v2063_v27, 16 }
  0x30   : > { %v379_v59 = vsel %vm327_vm0, %v374_v54, %v378_v55  ;;  %v1006_v54 = vshll.u32 %v2305_v44, 16 }
  0x3b   : > { %546 = vmatmul.bf16.gmra.mxu0 %v347_v3  ;;  %v982_v3 = vshll.u32 %v2061_v63, 16 }
  0x3c   : > { %705 = vmatmul.bf16.gmra.mxu1 %v2220_v24  ;;  %v954_v24 = vshrl.u32 %v2057_v7, 16 }
  0x3d   : > { %1144 = vmatmul.bf16.gmra.mxu2 %v945_v4  ;;  %v382_v4 = vor.u32 %v380_v0, %v378_v55  ;;  %v984_v7 = vrot.slane %v982_v3, 1 }
  0x3e   : > { %1394 = vmatmul.bf16.gmra.mxu3 %v1285_v5  ;;  %v956_v28 = vor.u32 %v954_v24, %v952_v15  ;;  %v386_v5 = vrot.slane %v384_v1, 1  ;;  %v392_v15 = vshll.u32 %v2030_v12, 16 }
  0x40   : > { %v961_v32 = vsel %vm327_vm0, %v956_v28, %v960_v29  ;;  %v387_v9 = vsel %vm327_vm0, %v382_v4, %v386_v5  ;;  %v396_v28 = vshrl.u32 %v2030_v12, 16  ;;  %v400_v29 = vshll.u32 %v2031_v26, 16 }
  0x4b   : > { %551 = vmatmul.bf16.gmra.mxu0 %v355_v17  ;;  %v990_v17 = vshll.u32 %v2062_v13, 16  ;;  %v2332_v13 = vld [vmem:[%s2197_s24 + $0x60] sm:$0xff] }
  0x4c   : > { %710 = vmatmul.bf16.gmra.mxu1 %v2024_v56  ;;  %v972_v56 = vor.u32 %v970_v52, %v968_v43  ;;  %v2302_v43 = vld [vmem:[%s2197_s24 + $0x50] sm:$0xff] }
  0x4d   : > { %1149 = vmatmul.bf16.gmra.mxu2 %v953_v18  ;;  %v390_v18 = vor.u32 %v388_v14, %v386_v5  ;;  %v992_v21 = vrot.slane %v990_v17, 1  ;;  %v408_v52 = vshll.u32 %v2302_v43, 16 }
  0x4e   : > { %1399 = vmatmul.bf16.gmra.mxu3 %v1287_v19  ;;  %v977_v60 = vsel %vm327_vm0, %v972_v56, %v976_v57  ;;  %v394_v19 = vrot.slane %v392_v15, 1 }
  0x4f   : > { %v410_v58 = vrot.slane %v408_v52, 1 }
  0x50   : > { %v395_v23 = vsel %vm327_vm0, %v390_v18, %v394_v19 }
  0x5b   : > { %556 = vmatmul.bf16.gmra.mxu0 %v363_v31  ;;  %v998_v31 = vshll.u32 %v2063_v27, 16 }
  0x5c   : > { %715 = vmatmul.bf16.gmra.mxu1 %v2025_v6  ;;  %v980_v6 = vor.u32 %v978_v2, %v976_v57 }
  0x5d   : > { %1154 = vmatmul.bf16.gmra.mxu2 %v961_v32  ;;  %v398_v32 = vor.u32 %v396_v28, %v394_v19  ;;  %v1000_v35 = vrot.slane %v998_v31, 1  ;;  %v1302_v31 = vrot.slane %v2332_v13, 1 }
  0x5e   : > { %1404 = vmatmul.bf16.gmra.mxu3 %v1289_v33  ;;  %v985_v10 = vsel %vm327_vm0, %v980_v6, %v984_v7  ;;  %v402_v33 = vrot.slane %v400_v29, 1 }
  0x60   : > { %v403_v39 = vsel %vm327_vm0, %v398_v32, %v402_v33  ;;  %v406_v57 = vor.u32 %v404_v51, %v402_v33 }
  0x62   : > { %v411_v6 = vsel %vm327_vm0, %v406_v57, %v410_v58 }
  0x6b   : > { %561 = vmatmul.bf16.gmra.mxu0 %v371_v45 }
  0x6c   : > { %720 = vmatmul.bf16.gmra.mxu1 %v2026_v20  ;;  %v988_v20 = vor.u32 %v986_v16, %v984_v7 }
  0x6d   : > { %1159 = vmatmul.bf16.gmra.mxu2 %v969_v46 }
  0x6e   : > { %1409 = vmatmul.bf16.gmra.mxu3 %v1291_v47  ;;  %v993_v24 = vsel %vm327_vm0, %v988_v20, %v992_v21 }
  0x7b   : > { %566 = vmatmul.bf16.gmra.mxu0 %v379_v59  ;;  %v1004_v59 = vor.u32 %v1002_v53, %v1000_v35 }
  0x7c   : > { %725 = vmatmul.bf16.gmra.mxu1 %v2027_v34  ;;  %v996_v34 = vor.u32 %v994_v30, %v992_v21  ;;  %v412_v21 = vshrl.u32 %v2302_v43, 16 }
  0x7d   : > { %1164 = vmatmul.bf16.gmra.mxu2 %v977_v60  ;;  %v1008_v60 = vrot.slane %v1006_v54, 1 }
  0x7e   : > { %1414 = vmatmul.bf16.gmra.mxu3 %v1293_v61  ;;  %v1001_v40 = vsel %vm327_vm0, %v996_v34, %v1000_v35  ;;  %v1300_v61 = vrot.slane %v2305_v44, 1  ;;  %v414_v27 = vor.u32 %v412_v21, %v410_v58  ;;  %v1018_v58 = vshrl.u32 %v2332_v13, 16 }
  0x7f   : > { %v1009_v7 = vsel %vm327_vm0, %v1004_v59, %v1008_v60 }
  0x80   : > { %v1301_v8 = vsel %vm1280_vm1, %v1298_v36, %v1300_v61 }
  0x8b   : > { %571 = vmatmul.bf16.gmra.mxu0 %v387_v9 }
  0x8c   : > { %730 = vmatmul.bf16.gmra.mxu1 %v2028_v48  ;;  %v2310_v48 = vld [vmem:[%s2531_s2] ss:$0 sm:$0xff] }
  0x8d   : > { %1169 = vmatmul.bf16.gmra.mxu2 %v985_v10 }
  0x8e   : > { %1419 = vmatmul.bf16.gmra.mxu3 %v1295_v11 }
  0x9b   : > { %576 = vmatmul.bf16.gmra.mxu0 %v395_v23  ;;  %v1010_v23 = vshrl.u32 %v2305_v44, 16 }
  0x9c   : > { %735 = vmatmul.bf16.gmra.mxu1 %v2029_v62 }
  0x9d   : > { %1174 = vmatmul.bf16.gmra.mxu2 %v993_v24  ;;  %v1014_v24 = vshll.u32 %v2332_v13, 16  ;;  %v1012_v29 = vor.u32 %v1010_v23, %v1008_v60 }
  0x9e   : > { %1424 = vmatmul.bf16.gmra.mxu3 %v1297_v25 }
  0x9f   : > { %v1016_v30 = vrot.slane %v1014_v24, 1 }
  0xa8   : > { %v542_v37 = vpop.f32.mrf.mxu0 }
  0xa9   : > { %v701_v38 = vpop.f32.mrf.mxu1 }
  0xaa   : > { %v702_v42 = vadd.f32 %v701_v38, %v542_v37 }
  0xab   : > { %581 = vmatmul.bf16.gmra.mxu0 %v403_v39 }
  0xac   : > { %740 = vmatmul.bf16.gmra.mxu1 %v2030_v12  ;;  %v2329_v12 = vld [vmem:[%s2197_s24 + $0x58] sm:$0xff] }
  0xad   : > { %1179 = vmatmul.bf16.gmra.mxu2 %v1001_v40  ;;  %v416_v22 = vshll.u32 %v2329_v12, 16  ;;  %v420_v57 = vshrl.u32 %v2329_v12, 16 }
  0xae   : > { %1429 = vmatmul.bf16.gmra.mxu3 %v1299_v41  ;;  %v1017_v41 = vsel %vm327_vm0, %v1012_v29, %v1016_v30 }
  0xaf   : > { %v418_v28 = vrot.slane %v416_v22, 1 }
  0xb0   : > { %v1140_v45 = vpop.f32.mrf.mxu2  ;;  %v544_v49 = vpop.f32.mrf.mxu0 }
  0xb1   : > { %v1390_v46 = vpop.f32.mrf.mxu3  ;;  %v1225_v47 = vadd.f32 %v1140_v45, %v702_v42  ;;  %v703_v50 = vpop.f32.mrf.mxu1  ;;  %v419_v40 = vsel %vm327_vm0, %v414_v27, %v418_v28  ;;  %v1303_v42 = vsel %vm1280_vm1, %v1300_v61, %v1302_v31 }
  0xb2   : > { %v704_v63 = vadd.f32 %v703_v50, %v544_v49  ;;  %v2353_v49 = vld [vmem:[%s2197_s24 + $0x68] sm:$0xff] }
  0xb3   : > { %v1475_v55 = vadd.f32 %v1390_v46, %v1225_v47  ;;  %v2350_v47 = vld [vmem:[%s2197_s24 + $0x60] sm:$0xff]  ;;  %v1022_v59 = vshll.u32 %v2353_v49, 16 }
  0xb4   : > { %v428_v27 = vshrl.u32 %v2350_v47, 16 }
  0xb5   : > { %v1513_v56 = vadd.f32 %v2310_v48, %v1475_v55 }
  0xb7   : > { %v1547_v62 = vmax.f32 %v1513_v56, 0.0 }
  0xb8   : > { %v1142_v0 = vpop.f32.mrf.mxu2  ;;  %v547_v4 = vpop.f32.mrf.mxu0 }
  0xb9   : > { %v1392_v1 = vpop.f32.mrf.mxu3  ;;  %v1581_v2 = vpack.c.bf16 %v1547_v62, %v1547_v62  ;;  %v1226_v3 = vadd.f32 %v1142_v0, %v704_v63  ;;  %v706_v5 = vpop.f32.mrf.mxu1  ;;  %v422_v62 = vor.u32 %v420_v57, %v418_v28  ;;  %v1020_v0 = vor.u32 %v1018_v58, %v1016_v30 }
  0xba   : > { %v707_v11 = vadd.f32 %v706_v5, %v547_v4  ;;  %v1026_v28 = vshrl.u32 %v2353_v49, 16 }
  0xbb   : > { %1616 = vst.msk [vmem:[%s2320_s11] sm:$0xf] %vm1615_vm2, %v1581_v2  ;;  %v1476_v9 = vadd.f32 %v1392_v1, %v1226_v3  ;;  %586 = vmatmul.bf16.gmra.mxu0 %v411_v6  ;;  %v1024_v1 = vrot.slane %v1022_v59, 1  ;;  %v1304_v2 = vrot.slane %v2353_v49, 1 }
  0xbc   : > { %745 = vmatmul.bf16.gmra.mxu1 %v2031_v26 }
  0xbd   : > { %v1514_v10 = vadd.f32 %v2310_v48, %v1476_v9  ;;  %1184 = vmatmul.bf16.gmra.mxu2 %v1009_v7  ;;  %v1025_v13 = vsel %vm327_vm0, %v1020_v0, %v1024_v1 }
  0xbe   : > { %1434 = vmatmul.bf16.gmra.mxu3 %v1301_v8 }
  0xbf   : > { %v1548_v14 = vmax.f32 %v1514_v10, 0.0 }
  0xc0   : > { %v1145_v15 = vpop.f32.mrf.mxu2  ;;  %v549_v19 = vpop.f32.mrf.mxu0 }
  0xc1   : > { %v1395_v16 = vpop.f32.mrf.mxu3  ;;  %v1582_v17 = vpack.c.bf16 %v1548_v14, %v1548_v14  ;;  %v1227_v18 = vadd.f32 %v1145_v15, %v707_v11  ;;  %v708_v20 = vpop.f32.mrf.mxu1  ;;  %v1305_v14 = vsel %vm1280_vm1, %v1302_v31, %v1304_v2 }
  0xc2   : > { %v709_v33 = vadd.f32 %v708_v20, %v549_v19  ;;  %v2374_v19 = vld [vmem:[%s2197_s24 + $0x70] sm:$0xff] }
  0xc3   : > { %1617 = vst.msk [vmem:[%s2320_s11 + $0x4] sm:$0xf] %vm1615_vm2, %v1582_v17  ;;  %v1477_v25 = vadd.f32 %v1395_v16, %v1227_v18  ;;  %v2371_v18 = vld [vmem:[%s2197_s24 + $0x68] sm:$0xff]  ;;  %v1030_v29 = vshll.u32 %v2374_v19, 16 }
  0xc5   : > { %v1515_v26 = vadd.f32 %v2310_v48, %v1477_v25 }
  0xc7   : > { %v1549_v32 = vmax.f32 %v1515_v26, 0.0 }
  0xc8   : > { %v1147_v34 = vpop.f32.mrf.mxu2  ;;  %v552_v38 = vpop.f32.mrf.mxu0 }
  0xc9   : > { %v1397_v35 = vpop.f32.mrf.mxu3  ;;  %v1583_v36 = vpack.c.bf16 %v1549_v32, %v1549_v32  ;;  %v1228_v37 = vadd.f32 %v1147_v34, %v709_v33  ;;  %v711_v39 = vpop.f32.mrf.mxu1  ;;  %v1028_v34 = vor.u32 %v1026_v28, %v1024_v1 }
  0xca   : > { %v712_v46 = vadd.f32 %v711_v39, %v552_v38 }
  0xcb   : > { %1618 = vst.msk [vmem:[%s2320_s11 + $0x8] sm:$0xf] %vm1615_vm2, %v1583_v36  ;;  %v1478_v44 = vadd.f32 %v1397_v35, %v1228_v37  ;;  %591 = vmatmul.bf16.gmra.mxu0 %v419_v40  ;;  %v1032_v35 = vrot.slane %v1030_v29, 1  ;;  %v1306_v36 = vrot.slane %v2374_v19, 1 }
  0xcc   : > { %750 = vmatmul.bf16.gmra.mxu1 %v2302_v43  ;;  %v424_v43 = vshll.u32 %v2350_v47, 16 }
  0xcd   : > { %v1516_v45 = vadd.f32 %v2310_v48, %v1478_v44  ;;  %1189 = vmatmul.bf16.gmra.mxu2 %v1017_v41  ;;  %v1033_v49 = vsel %vm327_vm0, %v1028_v34, %v1032_v35 }
  0xce   : > { %1439 = vmatmul.bf16.gmra.mxu3 %v1303_v42  ;;  %v426_v63 = vrot.slane %v424_v43, 1 }
  0xcf   : > { %v1550_v50 = vmax.f32 %v1516_v45, 0.0 }
  0xd0   : > { %v1150_v51 = vpop.f32.mrf.mxu2  ;;  %v554_v55 = vpop.f32.mrf.mxu0  ;;  %v427_v11 = vsel %vm327_vm0, %v422_v62, %v426_v63  ;;  %v430_v32 = vor.u32 %v428_v27, %v426_v63  ;;  %v436_v62 = vshrl.u32 %v2371_v18, 16  ;;  %v1034_v63 = vshrl.u32 %v2374_v19, 16 }
  0xd1   : > { %v1400_v52 = vpop.f32.mrf.mxu3  ;;  %v1584_v53 = vpack.c.bf16 %v1550_v50, %v1550_v50  ;;  %v1229_v54 = vadd.f32 %v1150_v51, %v712_v46  ;;  %v713_v56 = vpop.f32.mrf.mxu1  ;;  %v1307_v50 = vsel %vm1280_vm1, %v1304_v2, %v1306_v36 }
  0xd2   : > { %v714_v4 = vadd.f32 %v713_v56, %v554_v55  ;;  %v2395_v55 = vld [vmem:[%s2197_s24 + $0x78] sm:$0xff] }
  0xd3   : > { %1619 = vst.msk [vmem:[%s2320_s11 + $0xc] sm:$0xf] %vm1615_vm2, %v1584_v53  ;;  %v1479_v60 = vadd.f32 %v1400_v52, %v1229_v54  ;;  %v2392_v54 = vld [vmem:[%s2197_s24 + $0x70] sm:$0xff]  ;;  %v1038_v0 = vshll.u32 %v2395_v55, 16 }
  0xd5   : > { %v1517_v61 = vadd.f32 %v2310_v48, %v1479_v60 }
  0xd7   : > { %v1551_v3 = vmax.f32 %v1517_v61, 0.0 }
  0xd8   : > { %v1152_v5 = vpop.f32.mrf.mxu2  ;;  %v557_v9 = vpop.f32.mrf.mxu0 }
  0xd9   : > { %v1402_v6 = vpop.f32.mrf.mxu3  ;;  %v1585_v7 = vpack.c.bf16 %v1551_v3, %v1551_v3  ;;  %v1230_v8 = vadd.f32 %v1152_v5, %v714_v4  ;;  %v716_v10 = vpop.f32.mrf.mxu1  ;;  %v1036_v5 = vor.u32 %v1034_v63, %v1032_v35 }
  0xda   : > { %v717_v17 = vadd.f32 %v716_v10, %v557_v9 }
  0xdb   : > { %1620 = vst.msk [vmem:[%s2320_s11 + $0x10] sm:$0xf] %vm1615_vm2, %v1585_v7  ;;  %v1480_v15 = vadd.f32 %v1402_v6, %v1230_v8  ;;  %596 = vmatmul.bf16.gmra.mxu0 %v427_v11  ;;  %v1040_v6 = vrot.slane %v1038_v0, 1  ;;  %v1308_v7 = vrot.slane %v2395_v55, 1 }
  0xdc   : > { %755 = vmatmul.bf16.gmra.mxu1 %v2329_v12  ;;  %v432_v12 = vshll.u32 %v2371_v18, 16 }
  0xdd   : > { %v1518_v16 = vadd.f32 %v2310_v48, %v1480_v15  ;;  %1194 = vmatmul.bf16.gmra.mxu2 %v1025_v13  ;;  %v1041_v19 = vsel %vm327_vm0, %v1036_v5, %v1040_v6 }
  0xde   : > { %1444 = vmatmul.bf16.gmra.mxu3 %v1305_v14  ;;  %v434_v33 = vrot.slane %v432_v12, 1 }
  0xdf   : > { %v1552_v20 = vmax.f32 %v1518_v16, 0.0 }
  0xe0   : > { %v1155_v21 = vpop.f32.mrf.mxu2  ;;  %v559_v25 = vpop.f32.mrf.mxu0  ;;  %v435_v46 = vsel %vm327_vm0, %v430_v32, %v434_v33  ;;  %v438_v3 = vor.u32 %v436_v62, %v434_v33  ;;  %v444_v32 = vshrl.u32 %v2392_v54, 16  ;;  %v1042_v33 = vshrl.u32 %v2395_v55, 16 }
  0xe1   : > { %v1405_v22 = vpop.f32.mrf.mxu3  ;;  %v1586_v23 = vpack.c.bf16 %v1552_v20, %v1552_v20  ;;  %v1231_v24 = vadd.f32 %v1155_v21, %v717_v17  ;;  %v718_v26 = vpop.f32.mrf.mxu1  ;;  %v1309_v20 = vsel %vm1280_vm1, %v1306_v36, %v1308_v7 }
  0xe2   : > { %v719_v38 = vadd.f32 %v718_v26, %v559_v25  ;;  %v2416_v25 = vld [vmem:[%s2197_s24 + $0x80] sm:$0xff] }
  0xe3   : > { %1621 = vst.msk [vmem:[%s2320_s11 + $0x14] sm:$0xf] %vm1615_vm2, %v1586_v23  ;;  %v1481_v30 = vadd.f32 %v1405_v22, %v1231_v24  ;;  %v2413_v24 = vld [vmem:[%s2197_s24 + $0x78] sm:$0xff]  ;;  %v1046_v34 = vshll.u32 %v2416_v25, 16 }
  0xe5   : > { %v1519_v31 = vadd.f32 %v2310_v48, %v1481_v30 }
  0xe7   : > { %v1553_v37 = vmax.f32 %v1519_v31, 0.0 }
  0xe8   : > { %v1157_v39 = vpop.f32.mrf.mxu2  ;;  %v562_v44 = vpop.f32.mrf.mxu0 }
  0xe9   : > { %v1407_v40 = vpop.f32.mrf.mxu3  ;;  %v1587_v41 = vpack.c.bf16 %v1553_v37, %v1553_v37  ;;  %v1232_v42 = vadd.f32 %v1157_v39, %v719_v38  ;;  %v721_v45 = vpop.f32.mrf.mxu1  ;;  %v1044_v39 = vor.u32 %v1042_v33, %v1040_v6 }
  0xea   : > { %v722_v53 = vadd.f32 %v721_v45, %v562_v44 }
  0xeb   : > { %1622 = vst.msk [vmem:[%s2320_s11 + $0x18] sm:$0xf] %vm1615_vm2, %v1587_v41  ;;  %v1482_v51 = vadd.f32 %v1407_v40, %v1232_v42  ;;  %601 = vmatmul.bf16.gmra.mxu0 %v435_v46  ;;  %v1048_v40 = vrot.slane %v1046_v34, 1  ;;  %v1310_v41 = vrot.slane %v2416_v25, 1 }
  0xec   : > { %760 = vmatmul.bf16.gmra.mxu1 %v2350_v47  ;;  %v440_v47 = vshll.u32 %v2392_v54, 16 }
  0xed   : > { %v1520_v52 = vadd.f32 %v2310_v48, %v1482_v51  ;;  %1199 = vmatmul.bf16.gmra.mxu2 %v1033_v49  ;;  %v1049_v55 = vsel %vm327_vm0, %v1044_v39, %v1048_v40 }
  0xee   : > { %1449 = vmatmul.bf16.gmra.mxu3 %v1307_v50  ;;  %v442_v4 = vrot.slane %v440_v47, 1 }
  0xef   : > { %v1554_v56 = vmax.f32 %v1520_v52, 0.0 }
  0xf0   : > { %v1160_v57 = vpop.f32.mrf.mxu2  ;;  %v564_v60 = vpop.f32.mrf.mxu0  ;;  %v443_v17 = vsel %vm327_vm0, %v438_v3, %v442_v4  ;;  %v446_v37 = vor.u32 %v444_v32, %v442_v4  ;;  %v1050_v4 = vshrl.u32 %v2416_v25, 16 }
  0xf1   : > { %v1410_v43 = vpop.f32.mrf.mxu3  ;;  %v1588_v58 = vpack.c.bf16 %v1554_v56, %v1554_v56  ;;  %v1233_v59 = vadd.f32 %v1160_v57, %v722_v53  ;;  %v723_v61 = vpop.f32.mrf.mxu1  ;;  %v1311_v56 = vsel %vm1280_vm1, %v1308_v7, %v1310_v41 }
  0xf2   : > { %v724_v9 = vadd.f32 %v723_v61, %v564_v60  ;;  %v2437_v60 = vld [vmem:[%s2197_s24 + $0x88] sm:$0xff] }
  0xf3   : > { %1623 = vst.msk [vmem:[%s2320_s11 + $0x1c] sm:$0xf] %vm1615_vm2, %v1588_v58  ;;  %v1483_v1 = vadd.f32 %v1410_v43, %v1233_v59  ;;  %v2434_v59 = vld [vmem:[%s2197_s24 + $0x80] sm:$0xff]  ;;  %v1054_v5 = vshll.u32 %v2437_v60, 16 }
  0xf4   : > { %v456_v3 = vshll.u32 %v2434_v59, 16 }
  0xf5   : > { %v1521_v2 = vadd.f32 %v2310_v48, %v1483_v1 }
  0xf7   : > { %v1555_v8 = vmax.f32 %v1521_v2, 0.0 }
  0xf8   : > { %v1162_v10 = vpop.f32.mrf.mxu2  ;;  %v567_v15 = vpop.f32.mrf.mxu0 }
  0xf9   : > { %v1412_v11 = vpop.f32.mrf.mxu3  ;;  %v1589_v13 = vpack.c.bf16 %v1555_v8, %v1555_v8  ;;  %v1234_v14 = vadd.f32 %v1162_v10, %v724_v9  ;;  %v726_v16 = vpop.f32.mrf.mxu1  ;;  %v458_v9 = vrot.slane %v456_v3, 1  ;;  %v1052_v10 = vor.u32 %v1050_v4, %v1048_v40 }
  0xfa   : > { %v727_v23 = vadd.f32 %v726_v16, %v567_v15 }
  0xfb   : > { %1624 = vst.msk [vmem:[%s2320_s11 + $0x20] sm:$0xf] %vm1615_vm2, %v1589_v13  ;;  %v1484_v21 = vadd.f32 %v1412_v11, %v1234_v14  ;;  %606 = vmatmul.bf16.gmra.mxu0 %v443_v17  ;;  %v1056_v11 = vrot.slane %v1054_v5, 1  ;;  %v1312_v13 = vrot.slane %v2437_v60, 1  ;;  %v221_v14 = vld [vmem:[%s2197_s24 + $0x88] sm:$0x1] }
  0xfc   : > { %765 = vmatmul.bf16.gmra.mxu1 %v2371_v18  ;;  %v448_v18 = vshll.u32 %v2413_v24, 16  ;;  %v820_v17 = vld [vmem:[%s2197_s24 + $0x90] sm:$0x1] }
  0xfd   : > { %v1522_v22 = vadd.f32 %v2310_v48, %v1484_v21  ;;  %1204 = vmatmul.bf16.gmra.mxu2 %v1041_v19 }
  0xfe   : > { %1454 = vmatmul.bf16.gmra.mxu3 %v1309_v20  ;;  %v450_v38 = vrot.slane %v448_v18, 1 }
  0xff   : > { %v1556_v26 = vmax.f32 %v1522_v22, 0.0 }
 0x100   : > { %v1165_v27 = vpop.f32.mrf.mxu2  ;;  %v569_v30 = vpop.f32.mrf.mxu0  ;;  %v451_v53 = vsel %vm327_vm0, %v446_v37, %v450_v38 }
 0x101   : > { %v1415_v12 = vpop.f32.mrf.mxu3  ;;  %v1590_v28 = vpack.c.bf16 %v1556_v26, %v1556_v26  ;;  %v1235_v29 = vadd.f32 %v1165_v27, %v727_v23  ;;  %v728_v31 = vpop.f32.mrf.mxu1  ;;  %v308_v27 = vunpack.c.l.b16 %v221_v14 }
 0x102   : > { %v729_v44 = vadd.f32 %v728_v31, %v569_v30 }
 0x103   : > { %1625 = vst.msk [vmem:[%s2320_s11 + $0x24] sm:$0xf] %vm1615_vm2, %v1590_v28  ;;  %v1485_v35 = vadd.f32 %v1415_v12, %v1235_v29  ;;  %v1057_v12 = vsel %vm327_vm0, %v1052_v10, %v1056_v11  ;;  %v1313_v28 = vsel %vm1280_vm1, %v1310_v41, %v1312_v13  ;;  %v907_v29 = vunpack.c.l.b16 %v820_v17 }
 0x104   : > { %v326_v18 = vpack.c.b16 %v308_v27, %v308_v27  ;;  %v460_v41 = vshrl.u32 %v2434_v59, 16 }
 0x105   : > { %v1523_v36 = vadd.f32 %v2310_v48, %v1485_v35  ;;  %v925_v33 = vpack.c.b16 %v907_v29, %v907_v29 }
 0x107   : > { %v1557_v42 = vmax.f32 %v1523_v36, 0.0 }
 0x108   : > { %v1167_v45 = vpop.f32.mrf.mxu2  ;;  %v572_v51 = vpop.f32.mrf.mxu0 }
 0x109   : > { %v1417_v46 = vpop.f32.mrf.mxu3  ;;  %v1591_v49 = vpack.c.bf16 %v1557_v42, %v1557_v42  ;;  %v1236_v50 = vadd.f32 %v1167_v45, %v729_v44  ;;  %v731_v52 = vpop.f32.mrf.mxu1  ;;  %v464_v42 = vshll.u32 %v326_v18, 16  ;;  %v1062_v44 = vshll.u32 %v925_v33, 16 }
 0x10a   : > { %v732_v58 = vadd.f32 %v731_v52, %v572_v51 }
 0x10b   : > { %1626 = vst.msk [vmem:[%s2320_s11 + $0x28] sm:$0xf] %vm1615_vm2, %v1591_v49  ;;  %v1486_v57 = vadd.f32 %v1417_v46, %v1236_v50  ;;  %611 = vmatmul.bf16.gmra.mxu0 %v451_v53  ;;  %v462_v49 = vor.u32 %v460_v41, %v458_v9  ;;  %v466_v50 = vrot.slane %v464_v42, 1  ;;  %v1064_v52 = vrot.slane %v1062_v44, 1 }
 0x10c   : > { %770 = vmatmul.bf16.gmra.mxu1 %v2392_v54  ;;  %v452_v54 = vshrl.u32 %v2413_v24, 16  ;;  %v1314_v53 = vrot.slane %v925_v33, 1 }
 0x10d   : > { %v1524_v43 = vadd.f32 %v2310_v48, %v1486_v57  ;;  %1209 = vmatmul.bf16.gmra.mxu2 %v1049_v55 }
 0x10e   : > { %1459 = vmatmul.bf16.gmra.mxu3 %v1311_v56  ;;  %v454_v8 = vor.u32 %v452_v54, %v450_v38 }
 0x10f   : > { %v1558_v61 = vmax.f32 %v1524_v43, 0.0 }
 0x110   : > { %v1170_v62 = vpop.f32.mrf.mxu2  ;;  %v574_v1 = vpop.f32.mrf.mxu0  ;;  %v459_v26 = vsel %vm327_vm0, %v454_v8, %v458_v9 }
 0x111   : > { %v1420_v47 = vpop.f32.mrf.mxu3  ;;  %v1592_v63 = vpack.c.bf16 %v1558_v61, %v1558_v61  ;;  %v1237_v0 = vadd.f32 %v1170_v62, %v732_v58  ;;  %v733_v2 = vpop.f32.mrf.mxu1 }
 0x112   : > { %v734_v16 = vadd.f32 %v733_v2, %v574_v1 }
 0x113   : > { %1627 = vst.msk [vmem:[%s2320_s11 + $0x2c] sm:$0xf] %vm1615_vm2, %v1592_v63  ;;  %v1487_v6 = vadd.f32 %v1420_v47, %v1237_v0  ;;  %v467_v47 = vsel %vm327_vm0, %v462_v49, %v466_v50  ;;  %v1315_v0 = vsel %vm1280_vm1, %v1312_v13, %v1314_v53 }
 0x115   : > { %v1525_v7 = vadd.f32 %v2310_v48, %v1487_v6 }
 0x117   : > { %v1559_v15 = vmax.f32 %v1525_v7, 0.0 }
 0x118   : > { %v1172_v19 = vpop.f32.mrf.mxu2  ;;  %v577_v23 = vpop.f32.mrf.mxu0 }
 0x119   : > { %v1422_v20 = vpop.f32.mrf.mxu3  ;;  %v1593_v21 = vpack.c.bf16 %v1559_v15, %v1559_v15  ;;  %v1238_v22 = vadd.f32 %v1172_v19, %v734_v16  ;;  %v736_v25 = vpop.f32.mrf.mxu1 }
 0x11a   : > { %v737_v32 = vadd.f32 %v736_v25, %v577_v23 }
 0x11b   : > { %1628 = vst.msk [vmem:[%s2320_s11 + $0x30] sm:$0xf] %vm1615_vm2, %v1593_v21  ;;  %v1488_v30 = vadd.f32 %v1422_v20, %v1238_v22  ;;  %616 = vmatmul.bf16.gmra.mxu0 %v459_v26 }
 0x11c   : > { %775 = vmatmul.bf16.gmra.mxu1 %v2413_v24  ;;  %v1058_v24 = vshrl.u32 %v2437_v60, 16 }
 0x11d   : > { %v1526_v31 = vadd.f32 %v2310_v48, %v1488_v30  ;;  %1214 = vmatmul.bf16.gmra.mxu2 %v1057_v12 }
 0x11e   : > { %1464 = vmatmul.bf16.gmra.mxu3 %v1313_v28  ;;  %v1060_v51 = vor.u32 %v1058_v24, %v1056_v11 }
 0x11f   : > { %v1560_v34 = vmax.f32 %v1526_v31, 0.0 }
 0x120   : > { %v1175_v35 = vpop.f32.mrf.mxu2  ;;  %v579_v39 = vpop.f32.mrf.mxu0  ;;  %v1065_v63 = vsel %vm327_vm0, %v1060_v51, %v1064_v52 }
 0x121   : > { %v1425_v36 = vpop.f32.mrf.mxu3  ;;  %v1594_v37 = vpack.c.bf16 %v1560_v34, %v1560_v34  ;;  %v1239_v38 = vadd.f32 %v1175_v35, %v737_v32  ;;  %v738_v40 = vpop.f32.mrf.mxu1 }
 0x122   : > { %v739_v56 = vadd.f32 %v738_v40, %v579_v39 }
 0x123   : > { %1629 = vst.msk [vmem:[%s2320_s11 + $0x34] sm:$0xf] %vm1615_vm2, %v1594_v37  ;;  %v1489_v45 = vadd.f32 %v1425_v36, %v1239_v38 }
 0x125   : > { %v1527_v46 = vadd.f32 %v2310_v48, %v1489_v45 }
 0x127   : > { %v1561_v55 = vmax.f32 %v1527_v46, 0.0 }
 0x128   : > { %v1177_v57 = vpop.f32.mrf.mxu2  ;;  %v582_v62 = vpop.f32.mrf.mxu0 }
 0x129   : > { %v1427_v43 = vpop.f32.mrf.mxu3  ;;  %v1595_v58 = vpack.c.bf16 %v1561_v55, %v1561_v55  ;;  %v1240_v61 = vadd.f32 %v1177_v57, %v739_v56  ;;  %v741_v60 = vpop.f32.mrf.mxu1 }
 0x12a   : > { %v742_v54 = vadd.f32 %v741_v60, %v582_v62 }
 0x12b   : > { %1630 = vst.msk [vmem:[%s2320_s11 + $0x38] sm:$0xf] %vm1615_vm2, %v1595_v58  ;;  %v1490_v1 = vadd.f32 %v1427_v43, %v1240_v61  ;;  %621 = vmatmul.bf16.gmra.mxu0 %v467_v47 }
 0x12c   : > { %780 = vmatmul.bf16.gmra.mxu1 %v2434_v59 }
 0x12d   : > { %v1528_v2 = vadd.f32 %v2310_v48, %v1490_v1  ;;  %1219 = vmatmul.bf16.gmra.mxu2 %v1065_v63 }
 0x12e   : > { %1469 = vmatmul.bf16.gmra.mxu3 %v1315_v0 }
 0x12f   : > { %v1562_v3 = vmax.f32 %v1528_v2, 0.0 }
 0x130   : > { %v1180_v4 = vpop.f32.mrf.mxu2  ;;  %v584_v8 = vpop.f32.mrf.mxu0 }
 0x131   : > { %v1430_v5 = vpop.f32.mrf.mxu3  ;;  %v1596_v6 = vpack.c.bf16 %v1562_v3, %v1562_v3  ;;  %v1241_v7 = vadd.f32 %v1180_v4, %v742_v54  ;;  %v743_v9 = vpop.f32.mrf.mxu1 }
 0x132   : > { %v744_v59 = vadd.f32 %v743_v9, %v584_v8 }
 0x133   : > { %1631 = vst.msk [vmem:[%s2320_s11 + $0x3c] sm:$0xf] %vm1615_vm2, %v1596_v6  ;;  %v1491_v10 = vadd.f32 %v1430_v5, %v1241_v7 }
 0x135   : > { %v1529_v11 = vadd.f32 %v2310_v48, %v1491_v10 }
 0x137   : > { %v1563_v13 = vmax.f32 %v1529_v11, 0.0 }
 0x138   : > { %v1182_v14 = vpop.f32.mrf.mxu2  ;;  %v587_v19 = vpop.f32.mrf.mxu0 }
 0x139   : > { %v1432_v15 = vpop.f32.mrf.mxu3  ;;  %v1597_v16 = vpack.c.bf16 %v1563_v13, %v1563_v13  ;;  %v1242_v17 = vadd.f32 %v1182_v14, %v744_v59  ;;  %v746_v20 = vpop.f32.mrf.mxu1 }
 0x13a   : > { %v747_v23 = vadd.f32 %v746_v20, %v587_v19 }
 0x13b   : > { %1632 = vst.msk [vmem:[%s2320_s11 + $0x40] sm:$0xf] %vm1615_vm2, %v1597_v16  ;;  %v1492_v21 = vadd.f32 %v1432_v15, %v1242_v17 }
 0x13d   : > { %v1530_v22 = vadd.f32 %v2310_v48, %v1492_v21 }
 0x13f   : > { %v1564_v25 = vmax.f32 %v1530_v22, 0.0 }
 0x140   : > { %v1185_v26 = vpop.f32.mrf.mxu2  ;;  %v589_v29 = vpop.f32.mrf.mxu0 }
 0x141   : > { %v1435_v27 = vpop.f32.mrf.mxu3  ;;  %v1598_v12 = vpack.c.bf16 %v1564_v25, %v1564_v25  ;;  %v1243_v28 = vadd.f32 %v1185_v26, %v747_v23  ;;  %v748_v30 = vpop.f32.mrf.mxu1 }
 0x142   : > { %v749_v33 = vadd.f32 %v748_v30, %v589_v29 }
 0x143   : > { %1633 = vst.msk [vmem:[%s2320_s11 + $0x44] sm:$0xf] %vm1615_vm2, %v1598_v12  ;;  %v1493_v31 = vadd.f32 %v1435_v27, %v1243_v28 }
 0x145   : > { %v1531_v32 = vadd.f32 %v2310_v48, %v1493_v31 }
 0x147   : > { %v1565_v18 = vmax.f32 %v1531_v32, 0.0 }
 0x148   : > { %v1187_v34 = vpop.f32.mrf.mxu2  ;;  %v592_v38 = vpop.f32.mrf.mxu0 }
 0x149   : > { %v1437_v35 = vpop.f32.mrf.mxu3  ;;  %v1599_v36 = vpack.c.bf16 %v1565_v18, %v1565_v18  ;;  %v1244_v37 = vadd.f32 %v1187_v34, %v749_v33  ;;  %v751_v39 = vpop.f32.mrf.mxu1 }
 0x14a   : > { %v752_v42 = vadd.f32 %v751_v39, %v592_v38 }
 0x14b   : > { %1634 = vst.msk [vmem:[%s2320_s11 + $0x48] sm:$0xf] %vm1615_vm2, %v1599_v36  ;;  %v1494_v40 = vadd.f32 %v1437_v35, %v1244_v37 }
 0x14d   : > { %v1532_v41 = vadd.f32 %v2310_v48, %v1494_v40 }
 0x14f   : > { %v1566_v24 = vmax.f32 %v1532_v41, 0.0 }
 0x150   : > { %v1190_v44 = vpop.f32.mrf.mxu2  ;;  %v594_v50 = vpop.f32.mrf.mxu0 }
 0x151   : > { %v1440_v45 = vpop.f32.mrf.mxu3  ;;  %v1600_v46 = vpack.c.bf16 %v1566_v24, %v1566_v24  ;;  %v1245_v49 = vadd.f32 %v1190_v44, %v752_v42  ;;  %v753_v51 = vpop.f32.mrf.mxu1 }
 0x152   : > { %v754_v56 = vadd.f32 %v753_v51, %v594_v50 }
 0x153   : > { %1635 = vst.msk [vmem:[%s2320_s11 + $0x4c] sm:$0xf] %vm1615_vm2, %v1600_v46  ;;  %v1495_v52 = vadd.f32 %v1440_v45, %v1245_v49 }
 0x155   : > { %v1533_v53 = vadd.f32 %v2310_v48, %v1495_v52 }
 0x157   : > { %v1567_v55 = vmax.f32 %v1533_v53, 0.0 }
 0x158   : > { %v1192_v57 = vpop.f32.mrf.mxu2  ;;  %v597_v62 = vpop.f32.mrf.mxu0 }
 0x159   : > { %v1442_v43 = vpop.f32.mrf.mxu3  ;;  %v1601_v58 = vpack.c.bf16 %v1567_v55, %v1567_v55  ;;  %v1246_v61 = vadd.f32 %v1192_v57, %v754_v56  ;;  %v756_v60 = vpop.f32.mrf.mxu1 }
 0x15a   : > { %v757_v0 = vadd.f32 %v756_v60, %v597_v62 }
 0x15b   : > { %1636 = vst.msk [vmem:[%s2320_s11 + $0x50] sm:$0xf] %vm1615_vm2, %v1601_v58  ;;  %v1496_v47 = vadd.f32 %v1442_v43, %v1246_v61 }
 0x15d   : > { %v1534_v63 = vadd.f32 %v2310_v48, %v1496_v47 }
 0x15f   : > { %v1568_v1 = vmax.f32 %v1534_v63, 0.0 }
 0x160   : > { %v1195_v2 = vpop.f32.mrf.mxu2  ;;  %v599_v5 = vpop.f32.mrf.mxu0 }
 0x161   : > { %v1445_v54 = vpop.f32.mrf.mxu3  ;;  %v1602_v3 = vpack.c.bf16 %v1568_v1, %v1568_v1  ;;  %v1247_v4 = vadd.f32 %v1195_v2, %v757_v0  ;;  %v758_v6 = vpop.f32.mrf.mxu1 }
 0x162   : > { %v759_v10 = vadd.f32 %v758_v6, %v599_v5 }
 0x163   : > { %1637 = vst.msk [vmem:[%s2320_s11 + $0x54] sm:$0xf] %vm1615_vm2, %v1602_v3  ;;  %v1497_v7 = vadd.f32 %v1445_v54, %v1247_v4 }
 0x165   : > { %v1535_v8 = vadd.f32 %v2310_v48, %v1497_v7 }
 0x167   : > { %v1569_v9 = vmax.f32 %v1535_v8, 0.0 }
 0x168   : > { %v1197_v11 = vpop.f32.mrf.mxu2  ;;  %v602_v15 = vpop.f32.mrf.mxu0 }
 0x169   : > { %v1447_v13 = vpop.f32.mrf.mxu3  ;;  %v1603_v59 = vpack.c.bf16 %v1569_v9, %v1569_v9  ;;  %v1248_v14 = vadd.f32 %v1197_v11, %v759_v10  ;;  %v761_v16 = vpop.f32.mrf.mxu1 }
 0x16a   : > { %v762_v20 = vadd.f32 %v761_v16, %v602_v15 }
 0x16b   : > { %1638 = vst.msk [vmem:[%s2320_s11 + $0x58] sm:$0xf] %vm1615_vm2, %v1603_v59  ;;  %v1498_v17 = vadd.f32 %v1447_v13, %v1248_v14 }
 0x16d   : > { %v1536_v19 = vadd.f32 %v2310_v48, %v1498_v17 }
 0x16f   : > { %v1570_v21 = vmax.f32 %v1536_v19, 0.0 }
 0x170   : > { %v1200_v22 = vpop.f32.mrf.mxu2  ;;  %v604_v27 = vpop.f32.mrf.mxu0 }
 0x171   : > { %v1450_v23 = vpop.f32.mrf.mxu3  ;;  %v1604_v25 = vpack.c.bf16 %v1570_v21, %v1570_v21  ;;  %v1249_v26 = vadd.f32 %v1200_v22, %v762_v20  ;;  %v763_v12 = vpop.f32.mrf.mxu1 }
 0x172   : > { %v764_v31 = vadd.f32 %v763_v12, %v604_v27 }
 0x173   : > { %1639 = vst.msk [vmem:[%s2320_s11 + $0x5c] sm:$0xf] %vm1615_vm2, %v1604_v25  ;;  %v1499_v28 = vadd.f32 %v1450_v23, %v1249_v26 }
 0x175   : > { %v1537_v29 = vadd.f32 %v2310_v48, %v1499_v28 }
 0x177   : > { %v1571_v30 = vmax.f32 %v1537_v29, 0.0 }
 0x178   : > { %v1202_v32 = vpop.f32.mrf.mxu2  ;;  %v607_v35 = vpop.f32.mrf.mxu0 }
 0x179   : > { %v1452_v18 = vpop.f32.mrf.mxu3  ;;  %v1605_v33 = vpack.c.bf16 %v1571_v30, %v1571_v30  ;;  %v1250_v34 = vadd.f32 %v1202_v32, %v764_v31  ;;  %v766_v36 = vpop.f32.mrf.mxu1 }
 0x17a   : > { %v767_v39 = vadd.f32 %v766_v36, %v607_v35 }
 0x17b   : > { %1640 = vst.msk [vmem:[%s2320_s11 + $0x60] sm:$0xf] %vm1615_vm2, %v1605_v33  ;;  %v1500_v37 = vadd.f32 %v1452_v18, %v1250_v34 }
 0x17d   : > { %v1538_v38 = vadd.f32 %v2310_v48, %v1500_v37 }
 0x17f   : > { %v1572_v40 = vmax.f32 %v1538_v38, 0.0 }
 0x180   : > { %v1205_v41 = vpop.f32.mrf.mxu2  ;;  %v609_v45 = vpop.f32.mrf.mxu0 }
 0x181   : > { %v1455_v42 = vpop.f32.mrf.mxu3  ;;  %v1606_v24 = vpack.c.bf16 %v1572_v40, %v1572_v40  ;;  %v1251_v44 = vadd.f32 %v1205_v41, %v767_v39  ;;  %v768_v46 = vpop.f32.mrf.mxu1 }
 0x182   : > { %v769_v52 = vadd.f32 %v768_v46, %v609_v45 }
 0x183   : > { %1641 = vst.msk [vmem:[%s2320_s11 + $0x64] sm:$0xf] %vm1615_vm2, %v1606_v24  ;;  %v1501_v49 = vadd.f32 %v1455_v42, %v1251_v44 }
 0x185   : > { %v1539_v50 = vadd.f32 %v2310_v48, %v1501_v49 }
 0x187   : > { %v1573_v51 = vmax.f32 %v1539_v50, 0.0 }
 0x188   : > { %v1207_v53 = vpop.f32.mrf.mxu2  ;;  %v612_v43 = vpop.f32.mrf.mxu0 }
 0x189   : > { %v1457_v55 = vpop.f32.mrf.mxu3  ;;  %v1607_v56 = vpack.c.bf16 %v1573_v51, %v1573_v51  ;;  %v1252_v57 = vadd.f32 %v1207_v53, %v769_v52  ;;  %v771_v58 = vpop.f32.mrf.mxu1 }
 0x18a   : > { %v772_v60 = vadd.f32 %v771_v58, %v612_v43 }
 0x18b   : > { %1642 = vst.msk [vmem:[%s2320_s11 + $0x68] sm:$0xf] %vm1615_vm2, %v1607_v56  ;;  %v1502_v61 = vadd.f32 %v1457_v55, %v1252_v57  ;;  %v2106_v56 = vld [vmem:[%s2531_s2] ss:$0 sm:$0xff] }
 0x18d   : > { %v1540_v62 = vadd.f32 %v2310_v48, %v1502_v61 }
 0x18f   : > { %v1574_v47 = vmax.f32 %v1540_v62, 0.0 }
 0x190   : > { %v1210_v63 = vpop.f32.mrf.mxu2  ;;  %v614_v54 = vpop.f32.mrf.mxu0 }
 0x191   : > { %v1460_v0 = vpop.f32.mrf.mxu3  ;;  %v1608_v1 = vpack.c.bf16 %v1574_v47, %v1574_v47  ;;  %v1253_v2 = vadd.f32 %v1210_v63, %v772_v60  ;;  %v773_v3 = vpop.f32.mrf.mxu1 }
 0x192   : > { %v774_v7 = vadd.f32 %v773_v3, %v614_v54 }
 0x193   : > { %1643 = vst.msk [vmem:[%s2320_s11 + $0x6c] sm:$0xf] %vm1615_vm2, %v1608_v1  ;;  %v1503_v4 = vadd.f32 %v1460_v0, %v1253_v2 }
 0x195   : > { %v1541_v5 = vadd.f32 %v2310_v48, %v1503_v4 }
 0x197   : > { %v1575_v6 = vmax.f32 %v1541_v5, 0.0 }
 0x198   : > { %v1212_v8 = vpop.f32.mrf.mxu2  ;;  %v617_v13 = vpop.f32.mrf.mxu0 }
 0x199   : > { %v1462_v9 = vpop.f32.mrf.mxu3  ;;  %v1609_v10 = vpack.c.bf16 %v1575_v6, %v1575_v6  ;;  %v1254_v11 = vadd.f32 %v1212_v8, %v774_v7  ;;  %v776_v59 = vpop.f32.mrf.mxu1 }
 0x19a   : > { %v777_v16 = vadd.f32 %v776_v59, %v617_v13 }
 0x19b   : > { %1644 = vst.msk [vmem:[%s2320_s11 + $0x70] sm:$0xf] %vm1615_vm2, %v1609_v10  ;;  %v1504_v14 = vadd.f32 %v1462_v9, %v1254_v11 }
 0x19d   : > { %v1542_v15 = vadd.f32 %v2310_v48, %v1504_v14 }
 0x19f   : > { %v1576_v17 = vmax.f32 %v1542_v15, 0.0 }
 0x1a0   : > { %v1215_v19 = vpop.f32.mrf.mxu2  ;;  %v619_v23 = vpop.f32.mrf.mxu0 }
 0x1a1   : > { %v1465_v20 = vpop.f32.mrf.mxu3  ;;  %v1610_v21 = vpack.c.bf16 %v1576_v17, %v1576_v17  ;;  %v1255_v22 = vadd.f32 %v1215_v19, %v777_v16  ;;  %v778_v25 = vpop.f32.mrf.mxu1 }
 0x1a2   : > { %v779_v28 = vadd.f32 %v778_v25, %v619_v23 }
 0x1a3   : > { %1645 = vst.msk [vmem:[%s2320_s11 + $0x74] sm:$0xf] %vm1615_vm2, %v1610_v21  ;;  %v1505_v26 = vadd.f32 %v1465_v20, %v1255_v22 }
 0x1a5   : > { %v1543_v27 = vadd.f32 %v2310_v48, %v1505_v26 }
 0x1a7   : > { %v1577_v12 = vmax.f32 %v1543_v27, 0.0 }
 0x1a8   : > { %v1217_v29 = vpop.f32.mrf.mxu2  ;;  %v622_v18 = vpop.f32.mrf.mxu0 }
 0x1a9   : > { %v1467_v30 = vpop.f32.mrf.mxu3  ;;  %v1611_v31 = vpack.c.bf16 %v1577_v12, %v1577_v12  ;;  %v1256_v32 = vadd.f32 %v1217_v29, %v779_v28  ;;  %v781_v33 = vpop.f32.mrf.mxu1 }
 0x1aa   : > { %v782_v36 = vadd.f32 %v781_v33, %v622_v18 }
 0x1ab   : > { %1646 = vst.msk [vmem:[%s2320_s11 + $0x78] sm:$0xf] %vm1615_vm2, %v1611_v31  ;;  %v1506_v34 = vadd.f32 %v1467_v30, %v1256_v32 }
 0x1ad   : > { %v1544_v35 = vadd.f32 %v2310_v48, %v1506_v34 }
 0x1af   : > { %v1578_v37 = vmax.f32 %v1544_v35, 0.0 }
 0x1b0   : > { %v1220_v38 = vpop.f32.mrf.mxu2  ;;  %v624_v24 = vpop.f32.mrf.mxu0 }
 0x1b1   : > { %v1470_v39 = vpop.f32.mrf.mxu3  ;;  %v1612_v40 = vpack.c.bf16 %v1578_v37, %v1578_v37  ;;  %v1257_v41 = vadd.f32 %v1220_v38, %v782_v36  ;;  %v783_v44 = vpop.f32.mrf.mxu1 }
 0x1b2   : > { %v784_v49 = vadd.f32 %v783_v44, %v624_v24 }
 0x1b3   : > { %1647 = vst.msk [vmem:[%s2320_s11 + $0x7c] sm:$0xf] %vm1615_vm2, %v1612_v40  ;;  %v1507_v42 = vadd.f32 %v1470_v39, %v1257_v41 }
 0x1b5   : > { %v1545_v45 = vadd.f32 %v2310_v48, %v1507_v42 }
 0x1b7   : > { %v1579_v46 = vmax.f32 %v1545_v45, 0.0 }
 0x1b8   : > { %v1222_v50 = vpop.f32.mrf.mxu2 }
 0x1b9   : > { %v1613_v51 = vpack.c.bf16 %v1579_v46, %v1579_v46  ;;  %v1258_v52 = vadd.f32 %v1222_v50, %v784_v49  ;;  %v1472_v53 = vpop.f32.mrf.mxu3 }
 0x1bb   : > { %1648 = vst.msk [vmem:[%s2320_s11 + $0x80] sm:$0xf] %vm1615_vm2, %v1613_v51  ;;  %v1508_v55 = vadd.f32 %v1472_v53, %v1258_v52 }
 0x1bd   : > { %v1546_v57 = vadd.f32 %v2106_v56, %v1508_v55 }
 0x1bf   : > { %v1580_v43 = vmax.f32 %v1546_v57, 0.0 }
 0x1c1   : > { %v1614_v58 = vpack.c.bf16 %v1580_v43, %v1580_v43 }
 0x1c3   : > { %1649 = vst.msk [vmem:[%s2320_s11 + $0x84] sm:$0xf] %vm1615_vm2, %v1614_v58 }
 0x1c4 PF: > { %s13_s12 = sadd.s32 1, %s2113_s12  }
 0x1c5   : > { %p10_p4 = scmp.ge.s32.totalorder %s13_s12, 6  }
 0x1c7   :  { %12 = sbr.rel (!%p10_p4) target bundleno = 1 (0x1), region = 65 }

// kernel: observation_encoder_forward.7
= control target key start
LH: loop header
LB: loop body
LE: loop exit
PB: predicated region body
PF: predicated region fallthrough
CT: control target
= control target key end

     0   :  { %s1954_s12 = smov 0   ;;  %s2318_s0 = inlined_call_operand.vmem [shape: bf16[4,82,256], index: 0, kind: input, shape index: {}]   ;;  %s2319_s1 = inlined_call_operand.vmem [shape: bf16[2,2,256,128], index: 1, kind: input, shape index: {}]   ;;  %s2320_s2 = inlined_call_operand.vmem [shape: f32[1,128], index: 2, kind: input, shape index: {}]   ;;  %s2321_s3 = inlined_call_operand.vmem [shape: bf16[4,72,128], index: 3, kind: output, shape index: {}]  }
   0x1 LB: > { %s1387_s13 = sadd.s32 4294967295, %s1932_s12   ;;  %p1391_p0 = scmp.ge.s32.totalorder %s1932_s12, 1  ;;  %s1932_s12 = sphi %s1954_s12, %s13_s12  }
   0x2   : > { %p137_p1 = scmp.lt.s32.totalorder %s1932_s12, 5 }
   0x4   : > { %p138_p2 = pnand %p1391_p0, %p137_p1 }
   0x5   : > { %p161_p3 = scmp.lt.s32.totalorder (!%p138_p2), %s1387_s13, 3 }
   0x6   : > { %141 = sbr.rel (%p138_p2) target bundleno = 333 (0x14d), region = 32 }
   0xb   : > { %v1843_v0 = vld [vmem:[%s2319_s1 + $0xb8] sm:$0xff]  ;;  %v1842_v4 = vld [vmem:[%s2319_s1 + $0xb0] sm:$0xff]  ;;  %s2323_s13 = smov (!%p161_p3, %s1387_s13), 3  ;;  %v1841_v8 = vld [vmem:[%s2319_s1 + $0xa8] sm:$0xff]  ;;  %vm286_vm0 = vsmask.f32 7424 }
   0xc   : > { %v1851_v1 = vld [vmem:[%s2319_s1 + $0xf8] sm:$0xff]  ;;  %471 = vmatpush.bf16.msra.mxu0 %v1843_v0  ;;  %v1850_v5 = vld [vmem:[%s2319_s1 + $0xf0] sm:$0xff]  ;;  %s1915_s30 = smul.u32 88, %s2323_s13  ;;  %v1849_v9 = vld [vmem:[%s2319_s1 + $0xe8] sm:$0xff]  ;;  %vm1092_vm1 = vcmask 1046528  }
   0xd   : > { %v1827_v2 = vld [vmem:[%s2319_s1 + $0x38] sm:$0xff]  ;;  %504 = vmatpush.bf16.msra.mxu1 %v1851_v1  ;;  %v1826_v6 = vld [vmem:[%s2319_s1 + $0x30] sm:$0xff]  ;;  %v1825_v10 = vld [vmem:[%s2319_s1 + $0x28] sm:$0xff]  ;;  %s1916_s26 = smul.u32 36, %s2323_s13 }
   0xe   : > { %v1835_v3 = vld [vmem:[%s2319_s1 + $0x78] sm:$0xff]  ;;  %645 = vmatpush.bf16.msra.mxu2 %v1827_v2  ;;  %v1834_v7 = vld [vmem:[%s2319_s1 + $0x70] sm:$0xff]  ;;  %v1833_v11 = vld [vmem:[%s2319_s1 + $0x68] sm:$0xff]  ;;  %s2004_s16 = scalar_lea.vmem %s2318_s0, %s1915_s30 }
   0xf   : > { %678 = vmatpush.bf16.msra.mxu3 %v1835_v3  ;;  %v1840_v12 = vld [vmem:[%s2319_s1 + $0xa0] sm:$0xff]  ;;  %v1813_v17 = vld [vmem:[%s2004_s16 + $0x4] sm:$0xf0]  ;;  %v1430_v19 = vld [vmem:[%s2004_s16 + $0x8] sm:$0xf0]  ;;  %s2294_s29 = scalar_lea.vmem %s2321_s3, %s1916_s26 }
  0x10   : > { %472 = vmatpush.bf16.msra.mxu0 %v1842_v4  ;;  %v1848_v13 = vld [vmem:[%s2319_s1 + $0xe0] sm:$0xff]  ;;  %v1839_v20 = vld [vmem:[%s2319_s1 + $0x98] sm:$0xff]  ;;  %v1436_v23 = vld [vmem:[%s2004_s16 + $0x10] sm:$0xf] }
  0x11   : > { %505 = vmatpush.bf16.msra.mxu1 %v1850_v5  ;;  %v1824_v14 = vld [vmem:[%s2319_s1 + $0x20] sm:$0xff]  ;;  %v1847_v21 = vld [vmem:[%s2319_s1 + $0xd8] sm:$0xff]  ;;  %v1814_v28 = vld [vmem:[%s2004_s16 + $0x14] sm:$0xf] }
  0x12   : > { %646 = vmatpush.bf16.msra.mxu2 %v1826_v6  ;;  %v1832_v15 = vld [vmem:[%s2319_s1 + $0x60] sm:$0xff]  ;;  %v1823_v22 = vld [vmem:[%s2319_s1 + $0x18] sm:$0xff]  ;;  %v1838_v31 = vld [vmem:[%s2319_s1 + $0x90] sm:$0xff] }
  0x13   : > { %679 = vmatpush.bf16.msra.mxu3 %v1834_v7  ;;  %v1428_v16 = vld [vmem:[%s2004_s16] sm:$0xf]  ;;  %v1812_v18 = vld [vmem:[%s2004_s16 + $0x4] sm:$0xf]  ;;  %v1815_v24 = vld [vmem:[%s2004_s16 + $0x14] sm:$0xf0] }
  0x14   : > { %473 = vmatpush.bf16.msra.mxu0 %v1841_v8  ;;  %v2033_v25 = vor.u32 %v1813_v17, %v1428_v16  ;;  %v2035_v26 = vor.u32 %v1812_v18, %v1430_v19  ;;  %v1831_v27 = vld [vmem:[%s2319_s1 + $0x58] sm:$0xff]  ;;  %v2042_v30 = vor.u32 %v1815_v24, %v1436_v23  ;;  %v1846_v32 = vld [vmem:[%s2319_s1 + $0xd0] sm:$0xff]  ;;  %v1837_v40 = vld [vmem:[%s2319_s1 + $0x88] sm:$0xff] }
  0x15   : > { %506 = vmatpush.bf16.msra.mxu1 %v1849_v9  ;;  %v1438_v29 = vld [vmem:[%s2004_s16 + $0x18] sm:$0xf0]  ;;  %v1822_v36 = vld [vmem:[%s2319_s1 + $0x10] sm:$0xff]  ;;  %v1845_v41 = vld [vmem:[%s2319_s1 + $0xc8] sm:$0xff] }
  0x16   : > { %647 = vmatpush.bf16.msra.mxu2 %v1825_v10  ;;  %v290_v33 = vshll.u32 %v2033_v25, 16  ;;  %v2051_v34 = vor.u32 %v1814_v28, %v1438_v29  ;;  %v302_v35 = vshll.u32 %v2035_v26, 16  ;;  %v1830_v37 = vld [vmem:[%s2319_s1 + $0x50] sm:$0xff]  ;;  %v288_v38 = vshrl.u32 %v2033_v25, 16  ;;  %v1821_v46 = vld [vmem:[%s2319_s1 + $0x8] sm:$0xff]  ;;  %v1836_v48 = vld [vmem:[%s2319_s1 + $0x80] sm:$0xff] }
  0x17   : > { %680 = vmatpush.bf16.msra.mxu3 %v1833_v11  ;;  %v295_v39 = vshll.u32 %v2042_v30, 16  ;;  %v300_v43 = vshrl.u32 %v2035_v26, 16  ;;  %v1829_v47 = vld [vmem:[%s2319_s1 + $0x48] sm:$0xff]  ;;  %v1844_v49 = vld [vmem:[%s2319_s1 + $0xc0] sm:$0xff]  ;;  %v1883_v56 = vld [vmem:[%s2319_s1 + $0x1b8] sm:$0xff]  ;;  %v311_v10 = vshrl.u32 %v2042_v30, 16 }
  0x18   : > { %474 = vmatpush.bf16.msra.mxu0 %v1840_v12  ;;  %v292_v42 = vrot.slane %v290_v33, 1  ;;  %v304_v44 = vrot.slane %v302_v35, 1  ;;  %v307_v45 = vshll.u32 %v2051_v34, 16  ;;  %v1820_v54 = vld [vmem:[%s2319_s1] sm:$0xff]  ;;  %v1891_v57 = vld [vmem:[%s2319_s1 + $0x1f8] sm:$0xff]  ;;  %v1882_v2 = vld [vmem:[%s2319_s1 + $0x1b0] sm:$0xff] }
  0x19   : > { %507 = vmatpush.bf16.msra.mxu1 %v1848_v13  ;;  %v297_v51 = vrot.slane %v295_v39, 1  ;;  %v1828_v55 = vld [vmem:[%s2319_s1 + $0x40] sm:$0xff]  ;;  %v1867_v60 = vld [vmem:[%s2319_s1 + $0x138] sm:$0xff]  ;;  %v1817_v63 = vld [vmem:[%s2004_s16 + $0x24] sm:$0xf0]  ;;  %v319_v12 = vshrl.u32 %v2051_v34, 16 }
  0x1a   : > { %648 = vmatpush.bf16.msra.mxu2 %v1824_v14  ;;  %v293_v50 = vor.u32 %v292_v42, %v288_v38  ;;  %v305_v52 = vor.u32 %v304_v44, %v300_v43  ;;  %v309_v53 = vrot.slane %v307_v45, 1  ;;  %v1875_v61 = vld [vmem:[%s2319_s1 + $0x178] sm:$0xff]  ;;  %v1444_v62 = vld [vmem:[%s2004_s16 + $0x20] sm:$0xf]  ;;  %v1816_v0 = vld [vmem:[%s2004_s16 + $0x24] sm:$0xf] }
  0x1b   : > { %681 = vmatpush.bf16.msra.mxu3 %v1832_v15  ;;  %v1446_v1 = vld [vmem:[%s2004_s16 + $0x28] sm:$0xf0]  ;;  %v1890_v3 = vld [vmem:[%s2319_s1 + $0x1f0] sm:$0xff]  ;;  %v2114_v4 = vor.u32 %v1817_v63, %v1444_v62  ;;  %v1880_v16 = vld [vmem:[%s2319_s1 + $0x1a0] sm:$0xff]  ;;  %v313_v18 = vor.u32 %v311_v10, %v297_v51 }
  0x1c   : > { %475 = vmatpush.bf16.msra.mxu0 %v1839_v20  ;;  %v298_v58 = vsel %vm286_vm0, %v293_v50, %v297_v51  ;;  %v310_v59 = vsel %vm286_vm0, %v305_v52, %v309_v53  ;;  %v2116_v5 = vor.u32 %v1816_v0, %v1446_v1  ;;  %v1866_v6 = vld [vmem:[%s2319_s1 + $0x130] sm:$0xff]  ;;  %v1881_v8 = vld [vmem:[%s2319_s1 + $0x1a8] sm:$0xff]  ;;  %v1888_v17 = vld [vmem:[%s2319_s1 + $0x1e0] sm:$0xff]  ;;  %v321_v20 = vor.u32 %v319_v12, %v309_v53 }
  0x1d   : > { %508 = vmatpush.bf16.msra.mxu1 %v1847_v21  ;;  %v1874_v7 = vld [vmem:[%s2319_s1 + $0x170] sm:$0xff]  ;;  %v1889_v9 = vld [vmem:[%s2319_s1 + $0x1e8] sm:$0xff]  ;;  %v315_v11 = vshll.u32 %v2114_v4, 16  ;;  %v1872_v23 = vld [vmem:[%s2319_s1 + $0x160] sm:$0xff]  ;;  %v327_v42 = vshrl.u32 %v2114_v4, 16 }
  0x1e   : > { %649 = vmatpush.bf16.msra.mxu2 %v1823_v22  ;;  %v323_v13 = vshll.u32 %v2116_v5, 16  ;;  %v1865_v14 = vld [vmem:[%s2319_s1 + $0x128] sm:$0xff]  ;;  %v1864_v22 = vld [vmem:[%s2319_s1 + $0x120] sm:$0xff]  ;;  %v1879_v24 = vld [vmem:[%s2319_s1 + $0x198] sm:$0xff]  ;;  %v335_v44 = vshrl.u32 %v2116_v5, 16 }
  0x1f   : > { %682 = vmatpush.bf16.msra.mxu3 %v1831_v27  ;;  %v1873_v15 = vld [vmem:[%s2319_s1 + $0x168] sm:$0xff]  ;;  %v317_v19 = vrot.slane %v315_v11, 1  ;;  %v1819_v29 = vld [vmem:[%s2004_s16 + $0x34] sm:$0xf0]  ;;  %v1878_v38 = vld [vmem:[%s2319_s1 + $0x190] sm:$0xff] }
  0x20   : > { %476 = vmatpush.bf16.msra.mxu0 %v1838_v31  ;;  %v325_v21 = vrot.slane %v323_v13, 1  ;;  %v1818_v31 = vld [vmem:[%s2004_s16 + $0x34] sm:$0xf]  ;;  %v1863_v33 = vld [vmem:[%s2319_s1 + $0x118] sm:$0xff]  ;;  %v179_v50 = vld [vmem:[%s2004_s16 + $0x40] sm:$0xff] }
  0x21   : > { %509 = vmatpush.bf16.msra.mxu1 %v1846_v32  ;;  %v318_v27 = vsel %vm286_vm0, %v313_v18, %v317_v19  ;;  %v1454_v32 = vld [vmem:[%s2004_s16 + $0x38] sm:$0xf0]  ;;  %v1886_v39 = vld [vmem:[%s2319_s1 + $0x1d0] sm:$0xff]  ;;  %v212_v51 = vld [vmem:[%s2004_s16 + $0x48] sm:$0x11] }
  0x22   : > { %650 = vmatpush.bf16.msra.mxu2 %v1822_v36  ;;  %v326_v28 = vsel %vm286_vm0, %v321_v20, %v325_v21  ;;  %v1871_v35 = vld [vmem:[%s2319_s1 + $0x158] sm:$0xff]  ;;  %v1876_v62 = vld [vmem:[%s2319_s1 + $0x180] sm:$0xff]  ;;  %v711_v12 = vld [vmem:[%s2004_s16 + $0x8] sm:$0xff] }
  0x23   : > { %683 = vmatpush.bf16.msra.mxu3 %v1830_v37  ;;  %v2172_v37 = vor.u32 %v1818_v31, %v1454_v32  ;;  %v1884_v63 = vld [vmem:[%s2319_s1 + $0x1c0] sm:$0xff]  ;;  %v712_v13 = vld [vmem:[%s2004_s16 + $0x10] sm:$0xff]  ;;  %v765_v18 = vunpack.c.h.b16 %v711_v12  ;;  %v1053_v31 = vld [vmem:[%s2004_s16 + $0x8] sm:$0xee] }
  0x24   : > { %477 = vmatpush.bf16.msra.mxu0 %v1837_v40  ;;  %v1862_v40 = vld [vmem:[%s2319_s1 + $0x110] sm:$0xff]  ;;  %v1860_v0 = vld [vmem:[%s2319_s1 + $0x100] sm:$0xff] }
  0x25   : > { %510 = vmatpush.bf16.msra.mxu1 %v1845_v41  ;;  %v1885_v41 = vld [vmem:[%s2319_s1 + $0x1c8] sm:$0xff]  ;;  %v339_v45 = vshll.u32 %v2172_v37, 16  ;;  %v1868_v1 = vld [vmem:[%s2319_s1 + $0x140] sm:$0xff] }
  0x26   : > { %651 = vmatpush.bf16.msra.mxu2 %v1821_v46  ;;  %v329_v46 = vor.u32 %v327_v42, %v317_v19  ;;  %v767_v19 = vunpack.c.h.b16 %v712_v13 }
  0x27   : > { %684 = vmatpush.bf16.msra.mxu3 %v1829_v47 }
  0x28   : > { %478 = vmatpush.bf16.msra.mxu0 %v1836_v48  ;;  %v337_v48 = vor.u32 %v335_v44, %v325_v21 }
  0x29   : > { %511 = vmatpush.bf16.msra.mxu1 %v1844_v49  ;;  %v341_v49 = vrot.slane %v339_v45, 1 }
  0x2a   : > { %652 = vmatpush.bf16.msra.mxu2 %v1820_v54  ;;  %v272_v54 = vunpack.c.l.b16 %v179_v50 }
  0x2b   : > { %685 = vmatpush.bf16.msra.mxu3 %v1828_v55  ;;  %479 = vmatmul.bf16.vlgmr.msra.gmra.mxu0 %v298_v58  ;;  %v342_v53 = vsel %vm286_vm0, %v337_v48, %v341_v49  ;;  %v274_v55 = vunpack.c.l.b16 %v212_v51 }
  0x2c   : > { %512 = vmatmul.bf16.vlgmr.msra.gmra.mxu1 %v310_v59  ;;  %978 = vmatpush.bf16.msrb.mxu0 %v1867_v60  ;;  %v1861_v60 = vld [vmem:[%s2319_s1 + $0x108] sm:$0xff] }
  0x2d   : > { %653 = vmatmul.bf16.vlgmr.msra.gmra.mxu2 %v2033_v25  ;;  %1011 = vmatpush.bf16.msrb.mxu1 %v1875_v61  ;;  %v1887_v25 = vld [vmem:[%s2319_s1 + $0x1d8] sm:$0xff]  ;;  %v284_v58 = vpack.c.b16 %v274_v55, %v272_v54  ;;  %v1869_v61 = vld [vmem:[%s2319_s1 + $0x148] sm:$0xff] }
  0x2e   : > { %1217 = vmatpush.bf16.msrb.mxu2 %v1883_v56  ;;  %686 = vmatmul.bf16.vlgmr.msra.gmra.mxu3 %v2035_v26  ;;  %v1452_v26 = vld [vmem:[%s2004_s16 + $0x30] sm:$0xf]  ;;  %v273_v56 = vunpack.c.h.b16 %v179_v50  ;;  %v1628_v55 = vld [vmem:[%s2004_s16 + $0x28] sm:$0xf] }
  0x2f   : > { %1250 = vmatpush.bf16.msrb.mxu3 %v1891_v57  ;;  %v2170_v36 = vor.u32 %v1819_v29, %v1452_v26  ;;  %v275_v57 = vunpack.c.h.b16 %v212_v51  ;;  %v1622_v29 = vld [vmem:[%s2004_s16 + $0x20] sm:$0xf0] }
  0x30   : > { %979 = vmatpush.bf16.msrb.mxu0 %v1866_v6 }
  0x31   : > { %1012 = vmatpush.bf16.msrb.mxu1 %v1874_v7  ;;  %v331_v43 = vshll.u32 %v2170_v36, 16  ;;  %v285_v59 = vpack.c.b16 %v275_v57, %v273_v56 }
  0x32   : > { %1218 = vmatpush.bf16.msrb.mxu2 %v1882_v2  ;;  %v343_v2 = vshrl.u32 %v2170_v36, 16 }
  0x33   : > { %1251 = vmatpush.bf16.msrb.mxu3 %v1890_v3  ;;  %v333_v47 = vrot.slane %v331_v43, 1  ;;  %v347_v3 = vshll.u32 %v284_v58, 16 }
  0x34   : > { %980 = vmatpush.bf16.msrb.mxu0 %v1865_v14  ;;  %v359_v14 = vshrl.u32 %v284_v58, 16  ;;  %v1855_v58 = vld [vmem:[%s2004_s16 + $0x2c] sm:$0xf0] }
  0x35   : > { %1013 = vmatpush.bf16.msrb.mxu1 %v1873_v15  ;;  %v334_v52 = vsel %vm286_vm0, %v329_v46, %v333_v47  ;;  %v345_v6 = vor.u32 %v343_v2, %v333_v47  ;;  %v349_v7 = vrot.slane %v347_v3, 1  ;;  %v362_v15 = vshrl.u32 %v285_v59, 16 }
  0x36   : > { %1219 = vmatpush.bf16.msrb.mxu2 %v1881_v8 }
  0x37   : > { %1252 = vmatpush.bf16.msrb.mxu3 %v1889_v9  ;;  %v350_v10 = vsel %vm286_vm0, %v345_v6, %v349_v7  ;;  %v361_v20 = vor.u32 %v359_v14, %v349_v7  ;;  %v1857_v14 = vld [vmem:[%s2004_s16 + $0x3c] sm:$0xf0] }
  0x38   : > { %981 = vmatpush.bf16.msrb.mxu0 %v1864_v22  ;;  %v537_v22 = vpack.c.b16 %v272_v54, %v272_v54 }
  0x39   : > { %1014 = vmatpush.bf16.msrb.mxu1 %v1872_v23  ;;  %v538_v23 = vpack.c.b16 %v273_v56, %v273_v56 }
  0x3a   : > { %1220 = vmatpush.bf16.msrb.mxu2 %v1880_v16  ;;  %v764_v16 = vunpack.c.l.b16 %v711_v12 }
  0x3b   : > { %1253 = vmatpush.bf16.msrb.mxu3 %v1888_v17  ;;  %484 = vmatmul.bf16.gmra.mxu0 %v318_v27  ;;  %v766_v17 = vunpack.c.l.b16 %v712_v13  ;;  %v785_v27 = vpack.c.b16 %v767_v19, %v765_v18 }
  0x3c   : > { %517 = vmatmul.bf16.gmra.mxu1 %v326_v28  ;;  %982 = vmatpush.bf16.msrb.mxu0 %v1863_v33  ;;  %v1852_v28 = vld [vmem:[%s2004_s16 + $0x1c] sm:$0xf] }
  0x3d   : > { %658 = vmatmul.bf16.gmra.mxu2 %v2042_v30  ;;  %1015 = vmatpush.bf16.msrb.mxu1 %v1871_v35  ;;  %v1870_v30 = vld [vmem:[%s2319_s1 + $0x150] sm:$0xff]  ;;  %v784_v26 = vpack.c.b16 %v766_v17, %v764_v16  ;;  %v1625_v35 = vor.u32 %v1852_v28, %v1622_v29  ;;  %v1638_v16 = vld [vmem:[%s2004_s16 + $0x40] sm:$0xf0] }
  0x3e   : > { %1221 = vmatpush.bf16.msrb.mxu2 %v1879_v24  ;;  %691 = vmatmul.bf16.gmra.mxu3 %v2051_v34  ;;  %v1877_v34 = vld [vmem:[%s2319_s1 + $0x188] sm:$0xff]  ;;  %v1620_v24 = vld [vmem:[%s2004_s16 + $0x18] sm:$0xf] }
  0x3f   : > { %1254 = vmatpush.bf16.msrb.mxu3 %v1887_v25  ;;  %v1853_v25 = vld [vmem:[%s2004_s16 + $0x1c] sm:$0xf0]  ;;  %v797_v33 = vshll.u32 %v784_v26, 16  ;;  %v814_v42 = vshll.u32 %v1625_v35, 16 }
  0x40   : > { %983 = vmatpush.bf16.msrb.mxu0 %v1862_v40  ;;  %v1621_v32 = vor.u32 %v1853_v25, %v1620_v24 }
  0x41   : > { %1016 = vmatpush.bf16.msrb.mxu1 %v1870_v30  ;;  %v799_v30 = vrot.slane %v797_v33, 1  ;;  %v816_v48 = vrot.slane %v814_v42, 1 }
  0x42   : > { %1222 = vmatpush.bf16.msrb.mxu2 %v1878_v38  ;;  %v1089_v38 = vunpack.c.h.b16 %v1053_v31  ;;  %v802_v40 = vshll.u32 %v1621_v32, 16  ;;  %v1094_v50 = vrot.slane %v1621_v32, 1 }
  0x43   : > { %1255 = vmatpush.bf16.msrb.mxu3 %v1886_v39  ;;  %v795_v39 = vshrl.u32 %v784_v26, 16 }
  0x44   : > { %984 = vmatpush.bf16.msrb.mxu0 %v1861_v60  ;;  %v1091_v44 = vpack.c.b16 %v767_v19, %v1089_v38  ;;  %v804_v46 = vrot.slane %v802_v40, 1  ;;  %v1630_v60 = vld [vmem:[%s2004_s16 + $0x30] sm:$0xf0] }
  0x45   : > { %1017 = vmatpush.bf16.msrb.mxu1 %v1869_v61  ;;  %v800_v45 = vor.u32 %v799_v30, %v795_v39  ;;  %v1629_v61 = vor.u32 %v1855_v58, %v1628_v55  ;;  %v1646_v38 = vld [vmem:[%s2004_s16 + $0x50] sm:$0x10] }
  0x46   : > { %1223 = vmatpush.bf16.msrb.mxu2 %v1877_v34  ;;  %v807_v34 = vshrl.u32 %v785_v27, 16  ;;  %v1096_v51 = vrot.slane %v1091_v44, 1 }
  0x47   : > { %1256 = vmatpush.bf16.msrb.mxu3 %v1885_v41  ;;  %v1099_v7 = vrot.slane %v1629_v61, 1  ;;  %v834_v19 = vshrl.u32 %v1629_v61, 16 }
  0x48   : > { %985 = vmatpush.bf16.msrb.mxu0 %v1860_v0  ;;  %v822_v0 = vshll.u32 %v1629_v61, 16 }
  0x49   : > { %1018 = vmatpush.bf16.msrb.mxu1 %v1868_v1  ;;  %v826_v1 = vshrl.u32 %v1625_v35, 16  ;;  %v1100_v12 = vsel %vm1092_vm1, %v1094_v50, %v1099_v7 }
  0x4a   : > { %1224 = vmatpush.bf16.msrb.mxu2 %v1876_v62 }
  0x4b   : > { %489 = vmatmul.bf16.gmra.mxu0 %v334_v52  ;;  %1257 = vmatpush.bf16.msrb.mxu3 %v1884_v63  ;;  %v1097_v52 = vrot.slane %v1625_v35, 1  ;;  %v818_v63 = vshrl.u32 %v1621_v32, 16  ;;  %v1644_v32 = vld [vmem:[%s2004_s16 + $0x48] sm:$0xf] }
  0x4c   : > { %522 = vmatmul.bf16.gmra.mxu1 %v342_v53  ;;  %v805_v53 = vsel %vm286_vm0, %v800_v45, %v804_v46 }
  0x4d   : > { %663 = vmatmul.bf16.gmra.mxu2 %v2114_v4  ;;  %v351_v4 = vshrl.u32 %v2172_v37, 16  ;;  %v1098_v57 = vsel %vm1092_vm1, %v1096_v51, %v1097_v52  ;;  %v820_v3 = vor.u32 %v818_v63, %v804_v46 }
  0x4e   : > { %696 = vmatmul.bf16.gmra.mxu3 %v2116_v5  ;;  %v355_v5 = vshll.u32 %v285_v59, 16  ;;  %v1854_v59 = vld [vmem:[%s2004_s16 + $0x2c] sm:$0xf] }
  0x4f   : > { %v353_v8 = vor.u32 %v351_v4, %v341_v49  ;;  %v1633_v62 = vor.u32 %v1854_v59, %v1630_v60  ;;  %v824_v4 = vrot.slane %v822_v0, 1 }
  0x50   : > { %v357_v9 = vrot.slane %v355_v5, 1  ;;  %v828_v5 = vor.u32 %v826_v1, %v816_v48 }
  0x51   : > { %v830_v2 = vshll.u32 %v1633_v62, 16 }
  0x52   : > { %v358_v11 = vsel %vm286_vm0, %v353_v8, %v357_v9  ;;  %v364_v21 = vor.u32 %v362_v15, %v357_v9  ;;  %v1101_v8 = vrot.slane %v1633_v62, 1  ;;  %v825_v9 = vsel %vm286_vm0, %v820_v3, %v824_v4  ;;  %v1856_v15 = vld [vmem:[%s2004_s16 + $0x3c] sm:$0xf] }
  0x53   : > { %v832_v6 = vrot.slane %v830_v2, 1  ;;  %v1641_v18 = vor.u32 %v1856_v15, %v1638_v16 }
  0x54   : > { %v1102_v13 = vsel %vm1092_vm1, %v1097_v52, %v1101_v8 }
  0x55   : > { %v1105_v28 = vrot.slane %v1641_v18, 1 }
  0x57   : > { %v1106_v35 = vsel %vm1092_vm1, %v1101_v8, %v1105_v28 }
  0x5b   : > { %494 = vmatmul.bf16.gmra.mxu0 %v350_v10  ;;  %v833_v10 = vsel %vm286_vm0, %v828_v5, %v832_v6 }
  0x5c   : > { %527 = vmatmul.bf16.gmra.mxu1 %v358_v11  ;;  %v1636_v11 = vld [vmem:[%s2004_s16 + $0x38] sm:$0xf] }
  0x5d   : > { %668 = vmatmul.bf16.gmra.mxu2 %v2170_v36  ;;  %v809_v36 = vshll.u32 %v785_v27, 16 }
  0x5e   : > { %701 = vmatmul.bf16.gmra.mxu3 %v2172_v37  ;;  %v1088_v37 = vunpack.c.l.b16 %v1053_v31 }
  0x5f   : > { %v811_v41 = vrot.slane %v809_v36, 1  ;;  %v1859_v36 = vld [vmem:[%s2004_s16 + $0x4c] sm:$0x10] }
  0x60   : > { %v1090_v43 = vpack.c.b16 %v766_v17, %v1088_v37  ;;  %v1637_v17 = vor.u32 %v1857_v14, %v1636_v11  ;;  %v1858_v37 = vld [vmem:[%s2004_s16 + $0x4c] sm:$0xf]  ;;  %v1645_v39 = vor.u32 %v1859_v36, %v1644_v32 }
  0x61   : > { %v812_v47 = vor.u32 %v811_v41, %v807_v34  ;;  %v1649_v40 = vor.u32 %v1858_v37, %v1646_v38  ;;  %v858_v41 = vshrl.u32 %v1641_v18, 16 }
  0x62   : > { %v1093_v49 = vrot.slane %v1090_v43, 1  ;;  %v1103_v27 = vrot.slane %v1637_v17, 1  ;;  %v850_v30 = vshrl.u32 %v1637_v17, 16  ;;  %v854_v34 = vshll.u32 %v1645_v39, 16 }
  0x63   : > { %v817_v54 = vsel %vm286_vm0, %v812_v47, %v816_v48  ;;  %v862_v42 = vshll.u32 %v1649_v40, 16  ;;  %v1107_v47 = vrot.slane %v1645_v39, 1  ;;  %v1109_v48 = vrot.slane %v1649_v40, 1 }
  0x64   : > { %v1095_v56 = vsel %vm1092_vm1, %v1093_v49, %v1094_v50  ;;  %v1104_v33 = vsel %vm1092_vm1, %v1099_v7, %v1103_v27  ;;  %v856_v44 = vrot.slane %v854_v34, 1  ;;  %v866_v63 = vshrl.u32 %v1645_v39, 16 }
  0x65   : > { %v864_v46 = vrot.slane %v862_v42, 1  ;;  %v1110_v55 = vsel %vm1092_vm1, %v1105_v28, %v1109_v48  ;;  %v869_v0 = vshrl.u32 %v1649_v40, 16 }
  0x66   : > { %v868_v3 = vor.u32 %v866_v63, %v856_v44 }
  0x6b   : > { %499 = vmatmul.bf16.gmra.mxu0 %v361_v20  ;;  %v838_v20 = vshll.u32 %v1637_v17, 16 }
  0x6c   : > { %532 = vmatmul.bf16.gmra.mxu1 %v364_v21  ;;  %v842_v21 = vshrl.u32 %v1633_v62, 16 }
  0x6d   : > { %673 = vmatmul.bf16.gmra.mxu2 %v537_v22  ;;  %v846_v22 = vshll.u32 %v1641_v18, 16  ;;  %v840_v24 = vrot.slane %v838_v20, 1 }
  0x6e   : > { %706 = vmatmul.bf16.gmra.mxu3 %v538_v23  ;;  %v836_v23 = vor.u32 %v834_v19, %v824_v4  ;;  %v844_v25 = vor.u32 %v842_v21, %v832_v6  ;;  %v871_v4 = vor.u32 %v869_v0, %v864_v46 }
  0x6f   : > { %v848_v26 = vrot.slane %v846_v22, 1  ;;  %v852_v43 = vor.u32 %v850_v30, %v840_v24 }
  0x70   : > { %v841_v29 = vsel %vm286_vm0, %v836_v23, %v840_v24 }
  0x71   : > { %v849_v31 = vsel %vm286_vm0, %v844_v25, %v848_v26  ;;  %v860_v45 = vor.u32 %v858_v41, %v848_v26  ;;  %v857_v51 = vsel %vm286_vm0, %v852_v43, %v856_v44 }
  0x73   : > { %v865_v52 = vsel %vm286_vm0, %v860_v45, %v864_v46 }
  0x7b   : > { %986 = vmatmul.bf16.vlgmr.msrb.gmra.mxu0 %v805_v53 }
  0x7c   : > { %1019 = vmatmul.bf16.vlgmr.msrb.gmra.mxu1 %v817_v54  ;;  %v1108_v54 = vsel %vm1092_vm1, %v1103_v27, %v1107_v47 }
  0x7d   : > { %1225 = vmatmul.bf16.vlgmr.msrb.gmra.mxu2 %v1095_v56 }
  0x7e   : > { %1258 = vmatmul.bf16.vlgmr.msrb.gmra.mxu3 %v1098_v57 }
  0x8b   : > { %991 = vmatmul.bf16.gmra.mxu0 %v825_v9 }
  0x8c   : > { %1024 = vmatmul.bf16.gmra.mxu1 %v833_v10 }
  0x8d   : > { %1230 = vmatmul.bf16.gmra.mxu2 %v1100_v12 }
  0x8e   : > { %1263 = vmatmul.bf16.gmra.mxu3 %v1102_v13 }
  0x9b   : > { %996 = vmatmul.bf16.gmra.mxu0 %v841_v29 }
  0x9c   : > { %1029 = vmatmul.bf16.gmra.mxu1 %v849_v31 }
  0x9d   : > { %1235 = vmatmul.bf16.gmra.mxu2 %v1104_v33 }
  0x9e   : > { %1268 = vmatmul.bf16.gmra.mxu3 %v1106_v35 }
  0xa8   : > { %v480_v49 = vpop.f32.mrf.mxu0 }
  0xa9   : > { %v513_v50 = vpop.f32.mrf.mxu1 }
  0xaa   : > { %v514_v53 = vadd.f32 %v513_v50, %v480_v49 }
  0xab   : > { %1001 = vmatmul.bf16.gmra.mxu0 %v857_v51 }
  0xac   : > { %1034 = vmatmul.bf16.gmra.mxu1 %v865_v52 }
  0xad   : > { %1240 = vmatmul.bf16.gmra.mxu2 %v1108_v54 }
  0xae   : > { %1273 = vmatmul.bf16.gmra.mxu3 %v1110_v55 }
  0xb0   : > { %v654_v56 = vpop.f32.mrf.mxu2  ;;  %v482_v59 = vpop.f32.mrf.mxu0 }
  0xb1   : > { %v687_v57 = vpop.f32.mrf.mxu3  ;;  %v655_v58 = vadd.f32 %v654_v56, %v514_v53  ;;  %v515_v60 = vpop.f32.mrf.mxu1 }
  0xb2   : > { %v516_v61 = vadd.f32 %v515_v60, %v482_v59 }
  0xb3   : > { %v2263_v62 = vadd.f32 %v687_v57, %v655_v58 }
  0xb8   : > { %v656_v1 = vpop.f32.mrf.mxu2  ;;  %v485_v6 = vpop.f32.mrf.mxu0 }
  0xb9   : > { %v689_v2 = vpop.f32.mrf.mxu3  ;;  %v657_v5 = vadd.f32 %v656_v1, %v516_v61  ;;  %v518_v7 = vpop.f32.mrf.mxu1 }
  0xba   : > { %v519_v8 = vadd.f32 %v518_v7, %v485_v6 }
  0xbb   : > { %v2265_v9 = vadd.f32 %v689_v2, %v657_v5  ;;  %1006 = vmatmul.bf16.gmra.mxu0 %v868_v3 }
  0xbc   : > { %1039 = vmatmul.bf16.gmra.mxu1 %v871_v4 }
  0xbd   : > { %1245 = vmatmul.bf16.gmra.mxu2 %v1107_v47 }
  0xbe   : > { %1278 = vmatmul.bf16.gmra.mxu3 %v1109_v48 }
  0xc0   : > { %v659_v10 = vpop.f32.mrf.mxu2  ;;  %v487_v13 = vpop.f32.mrf.mxu0 }
  0xc1   : > { %v692_v11 = vpop.f32.mrf.mxu3  ;;  %v660_v12 = vadd.f32 %v659_v10, %v519_v8  ;;  %v520_v14 = vpop.f32.mrf.mxu1  ;;  %v2285_v8 = vld [vmem:[%s2320_s2] ss:$0 sm:$0xff] }
  0xc2   : > { %v521_v15 = vadd.f32 %v520_v14, %v487_v13 }
  0xc3   : > { %v2267_v16 = vadd.f32 %v692_v11, %v660_v12 }
  0xc8   : > { %v661_v17 = vpop.f32.mrf.mxu2  ;;  %v490_v20 = vpop.f32.mrf.mxu0 }
  0xc9   : > { %v694_v18 = vpop.f32.mrf.mxu3  ;;  %v662_v19 = vadd.f32 %v661_v17, %v521_v15  ;;  %v523_v21 = vpop.f32.mrf.mxu1 }
  0xca   : > { %v524_v22 = vadd.f32 %v523_v21, %v490_v20 }
  0xcb   : > { %v2269_v23 = vadd.f32 %v694_v18, %v662_v19 }
  0xd0   : > { %v664_v24 = vpop.f32.mrf.mxu2  ;;  %v492_v27 = vpop.f32.mrf.mxu0 }
  0xd1   : > { %v697_v25 = vpop.f32.mrf.mxu3  ;;  %v665_v26 = vadd.f32 %v664_v24, %v524_v22  ;;  %v525_v28 = vpop.f32.mrf.mxu1 }
  0xd2   : > { %v526_v29 = vadd.f32 %v525_v28, %v492_v27 }
  0xd3   : > { %v2271_v31 = vadd.f32 %v697_v25, %v665_v26 }
  0xd8   : > { %v666_v32 = vpop.f32.mrf.mxu2  ;;  %v495_v36 = vpop.f32.mrf.mxu0 }
  0xd9   : > { %v699_v33 = vpop.f32.mrf.mxu3  ;;  %v667_v35 = vadd.f32 %v666_v32, %v526_v29  ;;  %v528_v37 = vpop.f32.mrf.mxu1 }
  0xda   : > { %v529_v38 = vadd.f32 %v528_v37, %v495_v36 }
  0xdb   : > { %v2273_v39 = vadd.f32 %v699_v33, %v667_v35 }
  0xe0   : > { %v669_v40 = vpop.f32.mrf.mxu2  ;;  %v497_v41 = vpop.f32.mrf.mxu0 }
  0xe1   : > { %v702_v30 = vpop.f32.mrf.mxu3  ;;  %v670_v34 = vadd.f32 %v669_v40, %v529_v38  ;;  %v530_v42 = vpop.f32.mrf.mxu1 }
  0xe2   : > { %v531_v43 = vadd.f32 %v530_v42, %v497_v41 }
  0xe3   : > { %v2275_v44 = vadd.f32 %v702_v30, %v670_v34 }
  0xe8   : > { %v671_v45 = vpop.f32.mrf.mxu2  ;;  %v500_v48 = vpop.f32.mrf.mxu0 }
  0xe9   : > { %v704_v46 = vpop.f32.mrf.mxu3  ;;  %v672_v47 = vadd.f32 %v671_v45, %v531_v43  ;;  %v533_v49 = vpop.f32.mrf.mxu1 }
  0xea   : > { %v534_v50 = vadd.f32 %v533_v49, %v500_v48 }
  0xeb   : > { %v2277_v51 = vadd.f32 %v704_v46, %v672_v47 }
  0xf0   : > { %v674_v52 = vpop.f32.mrf.mxu2  ;;  %v502_v55 = vpop.f32.mrf.mxu0 }
  0xf1   : > { %v707_v53 = vpop.f32.mrf.mxu3  ;;  %v675_v54 = vadd.f32 %v674_v52, %v534_v50  ;;  %v535_v56 = vpop.f32.mrf.mxu1 }
  0xf3   : > { %v2279_v57 = vadd.f32 %v707_v53, %v675_v54 }
  0xf8   : > { %v676_v58 = vpop.f32.mrf.mxu2  ;;  %v987_v60 = vpop.f32.mrf.mxu0 }
  0xf9   : > { %v709_v59 = vpop.f32.mrf.mxu3  ;;  %v1020_v61 = vpop.f32.mrf.mxu1 }
  0xfa   : > { %v1021_v1 = vadd.f32 %v1020_v61, %v987_v60 }
  0xfc   : > { %v1044_v5 = vadd.f32 %v1021_v1, %v2263_v62 }
 0x100   : > { %v1226_v63 = vpop.f32.mrf.mxu2  ;;  %v989_v2 = vpop.f32.mrf.mxu0 }
 0x101   : > { %v1259_v0 = vpop.f32.mrf.mxu3  ;;  %v1022_v3 = vpop.f32.mrf.mxu1 }
 0x102   : > { %v1260_v4 = vadd.f32 %v1259_v0, %v1226_v63  ;;  %v1023_v6 = vadd.f32 %v1022_v3, %v989_v2 }
 0x104   : > { %v1283_v7 = vadd.f32 %v1260_v4, %v1044_v5  ;;  %v1045_v12 = vadd.f32 %v1023_v6, %v2265_v9 }
 0x106   : > { %v1296_v17 = vadd.f32 %v2285_v8, %v1283_v7 }
 0x108   : > { %v1228_v10 = vpop.f32.mrf.mxu2  ;;  %v992_v14 = vpop.f32.mrf.mxu0  ;;  %v1305_v19 = vmax.f32 %v1296_v17, 0.0 }
 0x109   : > { %v1261_v11 = vpop.f32.mrf.mxu3  ;;  %v1025_v15 = vpop.f32.mrf.mxu1 }
 0x10a   : > { %v1262_v13 = vadd.f32 %v1261_v11, %v1228_v10  ;;  %v1026_v24 = vadd.f32 %v1025_v15, %v992_v14 }
 0x10c   : > { %v1284_v18 = vadd.f32 %v1262_v13, %v1045_v12  ;;  %v1046_v28 = vadd.f32 %v1026_v24, %v2267_v16 }
 0x10e   : > { %v1297_v62 = vadd.f32 %v2285_v8, %v1284_v18 }
 0x110   : > { %v1306_v20 = vmax.f32 %v1297_v62, 0.0  ;;  %v1231_v21 = vpop.f32.mrf.mxu2  ;;  %v994_v25 = vpop.f32.mrf.mxu0 }
 0x111   : > { %v1264_v22 = vpop.f32.mrf.mxu3  ;;  %v1027_v26 = vpop.f32.mrf.mxu1 }
 0x112   : > { %v1895_v9 = vpack.c.bf16 %v1306_v20, %v1305_v19  ;;  %v1265_v27 = vadd.f32 %v1264_v22, %v1231_v21  ;;  %v1028_v29 = vadd.f32 %v1027_v26, %v994_v25 }
 0x114   : > { %1896 = vst [vmem:[%s2294_s29] sm:$0xff] %v1895_v9   ;;  %v1285_v32 = vadd.f32 %v1265_v27, %v1046_v28  ;;  %v1047_v36 = vadd.f32 %v1028_v29, %v2269_v23 }
 0x116   : > { %v1298_v30 = vadd.f32 %v2285_v8, %v1285_v32 }
 0x118   : > { %v1233_v33 = vpop.f32.mrf.mxu2  ;;  %v997_v38 = vpop.f32.mrf.mxu0  ;;  %v1307_v42 = vmax.f32 %v1298_v30, 0.0 }
 0x119   : > { %v1266_v35 = vpop.f32.mrf.mxu3  ;;  %v1030_v40 = vpop.f32.mrf.mxu1 }
 0x11a   : > { %v1267_v37 = vadd.f32 %v1266_v35, %v1233_v33  ;;  %v1031_v47 = vadd.f32 %v1030_v40, %v997_v38 }
 0x11c   : > { %v1286_v34 = vadd.f32 %v1267_v37, %v1047_v36  ;;  %v1048_v23 = vadd.f32 %v1031_v47, %v2271_v31 }
 0x11e   : > { %v1299_v41 = vadd.f32 %v2285_v8, %v1286_v34 }
 0x120   : > { %v1308_v43 = vmax.f32 %v1299_v41, 0.0  ;;  %v1236_v45 = vpop.f32.mrf.mxu2  ;;  %v999_v48 = vpop.f32.mrf.mxu0 }
 0x121   : > { %v1269_v46 = vpop.f32.mrf.mxu3  ;;  %v1032_v49 = vpop.f32.mrf.mxu1 }
 0x122   : > { %v1900_v16 = vpack.c.bf16 %v1308_v43, %v1307_v42  ;;  %v1270_v50 = vadd.f32 %v1269_v46, %v1236_v45  ;;  %v1033_v52 = vadd.f32 %v1032_v49, %v999_v48 }
 0x124   : > { %1912 = vst [vmem:[%s2294_s29 + $0x8] sm:$0xff] %v1900_v16   ;;  %v1287_v53 = vadd.f32 %v1270_v50, %v1048_v23  ;;  %v1049_v56 = vadd.f32 %v1033_v52, %v2273_v39 }
 0x126   : > { %v1300_v61 = vadd.f32 %v2285_v8, %v1287_v53 }
 0x128   : > { %v1238_v54 = vpop.f32.mrf.mxu2  ;;  %v1002_v59 = vpop.f32.mrf.mxu0  ;;  %v1309_v1 = vmax.f32 %v1300_v61, 0.0 }
 0x129   : > { %v1271_v55 = vpop.f32.mrf.mxu3  ;;  %v1035_v60 = vpop.f32.mrf.mxu1 }
 0x12a   : > { %v1272_v58 = vadd.f32 %v1271_v55, %v1238_v54  ;;  %v1036_v5 = vadd.f32 %v1035_v60, %v1002_v59 }
 0x12c   : > { %v1288_v63 = vadd.f32 %v1272_v58, %v1049_v56  ;;  %v1050_v39 = vadd.f32 %v1036_v5, %v2275_v44 }
 0x12e   : > { %v1301_v0 = vadd.f32 %v2285_v8, %v1288_v63 }
 0x130   : > { %v1310_v2 = vmax.f32 %v1301_v0, 0.0  ;;  %v1241_v3 = vpop.f32.mrf.mxu2  ;;  %v1004_v6 = vpop.f32.mrf.mxu0 }
 0x131   : > { %v1274_v4 = vpop.f32.mrf.mxu3  ;;  %v1037_v7 = vpop.f32.mrf.mxu1 }
 0x132   : > { %v1905_v31 = vpack.c.bf16 %v1310_v2, %v1309_v1  ;;  %v1275_v10 = vadd.f32 %v1274_v4, %v1241_v3  ;;  %v1038_v11 = vadd.f32 %v1037_v7, %v1004_v6 }
 0x134   : > { %1913 = vst [vmem:[%s2294_s29 + $0x10] sm:$0xff] %v1905_v31   ;;  %v1289_v12 = vadd.f32 %v1275_v10, %v1050_v39  ;;  %v1051_v15 = vadd.f32 %v1038_v11, %v2277_v51 }
 0x136   : > { %v1302_v19 = vadd.f32 %v2285_v8, %v1289_v12 }
 0x138   : > { %v1243_v13 = vpop.f32.mrf.mxu2  ;;  %v1007_v18 = vpop.f32.mrf.mxu0  ;;  %v1311_v9 = vmax.f32 %v1302_v19, 0.0 }
 0x139   : > { %v1276_v14 = vpop.f32.mrf.mxu3  ;;  %v1040_v62 = vpop.f32.mrf.mxu1 }
 0x13a   : > { %v1277_v17 = vadd.f32 %v1276_v14, %v1243_v13  ;;  %v1041_v22 = vadd.f32 %v1040_v62, %v1007_v18 }
 0x13c   : > { %v1290_v20 = vadd.f32 %v1277_v17, %v1051_v15  ;;  %v1052_v27 = vadd.f32 %v1041_v22, %v2279_v57 }
 0x13e   : > { %v1303_v21 = vadd.f32 %v2285_v8, %v1290_v20 }
 0x140   : > { %v1312_v24 = vmax.f32 %v1303_v21, 0.0  ;;  %v1246_v44 = vpop.f32.mrf.mxu2  ;;  %v1009_v51 = vpop.f32.mrf.mxu0 }
 0x141   : > { %v1279_v25 = vpop.f32.mrf.mxu3  ;;  %v1042_v29 = vpop.f32.mrf.mxu1 }
 0x142   : > { %v1910_v26 = vpack.c.bf16 %v1312_v24, %v1311_v9  ;;  %v1280_v28 = vadd.f32 %v1279_v25, %v1246_v44 }
 0x144   : > { %1914 = vst [vmem:[%s2294_s29 + $0x18] sm:$0xff] %v1910_v26   ;;  %v1291_v32 = vadd.f32 %v1280_v28, %v1052_v27 }
 0x146   : > { %v1304_v33 = vadd.f32 %v2285_v8, %v1291_v32 }
 0x148   : > { %v1313_v35 = vmax.f32 %v1304_v33, 0.0  ;;  %v1248_v36 = vpop.f32.mrf.mxu2 }
 0x149   : > { %v1281_v37 = vpop.f32.mrf.mxu3 }
 0x14a   : > { %v1322_v38 = vpack.c.bf16 %v1313_v35, %v1313_v35 }
 0x14c   : > { %1331 = vst [vmem:[%s2294_s29 + $0x20] sm:$0xf] %v1322_v38 }
 0x14d PF: > { %s13_s12 = sadd.s32 1, %s1932_s12  }
 0x14e   : > { %p10_p4 = scmp.ge.s32.totalorder %s13_s12, 6  }
 0x150   :  { %12 = sbr.rel (!%p10_p4) target bundleno = 1 (0x1), region = 65 }

// kernel: observation_encoder_forward.8
= control target key start
LH: loop header
LB: loop body
LE: loop exit
PB: predicated region body
PF: predicated region fallthrough
CT: control target
= control target key end

     0   :  { %s4208_s12 = smov 0   ;;  %s6175_s0 = inlined_call_operand.vmem [shape: bf16[4,26,512], index: 0, kind: input, shape index: {}]   ;;  %s6176_s1 = inlined_call_operand.vmem [shape: bf16[2,2,512,256], index: 1, kind: input, shape index: {}]   ;;  %s6177_s2 = inlined_call_operand.vmem [shape: f32[1,256], index: 2, kind: input, shape index: {}]   ;;  %s6178_s3 = inlined_call_operand.vmem [shape: bf16[4,20,256], index: 3, kind: output, shape index: {}]  }
   0x1 LB: > { %s2648_s13 = sadd.s32 4294967295, %s4186_s12   ;;  %p2652_p0 = scmp.ge.s32.totalorder %s4186_s12, 1  ;;  %s4186_s12 = sphi %s4208_s12, %s13_s12  }
   0x2   : > { %p137_p1 = scmp.lt.s32.totalorder %s4186_s12, 5 }
   0x4   : > { %p138_p2 = pnand %p2652_p0, %p137_p1 }
   0x5   : > { %p161_p3 = scmp.lt.s32.totalorder (!%p138_p2), %s2648_s13, 3 }
   0x6   : > { %141 = sbr.rel (%p138_p2) target bundleno = 444 (0x1bc), region = 32 }
   0xb   : > { %v2794_v0 = vld [vmem:[%s6176_s1 + $0x270] sm:$0xf]  ;;  %v3990_v1 = vld [vmem:[%s6176_s1 + $0x274] sm:$0xf0]  ;;  %v2786_v11 = vld [vmem:[%s6176_s1 + $0x260] sm:$0xf] }
   0xc   : > { %v2858_v2 = vld [vmem:[%s6176_s1 + $0x2f0] sm:$0xf]  ;;  %v2795_v3 = vor.u32 %v3990_v1, %v2794_v0  ;;  %v4006_v4 = vld [vmem:[%s6176_s1 + $0x2f4] sm:$0xf0]  ;;  %v3988_v13 = vld [vmem:[%s6176_s1 + $0x264] sm:$0xf0] }
   0xd   : > { %v2922_v5 = vld [vmem:[%s6176_s1 + $0x370] sm:$0xf]  ;;  %v4022_v6 = vld [vmem:[%s6176_s1 + $0x374] sm:$0xf0]  ;;  %v2859_v7 = vor.u32 %v4006_v4, %v2858_v2  ;;  %v2850_v14 = vld [vmem:[%s6176_s1 + $0x2e0] sm:$0xf]  ;;  %v2787_v16 = vor.u32 %v3988_v13, %v2786_v11 }
   0xe   : > { %v2923_v8 = vor.u32 %v4022_v6, %v2922_v5  ;;  %v2986_v9 = vld [vmem:[%s6176_s1 + $0x3f0] sm:$0xf]  ;;  %v4038_v10 = vld [vmem:[%s6176_s1 + $0x3f4] sm:$0xf0]  ;;  %723 = vmatpush.bf16.msra.mxu0 %v2795_v3  ;;  %v4004_v15 = vld [vmem:[%s6176_s1 + $0x2e4] sm:$0xf0] }
   0xf   : > { %v2987_v12 = vor.u32 %v4038_v10, %v2986_v9  ;;  %741 = vmatpush.bf16.msra.mxu1 %v2859_v7  ;;  %v2851_v17 = vor.u32 %v4004_v15, %v2850_v14  ;;  %v2914_v18 = vld [vmem:[%s6176_s1 + $0x360] sm:$0xf]  ;;  %v4020_v19 = vld [vmem:[%s6176_s1 + $0x364] sm:$0xf0]  ;;  %v2778_v23 = vld [vmem:[%s6176_s1 + $0x250] sm:$0xf] }
  0x10   : > { %759 = vmatpush.bf16.msra.mxu2 %v2923_v8  ;;  %v2978_v20 = vld [vmem:[%s6176_s1 + $0x3e0] sm:$0xf]  ;;  %v2915_v21 = vor.u32 %v4020_v19, %v2914_v18  ;;  %v4036_v22 = vld [vmem:[%s6176_s1 + $0x3e4] sm:$0xf0]  ;;  %v3986_v24 = vld [vmem:[%s6176_s1 + $0x254] sm:$0xf0] }
  0x11   : > { %777 = vmatpush.bf16.msra.mxu3 %v2987_v12  ;;  %v2979_v25 = vor.u32 %v4036_v22, %v2978_v20  ;;  %v2842_v26 = vld [vmem:[%s6176_s1 + $0x2d0] sm:$0xf]  ;;  %v4002_v27 = vld [vmem:[%s6176_s1 + $0x2d4] sm:$0xf0]  ;;  %v2779_v29 = vor.u32 %v3986_v24, %v2778_v23  ;;  %v2770_v35 = vld [vmem:[%s6176_s1 + $0x240] sm:$0xf] }
  0x12   : > { %v2906_v28 = vld [vmem:[%s6176_s1 + $0x350] sm:$0xf]  ;;  %724 = vmatpush.bf16.msra.mxu0 %v2787_v16  ;;  %v4018_v30 = vld [vmem:[%s6176_s1 + $0x354] sm:$0xf0]  ;;  %v2843_v33 = vor.u32 %v4002_v27, %v2842_v26  ;;  %v3984_v36 = vld [vmem:[%s6176_s1 + $0x244] sm:$0xf0] }
  0x13   : > { %v2970_v31 = vld [vmem:[%s6176_s1 + $0x3d0] sm:$0xf]  ;;  %v4034_v32 = vld [vmem:[%s6176_s1 + $0x3d4] sm:$0xf0]  ;;  %742 = vmatpush.bf16.msra.mxu1 %v2851_v17  ;;  %v2907_v34 = vor.u32 %v4018_v30, %v2906_v28  ;;  %v2834_v37 = vld [vmem:[%s6176_s1 + $0x2c0] sm:$0xf]  ;;  %v2771_v44 = vor.u32 %v3984_v36, %v2770_v35 }
  0x14   : > { %760 = vmatpush.bf16.msra.mxu2 %v2915_v21  ;;  %v2971_v38 = vor.u32 %v4034_v32, %v2970_v31  ;;  %v4000_v39 = vld [vmem:[%s6176_s1 + $0x2c4] sm:$0xf0]  ;;  %v2898_v40 = vld [vmem:[%s6176_s1 + $0x340] sm:$0xf]  ;;  %v2762_v47 = vld [vmem:[%s6176_s1 + $0x230] sm:$0xf] }
  0x15   : > { %778 = vmatpush.bf16.msra.mxu3 %v2979_v25  ;;  %v4016_v41 = vld [vmem:[%s6176_s1 + $0x344] sm:$0xf0]  ;;  %v2962_v42 = vld [vmem:[%s6176_s1 + $0x3c0] sm:$0xf]  ;;  %v2835_v45 = vor.u32 %v4000_v39, %v2834_v37  ;;  %v3982_v48 = vld [vmem:[%s6176_s1 + $0x234] sm:$0xf0] }
  0x16   : > { %v4032_v43 = vld [vmem:[%s6176_s1 + $0x3c4] sm:$0xf0]  ;;  %725 = vmatpush.bf16.msra.mxu0 %v2779_v29  ;;  %v2899_v46 = vor.u32 %v4016_v41, %v2898_v40  ;;  %v2826_v49 = vld [vmem:[%s6176_s1 + $0x2b0] sm:$0xf]  ;;  %v3998_v51 = vld [vmem:[%s6176_s1 + $0x2b4] sm:$0xf0]  ;;  %v2763_v56 = vor.u32 %v3982_v48, %v2762_v47 }
  0x17   : > { %743 = vmatpush.bf16.msra.mxu1 %v2843_v33  ;;  %v2963_v50 = vor.u32 %v4032_v43, %v2962_v42  ;;  %v2890_v52 = vld [vmem:[%s6176_s1 + $0x330] sm:$0xf]  ;;  %v4014_v53 = vld [vmem:[%s6176_s1 + $0x334] sm:$0xf0]  ;;  %v2754_v57 = vld [vmem:[%s6176_s1 + $0x220] sm:$0xf]  ;;  %v2827_v58 = vor.u32 %v3998_v51, %v2826_v49 }
  0x18   : > { %761 = vmatpush.bf16.msra.mxu2 %v2907_v34  ;;  %v2954_v54 = vld [vmem:[%s6176_s1 + $0x3b0] sm:$0xf]  ;;  %v4030_v55 = vld [vmem:[%s6176_s1 + $0x3b4] sm:$0xf0]  ;;  %v2891_v59 = vor.u32 %v4014_v53, %v2890_v52  ;;  %v3980_v60 = vld [vmem:[%s6176_s1 + $0x224] sm:$0xf0] }
  0x19   : > { %779 = vmatpush.bf16.msra.mxu3 %v2971_v38  ;;  %v2818_v61 = vld [vmem:[%s6176_s1 + $0x2a0] sm:$0xf]  ;;  %v3996_v62 = vld [vmem:[%s6176_s1 + $0x2a4] sm:$0xf0]  ;;  %v2955_v63 = vor.u32 %v4030_v55, %v2954_v54  ;;  %v2746_v4 = vld [vmem:[%s6176_s1 + $0x210] sm:$0xf]  ;;  %v2755_v6 = vor.u32 %v3980_v60, %v2754_v57 }
  0x1a   : > { %726 = vmatpush.bf16.msra.mxu0 %v2771_v44  ;;  %v2882_v0 = vld [vmem:[%s6176_s1 + $0x320] sm:$0xf]  ;;  %v4012_v1 = vld [vmem:[%s6176_s1 + $0x324] sm:$0xf0]  ;;  %v3978_v5 = vld [vmem:[%s6176_s1 + $0x214] sm:$0xf0]  ;;  %v2819_v10 = vor.u32 %v3996_v62, %v2818_v61 }
  0x1b   : > { %744 = vmatpush.bf16.msra.mxu1 %v2835_v45  ;;  %v2946_v2 = vld [vmem:[%s6176_s1 + $0x3a0] sm:$0xf]  ;;  %v4028_v3 = vld [vmem:[%s6176_s1 + $0x3a4] sm:$0xf0]  ;;  %v2810_v7 = vld [vmem:[%s6176_s1 + $0x290] sm:$0xf]  ;;  %v2883_v11 = vor.u32 %v4012_v1, %v2882_v0  ;;  %v2747_v26 = vor.u32 %v3978_v5, %v2746_v4 }
  0x1c   : > { %762 = vmatpush.bf16.msra.mxu2 %v2899_v46  ;;  %v3994_v8 = vld [vmem:[%s6176_s1 + $0x294] sm:$0xf0]  ;;  %v2874_v9 = vld [vmem:[%s6176_s1 + $0x310] sm:$0xf]  ;;  %v2947_v15 = vor.u32 %v4028_v3, %v2946_v2  ;;  %v4387_v16 = vld [vmem:[%s6176_s1 + $0x200] sm:$0xf] }
  0x1d   : > { %780 = vmatpush.bf16.msra.mxu3 %v2963_v50  ;;  %v4010_v12 = vld [vmem:[%s6176_s1 + $0x314] sm:$0xf0]  ;;  %v2938_v13 = vld [vmem:[%s6176_s1 + $0x390] sm:$0xf]  ;;  %v3976_v17 = vld [vmem:[%s6176_s1 + $0x204] sm:$0xf0]  ;;  %v2811_v29 = vor.u32 %v3994_v8, %v2810_v7 }
  0x1e   : > { %727 = vmatpush.bf16.msra.mxu0 %v2763_v56  ;;  %v4026_v14 = vld [vmem:[%s6176_s1 + $0x394] sm:$0xf0]  ;;  %v4395_v18 = vld [vmem:[%s6176_s1 + $0x280] sm:$0xf]  ;;  %v4400_v19 = vld [vmem:[%s6176_s1 + $0x284] sm:$0xf0]  ;;  %v2875_v30 = vor.u32 %v4010_v12, %v2874_v9  ;;  %v2739_v37 = vor.u32 %v3976_v17, %v4387_v16 }
  0x1f   : > { %745 = vmatpush.bf16.msra.mxu1 %v2827_v58  ;;  %v4407_v20 = vld [vmem:[%s6176_s1 + $0x300] sm:$0xf]  ;;  %v4412_v21 = vld [vmem:[%s6176_s1 + $0x304] sm:$0xf0]  ;;  %v4427_v24 = vld [vmem:[%s6176_s1 + $0x374] sm:$0xf]  ;;  %v2939_v34 = vor.u32 %v4026_v14, %v2938_v13  ;;  %v2803_v38 = vor.u32 %v4400_v19, %v4395_v18 }
  0x20   : > { %763 = vmatpush.bf16.msra.mxu2 %v2891_v59  ;;  %v4417_v22 = vld [vmem:[%s6176_s1 + $0x380] sm:$0xf]  ;;  %v4422_v23 = vld [vmem:[%s6176_s1 + $0x384] sm:$0xf0]  ;;  %v4432_v25 = vld [vmem:[%s6176_s1 + $0x378] sm:$0xf0]  ;;  %v2867_v42 = vor.u32 %v4412_v21, %v4407_v20 }
  0x21   : > { %781 = vmatpush.bf16.msra.mxu3 %v2955_v63  ;;  %s6180_s13 = smov (!%p161_p3, %s2648_s13), 3  ;;  %v4441_v27 = vld [vmem:[%s6176_s1 + $0x274] sm:$0xf]  ;;  %v4446_v28 = vld [vmem:[%s6176_s1 + $0x278] sm:$0xf0]  ;;  %v2931_v43 = vor.u32 %v4422_v23, %v4417_v22  ;;  %v2927_v47 = vor.u32 %v4427_v24, %v4432_v25  ;;  %vm2078_vm2 = vcmask 1044480  }
  0x22   : > { %728 = vmatpush.bf16.msra.mxu0 %v2755_v6  ;;  %v4451_v31 = vld [vmem:[%s6176_s1 + $0x2f4] sm:$0xf]  ;;  %v4456_v32 = vld [vmem:[%s6176_s1 + $0x2f8] sm:$0xf0]  ;;  %s3906_s4 = sshll.u32 %s6180_s13, 6  ;;  %v2799_v48 = vor.u32 %v4441_v27, %v4446_v28  ;;  %s4171_s25 = smul.u32 24, %s6180_s13 }
  0x23   : > { %746 = vmatpush.bf16.msra.mxu1 %v2819_v10  ;;  %v4461_v33 = vld [vmem:[%s6176_s1 + $0x3f4] sm:$0xf]  ;;  %vm334_vm0 = vsmask.f32 7424  ;;  %v4467_v35 = vld [vmem:[%s6176_s1 + $0x3f8] sm:$0xf0]  ;;  %s4480_s11 = scalar_lea.vmem %s6175_s0, %s3906_s4  ;;  %v2863_v55 = vor.u32 %v4451_v31, %v4456_v32 }
  0x24   : > { %764 = vmatpush.bf16.msra.mxu2 %v2883_v11  ;;  %v4472_v36 = vld [vmem:[%s6176_s1 + $0x364] sm:$0xf]  ;;  %v4485_v39 = vld [vmem:[%s6176_s1 + $0x368] sm:$0xf0]  ;;  %v2722_v44 = vld [vmem:[%s4480_s11] sm:$0xf]  ;;  %v2991_v59 = vor.u32 %v4461_v33, %v4467_v35  ;;  %s170_s28 = scalar_lea.vmem %s6178_s3, %s4171_s25 }
  0x25   : > { %782 = vmatpush.bf16.msra.mxu3 %v2947_v15  ;;  %v4490_v40 = vld [vmem:[%s6176_s1 + $0x264] sm:$0xf]  ;;  %v4495_v41 = vld [vmem:[%s6176_s1 + $0x268] sm:$0xf0]  ;;  %v3909_v45 = vld [vmem:[%s4480_s11 + $0xc] sm:$0xf0]  ;;  %v2919_v60 = vor.u32 %v4472_v36, %v4485_v39 }
  0x26   : > { %729 = vmatpush.bf16.msra.mxu0 %v2747_v26  ;;  %v241_v46 = vld [vmem:[%s4480_s11 + $0x20] sm:$0x77]  ;;  %v4508_v50 = vor.u32 %v3909_v45, %v2722_v44  ;;  %v2724_v52 = vld [vmem:[%s4480_s11 + $0x10] sm:$0xf0]  ;;  %v2730_v54 = vld [vmem:[%s4480_s11 + $0x8] sm:$0xf]  ;;  %v2791_v61 = vor.u32 %v4490_v40, %v4495_v41 }
  0x27   : > { %747 = vmatpush.bf16.msra.mxu1 %v2811_v29  ;;  %v322_v49 = vunpack.c.l.b16 %v241_v46  ;;  %v3907_v51 = vld [vmem:[%s4480_s11 + $0x4] sm:$0xf]  ;;  %v323_v53 = vunpack.c.h.b16 %v241_v46  ;;  %v3910_v57 = vld [vmem:[%s4480_s11 + $0x14] sm:$0xf0]  ;;  %v242_v58 = vld [vmem:[%s4480_s11 + $0x28] sm:$0x77] }
  0x28   : > { %765 = vmatpush.bf16.msra.mxu2 %v2875_v30  ;;  %v4515_v56 = vor.u32 %v3907_v51, %v2724_v52  ;;  %v336_v63 = vshrl.u32 %v4508_v50, 16  ;;  %v338_v0 = vshll.u32 %v4508_v50, 16  ;;  %v324_v4 = vunpack.c.l.b16 %v242_v58  ;;  %v3908_v6 = vld [vmem:[%s4480_s11 + $0xc] sm:$0xf]  ;;  %v2732_v7 = vld [vmem:[%s4480_s11 + $0x18] sm:$0xf0] }
  0x29   : > { %783 = vmatpush.bf16.msra.mxu3 %v2939_v34  ;;  %v4525_v62 = vpack.c.b16 %v322_v49, %v322_v49  ;;  %v4529_v1 = vpack.c.b16 %v323_v53, %v323_v53  ;;  %v4533_v5 = vor.u32 %v3910_v57, %v2730_v54  ;;  %v4003_v8 = vld [vmem:[%s6176_s1 + $0x2e4] sm:$0xf]  ;;  %v325_v12 = vunpack.c.h.b16 %v242_v58  ;;  %v2852_v13 = vld [vmem:[%s6176_s1 + $0x2e8] sm:$0xf0]  ;;  %v4017_v24 = vld [vmem:[%s6176_s1 + $0x354] sm:$0xf] }
  0x2a   : > { %730 = vmatpush.bf16.msra.mxu0 %v2739_v37  ;;  %v348_v2 = vshrl.u32 %v4515_v56, 16  ;;  %v350_v3 = vshll.u32 %v4515_v56, 16  ;;  %v340_v9 = vrot.slane %v338_v0, 1  ;;  %v4545_v15 = vpack.c.b16 %v324_v4, %v324_v4  ;;  %v4035_v18 = vld [vmem:[%s6176_s1 + $0x3e4] sm:$0xf] }
  0x2b   : > { %748 = vmatpush.bf16.msra.mxu1 %v2803_v38  ;;  %v343_v10 = vshll.u32 %v4525_v62, 16  ;;  %v355_v11 = vshll.u32 %v4529_v1, 16  ;;  %v360_v16 = vshrl.u32 %v4533_v5, 16  ;;  %v362_v17 = vshll.u32 %v4533_v5, 16  ;;  %v2980_v19 = vld [vmem:[%s6176_s1 + $0x3e8] sm:$0xf0] }
  0x2c   : > { %766 = vmatpush.bf16.msra.mxu2 %v2867_v42  ;;  %v352_v14 = vrot.slane %v350_v3, 1  ;;  %v341_v20 = vor.u32 %v340_v9, %v336_v63  ;;  %v4559_v23 = vor.u32 %v3908_v6, %v2732_v7  ;;  %v2908_v25 = vld [vmem:[%s6176_s1 + $0x358] sm:$0xf0]  ;;  %v367_v28 = vshll.u32 %v4545_v15, 16  ;;  %v3985_v30 = vld [vmem:[%s6176_s1 + $0x254] sm:$0xf] }
  0x2d   : > { %784 = vmatpush.bf16.msra.mxu3 %v2931_v43  ;;  %v4555_v21 = vrot.slane %v343_v10, 1  ;;  %v4557_v22 = vrot.slane %v355_v11, 1  ;;  %v364_v27 = vrot.slane %v362_v17, 1  ;;  %v4568_v29 = vpack.c.b16 %v325_v12, %v325_v12  ;;  %v2780_v31 = vld [vmem:[%s6176_s1 + $0x258] sm:$0xf0] }
  0x2e   : > { %795 = vmatpush.bf16.msrb.mxu0 %v2799_v48  ;;  %v353_v26 = vor.u32 %v352_v14, %v348_v2  ;;  %v372_v33 = vshrl.u32 %v4559_v23, 16  ;;  %v374_v34 = vshll.u32 %v4559_v23, 16  ;;  %v2855_v35 = vor.u32 %v4003_v8, %v2852_v13  ;;  %v4001_v36 = vld [vmem:[%s6176_s1 + $0x2d4] sm:$0xf]  ;;  %v2844_v37 = vld [vmem:[%s6176_s1 + $0x2d8] sm:$0xf0] }
  0x2f   : > { %813 = vmatpush.bf16.msrb.mxu1 %v2863_v55  ;;  %v4578_v32 = vsel %vm334_vm0, %v341_v20, %v4555_v21  ;;  %v365_v39 = vor.u32 %v364_v27, %v360_v16  ;;  %v4593_v40 = vrot.slane %v367_v28, 1  ;;  %v379_v41 = vshll.u32 %v4568_v29, 16  ;;  %v4033_v42 = vld [vmem:[%s6176_s1 + $0x3d4] sm:$0xf]  ;;  %v2972_v43 = vld [vmem:[%s6176_s1 + $0x3d8] sm:$0xf0] }
  0x30   : > { %831 = vmatpush.bf16.msrb.mxu2 %v2927_v47  ;;  %731 = vmatmul.bf16.vlgmr.msra.gmra.mxu0 %v4578_v32  ;;  %v4591_v38 = vsel %vm334_vm0, %v353_v26, %v4557_v22  ;;  %v376_v44 = vrot.slane %v374_v34, 1  ;;  %v2983_v45 = vor.u32 %v4035_v18, %v2980_v19  ;;  %v2911_v46 = vor.u32 %v4017_v24, %v2908_v25  ;;  %v4015_v48 = vld [vmem:[%s6176_s1 + $0x344] sm:$0xf]  ;;  %v2900_v49 = vld [vmem:[%s6176_s1 + $0x348] sm:$0xf0] }
  0x31   : > { %849 = vmatpush.bf16.msrb.mxu3 %v2991_v59  ;;  %749 = vmatmul.bf16.vlgmr.msra.gmra.mxu1 %v4591_v38  ;;  %v2783_v47 = vor.u32 %v3985_v30, %v2780_v31  ;;  %v4611_v51 = vsel %vm334_vm0, %v365_v39, %v4593_v40  ;;  %v4613_v52 = vrot.slane %v379_v41, 1  ;;  %v2847_v53 = vor.u32 %v4001_v36, %v2844_v37  ;;  %v3983_v54 = vld [vmem:[%s6176_s1 + $0x244] sm:$0xf]  ;;  %v2772_v55 = vld [vmem:[%s6176_s1 + $0x248] sm:$0xf0] }
  0x32   : > { %796 = vmatpush.bf16.msrb.mxu0 %v2791_v61  ;;  %767 = vmatmul.bf16.vlgmr.msra.gmra.mxu2 %v4611_v51  ;;  %v377_v57 = vor.u32 %v376_v44, %v372_v33  ;;  %v2975_v58 = vor.u32 %v4033_v42, %v2972_v43  ;;  %v3999_v59 = vld [vmem:[%s6176_s1 + $0x2c4] sm:$0xf]  ;;  %v2903_v61 = vor.u32 %v4015_v48, %v2900_v49  ;;  %v2964_v0 = vld [vmem:[%s6176_s1 + $0x3c8] sm:$0xf0]  ;;  %v4013_v4 = vld [vmem:[%s6176_s1 + $0x334] sm:$0xf] }
  0x33   : > { %814 = vmatpush.bf16.msrb.mxu1 %v2855_v35  ;;  %v4031_v63 = vld [vmem:[%s6176_s1 + $0x3c4] sm:$0xf]  ;;  %v2775_v3 = vor.u32 %v3983_v54, %v2772_v55  ;;  %v2892_v6 = vld [vmem:[%s6176_s1 + $0x338] sm:$0xf0]  ;;  %v3981_v8 = vld [vmem:[%s6176_s1 + $0x234] sm:$0xf] }
  0x34   : > { %832 = vmatpush.bf16.msrb.mxu2 %v2919_v60  ;;  %v2836_v60 = vld [vmem:[%s6176_s1 + $0x2c8] sm:$0xf0]  ;;  %v4636_v2 = vsel %vm334_vm0, %v377_v57, %v4613_v52  ;;  %v2764_v9 = vld [vmem:[%s6176_s1 + $0x238] sm:$0xf0]  ;;  %v2967_v10 = vor.u32 %v4031_v63, %v2964_v0  ;;  %v3997_v11 = vld [vmem:[%s6176_s1 + $0x2b4] sm:$0xf]  ;;  %v2895_v14 = vor.u32 %v4013_v4, %v2892_v6 }
  0x35   : > { %850 = vmatpush.bf16.msrb.mxu3 %v2983_v45  ;;  %v2839_v7 = vor.u32 %v3999_v59, %v2836_v60  ;;  %v2828_v12 = vld [vmem:[%s6176_s1 + $0x2b8] sm:$0xf0]  ;;  %v383_v13 = vshrl.u32 %v4525_v62, 16  ;;  %v4029_v16 = vld [vmem:[%s6176_s1 + $0x3b4] sm:$0xf]  ;;  %v386_v18 = vshrl.u32 %v4529_v1, 16  ;;  %v2767_v19 = vor.u32 %v3981_v8, %v2764_v9 }
  0x36   : > { %797 = vmatpush.bf16.msrb.mxu0 %v2783_v47  ;;  %785 = vmatmul.bf16.vlgmr.msra.gmra.mxu3 %v4636_v2  ;;  %v2956_v17 = vld [vmem:[%s6176_s1 + $0x3b8] sm:$0xf0]  ;;  %v4011_v20 = vld [vmem:[%s6176_s1 + $0x324] sm:$0xf]  ;;  %v2884_v62 = vld [vmem:[%s6176_s1 + $0x328] sm:$0xf0]  ;;  %v2831_v24 = vor.u32 %v3997_v11, %v2828_v12 }
  0x37   : > { %815 = vmatpush.bf16.msrb.mxu1 %v2847_v53  ;;  %v3979_v25 = vld [vmem:[%s6176_s1 + $0x224] sm:$0xf]  ;;  %v2756_v26 = vld [vmem:[%s6176_s1 + $0x228] sm:$0xf0]  ;;  %v389_v1 = vshrl.u32 %v4545_v15, 16  ;;  %v2959_v27 = vor.u32 %v4029_v16, %v2956_v17  ;;  %v4685_v31 = vor.u32 %v383_v13, %v4555_v21  ;;  %v2887_v33 = vor.u32 %v4011_v20, %v2884_v62 }
  0x38   : > { %833 = vmatpush.bf16.msrb.mxu2 %v2911_v46  ;;  %v3995_v28 = vld [vmem:[%s6176_s1 + $0x2a4] sm:$0xf]  ;;  %v2820_v30 = vld [vmem:[%s6176_s1 + $0x2a8] sm:$0xf0]  ;;  %v4694_v35 = vor.u32 %v386_v18, %v4557_v22  ;;  %v2759_v36 = vor.u32 %v3979_v25, %v2756_v26  ;;  %v4009_v21 = vld [vmem:[%s6176_s1 + $0x314] sm:$0xf] }
  0x39   : > { %851 = vmatpush.bf16.msrb.mxu3 %v2975_v58  ;;  %v4027_v34 = vld [vmem:[%s6176_s1 + $0x3a4] sm:$0xf]  ;;  %v2948_v15 = vld [vmem:[%s6176_s1 + $0x3a8] sm:$0xf0]  ;;  %v2876_v37 = vld [vmem:[%s6176_s1 + $0x318] sm:$0xf0]  ;;  %v2823_v41 = vor.u32 %v3995_v28, %v2820_v30  ;;  %v4710_v43 = vor.u32 %v389_v1, %v4593_v40 }
  0x3a   : > { %798 = vmatpush.bf16.msrb.mxu0 %v2775_v3  ;;  %v392_v39 = vshrl.u32 %v4568_v29, 16  ;;  %v3977_v42 = vld [vmem:[%s6176_s1 + $0x214] sm:$0xf]  ;;  %v2748_v22 = vld [vmem:[%s6176_s1 + $0x218] sm:$0xf0]  ;;  %v2951_v44 = vor.u32 %v4027_v34, %v2948_v15  ;;  %v2879_v47 = vor.u32 %v4009_v21, %v2876_v37 }
  0x3b   : > { %816 = vmatpush.bf16.msrb.mxu1 %v2839_v7  ;;  %v3993_v45 = vld [vmem:[%s6176_s1 + $0x294] sm:$0xf]  ;;  %v2812_v29 = vld [vmem:[%s6176_s1 + $0x298] sm:$0xf0]  ;;  %v4007_v48 = vld [vmem:[%s6176_s1 + $0x304] sm:$0xf]  ;;  %v2751_v53 = vor.u32 %v3977_v42, %v2748_v22 }
  0x3c   : > { %834 = vmatpush.bf16.msrb.mxu2 %v2903_v61  ;;  %v4025_v46 = vld [vmem:[%s6176_s1 + $0x394] sm:$0xf]  ;;  %v2940_v40 = vld [vmem:[%s6176_s1 + $0x398] sm:$0xf0]  ;;  %v2868_v49 = vld [vmem:[%s6176_s1 + $0x308] sm:$0xf0]  ;;  %v4742_v58 = vor.u32 %v392_v39, %v4613_v52  ;;  %v2815_v59 = vor.u32 %v3993_v45, %v2812_v29 }
  0x3d   : > { %852 = vmatpush.bf16.msrb.mxu3 %v2967_v10  ;;  %v3975_v54 = vld [vmem:[%s6176_s1 + $0x204] sm:$0xf]  ;;  %v2740_v55 = vld [vmem:[%s6176_s1 + $0x208] sm:$0xf0]  ;;  %v3178_v61 = vld [vmem:[%s6176_s1 + $0x170] sm:$0xf]  ;;  %v2943_v0 = vor.u32 %v4025_v46, %v2940_v40  ;;  %v2871_v6 = vor.u32 %v4007_v48, %v2868_v49 }
  0x3e   : > { %799 = vmatpush.bf16.msrb.mxu0 %v2767_v19  ;;  %v3991_v57 = vld [vmem:[%s6176_s1 + $0x284] sm:$0xf]  ;;  %v2804_v60 = vld [vmem:[%s6176_s1 + $0x288] sm:$0xf0]  ;;  %v3958_v63 = vld [vmem:[%s6176_s1 + $0x174] sm:$0xf0]  ;;  %v2743_v10 = vor.u32 %v3975_v54, %v2740_v55 }
  0x3f   : > { %817 = vmatpush.bf16.msrb.mxu1 %v2831_v24  ;;  %v4023_v52 = vld [vmem:[%s6176_s1 + $0x384] sm:$0xf]  ;;  %v3050_v3 = vld [vmem:[%s6176_s1 + $0x70] sm:$0xf]  ;;  %v3926_v4 = vld [vmem:[%s6176_s1 + $0x74] sm:$0xf0]  ;;  %v3179_v11 = vor.u32 %v3958_v63, %v3178_v61 }
  0x40   : > { %835 = vmatpush.bf16.msrb.mxu2 %v2895_v14  ;;  %736 = vmatmul.bf16.gmra.mxu0 %v4685_v31  ;;  %v2932_v7 = vld [vmem:[%s6176_s1 + $0x388] sm:$0xf0]  ;;  %v3114_v8 = vld [vmem:[%s6176_s1 + $0xf0] sm:$0xf]  ;;  %v3942_v9 = vld [vmem:[%s6176_s1 + $0xf4] sm:$0xf0]  ;;  %v2807_v14 = vor.u32 %v3991_v57, %v2804_v60  ;;  %v3051_v16 = vor.u32 %v3926_v4, %v3050_v3 }
  0x41   : > { %853 = vmatpush.bf16.msrb.mxu3 %v2959_v27  ;;  %754 = vmatmul.bf16.gmra.mxu1 %v4694_v35  ;;  %v3242_v12 = vld [vmem:[%s6176_s1 + $0x1f0] sm:$0xf]  ;;  %v3974_v13 = vld [vmem:[%s6176_s1 + $0x1f4] sm:$0xf0]  ;;  %v3170_v17 = vld [vmem:[%s6176_s1 + $0x160] sm:$0xf]  ;;  %v2935_v19 = vor.u32 %v4023_v52, %v2932_v7  ;;  %v3115_v20 = vor.u32 %v3942_v9, %v3114_v8 }
  0x42   : > { %800 = vmatpush.bf16.msrb.mxu0 %v2759_v36  ;;  %772 = vmatmul.bf16.gmra.mxu2 %v4710_v43  ;;  %v3956_v18 = vld [vmem:[%s6176_s1 + $0x164] sm:$0xf0]  ;;  %v3042_v62 = vld [vmem:[%s6176_s1 + $0x60] sm:$0xf]  ;;  %v3243_v25 = vor.u32 %v3974_v13, %v3242_v12  ;;  %v3162_v34 = vld [vmem:[%s6176_s1 + $0x150] sm:$0xf] }
  0x43   : > { %818 = vmatpush.bf16.msrb.mxu1 %v2823_v41  ;;  %v3924_v24 = vld [vmem:[%s6176_s1 + $0x64] sm:$0xf0]  ;;  %v3106_v26 = vld [vmem:[%s6176_s1 + $0xe0] sm:$0xf]  ;;  %v3171_v27 = vor.u32 %v3956_v18, %v3170_v17  ;;  %v3954_v15 = vld [vmem:[%s6176_s1 + $0x154] sm:$0xf0] }
  0x44   : > { %836 = vmatpush.bf16.msrb.mxu2 %v2887_v33  ;;  %v3940_v1 = vld [vmem:[%s6176_s1 + $0xe4] sm:$0xf0]  ;;  %v3234_v28 = vld [vmem:[%s6176_s1 + $0x1e0] sm:$0xf]  ;;  %v3043_v33 = vor.u32 %v3924_v24, %v3042_v62  ;;  %v3034_v21 = vld [vmem:[%s6176_s1 + $0x50] sm:$0xf]  ;;  %v3163_v22 = vor.u32 %v3954_v15, %v3162_v34 }
  0x45   : > { %854 = vmatpush.bf16.msrb.mxu3 %v2951_v44  ;;  %v3972_v30 = vld [vmem:[%s6176_s1 + $0x1e4] sm:$0xf0]  ;;  %v3107_v36 = vor.u32 %v3940_v1, %v3106_v26  ;;  %v3922_v37 = vld [vmem:[%s6176_s1 + $0x54] sm:$0xf0]  ;;  %v3098_v41 = vld [vmem:[%s6176_s1 + $0xd0] sm:$0xf] }
  0x46   : > { %801 = vmatpush.bf16.msrb.mxu0 %v2751_v53  ;;  %790 = vmatmul.bf16.gmra.mxu3 %v4742_v58  ;;  %v3235_v39 = vor.u32 %v3972_v30, %v3234_v28  ;;  %v3938_v42 = vld [vmem:[%s6176_s1 + $0xd4] sm:$0xf0]  ;;  %v3226_v44 = vld [vmem:[%s6176_s1 + $0x1d0] sm:$0xf]  ;;  %v3035_v29 = vor.u32 %v3922_v37, %v3034_v21  ;;  %v3154_v46 = vld [vmem:[%s6176_s1 + $0x140] sm:$0xf] }
  0x47   : > { %819 = vmatpush.bf16.msrb.mxu1 %v2815_v59  ;;  %v3970_v45 = vld [vmem:[%s6176_s1 + $0x1d4] sm:$0xf0]  ;;  %v3099_v40 = vor.u32 %v3938_v42, %v3098_v41  ;;  %v3026_v48 = vld [vmem:[%s6176_s1 + $0x40] sm:$0xf]  ;;  %v3920_v49 = vld [vmem:[%s6176_s1 + $0x44] sm:$0xf0] }
  0x48   : > { %837 = vmatpush.bf16.msrb.mxu2 %v2879_v47  ;;  %v3952_v47 = vld [vmem:[%s6176_s1 + $0x144] sm:$0xf0]  ;;  %v3227_v53 = vor.u32 %v3970_v45, %v3226_v44  ;;  %v3090_v54 = vld [vmem:[%s6176_s1 + $0xc0] sm:$0xf]  ;;  %v3027_v60 = vor.u32 %v3920_v49, %v3026_v48  ;;  %v3146_v61 = vld [vmem:[%s6176_s1 + $0x130] sm:$0xf] }
  0x49   : > { %855 = vmatpush.bf16.msrb.mxu3 %v2943_v0  ;;  %v3936_v55 = vld [vmem:[%s6176_s1 + $0xc4] sm:$0xf0]  ;;  %v3155_v57 = vor.u32 %v3952_v47, %v3154_v46  ;;  %v3218_v59 = vld [vmem:[%s6176_s1 + $0x1c0] sm:$0xf]  ;;  %v3018_v0 = vld [vmem:[%s6176_s1 + $0x30] sm:$0xf] }
  0x4a   : > { %802 = vmatpush.bf16.msrb.mxu0 %v2743_v10  ;;  %v3091_v63 = vor.u32 %v3936_v55, %v3090_v54  ;;  %v3918_v52 = vld [vmem:[%s6176_s1 + $0x34] sm:$0xf0]  ;;  %v3082_v4 = vld [vmem:[%s6176_s1 + $0xb0] sm:$0xf]  ;;  %v3138_v10 = vld [vmem:[%s6176_s1 + $0x120] sm:$0xf] }
  0x4b   : > { %820 = vmatpush.bf16.msrb.mxu1 %v2807_v14  ;;  %v3210_v7 = vld [vmem:[%s6176_s1 + $0x1b0] sm:$0xf]  ;;  %v3966_v8 = vld [vmem:[%s6176_s1 + $0x1b4] sm:$0xf0]  ;;  %v3019_v9 = vor.u32 %v3918_v52, %v3018_v0  ;;  %v3010_v13 = vld [vmem:[%s6176_s1 + $0x20] sm:$0xf] }
  0x4c   : > { %838 = vmatpush.bf16.msrb.mxu2 %v2871_v6  ;;  %v3211_v14 = vor.u32 %v3966_v8, %v3210_v7  ;;  %v3932_v17 = vld [vmem:[%s6176_s1 + $0xa4] sm:$0xf0]  ;;  %v3130_v24 = vld [vmem:[%s6176_s1 + $0x110] sm:$0xf]  ;;  %v3122_v21 = vld [vmem:[%s6176_s1 + $0x100] sm:$0xf] }
  0x4d   : > { %856 = vmatpush.bf16.msrb.mxu3 %v2935_v19  ;;  %v3202_v19 = vld [vmem:[%s6176_s1 + $0x1a0] sm:$0xf]  ;;  %v3002_v1 = vld [vmem:[%s6176_s1 + $0x10] sm:$0xf]  ;;  %v3912_v42 = vld [vmem:[%s6176_s1 + $0x4] sm:$0xf0] }
  0x4e   : > { %1205 = vmatpush.bf16.msra.mxu0 %v3051_v16  ;;  %v3074_v16 = vld [vmem:[%s6176_s1 + $0xa0] sm:$0xf]  ;;  %v3066_v30 = vld [vmem:[%s6176_s1 + $0x90] sm:$0xf]  ;;  %v3928_v45 = vld [vmem:[%s6176_s1 + $0x84] sm:$0xf0] }
  0x4f   : > { %1223 = vmatpush.bf16.msra.mxu1 %v3115_v20  ;;  %v3964_v20 = vld [vmem:[%s6176_s1 + $0x1a4] sm:$0xf0]  ;;  %v3075_v26 = vor.u32 %v3932_v17, %v3074_v16  ;;  %v3194_v15 = vld [vmem:[%s6176_s1 + $0x190] sm:$0xf]  ;;  %v2994_v41 = vld [vmem:[%s6176_s1] sm:$0xf] }
  0x50   : > { %1241 = vmatpush.bf16.msra.mxu2 %v3179_v11  ;;  %803 = vmatmul.bf16.vlgmr.msrb.gmra.mxu0 %v4578_v32  ;;  %v3968_v32 = vld [vmem:[%s6176_s1 + $0x1c4] sm:$0xf0]  ;;  %v3203_v28 = vor.u32 %v3964_v20, %v3202_v19  ;;  %v3058_v44 = vld [vmem:[%s6176_s1 + $0x80] sm:$0xf]  ;;  %v3180_v48 = vld [vmem:[%s6176_s1 + $0x178] sm:$0xf0]  ;;  %v2995_v55 = vor.u32 %v3912_v42, %v2994_v41 }
  0x51   : > { %1259 = vmatpush.bf16.msra.mxu3 %v3243_v25  ;;  %821 = vmatmul.bf16.vlgmr.msrb.gmra.mxu1 %v4591_v38  ;;  %v3950_v38 = vld [vmem:[%s6176_s1 + $0x134] sm:$0xf0]  ;;  %v3219_v3 = vor.u32 %v3968_v32, %v3218_v59  ;;  %v3948_v11 = vld [vmem:[%s6176_s1 + $0x124] sm:$0xf0]  ;;  %v3941_v54 = vld [vmem:[%s6176_s1 + $0xf4] sm:$0xf]  ;;  %v3059_v32 = vor.u32 %v3928_v45, %v3058_v44 }
  0x52   : > { %1206 = vmatpush.bf16.msra.mxu0 %v3043_v33  ;;  %839 = vmatmul.bf16.vlgmr.msrb.gmra.mxu2 %v4611_v51  ;;  %v3934_v51 = vld [vmem:[%s6176_s1 + $0xb4] sm:$0xf0]  ;;  %v3147_v6 = vor.u32 %v3950_v38, %v3146_v61  ;;  %v3139_v18 = vor.u32 %v3948_v11, %v3138_v10  ;;  %v3960_v47 = vld [vmem:[%s6176_s1 + $0x184] sm:$0xf0]  ;;  %v3244_v59 = vld [vmem:[%s6176_s1 + $0x1f8] sm:$0xf0] }
  0x53   : > { %1224 = vmatpush.bf16.msra.mxu1 %v3107_v36  ;;  %v3083_v12 = vor.u32 %v3934_v51, %v3082_v4  ;;  %v3946_v25 = vld [vmem:[%s6176_s1 + $0x114] sm:$0xf0]  ;;  %v3172_v0 = vld [vmem:[%s6176_s1 + $0x168] sm:$0xf0]  ;;  %v3939_v51 = vld [vmem:[%s6176_s1 + $0xe4] sm:$0xf] }
  0x54   : > { %1242 = vmatpush.bf16.msra.mxu2 %v3171_v27  ;;  %v3914_v27 = vld [vmem:[%s6176_s1 + $0x14] sm:$0xf0]  ;;  %v3131_v34 = vor.u32 %v3946_v25, %v3130_v24  ;;  %v3044_v4 = vld [vmem:[%s6176_s1 + $0x68] sm:$0xf0]  ;;  %v3971_v7 = vld [vmem:[%s6176_s1 + $0x1e4] sm:$0xf] }
  0x55   : > { %1260 = vmatpush.bf16.msra.mxu3 %v3235_v39  ;;  %v3930_v33 = vld [vmem:[%s6176_s1 + $0x94] sm:$0xf0]  ;;  %v3003_v37 = vor.u32 %v3914_v27, %v3002_v1  ;;  %v3944_v39 = vld [vmem:[%s6176_s1 + $0x104] sm:$0xf0]  ;;  %v3236_v8 = vld [vmem:[%s6176_s1 + $0x1e8] sm:$0xf0] }
  0x56   : > { %1207 = vmatpush.bf16.msra.mxu0 %v3035_v29  ;;  %857 = vmatmul.bf16.vlgmr.msrb.gmra.mxu3 %v4636_v2  ;;  %v3916_v2 = vld [vmem:[%s6176_s1 + $0x24] sm:$0xf0]  ;;  %v3962_v36 = vld [vmem:[%s6176_s1 + $0x194] sm:$0xf0]  ;;  %v3186_v29 = vld [vmem:[%s6176_s1 + $0x180] sm:$0xf]  ;;  %v3123_v49 = vor.u32 %v3944_v39, %v3122_v21 }
  0x57   : > { %1225 = vmatpush.bf16.msra.mxu1 %v3099_v40  ;;  %v3011_v62 = vor.u32 %v3916_v2, %v3010_v13  ;;  %v3195_v46 = vor.u32 %v3962_v36, %v3194_v15  ;;  %v3957_v40 = vld [vmem:[%s6176_s1 + $0x174] sm:$0xf]  ;;  %v3187_v61 = vor.u32 %v3960_v47, %v3186_v29  ;;  %v3164_v11 = vld [vmem:[%s6176_s1 + $0x158] sm:$0xf0]  ;;  %v3239_v13 = vor.u32 %v3971_v7, %v3236_v8  ;;  %v3951_v24 = vld [vmem:[%s6176_s1 + $0x144] sm:$0xf] }
  0x58   : > { %1243 = vmatpush.bf16.msra.mxu2 %v3163_v22  ;;  %v3067_v22 = vor.u32 %v3930_v33, %v3066_v30  ;;  %v3921_v2 = vld [vmem:[%s6176_s1 + $0x54] sm:$0xf]  ;;  %v3228_v20 = vld [vmem:[%s6176_s1 + $0x1d8] sm:$0xf0]  ;;  %v3156_v25 = vld [vmem:[%s6176_s1 + $0x148] sm:$0xf0] }
  0x59   : > { %1261 = vmatpush.bf16.msra.mxu3 %v3227_v53  ;;  %v3052_v53 = vld [vmem:[%s6176_s1 + $0x78] sm:$0xf0]  ;;  %v3937_v16 = vld [vmem:[%s6176_s1 + $0xd4] sm:$0xf]  ;;  %v3919_v27 = vld [vmem:[%s6176_s1 + $0x44] sm:$0xf] }
  0x5a   : > { %1208 = vmatpush.bf16.msra.mxu0 %v3027_v60  ;;  %v3183_v60 = vor.u32 %v3957_v40, %v3180_v48  ;;  %v3969_v19 = vld [vmem:[%s6176_s1 + $0x1d4] sm:$0xf]  ;;  %v3935_v30 = vld [vmem:[%s6176_s1 + $0xc4] sm:$0xf]  ;;  %v3092_v33 = vld [vmem:[%s6176_s1 + $0xc8] sm:$0xf0] }
  0x5b   : > { %1226 = vmatpush.bf16.msra.mxu1 %v3091_v63  ;;  %v3955_v63 = vld [vmem:[%s6176_s1 + $0x164] sm:$0xf]  ;;  %v3231_v1 = vor.u32 %v3969_v19, %v3228_v20  ;;  %v3220_v36 = vld [vmem:[%s6176_s1 + $0x1c8] sm:$0xf0]  ;;  %v3148_v39 = vld [vmem:[%s6176_s1 + $0x138] sm:$0xf0]  ;;  %v3095_v41 = vor.u32 %v3935_v30, %v3092_v33 }
  0x5c   : > { %1244 = vmatpush.bf16.msra.mxu2 %v3155_v57  ;;  %v3973_v57 = vld [vmem:[%s6176_s1 + $0x1f4] sm:$0xf]  ;;  %v3967_v15 = vld [vmem:[%s6176_s1 + $0x1c4] sm:$0xf]  ;;  %v3084_v29 = vld [vmem:[%s6176_s1 + $0xb8] sm:$0xf0] }
  0x5d   : > { %1262 = vmatpush.bf16.msra.mxu3 %v3219_v3  ;;  %v3247_v3 = vor.u32 %v3973_v57, %v3244_v59  ;;  %v3917_v42 = vld [vmem:[%s6176_s1 + $0x34] sm:$0xf]  ;;  %v3223_v44 = vor.u32 %v3967_v15, %v3220_v36  ;;  %v3212_v40 = vld [vmem:[%s6176_s1 + $0x1b8] sm:$0xf0]  ;;  %v175_v48 = vld [vmem:[%s4480_s11 + $0x20] sm:$0x33] }
  0x5e   : > { %1209 = vmatpush.bf16.msra.mxu0 %v3019_v9  ;;  %v3175_v9 = vor.u32 %v3955_v63, %v3172_v0  ;;  %v3933_v45 = vld [vmem:[%s6176_s1 + $0xb4] sm:$0xf]  ;;  %v3931_v59 = vld [vmem:[%s6176_s1 + $0xa4] sm:$0xf]  ;;  %v3204_v0 = vld [vmem:[%s6176_s1 + $0x1a8] sm:$0xf0] }
  0x5f   : > { %1227 = vmatpush.bf16.msra.mxu1 %v3083_v12  ;;  %v3965_v47 = vld [vmem:[%s6176_s1 + $0x1b4] sm:$0xf]  ;;  %v3963_v63 = vld [vmem:[%s6176_s1 + $0x1a4] sm:$0xf]  ;;  %v3004_v7 = vld [vmem:[%s6176_s1 + $0x18] sm:$0xf0] }
  0x60   : > { %1245 = vmatpush.bf16.msra.mxu2 %v3147_v6  ;;  %808 = vmatmul.bf16.gmra.mxu0 %v4685_v31  ;;  %v3925_v31 = vld [vmem:[%s6176_s1 + $0x74] sm:$0xf]  ;;  %v3108_v6 = vld [vmem:[%s6176_s1 + $0xe8] sm:$0xf0]  ;;  %v3215_v57 = vor.u32 %v3965_v47, %v3212_v40  ;;  %v3911_v19 = vld [vmem:[%s6176_s1 + $0x4] sm:$0xf] }
  0x61   : > { %1263 = vmatpush.bf16.msra.mxu3 %v3211_v14  ;;  %826 = vmatmul.bf16.gmra.mxu1 %v4694_v35  ;;  %v3116_v35 = vld [vmem:[%s6176_s1 + $0xf8] sm:$0xf0]  ;;  %v3055_v38 = vor.u32 %v3925_v31, %v3052_v53  ;;  %v3111_v12 = vor.u32 %v3939_v51, %v3108_v6  ;;  %v3947_v31 = vld [vmem:[%s6176_s1 + $0x124] sm:$0xf]  ;;  %v3140_v53 = vld [vmem:[%s6176_s1 + $0x128] sm:$0xf0] }
  0x62   : > { %1210 = vmatpush.bf16.msra.mxu0 %v3011_v62  ;;  %844 = vmatmul.bf16.gmra.mxu2 %v4710_v43  ;;  %v3119_v52 = vor.u32 %v3941_v54, %v3116_v35  ;;  %v3923_v43 = vld [vmem:[%s6176_s1 + $0x64] sm:$0xf]  ;;  %v3036_v14 = vld [vmem:[%s6176_s1 + $0x58] sm:$0xf0]  ;;  %v3087_v54 = vor.u32 %v3933_v45, %v3084_v29  ;;  %v3012_v35 = vld [vmem:[%s6176_s1 + $0x28] sm:$0xf0] }
  0x63   : > { %1228 = vmatpush.bf16.msra.mxu1 %v3075_v26  ;;  %v3047_v10 = vor.u32 %v3923_v43, %v3044_v4  ;;  %v3039_v62 = vor.u32 %v3921_v2, %v3036_v14  ;;  %v3945_v43 = vld [vmem:[%s6176_s1 + $0x114] sm:$0xf]  ;;  %v3132_v4 = vld [vmem:[%s6176_s1 + $0x118] sm:$0xf0]  ;;  %v3943_v14 = vld [vmem:[%s6176_s1 + $0x104] sm:$0xf] }
  0x64   : > { %1246 = vmatpush.bf16.msra.mxu2 %v3139_v18  ;;  %v3100_v18 = vld [vmem:[%s6176_s1 + $0xd8] sm:$0xf0]  ;;  %v3913_v6 = vld [vmem:[%s6176_s1 + $0x14] sm:$0xf]  ;;  %v2996_v20 = vld [vmem:[%s6176_s1 + $0x8] sm:$0xf0] }
  0x65   : > { %1264 = vmatpush.bf16.msra.mxu3 %v3203_v28  ;;  %v3103_v26 = vor.u32 %v3937_v16, %v3100_v18  ;;  %v3028_v28 = vld [vmem:[%s6176_s1 + $0x48] sm:$0xf0]  ;;  %v3196_v2 = vld [vmem:[%s6176_s1 + $0x198] sm:$0xf0]  ;;  %v3959_v33 = vld [vmem:[%s6176_s1 + $0x184] sm:$0xf] }
  0x66   : > { %1211 = vmatpush.bf16.msra.mxu0 %v3003_v37  ;;  %862 = vmatmul.bf16.gmra.mxu3 %v4742_v58  ;;  %v3953_v58 = vld [vmem:[%s6176_s1 + $0x154] sm:$0xf]  ;;  %v3031_v21 = vor.u32 %v3919_v27, %v3028_v28  ;;  %v3124_v18 = vld [vmem:[%s6176_s1 + $0x108] sm:$0xf0]  ;;  %v3386_v36 = vld [vmem:[%s6176_s1 + $0x470] sm:$0xf] }
  0x67   : > { %1229 = vmatpush.bf16.msra.mxu1 %v3067_v22  ;;  %v3167_v17 = vor.u32 %v3953_v58, %v3164_v11  ;;  %v3949_v37 = vld [vmem:[%s6176_s1 + $0x134] sm:$0xf]  ;;  %v3020_v22 = vld [vmem:[%s6176_s1 + $0x38] sm:$0xf0]  ;;  %v3060_v30 = vld [vmem:[%s6176_s1 + $0x88] sm:$0xf0]  ;;  %v3127_v15 = vor.u32 %v3943_v14, %v3124_v18 }
  0x68   : > { %1247 = vmatpush.bf16.msra.mxu2 %v3131_v34  ;;  %v3159_v34 = vor.u32 %v3951_v24, %v3156_v25  ;;  %v3068_v58 = vld [vmem:[%s6176_s1 + $0x98] sm:$0xf0]  ;;  %v3927_v25 = vld [vmem:[%s6176_s1 + $0x84] sm:$0xf]  ;;  %v4088_v47 = vld [vmem:[%s6176_s1 + $0x564] sm:$0xf0] }
  0x69   : > { %1265 = vmatpush.bf16.msra.mxu3 %v3195_v46  ;;  %v3151_v46 = vor.u32 %v3949_v37, %v3148_v39  ;;  %v3450_v37 = vld [vmem:[%s6176_s1 + $0x4f0] sm:$0xf]  ;;  %v2999_v39 = vor.u32 %v3911_v19, %v2996_v20  ;;  %v3063_v29 = vor.u32 %v3927_v25, %v3060_v30  ;;  %v3426_v14 = vld [vmem:[%s6176_s1 + $0x4c0] sm:$0xf]  ;;  %v4100_v20 = vld [vmem:[%s6176_s1 + $0x5c4] sm:$0xf0] }
  0x6a   : > { %1212 = vmatpush.bf16.msra.mxu0 %v2995_v55  ;;  %v3915_v55 = vld [vmem:[%s6176_s1 + $0x24] sm:$0xf]  ;;  %v3554_v18 = vld [vmem:[%s6176_s1 + $0x5c0] sm:$0xf]  ;;  %vm1454_vm1 = vsmask.f32 5376 }
  0x6b   : > { %1230 = vmatpush.bf16.msra.mxu1 %v3059_v32  ;;  %v3076_v32 = vld [vmem:[%s6176_s1 + $0xa8] sm:$0xf0] }
  0x6c   : > { %1248 = vmatpush.bf16.msra.mxu2 %v3123_v49  ;;  %v3023_v49 = vor.u32 %v3917_v42, %v3020_v22  ;;  %v3079_v51 = vor.u32 %v3931_v59, %v3076_v32  ;;  %v4074_v42 = vld [vmem:[%s6176_s1 + $0x4f4] sm:$0xf0]  ;;  %v3578_v22 = vld [vmem:[%s6176_s1 + $0x5f0] sm:$0xf]  ;;  %v3570_v59 = vld [vmem:[%s6176_s1 + $0x5e0] sm:$0xf] }
  0x6d   : > { %1266 = vmatpush.bf16.msra.mxu3 %v3187_v61  ;;  %v176_v61 = vld [vmem:[%s4480_s11 + $0x28] sm:$0x33] }
  0x6e   : > { %1277 = vmatpush.bf16.msrb.mxu0 %v3055_v38  ;;  %v3143_v38 = vor.u32 %v3947_v31, %v3140_v53  ;;  %v871_v8 = vunpack.c.l.b16 %v176_v61  ;;  %v3378_v53 = vld [vmem:[%s6176_s1 + $0x460] sm:$0xf]  ;;  %v4104_v32 = vld [vmem:[%s6176_s1 + $0x5e4] sm:$0xf0] }
  0x6f   : > { %1295 = vmatpush.bf16.msrb.mxu1 %v3119_v52  ;;  %v870_v52 = vunpack.c.h.b16 %v175_v48 }
  0x70   : > { %1313 = vmatpush.bf16.msrb.mxu2 %v3183_v60  ;;  %1213 = vmatmul.bf16.vlgmr.msra.gmra.mxu0 %v4508_v50  ;;  %v869_v60 = vunpack.c.l.b16 %v175_v48  ;;  %v5154_v27 = vpack.c.b16 %v871_v8, %v871_v8 }
  0x71   : > { %1331 = vmatpush.bf16.msrb.mxu3 %v3247_v3  ;;  %1231 = vmatmul.bf16.vlgmr.msra.gmra.mxu1 %v4515_v56  ;;  %v3015_v3 = vor.u32 %v3915_v55, %v3012_v35  ;;  %v5134_v16 = vpack.c.b16 %v870_v52, %v870_v52  ;;  %v3442_v55 = vld [vmem:[%s6176_s1 + $0x4e0] sm:$0xf]  ;;  %v3370_v52 = vld [vmem:[%s6176_s1 + $0x450] sm:$0xf] }
  0x72   : > { %1278 = vmatpush.bf16.msrb.mxu0 %v3047_v10  ;;  %1249 = vmatmul.bf16.vlgmr.msra.gmra.mxu2 %v4533_v5  ;;  %v3929_v10 = vld [vmem:[%s6176_s1 + $0x94] sm:$0xf]  ;;  %v5123_v11 = vpack.c.b16 %v869_v60, %v869_v60  ;;  %v3498_v60 = vld [vmem:[%s6176_s1 + $0x550] sm:$0xf] }
  0x73   : > { %1296 = vmatpush.bf16.msrb.mxu1 %v3111_v12  ;;  %v3135_v12 = vor.u32 %v3945_v43, %v3132_v4  ;;  %v3071_v24 = vor.u32 %v3929_v10, %v3068_v58  ;;  %v3434_v4 = vld [vmem:[%s6176_s1 + $0x4d0] sm:$0xf]  ;;  %v4084_v10 = vld [vmem:[%s6176_s1 + $0x544] sm:$0xf0] }
  0x74   : > { %1314 = vmatpush.bf16.msrb.mxu2 %v3175_v9  ;;  %v3207_v9 = vor.u32 %v3963_v63, %v3204_v0  ;;  %v3571_v0 = vor.u32 %v4104_v32, %v3570_v59  ;;  %v4039_v59 = vld [vmem:[%s4480_s11 + $0x24] sm:$0xf]  ;;  %v3316_v32 = vld [vmem:[%s4480_s11 + $0x30] sm:$0x10] }
  0x75   : > { %1332 = vmatpush.bf16.msrb.mxu3 %v3239_v13  ;;  %v3961_v13 = vld [vmem:[%s6176_s1 + $0x194] sm:$0xf] }
  0x76   : > { %1279 = vmatpush.bf16.msrb.mxu0 %v3039_v62  ;;  %1267 = vmatmul.bf16.vlgmr.msra.gmra.mxu3 %v4559_v23  ;;  %v872_v62 = vunpack.c.h.b16 %v176_v61  ;;  %v3199_v28 = vor.u32 %v3961_v13, %v3196_v2  ;;  %v4086_v61 = vld [vmem:[%s6176_s1 + $0x554] sm:$0xf0]  ;;  %v4052_v13 = vld [vmem:[%s6176_s1 + $0x444] sm:$0xf0] }
  0x77   : > { %1297 = vmatpush.bf16.msrb.mxu1 %v3103_v26  ;;  %v3514_v26 = vld [vmem:[%s6176_s1 + $0x570] sm:$0xf]  ;;  %v3499_v43 = vor.u32 %v4086_v61, %v3498_v60  ;;  %v4078_v61 = vld [vmem:[%s6176_s1 + $0x514] sm:$0xf0] }
  0x78   : > { %1315 = vmatpush.bf16.msrb.mxu2 %v3167_v17  ;;  %v3007_v17 = vor.u32 %v3913_v6, %v3004_v7  ;;  %v5185_v45 = vpack.c.b16 %v872_v62, %v872_v62  ;;  %v3562_v6 = vld [vmem:[%s6176_s1 + $0x5d0] sm:$0xf]  ;;  %v4102_v7 = vld [vmem:[%s6176_s1 + $0x5d4] sm:$0xf0] }
  0x79   : > { %1333 = vmatpush.bf16.msrb.mxu3 %v3231_v1  ;;  %v4090_v1 = vld [vmem:[%s6176_s1 + $0x574] sm:$0xf0]  ;;  %v3563_v2 = vor.u32 %v4102_v7, %v3562_v6  ;;  %v3482_v62 = vld [vmem:[%s6176_s1 + $0x530] sm:$0xf] }
  0x7a   : > { %1280 = vmatpush.bf16.msrb.mxu0 %v3031_v21  ;;  %v4058_v21 = vld [vmem:[%s6176_s1 + $0x474] sm:$0xf0]  ;;  %v3530_v6 = vld [vmem:[%s6176_s1 + $0x590] sm:$0xf] }
  0x7b   : > { %1298 = vmatpush.bf16.msrb.mxu1 %v3095_v41  ;;  %v3515_v41 = vor.u32 %v4090_v1, %v3514_v26  ;;  %v3387_v48 = vor.u32 %v4058_v21, %v3386_v36  ;;  %v3354_v26 = vld [vmem:[%s6176_s1 + $0x430] sm:$0xf]  ;;  %v4050_v1 = vld [vmem:[%s6176_s1 + $0x434] sm:$0xf0]  ;;  %v3555_v36 = vor.u32 %v4100_v20, %v3554_v18  ;;  %v5385_v20 = vld [vmem:[%s6176_s1 + $0x480] sm:$0xf] }
  0x7c   : > { %1316 = vmatpush.bf16.msrb.mxu2 %v3159_v34  ;;  %v3188_v34 = vld [vmem:[%s6176_s1 + $0x188] sm:$0xf0]  ;;  %v3546_v21 = vld [vmem:[%s6176_s1 + $0x5b0] sm:$0xf]  ;;  %v4094_v7 = vld [vmem:[%s6176_s1 + $0x594] sm:$0xf0] }
  0x7d   : > { %1334 = vmatpush.bf16.msrb.mxu3 %v3223_v44  ;;  %v4106_v44 = vld [vmem:[%s6176_s1 + $0x5f4] sm:$0xf0]  ;;  %v3191_v40 = vor.u32 %v3959_v33, %v3188_v34  ;;  %v1349_v34 = vld [vmem:[%s4480_s11] sm:$0xcc] }
  0x7e   : > { %1281 = vmatpush.bf16.msrb.mxu0 %v3023_v49  ;;  %v3451_v49 = vor.u32 %v4074_v42, %v3450_v37  ;;  %v3579_v31 = vor.u32 %v4106_v44, %v3578_v22  ;;  %v4066_v33 = vld [vmem:[%s6176_s1 + $0x4b4] sm:$0xf0]  ;;  %v3314_v37 = vld [vmem:[%s4480_s11 + $0x20] sm:$0xf] }
  0x7f   : > { %1299 = vmatpush.bf16.msrb.mxu1 %v3087_v54  ;;  %v4056_v54 = vld [vmem:[%s6176_s1 + $0x464] sm:$0xf0]  ;;  %v4098_v42 = vld [vmem:[%s6176_s1 + $0x5b4] sm:$0xf0]  ;;  %v3474_v22 = vld [vmem:[%s6176_s1 + $0x520] sm:$0xf] }
  0x80   : > { %1317 = vmatpush.bf16.msrb.mxu2 %v3151_v46  ;;  %1218 = vmatmul.bf16.gmra.mxu0 %v5123_v11  ;;  %v3506_v46 = vld [vmem:[%s6176_s1 + $0x560] sm:$0xf] }
  0x81   : > { %1335 = vmatpush.bf16.msrb.mxu3 %v3215_v57  ;;  %1236 = vmatmul.bf16.gmra.mxu1 %v5134_v16  ;;  %v3507_v35 = vor.u32 %v4088_v47, %v3506_v46  ;;  %v4072_v57 = vld [vmem:[%s6176_s1 + $0x4e4] sm:$0xf0]  ;;  %v3346_v44 = vld [vmem:[%s6176_s1 + $0x420] sm:$0xf]  ;;  %v1430_v47 = vunpack.c.l.b16 %v1349_v34 }
  0x82   : > { %1282 = vmatpush.bf16.msrb.mxu0 %v3015_v3  ;;  %1254 = vmatmul.bf16.gmra.mxu2 %v5154_v27  ;;  %v3443_v63 = vor.u32 %v4072_v57, %v3442_v55  ;;  %v4054_v3 = vld [vmem:[%s6176_s1 + $0x454] sm:$0xf0]  ;;  %v3410_v46 = vld [vmem:[%s6176_s1 + $0x4a0] sm:$0xf]  ;;  %v3466_v57 = vld [vmem:[%s6176_s1 + $0x510] sm:$0xf] }
  0x83   : > { %1300 = vmatpush.bf16.msrb.mxu1 %v3079_v51  ;;  %v4070_v51 = vld [vmem:[%s6176_s1 + $0x4d4] sm:$0xf0]  ;;  %v3371_v8 = vor.u32 %v4054_v3, %v3370_v52 }
  0x84   : > { %1318 = vmatpush.bf16.msrb.mxu2 %v3143_v38  ;;  %v3379_v38 = vor.u32 %v4056_v54, %v3378_v53  ;;  %v3435_v58 = vor.u32 %v4070_v51, %v3434_v4  ;;  %v3538_v53 = vld [vmem:[%s6176_s1 + $0x5a0] sm:$0xf]  ;;  %v4096_v54 = vld [vmem:[%s6176_s1 + $0x5a4] sm:$0xf0]  ;;  %v4062_v52 = vld [vmem:[%s6176_s1 + $0x494] sm:$0xf0] }
  0x85   : > { %1336 = vmatpush.bf16.msrb.mxu3 %v3207_v9  ;;  %v3490_v9 = vld [vmem:[%s6176_s1 + $0x540] sm:$0xf]  ;;  %v5350_v4 = vld [vmem:[%s4480_s11 + $0x8] sm:$0xcc] }
  0x86   : > { %1283 = vmatpush.bf16.msrb.mxu0 %v3007_v17  ;;  %1272 = vmatmul.bf16.gmra.mxu3 %v5185_v45  ;;  %v4068_v17 = vld [vmem:[%s6176_s1 + $0x4c4] sm:$0xf0]  ;;  %v3491_v19 = vor.u32 %v4084_v10, %v3490_v9  ;;  %v5359_v9 = vor.u32 %v4039_v59, %v3316_v32  ;;  %v3539_v10 = vor.u32 %v4096_v54, %v3538_v53  ;;  %v3388_v53 = vld [vmem:[%s6176_s1 + $0x478] sm:$0xf0]  ;;  %v4073_v32 = vld [vmem:[%s6176_s1 + $0x4f4] sm:$0xf] }
  0x87   : > { %1301 = vmatpush.bf16.msrb.mxu1 %v3071_v24  ;;  %v4082_v24 = vld [vmem:[%s6176_s1 + $0x534] sm:$0xf0]  ;;  %v3427_v30 = vor.u32 %v4068_v17, %v3426_v14  ;;  %v3467_v17 = vor.u32 %v4078_v61, %v3466_v57 }
  0x88   : > { %1319 = vmatpush.bf16.msrb.mxu2 %v3135_v12  ;;  %v3362_v12 = vld [vmem:[%s6176_s1 + $0x440] sm:$0xf]  ;;  %v5380_v14 = vld [vmem:[%s4480_s11 + $0x18] sm:$0xff]  ;;  %v1484_v59 = vshll.u32 %v5359_v9, 16 }
  0x89   : > { %1337 = vmatpush.bf16.msrb.mxu3 %v3199_v28  ;;  %v3363_v25 = vor.u32 %v4052_v13, %v3362_v12  ;;  %v3418_v28 = vld [vmem:[%s6176_s1 + $0x4b0] sm:$0xf]  ;;  %v4076_v12 = vld [vmem:[%s6176_s1 + $0x504] sm:$0xf0]  ;;  %v5372_v13 = vld [vmem:[%s6176_s1 + $0x400] sm:$0xf] }
  0x8a   : > { %1284 = vmatpush.bf16.msrb.mxu0 %v2999_v39  ;;  %v4041_v39 = vld [vmem:[%s4480_s11 + $0x2c] sm:$0x10] }
  0x8b   : > { %1302 = vmatpush.bf16.msrb.mxu1 %v3063_v29  ;;  %v4048_v29 = vld [vmem:[%s6176_s1 + $0x424] sm:$0xf0]  ;;  %v5320_v55 = vor.u32 %v4041_v39, %v3314_v37  ;;  %v1481_v39 = vshrl.u32 %v5359_v9, 16 }
  0x8c   : > { %1320 = vmatpush.bf16.msrb.mxu2 %v3127_v15  ;;  %v5282_v15 = vld [vmem:[%s4480_s11 + $0x10] sm:$0xff] }
  0x8d   : > { %1338 = vmatpush.bf16.msrb.mxu3 %v3191_v40  ;;  %v1434_v40 = vunpack.c.l.b16 %v5282_v15 }
  0x8e   : > { %1851 = vmatpush.bf16.msra.mxu0 %v3387_v48  ;;  %v1431_v48 = vunpack.c.h.b16 %v1349_v34 }
  0x8f   : > { %1869 = vmatpush.bf16.msra.mxu1 %v3451_v49  ;;  %v3419_v49 = vor.u32 %v4066_v33, %v3418_v28  ;;  %v1446_v3 = vpack.c.b16 %v1434_v40, %v1430_v47  ;;  %v1467_v33 = vshll.u32 %v5320_v55, 16  ;;  %v3324_v47 = vld [vmem:[%s4480_s11 + $0x38] sm:$0x10] }
  0x90   : > { %1887 = vmatpush.bf16.msra.mxu2 %v3515_v41  ;;  %1285 = vmatmul.bf16.vlgmr.msrb.gmra.mxu0 %v4508_v50  ;;  %v3483_v50 = vor.u32 %v4082_v24, %v3482_v62  ;;  %v3355_v41 = vor.u32 %v4050_v1, %v3354_v26  ;;  %v5390_v62 = vld [vmem:[%s6176_s1 + $0x484] sm:$0xf0]  ;;  %v1432_v26 = vunpack.c.l.b16 %v5350_v4  ;;  %v5398_v1 = vld [vmem:[%s6176_s1 + $0x580] sm:$0xf] }
  0x91   : > { %1905 = vmatpush.bf16.msra.mxu3 %v3579_v31  ;;  %1303 = vmatmul.bf16.vlgmr.msrb.gmra.mxu1 %v4515_v56  ;;  %v4080_v56 = vld [vmem:[%s6176_s1 + $0x524] sm:$0xf0]  ;;  %v1456_v28 = vshrl.u32 %v1446_v3, 16  ;;  %v3395_v54 = vor.u32 %v5390_v62, %v5385_v20 }
  0x92   : > { %1852 = vmatpush.bf16.msra.mxu0 %v3379_v38  ;;  %1321 = vmatmul.bf16.vlgmr.msrb.gmra.mxu2 %v4533_v5  ;;  %v1435_v5 = vunpack.c.h.b16 %v5282_v15  ;;  %v4064_v31 = vld [vmem:[%s6176_s1 + $0x4a4] sm:$0xf0]  ;;  %v3475_v60 = vor.u32 %v4080_v56, %v3474_v22  ;;  %v3338_v38 = vld [vmem:[%s6176_s1 + $0x410] sm:$0xf]  ;;  %v4040_v22 = vld [vmem:[%s4480_s11 + $0x2c] sm:$0xf] }
  0x93   : > { %1870 = vmatpush.bf16.msra.mxu1 %v3443_v63  ;;  %v4046_v63 = vld [vmem:[%s6176_s1 + $0x414] sm:$0xf0]  ;;  %v3411_v51 = vor.u32 %v4064_v31, %v3410_v46  ;;  %v3322_v24 = vld [vmem:[%s4480_s11 + $0x28] sm:$0xf]  ;;  %v4089_v56 = vld [vmem:[%s6176_s1 + $0x574] sm:$0xf] }
  0x94   : > { %1888 = vmatpush.bf16.msra.mxu2 %v3507_v35  ;;  %v3547_v35 = vor.u32 %v4098_v42, %v3546_v21  ;;  %v3339_v18 = vor.u32 %v4046_v63, %v3338_v38  ;;  %v4057_v31 = vld [vmem:[%s6176_s1 + $0x474] sm:$0xf]  ;;  %v5437_v57 = vrot.slane %v1456_v28, 2  ;;  %v1469_v38 = vrot.slane %v1467_v33, 3  ;;  %v3500_v33 = vld [vmem:[%s6176_s1 + $0x558] sm:$0xf0] }
  0x95   : > { %1906 = vmatpush.bf16.msra.mxu3 %v3571_v0  ;;  %v3347_v0 = vor.u32 %v4048_v29, %v3346_v44  ;;  %v3516_v44 = vld [vmem:[%s6176_s1 + $0x578] sm:$0xf0]  ;;  %v4131_v15 = vld [vmem:[%s6176_s1 + $0x6c4] sm:$0xf] }
  0x96   : > { %1853 = vmatpush.bf16.msra.mxu0 %v3371_v8  ;;  %1339 = vmatmul.bf16.vlgmr.msrb.gmra.mxu3 %v4559_v23  ;;  %v3402_v23 = vld [vmem:[%s6176_s1 + $0x490] sm:$0xf]  ;;  %v1464_v8 = vshrl.u32 %v5320_v55, 16 }
  0x97   : > { %1871 = vmatpush.bf16.msra.mxu1 %v3435_v58  ;;  %v5364_v58 = vld [vmem:[%s6176_s1 + $0x500] sm:$0xf] }
  0x98   : > { %1889 = vmatpush.bf16.msra.mxu2 %v3499_v43  ;;  %v5347_v43 = vpack.c.b16 %v1435_v5, %v1431_v48  ;;  %v5407_v21 = vrot.slane %v1464_v8, 2  ;;  %v3459_v29 = vor.u32 %v4076_v12, %v5364_v58  ;;  %v1433_v48 = vunpack.c.h.b16 %v5350_v4  ;;  %v4055_v58 = vld [vmem:[%s6176_s1 + $0x464] sm:$0xf]  ;;  %v3380_v12 = vld [vmem:[%s6176_s1 + $0x468] sm:$0xf0] }
  0x99   : > { %1907 = vmatpush.bf16.msra.mxu3 %v3563_v2  ;;  %v5377_v2 = vld [vmem:[%s6176_s1 + $0x404] sm:$0xf0]  ;;  %v3391_v4 = vor.u32 %v4057_v31, %v3388_v53  ;;  %v3383_v28 = vor.u32 %v4055_v58, %v3380_v12  ;;  %v4101_v31 = vld [vmem:[%s6176_s1 + $0x5d4] sm:$0xf]  ;;  %v3564_v53 = vld [vmem:[%s6176_s1 + $0x5d8] sm:$0xf0] }
  0x9a   : > { %1854 = vmatpush.bf16.msra.mxu0 %v3363_v25  ;;  %v4042_v25 = vld [vmem:[%s4480_s11 + $0x34] sm:$0x10]  ;;  %v1473_v34 = vshrl.u32 %v5347_v43, 16  ;;  %v1476_v37 = vshll.u32 %v5347_v43, 16  ;;  %v3331_v46 = vor.u32 %v5377_v2, %v5372_v13  ;;  %v5461_v43 = vor.u32 %v4040_v22, %v3324_v47 }
  0x9b   : > { %1872 = vmatpush.bf16.msra.mxu1 %v3427_v30  ;;  %v1459_v30 = vshll.u32 %v1446_v3, 16  ;;  %v5412_v42 = vor.u32 %v4042_v25, %v3322_v24  ;;  %v1483_v13 = vrot.slane %v1481_v39, 2  ;;  %v1486_v2 = vrot.slane %v1484_v59, 3  ;;  %v3572_v25 = vld [vmem:[%s6176_s1 + $0x5e8] sm:$0xf0] }
  0x9c   : > { %1890 = vmatpush.bf16.msra.mxu2 %v3491_v19  ;;  %v3403_v19 = vor.u32 %v4062_v52, %v3402_v23  ;;  %v4105_v23 = vld [vmem:[%s6176_s1 + $0x5f4] sm:$0xf]  ;;  %v3580_v52 = vld [vmem:[%s6176_s1 + $0x5f8] sm:$0xf0] }
  0x9d   : > { %1908 = vmatpush.bf16.msra.mxu3 %v3555_v36  ;;  %v5405_v36 = vld [vmem:[%s6176_s1 + $0x584] sm:$0xf0]  ;;  %v5447_v61 = vrot.slane %v1459_v30, 3  ;;  %v1498_v3 = vshrl.u32 %v5412_v42, 16  ;;  %v4085_v30 = vld [vmem:[%s6176_s1 + $0x554] sm:$0xf] }
  0x9e   : > { %1855 = vmatpush.bf16.msra.mxu0 %v3355_v41  ;;  %v3531_v41 = vor.u32 %v4094_v7, %v3530_v6  ;;  %v3508_v6 = vld [vmem:[%s6176_s1 + $0x568] sm:$0xf0]  ;;  %v5469_v7 = vrot.slane %v1476_v37, 3  ;;  %v4053_v39 = vld [vmem:[%s6176_s1 + $0x454] sm:$0xf] }
  0x9f   : > { %1873 = vmatpush.bf16.msra.mxu1 %v3419_v49  ;;  %v1437_v49 = vunpack.c.h.b16 %v5380_v14 }
  0xa0   : > { %1891 = vmatpush.bf16.msra.mxu2 %v3483_v50  ;;  %v1436_v50 = vunpack.c.l.b16 %v5380_v14  ;;  %1290 = vmatmul.bf16.gmra.mxu0 %v5123_v11  ;;  %v5458_v11 = vrot.slane %v1473_v34, 2 }
  0xa1   : > { %1909 = vmatpush.bf16.msra.mxu3 %v3547_v35  ;;  %v3523_v35 = vor.u32 %v5405_v36, %v5398_v1  ;;  %1308 = vmatmul.bf16.gmra.mxu1 %v5134_v16  ;;  %v1501_v16 = vshll.u32 %v5412_v42, 16  ;;  %v1449_v8 = vpack.c.b16 %v1437_v49, %v1433_v48  ;;  %v1515_v1 = vshrl.u32 %v5461_v43, 16 }
  0xa2   : > { %1856 = vmatpush.bf16.msra.mxu0 %v3347_v0  ;;  %v1448_v63 = vpack.c.b16 %v1436_v50, %v1432_v26  ;;  %v3519_v0 = vor.u32 %v4089_v56, %v3516_v44  ;;  %1326 = vmatmul.bf16.gmra.mxu2 %v5154_v27  ;;  %v4103_v27 = vld [vmem:[%s6176_s1 + $0x5e4] sm:$0xf]  ;;  %v1500_v26 = vrot.slane %v1498_v3, 2  ;;  %v1518_v56 = vshll.u32 %v5461_v43, 16 }
  0xa3   : > { %1874 = vmatpush.bf16.msra.mxu1 %v3411_v51  ;;  %v4087_v51 = vld [vmem:[%s6176_s1 + $0x564] sm:$0xf]  ;;  %v1503_v34 = vrot.slane %v1501_v16, 3  ;;  %v1507_v36 = vshrl.u32 %v1449_v8, 16  ;;  %v1510_v22 = vshll.u32 %v1449_v8, 16  ;;  %v3575_v44 = vor.u32 %v4103_v27, %v3572_v25 }
  0xa4   : > { %1892 = vmatpush.bf16.msra.mxu2 %v3475_v60  ;;  %v3452_v60 = vld [vmem:[%s6176_s1 + $0x4f8] sm:$0xf0]  ;;  %v1490_v20 = vshrl.u32 %v1448_v63, 16  ;;  %v1493_v62 = vshll.u32 %v1448_v63, 16  ;;  %v3511_v24 = vor.u32 %v4087_v51, %v3508_v6  ;;  %v3503_v48 = vor.u32 %v4085_v30, %v3500_v33  ;;  %v3492_v63 = vld [vmem:[%s6176_s1 + $0x548] sm:$0xf0] }
  0xa5   : > { %1910 = vmatpush.bf16.msra.mxu3 %v3539_v10  ;;  %v3455_v10 = vor.u32 %v4073_v32, %v3452_v60  ;;  %v1479_v59 = vor.u32 %v5469_v7, %v5458_v11  ;;  %v4083_v60 = vld [vmem:[%s6176_s1 + $0x544] sm:$0xf]  ;;  %v1520_v11 = vrot.slane %v1518_v56, 3  ;;  %v3567_v3 = vor.u32 %v4101_v31, %v3564_v53  ;;  %v3428_v51 = vld [vmem:[%s6176_s1 + $0x4c8] sm:$0xf0] }
  0xa6   : > { %1857 = vmatpush.bf16.msra.mxu0 %v3339_v18  ;;  %v4071_v18 = vld [vmem:[%s6176_s1 + $0x4e4] sm:$0xf]  ;;  %1344 = vmatmul.bf16.gmra.mxu3 %v5185_v45  ;;  %v4069_v45 = vld [vmem:[%s6176_s1 + $0x4d4] sm:$0xf]  ;;  %v1495_v47 = vrot.slane %v1493_v62, 3  ;;  %v5547_v7 = vor.u32 %v1503_v34, %v1500_v26  ;;  %v3495_v16 = vor.u32 %v4083_v60, %v3492_v63 }
  0xa7   : > { %1875 = vmatpush.bf16.msra.mxu1 %v3403_v19  ;;  %v3444_v19 = vld [vmem:[%s6176_s1 + $0x4e8] sm:$0xf0]  ;;  %v4099_v8 = vld [vmem:[%s6176_s1 + $0x5c4] sm:$0xf]  ;;  %v4049_v62 = vld [vmem:[%s6176_s1 + $0x434] sm:$0xf] }
  0xa8   : > { %1893 = vmatpush.bf16.msra.mxu2 %v3467_v17  ;;  %v3583_v17 = vor.u32 %v4105_v23, %v3580_v52  ;;  %v3447_v37 = vor.u32 %v4071_v18, %v3444_v19  ;;  %v1509_v23 = vrot.slane %v1507_v36, 2  ;;  %v1512_v52 = vrot.slane %v1510_v22, 3  ;;  %v3420_v30 = vld [vmem:[%s6176_s1 + $0x4b8] sm:$0xf0]  ;;  %v4097_v36 = vld [vmem:[%s6176_s1 + $0x5b4] sm:$0xf] }
  0xa9   : > { %1911 = vmatpush.bf16.msra.mxu3 %v3531_v41  ;;  %v3372_v41 = vld [vmem:[%s6176_s1 + $0x458] sm:$0xf0]  ;;  %v3476_v22 = vld [vmem:[%s6176_s1 + $0x528] sm:$0xf0]  ;;  %v4095_v53 = vld [vmem:[%s6176_s1 + $0x5a4] sm:$0xf] }
  0xaa   : > { %1858 = vmatpush.bf16.msra.mxu0 %v3331_v46  ;;  %v1492_v46 = vrot.slane %v1490_v20, 2  ;;  %v3375_v32 = vor.u32 %v4053_v39, %v3372_v41  ;;  %v1513_v25 = vor.u32 %v1512_v52, %v1509_v23  ;;  %v4079_v41 = vld [vmem:[%s6176_s1 + $0x524] sm:$0xf]  ;;  %v4077_v60 = vld [vmem:[%s6176_s1 + $0x514] sm:$0xf] }
  0xab   : > { %1876 = vmatpush.bf16.msra.mxu1 %v3395_v54  ;;  %v1462_v54 = vor.u32 %v5447_v61, %v5437_v57  ;;  %v1517_v57 = vrot.slane %v1515_v1, 2  ;;  %v4051_v61 = vld [vmem:[%s6176_s1 + $0x444] sm:$0xf]  ;;  %v3479_v31 = vor.u32 %v4079_v41, %v3476_v22  ;;  %v3468_v63 = vld [vmem:[%s6176_s1 + $0x518] sm:$0xf0] }
  0xac   : > { %1894 = vmatpush.bf16.msra.mxu2 %v3459_v29  ;;  %v3436_v29 = vld [vmem:[%s6176_s1 + $0x4d8] sm:$0xf0]  ;;  %v1496_v6 = vor.u32 %v1495_v47, %v1492_v46  ;;  %v4063_v47 = vld [vmem:[%s6176_s1 + $0x4a4] sm:$0xf]  ;;  %v4122_v22 = vld [vmem:[%s6176_s1 + $0x674] sm:$0xf0] }
  0xad   : > { %1912 = vmatpush.bf16.msra.mxu3 %v3523_v35  ;;  %v5523_v35 = vor.u32 %v1469_v38, %v5407_v21  ;;  %v3439_v21 = vor.u32 %v4069_v45, %v3436_v29  ;;  %v3364_v38 = vld [vmem:[%s6176_s1 + $0x448] sm:$0xf0]  ;;  %v732_v58 = vpop.f32.mrf.mxu0  ;;  %v5575_v26 = vor.u32 %v1520_v11, %v1517_v57 }
  0xae   : > { %1923 = vmatpush.bf16.msrb.mxu0 %v3391_v4  ;;  %v4067_v4 = vld [vmem:[%s6176_s1 + $0x4c4] sm:$0xf]  ;;  %v750_v18 = vpop.f32.mrf.mxu1  ;;  %v5586_v33 = vsel %vm1454_vm1, %v1496_v6, %v5547_v7  ;;  %v3348_v45 = vld [vmem:[%s6176_s1 + $0x428] sm:$0xf0]  ;;  %v3471_v6 = vor.u32 %v4077_v60, %v3468_v63  ;;  %v3826_v60 = vld [vmem:[%s6176_s1 + $0x760] sm:$0xf] }
  0xaf   : > { %1941 = vmatpush.bf16.msrb.mxu1 %v3455_v10  ;;  %v3556_v10 = vld [vmem:[%s6176_s1 + $0x5c8] sm:$0xf0]  ;;  %v5557_v12 = vsel %vm1454_vm1, %v1462_v54, %v5523_v35  ;;  %v3431_v20 = vor.u32 %v4067_v4, %v3428_v51  ;;  %v751_v27 = vadd.f32 %v750_v18, %v732_v58  ;;  %v5610_v29 = vsel %vm1454_vm1, %v1513_v25, %v5575_v26  ;;  %v4061_v4 = vld [vmem:[%s6176_s1 + $0x494] sm:$0xf]  ;;  %v3404_v51 = vld [vmem:[%s6176_s1 + $0x498] sm:$0xf0] }
  0xb0   : > { %1959 = vmatpush.bf16.msrb.mxu2 %v3519_v0  ;;  %v5533_v0 = vor.u32 %v1486_v2, %v1483_v13  ;;  %v3367_v13 = vor.u32 %v4051_v61, %v3364_v38  ;;  %v4081_v2 = vld [vmem:[%s6176_s1 + $0x534] sm:$0xf]  ;;  %v3559_v1 = vor.u32 %v4099_v8, %v3556_v10  ;;  %1859 = vmatmul.bf16.vlgmr.msra.gmra.mxu0 %v5557_v12  ;;  %v3540_v54 = vld [vmem:[%s6176_s1 + $0x5a8] sm:$0xf0]  ;;  %v3340_v38 = vld [vmem:[%s6176_s1 + $0x418] sm:$0xf0] }
  0xb1   : > { %1977 = vmatpush.bf16.msrb.mxu3 %v3583_v17  ;;  %v3484_v17 = vld [vmem:[%s6176_s1 + $0x538] sm:$0xf0]  ;;  %v4045_v61 = vld [vmem:[%s6176_s1 + $0x414] sm:$0xf]  ;;  %v3407_v18 = vor.u32 %v4061_v4, %v3404_v51  ;;  %v3396_v25 = vld [vmem:[%s6176_s1 + $0x488] sm:$0xf0] }
  0xb2   : > { %1924 = vmatpush.bf16.msrb.mxu0 %v3383_v28  ;;  %v5567_v19 = vsel %vm1454_vm1, %v1479_v59, %v5533_v0  ;;  %v4065_v28 = vld [vmem:[%s6176_s1 + $0x4b4] sm:$0xf]  ;;  %v3487_v34 = vor.u32 %v4081_v2, %v3484_v17  ;;  %1895 = vmatmul.bf16.vlgmr.msra.gmra.mxu2 %v5586_v33  ;;  %v3532_v8 = vld [vmem:[%s6176_s1 + $0x598] sm:$0xf0]  ;;  %v3343_v58 = vor.u32 %v4045_v61, %v3340_v38  ;;  %v3460_v2 = vld [vmem:[%s6176_s1 + $0x508] sm:$0xf0] }
  0xb3   : > { %1942 = vmatpush.bf16.msrb.mxu1 %v3447_v37  ;;  %v3548_v37 = vld [vmem:[%s6176_s1 + $0x5b8] sm:$0xf0]  ;;  %v3423_v56 = vor.u32 %v4065_v28, %v3420_v30  ;;  %v4154_v28 = vld [vmem:[%s6176_s1 + $0x774] sm:$0xf0]  ;;  %v4152_v63 = vld [vmem:[%s6176_s1 + $0x764] sm:$0xf0] }
  0xb4   : > { %1960 = vmatpush.bf16.msrb.mxu2 %v3511_v24  ;;  %v3356_v24 = vld [vmem:[%s6176_s1 + $0x438] sm:$0xf0]  ;;  %1877 = vmatmul.bf16.vlgmr.msra.gmra.mxu1 %v5567_v19  ;;  %v3551_v46 = vor.u32 %v4097_v36, %v3548_v37  ;;  %v3524_v36 = vld [vmem:[%s6176_s1 + $0x588] sm:$0xf0]  ;;  %v3706_v37 = vld [vmem:[%s6176_s1 + $0x670] sm:$0xf]  ;;  %v3827_v51 = vor.u32 %v4152_v63, %v3826_v60 }
  0xb5   : > { %1978 = vmatpush.bf16.msrb.mxu3 %v3575_v44  ;;  %v3359_v39 = vor.u32 %v4049_v62, %v3356_v24  ;;  %v4047_v44 = vld [vmem:[%s6176_s1 + $0x424] sm:$0xf]  ;;  %v734_v59 = vpop.f32.mrf.mxu0  ;;  %v768_v23 = vpop.f32.mrf.mxu2  ;;  %v3332_v62 = vld [vmem:[%s6176_s1 + $0x408] sm:$0xf0]  ;;  %v4146_v60 = vld [vmem:[%s6176_s1 + $0x734] sm:$0xf0] }
  0xb6   : > { %1925 = vmatpush.bf16.msrb.mxu0 %v3375_v32  ;;  %v3351_v32 = vor.u32 %v4047_v44, %v3348_v45  ;;  %1913 = vmatmul.bf16.vlgmr.msra.gmra.mxu3 %v5610_v29  ;;  %v752_v57 = vpop.f32.mrf.mxu1  ;;  %v769_v52 = vadd.f32 %v768_v23, %v751_v27  ;;  %v4059_v24 = vld [vmem:[%s6176_s1 + $0x484] sm:$0xf]  ;;  %v4138_v44 = vld [vmem:[%s6176_s1 + $0x6f4] sm:$0xf0]  ;;  %v3707_v23 = vor.u32 %v4122_v22, %v3706_v37  ;;  %v3810_v37 = vld [vmem:[%s6176_s1 + $0x740] sm:$0xf] }
  0xb7   : > { %1943 = vmatpush.bf16.msrb.mxu1 %v3439_v21  ;;  %v753_v11 = vadd.f32 %v752_v57, %v734_v59 }
  0xb8   : > { %1961 = vmatpush.bf16.msrb.mxu2 %v3503_v48  ;;  %v3412_v48 = vld [vmem:[%s6176_s1 + $0x4a8] sm:$0xf0] }
  0xb9   : > { %1979 = vmatpush.bf16.msrb.mxu3 %v3567_v3  ;;  %v3415_v21 = vor.u32 %v4063_v47, %v3412_v48  ;;  %v3543_v3 = vor.u32 %v4095_v53, %v3540_v54  ;;  %v786_v10 = vpop.f32.mrf.mxu3  ;;  %v3399_v47 = vor.u32 %v4059_v24, %v3396_v25  ;;  %v4170_v53 = vld [vmem:[%s6176_s1 + $0x7f4] sm:$0xf0]  ;;  %v3754_v24 = vld [vmem:[%s6176_s1 + $0x6d0] sm:$0xf] }
  0xba   : > { %1926 = vmatpush.bf16.msrb.mxu0 %v3367_v13  ;;  %v4075_v13 = vld [vmem:[%s6176_s1 + $0x504] sm:$0xf]  ;;  %v5655_v17 = vadd.f32 %v786_v10, %v769_v52  ;;  %v4120_v52 = vld [vmem:[%s6176_s1 + $0x664] sm:$0xf0]  ;;  %v4150_v10 = vld [vmem:[%s6176_s1 + $0x754] sm:$0xf0] }
  0xbb   : > { %1944 = vmatpush.bf16.msrb.mxu1 %v3431_v20  ;;  %v4043_v20 = vld [vmem:[%s6176_s1 + $0x404] sm:$0xf]  ;;  %v3463_v30 = vor.u32 %v4075_v13, %v3460_v2  ;;  %v3690_v2 = vld [vmem:[%s6176_s1 + $0x650] sm:$0xf] }
  0xbc   : > { %1962 = vmatpush.bf16.msrb.mxu2 %v3495_v16  ;;  %v4093_v16 = vld [vmem:[%s6176_s1 + $0x594] sm:$0xf]  ;;  %v3335_v41 = vor.u32 %v4043_v20, %v3332_v62  ;;  %v4118_v62 = vld [vmem:[%s6176_s1 + $0x654] sm:$0xf0] }
  0xbd   : > { %1980 = vmatpush.bf16.msrb.mxu3 %v3559_v1  ;;  %v3535_v27 = vor.u32 %v4093_v16, %v3532_v8  ;;  %v3834_v1 = vld [vmem:[%s6176_s1 + $0x770] sm:$0xf]  ;;  %v770_v45 = vpop.f32.mrf.mxu2  ;;  %v4168_v16 = vld [vmem:[%s6176_s1 + $0x7e4] sm:$0xf0] }
  0xbe   : > { %1927 = vmatpush.bf16.msrb.mxu0 %v3359_v39  ;;  %v737_v39 = vpop.f32.mrf.mxu0  ;;  %v3835_v48 = vor.u32 %v4154_v28, %v3834_v1  ;;  %v771_v54 = vadd.f32 %v770_v45, %v753_v11  ;;  %v3762_v11 = vld [vmem:[%s6176_s1 + $0x6e0] sm:$0xf]  ;;  %v3818_v8 = vld [vmem:[%s6176_s1 + $0x750] sm:$0xf] }
  0xbf   : > { %1945 = vmatpush.bf16.msrb.mxu1 %v3423_v56  ;;  %v3770_v56 = vld [vmem:[%s6176_s1 + $0x6f0] sm:$0xf]  ;;  %v3819_v28 = vor.u32 %v4150_v10, %v3818_v8  ;;  %v3746_v45 = vld [vmem:[%s6176_s1 + $0x6c0] sm:$0xf] }
  0xc0   : > { %1963 = vmatpush.bf16.msrb.mxu2 %v3487_v34  ;;  %v4091_v34 = vld [vmem:[%s6176_s1 + $0x584] sm:$0xf]  ;;  %1864 = vmatmul.bf16.gmra.mxu0 %v5523_v35  ;;  %v3771_v57 = vor.u32 %v4138_v44, %v3770_v56  ;;  %v3866_v10 = vld [vmem:[%s6176_s1 + $0x7b0] sm:$0xf] }
  0xc1   : > { %1981 = vmatpush.bf16.msrb.mxu3 %v3551_v46  ;;  %v755_v46 = vpop.f32.mrf.mxu1  ;;  %v788_v61 = vpop.f32.mrf.mxu3 }
  0xc2   : > { %1928 = vmatpush.bf16.msrb.mxu0 %v3351_v32  ;;  %v756_v59 = vadd.f32 %v755_v46, %v737_v39  ;;  %v3527_v32 = vor.u32 %v4091_v34, %v3524_v36  ;;  %v5719_v4 = vadd.f32 %v788_v61, %v771_v54  ;;  %1900 = vmatmul.bf16.gmra.mxu2 %v5547_v7  ;;  %v4166_v34 = vld [vmem:[%s6176_s1 + $0x7d4] sm:$0xf0]  ;;  %v4148_v39 = vld [vmem:[%s6176_s1 + $0x744] sm:$0xf0]  ;;  %v3874_v54 = vld [vmem:[%s6176_s1 + $0x7c0] sm:$0xf] }
  0xc3   : > { %1946 = vmatpush.bf16.msrb.mxu1 %v3415_v21  ;;  %v3698_v21 = vld [vmem:[%s6176_s1 + $0x660] sm:$0xf]  ;;  %v4132_v46 = vld [vmem:[%s6176_s1 + $0x6c4] sm:$0xf0]  ;;  %v4130_v61 = vld [vmem:[%s6176_s1 + $0x6b4] sm:$0xf0] }
  0xc4   : > { %1964 = vmatpush.bf16.msrb.mxu2 %v3479_v31  ;;  %v3898_v31 = vld [vmem:[%s6176_s1 + $0x7f0] sm:$0xf]  ;;  %1882 = vmatmul.bf16.gmra.mxu1 %v5533_v0  ;;  %v3747_v63 = vor.u32 %v4132_v46, %v3746_v45 }
  0xc5   : > { %1982 = vmatpush.bf16.msrb.mxu3 %v3543_v3  ;;  %v3899_v38 = vor.u32 %v4170_v53, %v3898_v31  ;;  %v4136_v3 = vld [vmem:[%s6176_s1 + $0x6e4] sm:$0xf0]  ;;  %v773_v25 = vpop.f32.mrf.mxu2  ;;  %v3682_v31 = vld [vmem:[%s6176_s1 + $0x640] sm:$0xf] }
  0xc6   : > { %1929 = vmatpush.bf16.msrb.mxu0 %v3343_v58  ;;  %v3699_v58 = vor.u32 %v4120_v52, %v3698_v21  ;;  %v3763_v13 = vor.u32 %v4136_v3, %v3762_v11  ;;  %1918 = vmatmul.bf16.gmra.mxu3 %v5575_v26  ;;  %v774_v36 = vadd.f32 %v773_v25, %v756_v59  ;;  %v4116_v53 = vld [vmem:[%s6176_s1 + $0x644] sm:$0xf0]  ;;  %v3738_v21 = vld [vmem:[%s6176_s1 + $0x6b0] sm:$0xf] }
  0xc7   : > { %1947 = vmatpush.bf16.msrb.mxu1 %v3407_v18  ;;  %v739_v18 = vpop.f32.mrf.mxu0  ;;  %v4164_v59 = vld [vmem:[%s6176_s1 + $0x7c4] sm:$0xf0] }
  0xc8   : > { %1965 = vmatpush.bf16.msrb.mxu2 %v3471_v6  ;;  %v3890_v6 = vld [vmem:[%s6176_s1 + $0x7e0] sm:$0xf]  ;;  %v3875_v11 = vor.u32 %v4164_v59, %v3874_v54  ;;  %v4162_v18 = vld [vmem:[%s6176_s1 + $0x7b4] sm:$0xf0] }
  0xc9   : > { %1983 = vmatpush.bf16.msrb.mxu3 %v3535_v27  ;;  %v3891_v20 = vor.u32 %v4168_v16, %v3890_v6  ;;  %v4134_v27 = vld [vmem:[%s6176_s1 + $0x6d4] sm:$0xf0]  ;;  %v757_v1 = vpop.f32.mrf.mxu1  ;;  %v791_v56 = vpop.f32.mrf.mxu3  ;;  %v2002_v16 = vld [vmem:[%s4480_s11 + $0x8] sm:$0x88] }
  0xca   : > { %1930 = vmatpush.bf16.msrb.mxu0 %v3335_v41  ;;  %v3691_v41 = vor.u32 %v4118_v62, %v3690_v2  ;;  %v3755_v22 = vor.u32 %v4134_v27, %v3754_v24  ;;  %v4114_v6 = vld [vmem:[%s6176_s1 + $0x634] sm:$0xf0]  ;;  %v3739_v2 = vor.u32 %v4130_v61, %v3738_v21  ;;  %v4128_v62 = vld [vmem:[%s6176_s1 + $0x6a4] sm:$0xf0]  ;;  %v2072_v24 = vunpack.c.l.b16 %v2002_v16 }
  0xcb   : > { %1948 = vmatpush.bf16.msrb.mxu1 %v3399_v47  ;;  %v5765_v47 = vadd.f32 %v791_v56, %v774_v36  ;;  %v2073_v27 = vunpack.c.h.b16 %v2002_v16  ;;  %v4158_v21 = vld [vmem:[%s6176_s1 + $0x794] sm:$0xf0]  ;;  %v4124_v16 = vld [vmem:[%s6176_s1 + $0x684] sm:$0xf0] }
  0xcc   : > { %1966 = vmatpush.bf16.msrb.mxu2 %v3463_v30  ;;  %v3882_v30 = vld [vmem:[%s6176_s1 + $0x7d0] sm:$0xf] }
  0xcd   : > { %1984 = vmatpush.bf16.msrb.mxu3 %v3527_v32  ;;  %v3883_v44 = vor.u32 %v4166_v34, %v3882_v30  ;;  %v3802_v32 = vld [vmem:[%s6176_s1 + $0x730] sm:$0xf]  ;;  %v4112_v30 = vld [vmem:[%s6176_s1 + $0x624] sm:$0xf0]  ;;  %v3867_v34 = vor.u32 %v4162_v18, %v3866_v10  ;;  %v2077_v56 = vpack.c.b16 %v1437_v49, %v2073_v27  ;;  %v3772_v27 = vld [vmem:[%s6176_s1 + $0x6f8] sm:$0xf0] }
  0xce   : > { %2419 = vmatpush.bf16.msra.mxu0 %v3707_v23  ;;  %v3803_v3 = vor.u32 %v4146_v60, %v3802_v32 }
  0xcf   : > { %2437 = vmatpush.bf16.msra.mxu1 %v3771_v57  ;;  %v804_v23 = vpop.f32.mrf.mxu0  ;;  %v3683_v57 = vor.u32 %v4116_v53, %v3682_v31  ;;  %v4110_v31 = vld [vmem:[%s6176_s1 + $0x614] sm:$0xf0]  ;;  %v2088_v54 = vrot.slane %v2077_v56, 3 }
  0xd0   : > { %2455 = vmatpush.bf16.msra.mxu2 %v3835_v48  ;;  %v3811_v48 = vor.u32 %v4148_v39, %v3810_v37  ;;  %1931 = vmatmul.bf16.vlgmr.msrb.gmra.mxu0 %v5557_v12  ;;  %v4142_v37 = vld [vmem:[%s6176_s1 + $0x714] sm:$0xf0]  ;;  %v3858_v39 = vld [vmem:[%s6176_s1 + $0x7a0] sm:$0xf] }
  0xd1   : > { %2473 = vmatpush.bf16.msra.mxu3 %v3899_v38  ;;  %v775_v38 = vpop.f32.mrf.mxu2  ;;  %v822_v52 = vpop.f32.mrf.mxu1 }
  0xd2   : > { %2420 = vmatpush.bf16.msra.mxu0 %v3699_v58  ;;  %v823_v8 = vadd.f32 %v822_v52, %v804_v23  ;;  %v3794_v58 = vld [vmem:[%s6176_s1 + $0x720] sm:$0xf]  ;;  %v793_v25 = vpop.f32.mrf.mxu3  ;;  %1967 = vmatmul.bf16.vlgmr.msrb.gmra.mxu2 %v5586_v33  ;;  %v2076_v33 = vpack.c.b16 %v1436_v50, %v2072_v24  ;;  %v4126_v50 = vld [vmem:[%s6176_s1 + $0x694] sm:$0xf0]  ;;  %v4140_v23 = vld [vmem:[%s6176_s1 + $0x704] sm:$0xf0] }
  0xd3   : > { %2438 = vmatpush.bf16.msra.mxu1 %v3763_v13  ;;  %v4144_v13 = vld [vmem:[%s6176_s1 + $0x724] sm:$0xf0]  ;;  %v4153_v52 = vld [vmem:[%s6176_s1 + $0x774] sm:$0xf] }
  0xd4   : > { %2456 = vmatpush.bf16.msra.mxu2 %v3827_v51  ;;  %v3674_v51 = vld [vmem:[%s6176_s1 + $0x630] sm:$0xf]  ;;  %1949 = vmatmul.bf16.vlgmr.msrb.gmra.mxu1 %v5567_v19  ;;  %v3795_v1 = vor.u32 %v4144_v13, %v3794_v58  ;;  %v2085_v53 = vrot.slane %v2076_v33, 3  ;;  %v3650_v58 = vld [vmem:[%s6176_s1 + $0x600] sm:$0xf] }
  0xd5   : > { %2474 = vmatpush.bf16.msra.mxu3 %v3891_v20  ;;  %v3730_v20 = vld [vmem:[%s6176_s1 + $0x6a0] sm:$0xf]  ;;  %v3675_v12 = vor.u32 %v4114_v6, %v3674_v51  ;;  %v3786_v19 = vld [vmem:[%s6176_s1 + $0x710] sm:$0xf]  ;;  %v4108_v13 = vld [vmem:[%s6176_s1 + $0x604] sm:$0xf0] }
  0xd6   : > { %2421 = vmatpush.bf16.msra.mxu0 %v3691_v41  ;;  %v3731_v36 = vor.u32 %v4128_v62, %v3730_v20  ;;  %v4160_v41 = vld [vmem:[%s6176_s1 + $0x7a4] sm:$0xf0]  ;;  %1985 = vmatmul.bf16.vlgmr.msrb.gmra.mxu3 %v5610_v29  ;;  %v3787_v49 = vor.u32 %v4142_v37, %v3786_v19  ;;  %v3850_v29 = vld [vmem:[%s6176_s1 + $0x790] sm:$0xf]  ;;  %v3714_v6 = vld [vmem:[%s6176_s1 + $0x680] sm:$0xf] }
  0xd7   : > { %2439 = vmatpush.bf16.msra.mxu1 %v3755_v22  ;;  %v5840_v22 = vrot.slane %v5412_v42, 3  ;;  %v806_v45 = vpop.f32.mrf.mxu0  ;;  %v3859_v60 = vor.u32 %v4160_v41, %v3858_v39  ;;  %v3851_v18 = vor.u32 %v4158_v21, %v3850_v29  ;;  %v3708_v62 = vld [vmem:[%s6176_s1 + $0x678] sm:$0xf0]  ;;  %v4137_v24 = vld [vmem:[%s6176_s1 + $0x6f4] sm:$0xf]  ;;  %v3715_v25 = vor.u32 %v4124_v16, %v3714_v6 }
  0xd8   : > { %2457 = vmatpush.bf16.msra.mxu2 %v3819_v28  ;;  %v3666_v28 = vld [vmem:[%s6176_s1 + $0x620] sm:$0xf]  ;;  %v4151_v19 = vld [vmem:[%s6176_s1 + $0x764] sm:$0xf]  ;;  %v3828_v37 = vld [vmem:[%s6176_s1 + $0x768] sm:$0xf0] }
  0xd9   : > { %2475 = vmatpush.bf16.msra.mxu3 %v3883_v44  ;;  %v5845_v44 = vrot.slane %v5461_v43, 3  ;;  %v3667_v46 = vor.u32 %v4112_v30, %v3666_v28  ;;  %v840_v42 = vpop.f32.mrf.mxu2  ;;  %v824_v14 = vpop.f32.mrf.mxu1  ;;  %v3658_v43 = vld [vmem:[%s6176_s1 + $0x610] sm:$0xf]  ;;  %v5874_v61 = vsel %vm2078_vm2, %v2085_v53, %v5840_v22  ;;  %v4169_v28 = vld [vmem:[%s6176_s1 + $0x7f4] sm:$0xf] }
  0xda   : > { %2422 = vmatpush.bf16.msra.mxu0 %v3683_v57  ;;  %v841_v59 = vadd.f32 %v840_v42, %v823_v8  ;;  %v825_v32 = vadd.f32 %v824_v14, %v806_v45  ;;  %v3659_v51 = vor.u32 %v4110_v31, %v3658_v43  ;;  %v2001_v33 = vld [vmem:[%s4480_s11] sm:$0x88]  ;;  %v3775_v45 = vor.u32 %v4137_v24, %v3772_v27  ;;  %v3700_v14 = vld [vmem:[%s6176_s1 + $0x668] sm:$0xf0]  ;;  %v3820_v29 = vld [vmem:[%s6176_s1 + $0x758] sm:$0xf0] }
  0xdb   : > { %2440 = vmatpush.bf16.msra.mxu1 %v3747_v63  ;;  %v3778_v63 = vld [vmem:[%s6176_s1 + $0x700] sm:$0xf]  ;;  %v5878_v38 = vsel %vm2078_vm2, %v2088_v54, %v5845_v44  ;;  %v4119_v42 = vld [vmem:[%s6176_s1 + $0x664] sm:$0xf]  ;;  %v3831_v43 = vor.u32 %v4151_v19, %v3828_v37  ;;  %v3764_v53 = vld [vmem:[%s6176_s1 + $0x6e8] sm:$0xf0] }
  0xdc   : > { %2458 = vmatpush.bf16.msra.mxu2 %v3811_v48  ;;  %v3722_v48 = vld [vmem:[%s6176_s1 + $0x690] sm:$0xf]  ;;  %v3779_v10 = vor.u32 %v4140_v23, %v3778_v63  ;;  %v4135_v31 = vld [vmem:[%s6176_s1 + $0x6e4] sm:$0xf]  ;;  %v2071_v23 = vunpack.c.h.b16 %v2001_v33  ;;  %v4117_v21 = vld [vmem:[%s6176_s1 + $0x654] sm:$0xf] }
  0xdd   : > { %2476 = vmatpush.bf16.msra.mxu3 %v3875_v11  ;;  %v3723_v57 = vor.u32 %v4126_v50, %v3722_v48  ;;  %v3836_v11 = vld [vmem:[%s6176_s1 + $0x778] sm:$0xf0]  ;;  %v4167_v54 = vld [vmem:[%s6176_s1 + $0x7e4] sm:$0xf]  ;;  %v4165_v6 = vld [vmem:[%s6176_s1 + $0x7d4] sm:$0xf] }
  0xde   : > { %2423 = vmatpush.bf16.msra.mxu0 %v3675_v12  ;;  %v3839_v20 = vor.u32 %v4153_v52, %v3836_v11  ;;  %v3842_v12 = vld [vmem:[%s6176_s1 + $0x780] sm:$0xf]  ;;  %v3692_v52 = vld [vmem:[%s6176_s1 + $0x658] sm:$0xf0]  ;;  %v3876_v19 = vld [vmem:[%s6176_s1 + $0x7c8] sm:$0xf0] }
  0xdf   : > { %2441 = vmatpush.bf16.msra.mxu1 %v3739_v2  ;;  %v4121_v2 = vld [vmem:[%s6176_s1 + $0x674] sm:$0xf]  ;;  %v809_v30 = vpop.f32.mrf.mxu0 }
  0xe0   : > { %2459 = vmatpush.bf16.msra.mxu2 %v3803_v3  ;;  %v858_v3 = vpop.f32.mrf.mxu3  ;;  %v3711_v56 = vor.u32 %v4121_v2, %v3708_v62  ;;  %1936 = vmatmul.bf16.gmra.mxu0 %v5523_v35  ;;  %v2070_v35 = vunpack.c.l.b16 %v2001_v33  ;;  %v3812_v2 = vld [vmem:[%s6176_s1 + $0x748] sm:$0xf0]  ;;  %v2075_v62 = vpack.c.b16 %v1435_v5, %v2071_v23 }
  0xe1   : > { %2477 = vmatpush.bf16.msra.mxu3 %v3867_v34  ;;  %v5892_v8 = vadd.f32 %v858_v3, %v841_v59  ;;  %v3651_v34 = vor.u32 %v4108_v13, %v3650_v58  ;;  %v842_v39 = vpop.f32.mrf.mxu2  ;;  %v827_v41 = vpop.f32.mrf.mxu1  ;;  %v3884_v58 = vld [vmem:[%s6176_s1 + $0x7d8] sm:$0xf0]  ;;  %v4147_v13 = vld [vmem:[%s6176_s1 + $0x744] sm:$0xf]  ;;  %v3748_v5 = vld [vmem:[%s6176_s1 + $0x6c8] sm:$0xf0] }
  0xe2   : > { %2424 = vmatpush.bf16.msra.mxu0 %v3667_v46  ;;  %v843_v46 = vadd.f32 %v842_v39, %v825_v32  ;;  %v828_v48 = vadd.f32 %v827_v41, %v809_v30  ;;  %v3892_v32 = vld [vmem:[%s6176_s1 + $0x7e8] sm:$0xf0]  ;;  %1972 = vmatmul.bf16.gmra.mxu2 %v5547_v7  ;;  %v3756_v7 = vld [vmem:[%s6176_s1 + $0x6d8] sm:$0xf0]  ;;  %v2082_v39 = vrot.slane %v2075_v62, 3  ;;  %v6013_v41 = vrot.slane %v5359_v9, 3 }
  0xe3   : > { %2442 = vmatpush.bf16.msra.mxu1 %v3731_v36  ;;  %v3900_v36 = vld [vmem:[%s6176_s1 + $0x7f8] sm:$0xf0]  ;;  %v3895_v11 = vor.u32 %v4167_v54, %v3892_v32  ;;  %v3796_v23 = vld [vmem:[%s6176_s1 + $0x728] sm:$0xf0] }
  0xe4   : > { %2460 = vmatpush.bf16.msra.mxu2 %v3795_v1  ;;  %v4156_v1 = vld [vmem:[%s6176_s1 + $0x784] sm:$0xf0]  ;;  %1954 = vmatmul.bf16.gmra.mxu1 %v5533_v0  ;;  %v3703_v0 = vor.u32 %v4119_v42, %v3700_v14  ;;  %v3676_v9 = vld [vmem:[%s6176_s1 + $0x638] sm:$0xf0]  ;;  %v6046_v32 = vsel %vm2078_vm2, %v2082_v39, %v6013_v41 }
  0xe5   : > { %2478 = vmatpush.bf16.msra.mxu3 %v3859_v60  ;;  %v3843_v50 = vor.u32 %v4156_v1, %v3842_v12  ;;  %v4149_v60 = vld [vmem:[%s6176_s1 + $0x754] sm:$0xf]  ;;  %v3684_v12 = vld [vmem:[%s6176_s1 + $0x648] sm:$0xf0]  ;;  %v3815_v1 = vor.u32 %v4147_v13, %v3812_v2  ;;  %v3740_v42 = vld [vmem:[%s6176_s1 + $0x6b8] sm:$0xf0] }
  0xe6   : > { %2425 = vmatpush.bf16.msra.mxu0 %v3659_v51  ;;  %v3823_v3 = vor.u32 %v4149_v60, %v3820_v29  ;;  %v4133_v51 = vld [vmem:[%s6176_s1 + $0x6d4] sm:$0xf]  ;;  %1990 = vmatmul.bf16.gmra.mxu3 %v5575_v26  ;;  %v3887_v26 = vor.u32 %v4165_v6, %v3884_v58  ;;  %v4143_v29 = vld [vmem:[%s6176_s1 + $0x724] sm:$0xf]  ;;  %v3788_v13 = vld [vmem:[%s6176_s1 + $0x718] sm:$0xf0] }
  0xe7   : > { %2443 = vmatpush.bf16.msra.mxu1 %v3723_v57  ;;  %v3767_v57 = vor.u32 %v4135_v31, %v3764_v53  ;;  %v811_v16 = vpop.f32.mrf.mxu0  ;;  %v3759_v27 = vor.u32 %v4133_v51, %v3756_v7  ;;  %v4161_v31 = vld [vmem:[%s6176_s1 + $0x7b4] sm:$0xf]  ;;  %v3868_v53 = vld [vmem:[%s6176_s1 + $0x7b8] sm:$0xf0]  ;;  %v3799_v7 = vor.u32 %v4143_v29, %v3796_v23  ;;  %v4159_v6 = vld [vmem:[%s6176_s1 + $0x7a4] sm:$0xf] }
  0xe8   : > { %2461 = vmatpush.bf16.msra.mxu2 %v3787_v49  ;;  %v3903_v49 = vor.u32 %v4169_v28, %v3900_v36  ;;  %v860_v59 = vpop.f32.mrf.mxu3  ;;  %v4163_v36 = vld [vmem:[%s6176_s1 + $0x7c4] sm:$0xf]  ;;  %v3860_v16 = vld [vmem:[%s6176_s1 + $0x7a8] sm:$0xf0]  ;;  %v4141_v58 = vld [vmem:[%s6176_s1 + $0x714] sm:$0xf] }
  0xe9   : > { %2479 = vmatpush.bf16.msra.mxu3 %v3851_v18  ;;  %v5957_v63 = vadd.f32 %v860_v59, %v843_v46  ;;  %v845_v18 = vpop.f32.mrf.mxu2  ;;  %v4113_v46 = vld [vmem:[%s6176_s1 + $0x634] sm:$0xf]  ;;  %v3863_v62 = vor.u32 %v4159_v6, %v3860_v16 }
  0xea   : > { %2426 = vmatpush.bf16.msra.mxu0 %v3651_v34  ;;  %v846_v24 = vadd.f32 %v845_v18, %v828_v48  ;;  %v6002_v34 = vrot.slane %v5320_v55, 3  ;;  %v4145_v55 = vld [vmem:[%s6176_s1 + $0x734] sm:$0xf]  ;;  %v3879_v48 = vor.u32 %v4163_v36, %v3876_v19  ;;  %v3679_v60 = vor.u32 %v4113_v46, %v3676_v9  ;;  %v3780_v36 = vld [vmem:[%s6176_s1 + $0x708] sm:$0xf0] }
  0xeb   : > { %2444 = vmatpush.bf16.msra.mxu1 %v3715_v25  ;;  %v4115_v25 = vld [vmem:[%s6176_s1 + $0x644] sm:$0xf]  ;;  %v4109_v18 = vld [vmem:[%s6176_s1 + $0x614] sm:$0xf]  ;;  %v3716_v46 = vld [vmem:[%s6176_s1 + $0x688] sm:$0xf0] }
  0xec   : > { %2462 = vmatpush.bf16.msra.mxu2 %v3779_v10  ;;  %v2074_v10 = vpack.c.b16 %v1434_v40, %v2070_v35  ;;  %v3695_v40 = vor.u32 %v4117_v21, %v3692_v52  ;;  %v3687_v33 = vor.u32 %v4115_v25, %v3684_v12  ;;  %v3871_v52 = vor.u32 %v4161_v31, %v3868_v53  ;;  %v4157_v12 = vld [vmem:[%s6176_s1 + $0x794] sm:$0xf] }
  0xed   : > { %2480 = vmatpush.bf16.msra.mxu3 %v3843_v50  ;;  %v4129_v50 = vld [vmem:[%s6176_s1 + $0x6b4] sm:$0xf]  ;;  %v3791_v25 = vor.u32 %v4141_v58, %v3788_v13 }
  0xee   : > { %2491 = vmatpush.bf16.msrb.mxu0 %v3711_v56  ;;  %v2079_v30 = vrot.slane %v2074_v10, 3  ;;  %v3804_v56 = vld [vmem:[%s6176_s1 + $0x738] sm:$0xf0] }
  0xef   : > { %2509 = vmatpush.bf16.msrb.mxu1 %v3775_v45  ;;  %v3751_v45 = vor.u32 %v4131_v15, %v3748_v5  ;;  %v1214_v14 = vpop.f32.mrf.mxu0 }
  0xf0   : > { %2527 = vmatpush.bf16.msrb.mxu2 %v3839_v20  ;;  %v829_v20 = vpop.f32.mrf.mxu1  ;;  %v863_v28 = vpop.f32.mrf.mxu3  ;;  %v1215_v59 = vadd.f32 %v1214_v14, %v5655_v17  ;;  %v4111_v17 = vld [vmem:[%s6176_s1 + $0x624] sm:$0xf] }
  0xf1   : > { %2545 = vmatpush.bf16.msrb.mxu3 %v3903_v49  ;;  %v6010_v37 = vadd.f32 %v863_v28, %v846_v24  ;;  %v6035_v49 = vsel %vm2078_vm2, %v2079_v30, %v6002_v34  ;;  %v847_v54 = vpop.f32.mrf.mxu2  ;;  %v3660_v20 = vld [vmem:[%s6176_s1 + $0x618] sm:$0xf0]  ;;  %v4139_v30 = vld [vmem:[%s6176_s1 + $0x704] sm:$0xf] }
  0xf2   : > { %2492 = vmatpush.bf16.msrb.mxu0 %v3703_v0  ;;  %v3743_v0 = vor.u32 %v4129_v50, %v3740_v42  ;;  %2463 = vmatmul.bf16.vlgmr.msra.gmra.mxu2 %v5874_v61  ;;  %v3724_v24 = vld [vmem:[%s6176_s1 + $0x698] sm:$0xf0]  ;;  %v3663_v28 = vor.u32 %v4109_v18, %v3660_v20  ;;  %v4155_v50 = vld [vmem:[%s6176_s1 + $0x784] sm:$0xf]  ;;  %v3844_v42 = vld [vmem:[%s6176_s1 + $0x788] sm:$0xf0] }
  0xf3   : > { %2510 = vmatpush.bf16.msrb.mxu1 %v3767_v57  ;;  %v3668_v57 = vld [vmem:[%s6176_s1 + $0x628] sm:$0xf0]  ;;  %2427 = vmatmul.bf16.vlgmr.msra.gmra.mxu0 %v6035_v49  ;;  %v3847_v53 = vor.u32 %v4155_v50, %v3844_v42 }
  0xf4   : > { %2528 = vmatpush.bf16.msrb.mxu2 %v3831_v43  ;;  %v3807_v43 = vor.u32 %v4145_v55, %v3804_v56  ;;  %2445 = vmatmul.bf16.vlgmr.msra.gmra.mxu1 %v6046_v32  ;;  %v3671_v10 = vor.u32 %v4111_v17, %v3668_v57 }
  0xf5   : > { %2546 = vmatpush.bf16.msrb.mxu3 %v3895_v11  ;;  %v4127_v11 = vld [vmem:[%s6176_s1 + $0x6a4] sm:$0xf] }
  0xf6   : > { %2493 = vmatpush.bf16.msrb.mxu0 %v3695_v40  ;;  %v4125_v40 = vld [vmem:[%s6176_s1 + $0x694] sm:$0xf]  ;;  %2481 = vmatmul.bf16.vlgmr.msra.gmra.mxu3 %v5878_v38 }
  0xf7   : > { %2511 = vmatpush.bf16.msrb.mxu1 %v3759_v27  ;;  %v1216_v27 = vpop.f32.mrf.mxu0  ;;  %v3727_v39 = vor.u32 %v4125_v40, %v3724_v24 }
  0xf8   : > { %2529 = vmatpush.bf16.msrb.mxu2 %v3823_v3  ;;  %v1232_v35 = vpop.f32.mrf.mxu1  ;;  %v3732_v3 = vld [vmem:[%s6176_s1 + $0x6a8] sm:$0xf0]  ;;  %v865_v51 = vpop.f32.mrf.mxu3  ;;  %v1217_v15 = vadd.f32 %v1216_v27, %v5719_v4 }
  0xf9   : > { %2547 = vmatpush.bf16.msrb.mxu3 %v3887_v26  ;;  %v1233_v21 = vadd.f32 %v1232_v35, %v1215_v59  ;;  %v3735_v2 = vor.u32 %v4127_v11, %v3732_v3  ;;  %v3852_v26 = vld [vmem:[%s6176_s1 + $0x798] sm:$0xf0]  ;;  %v3652_v4 = vld [vmem:[%s6176_s1 + $0x608] sm:$0xf0] }
  0xfa   : > { %2494 = vmatpush.bf16.msrb.mxu0 %v3687_v33  ;;  %v4107_v33 = vld [vmem:[%s6176_s1 + $0x604] sm:$0xf]  ;;  %v3855_v56 = vor.u32 %v4157_v12, %v3852_v26 }
  0xfb   : > { %2512 = vmatpush.bf16.msrb.mxu1 %v3751_v45  ;;  %v4123_v45 = vld [vmem:[%s6176_s1 + $0x684] sm:$0xf] }
  0xfc   : > { %2530 = vmatpush.bf16.msrb.mxu2 %v3815_v1  ;;  %v1250_v1 = vpop.f32.mrf.mxu2  ;;  %v3719_v31 = vor.u32 %v4123_v45, %v3716_v46 }
  0xfd   : > { %2548 = vmatpush.bf16.msrb.mxu3 %v3879_v48  ;;  %v1251_v19 = vadd.f32 %v1250_v1, %v1233_v21  ;;  %v3783_v48 = vor.u32 %v4139_v30, %v3780_v36 }
  0xfe   : > { %2495 = vmatpush.bf16.msrb.mxu0 %v3679_v60 }
  0xff   : > { %2513 = vmatpush.bf16.msrb.mxu1 %v3743_v0  ;;  %v1219_v54 = vpop.f32.mrf.mxu0 }
 0x100   : > { %2531 = vmatpush.bf16.msrb.mxu2 %v3807_v43  ;;  %v1234_v5 = vpop.f32.mrf.mxu1  ;;  %v1268_v9 = vpop.f32.mrf.mxu3  ;;  %v3655_v43 = vor.u32 %v4107_v33, %v3652_v4  ;;  %v1220_v35 = vadd.f32 %v1219_v54, %v5765_v47 }
 0x101   : > { %2549 = vmatpush.bf16.msrb.mxu3 %v3871_v52  ;;  %v1235_v55 = vadd.f32 %v1234_v5, %v1217_v15  ;;  %v6125_v14 = vadd.f32 %v1268_v9, %v1251_v19 }
 0x102   : > { %2496 = vmatpush.bf16.msrb.mxu0 %v3671_v10  ;;  %2468 = vmatmul.bf16.gmra.mxu2 %v5840_v22 }
 0x103   : > { %2514 = vmatpush.bf16.msrb.mxu1 %v3735_v2  ;;  %2432 = vmatmul.bf16.gmra.mxu0 %v6002_v34 }
 0x104   : > { %2532 = vmatpush.bf16.msrb.mxu2 %v3799_v7  ;;  %v1252_v59 = vpop.f32.mrf.mxu2  ;;  %2450 = vmatmul.bf16.gmra.mxu1 %v6013_v41 }
 0x105   : > { %2550 = vmatpush.bf16.msrb.mxu3 %v3863_v62  ;;  %v1253_v29 = vadd.f32 %v1252_v59, %v1235_v55 }
 0x106   : > { %2497 = vmatpush.bf16.msrb.mxu0 %v3663_v28  ;;  %2486 = vmatmul.bf16.gmra.mxu3 %v5845_v44 }
 0x107   : > { %2515 = vmatpush.bf16.msrb.mxu1 %v3727_v39  ;;  %v1221_v57 = vpop.f32.mrf.mxu0 }
 0x108   : > { %2533 = vmatpush.bf16.msrb.mxu2 %v3791_v25  ;;  %v1237_v60 = vpop.f32.mrf.mxu1  ;;  %v1270_v0 = vpop.f32.mrf.mxu3 }
 0x109   : > { %2551 = vmatpush.bf16.msrb.mxu3 %v3855_v56  ;;  %v1238_v23 = vadd.f32 %v1237_v60, %v1220_v35  ;;  %v6130_v17 = vadd.f32 %v1270_v0, %v1253_v29 }
 0x10a   : > { %2498 = vmatpush.bf16.msrb.mxu0 %v3655_v43 }
 0x10b   : > { %2516 = vmatpush.bf16.msrb.mxu1 %v3719_v31 }
 0x10c   : > { %2534 = vmatpush.bf16.msrb.mxu2 %v3783_v48  ;;  %v1255_v21 = vpop.f32.mrf.mxu2 }
 0x10d   : > { %2552 = vmatpush.bf16.msrb.mxu3 %v3847_v53  ;;  %v1256_v52 = vadd.f32 %v1255_v21, %v1238_v23 }
 0x10f   : > { %v1286_v51 = vpop.f32.mrf.mxu0 }
 0x110   : > { %v1239_v47 = vpop.f32.mrf.mxu1  ;;  %v1273_v11 = vpop.f32.mrf.mxu3  ;;  %v1287_v6 = vadd.f32 %v1286_v51, %v5892_v8 }
 0x111   : > { %v6134_v3 = vadd.f32 %v1273_v11, %v1256_v52 }
 0x112   : > { %2535 = vmatmul.bf16.vlgmr.msrb.gmra.mxu2 %v5874_v61 }
 0x113   : > { %2499 = vmatmul.bf16.vlgmr.msrb.gmra.mxu0 %v6035_v49 }
 0x114   : > { %v1257_v7 = vpop.f32.mrf.mxu2  ;;  %2517 = vmatmul.bf16.vlgmr.msrb.gmra.mxu1 %v6046_v32 }
 0x116   : > { %2553 = vmatmul.bf16.vlgmr.msrb.gmra.mxu3 %v5878_v38 }
 0x117   : > { %v1288_v13 = vpop.f32.mrf.mxu0 }
 0x118   : > { %v1304_v16 = vpop.f32.mrf.mxu1  ;;  %v1275_v58 = vpop.f32.mrf.mxu3  ;;  %v1289_v18 = vadd.f32 %v1288_v13, %v5957_v63 }
 0x119   : > { %v1305_v10 = vadd.f32 %v1304_v16, %v1287_v6 }
 0x11c   : > { %v1322_v2 = vpop.f32.mrf.mxu2 }
 0x11d   : > { %v1323_v62 = vadd.f32 %v1322_v2, %v1305_v10 }
 0x11f   : > { %v1291_v27 = vpop.f32.mrf.mxu0 }
 0x120   : > { %v1306_v20 = vpop.f32.mrf.mxu1  ;;  %v1340_v24 = vpop.f32.mrf.mxu3  ;;  %v1292_v49 = vadd.f32 %v1291_v27, %v6010_v37 }
 0x121   : > { %v1307_v40 = vadd.f32 %v1306_v20, %v1289_v18  ;;  %v1341_v8 = vadd.f32 %v1340_v24, %v1323_v62 }
 0x122   : > { %2540 = vmatmul.bf16.gmra.mxu2 %v5840_v22 }
 0x123   : > { %2504 = vmatmul.bf16.gmra.mxu0 %v6002_v34 }
 0x124   : > { %v1324_v25 = vpop.f32.mrf.mxu2  ;;  %2522 = vmatmul.bf16.gmra.mxu1 %v6013_v41 }
 0x125   : > { %v1325_v26 = vadd.f32 %v1324_v25, %v1307_v40 }
 0x126   : > { %2558 = vmatmul.bf16.gmra.mxu3 %v5845_v44 }
 0x127   : > { %v1293_v63 = vpop.f32.mrf.mxu0 }
 0x128   : > { %v1309_v12 = vpop.f32.mrf.mxu1  ;;  %v1342_v61 = vpop.f32.mrf.mxu3 }
 0x129   : > { %v1310_v32 = vadd.f32 %v1309_v12, %v1292_v49  ;;  %v1343_v38 = vadd.f32 %v1342_v61, %v1325_v26 }
 0x12c   : > { %v1327_v1 = vpop.f32.mrf.mxu2 }
 0x12d   : > { %v1328_v5 = vadd.f32 %v1327_v1, %v1310_v32 }
 0x12f   : > { %v1860_v37 = vpop.f32.mrf.mxu0 }
 0x130   : > { %v1311_v15 = vpop.f32.mrf.mxu1  ;;  %v1345_v28 = vpop.f32.mrf.mxu3 }
 0x131   : > { %v1346_v30 = vadd.f32 %v1345_v28, %v1328_v5 }
 0x134   : > { %v1329_v36 = vpop.f32.mrf.mxu2 }
 0x137   : > { %v1862_v34 = vpop.f32.mrf.mxu0 }
 0x138   : > { %v1878_v19 = vpop.f32.mrf.mxu1  ;;  %v1347_v33 = vpop.f32.mrf.mxu3 }
 0x139   : > { %v1879_v39 = vadd.f32 %v1878_v19, %v1860_v37 }
 0x13c   : > { %v1896_v4 = vpop.f32.mrf.mxu2 }
 0x13d   : > { %v1897_v41 = vadd.f32 %v1896_v4, %v1879_v39 }
 0x13f   : > { %v1865_v44 = vpop.f32.mrf.mxu0 }
 0x140   : > { %v1880_v55 = vpop.f32.mrf.mxu1  ;;  %v1914_v45 = vpop.f32.mrf.mxu3 }
 0x141   : > { %v1881_v56 = vadd.f32 %v1880_v55, %v1862_v34  ;;  %v1915_v22 = vadd.f32 %v1914_v45, %v1897_v41 }
 0x143   : > { %v6148_v46 = vadd.f32 %v1915_v22, %v6125_v14 }
 0x144   : > { %v1898_v9 = vpop.f32.mrf.mxu2 }
 0x145   : > { %v1899_v50 = vadd.f32 %v1898_v9, %v1881_v56 }
 0x147   : > { %v1867_v54 = vpop.f32.mrf.mxu0 }
 0x148   : > { %v1883_v48 = vpop.f32.mrf.mxu1  ;;  %v1916_v43 = vpop.f32.mrf.mxu3 }
 0x149   : > { %v1884_v42 = vadd.f32 %v1883_v48, %v1865_v44  ;;  %v1917_v31 = vadd.f32 %v1916_v43, %v1899_v50 }
 0x14b   : > { %v6151_v53 = vadd.f32 %v1917_v31, %v6130_v17 }
 0x14c   : > { %v1901_v59 = vpop.f32.mrf.mxu2 }
 0x14d   : > { %v1902_v60 = vadd.f32 %v1901_v59, %v1884_v42  ;;  %v2569_v42 = vld [vmem:[%s6177_s2] sm:$0x3] }
 0x14f   : > { %v1932_v14 = vpop.f32.mrf.mxu0 }
 0x150   : > { %v1885_v35 = vpop.f32.mrf.mxu1  ;;  %v1919_v29 = vpop.f32.mrf.mxu3 }
 0x151   : > { %v1920_v23 = vadd.f32 %v1919_v29, %v1902_v60  ;;  %v2571_v29 = vperm.slane %v2569_v42, 0 }
 0x153   : > { %v6154_v0 = vadd.f32 %v1920_v23, %v6134_v3 }
 0x154   : > { %v1903_v57 = vpop.f32.mrf.mxu2 }
 0x157   : > { %v1934_v11 = vpop.f32.mrf.mxu0 }
 0x158   : > { %v1950_v21 = vpop.f32.mrf.mxu1  ;;  %v1921_v52 = vpop.f32.mrf.mxu3 }
 0x159   : > { %v1951_v47 = vadd.f32 %v1950_v21, %v1932_v14  ;;  %v2572_v21 = vperm.slane %v2569_v42, 1 }
 0x15c   : > { %v1968_v51 = vpop.f32.mrf.mxu2 }
 0x15d   : > { %v1969_v6 = vadd.f32 %v1968_v51, %v1951_v47 }
 0x15f   : > { %v1937_v13 = vpop.f32.mrf.mxu0 }
 0x160   : > { %v1952_v7 = vpop.f32.mrf.mxu1  ;;  %v1986_v16 = vpop.f32.mrf.mxu3 }
 0x161   : > { %v1953_v17 = vadd.f32 %v1952_v7, %v1934_v11  ;;  %v1987_v10 = vadd.f32 %v1986_v16, %v1969_v6 }
 0x163   : > { %v1996_v58 = vadd.f32 %v1987_v10, %v1341_v8 }
 0x164   : > { %v1970_v2 = vpop.f32.mrf.mxu2 }
 0x165   : > { %v1971_v20 = vadd.f32 %v1970_v2, %v1953_v17 }
 0x167   : > { %v1939_v27 = vpop.f32.mrf.mxu0 }
 0x168   : > { %v1955_v18 = vpop.f32.mrf.mxu1  ;;  %v1988_v3 = vpop.f32.mrf.mxu3 }
 0x169   : > { %v1956_v62 = vadd.f32 %v1955_v18, %v1937_v13  ;;  %v1989_v40 = vadd.f32 %v1988_v3, %v1971_v20 }
 0x16b   : > { %v6156_v24 = vadd.f32 %v1989_v40, %v1343_v38 }
 0x16c   : > { %v1973_v25 = vpop.f32.mrf.mxu2 }
 0x16d   : > { %v1974_v12 = vadd.f32 %v1973_v25, %v1956_v62 }
 0x170   : > { %v1957_v49 = vpop.f32.mrf.mxu1  ;;  %v1991_v26 = vpop.f32.mrf.mxu3 }
 0x171   : > { %v1992_v32 = vadd.f32 %v1991_v26, %v1974_v12  ;;  %v2428_v63 = vpop.f32.mrf.mxu0 }
 0x173   : > { %v6158_v61 = vadd.f32 %v1992_v32, %v1346_v30 }
 0x174   : > { %v1975_v1 = vpop.f32.mrf.mxu2 }
 0x178   : > { %v2446_v8 = vpop.f32.mrf.mxu1  ;;  %v1993_v15 = vpop.f32.mrf.mxu3 }
 0x179   : > { %v2430_v5 = vpop.f32.mrf.mxu0  ;;  %v2447_v56 = vadd.f32 %v2446_v8, %v2428_v63 }
 0x17c   : > { %v2464_v28 = vpop.f32.mrf.mxu2 }
 0x17d   : > { %v2465_v44 = vadd.f32 %v2464_v28, %v2447_v56 }
 0x180   : > { %v2448_v37 = vpop.f32.mrf.mxu1  ;;  %v2482_v36 = vpop.f32.mrf.mxu3 }
 0x181   : > { %v2433_v19 = vpop.f32.mrf.mxu0  ;;  %v2483_v50 = vadd.f32 %v2482_v36, %v2465_v44  ;;  %v2449_v31 = vadd.f32 %v2448_v37, %v2430_v5 }
 0x183   : > { %v2563_v60 = vadd.f32 %v2483_v50, %v6148_v46 }
 0x184   : > { %v2466_v39 = vpop.f32.mrf.mxu2 }
 0x185   : > { %v2467_v23 = vadd.f32 %v2466_v39, %v2449_v31  ;;  %v2575_v47 = vadd.f32 %v2571_v29, %v2563_v60 }
 0x187   : > { %v2581_v2 = vmax.f32 %v2575_v47, 0.0 }
 0x188   : > { %v2451_v38 = vpop.f32.mrf.mxu1  ;;  %v2484_v33 = vpop.f32.mrf.mxu3 }
 0x189   : > { %v2435_v34 = vpop.f32.mrf.mxu0  ;;  %v2485_v52 = vadd.f32 %v2484_v33, %v2467_v23  ;;  %v2452_v11 = vadd.f32 %v2451_v38, %v2433_v19 }
 0x18b   : > { %v2565_v18 = vadd.f32 %v2485_v52, %v6151_v53 }
 0x18c   : > { %v2469_v4 = vpop.f32.mrf.mxu2 }
 0x18d   : > { %v2470_v46 = vadd.f32 %v2469_v4, %v2452_v11  ;;  %v2577_v27 = vadd.f32 %v2571_v29, %v2565_v18 }
 0x18f   : > { %v2583_v1 = vmax.f32 %v2577_v27, 0.0 }
 0x190   : > { %v2453_v55 = vpop.f32.mrf.mxu1  ;;  %v2487_v41 = vpop.f32.mrf.mxu3 }
 0x191   : > { %v2500_v45 = vpop.f32.mrf.mxu0  ;;  %v2488_v25 = vadd.f32 %v2487_v41, %v2470_v46 }
 0x193   : > { %v2567_v8 = vadd.f32 %v2488_v25, %v6154_v0 }
 0x194   : > { %v2471_v30 = vpop.f32.mrf.mxu2 }
 0x195   : > { %v2579_v36 = vadd.f32 %v2571_v29, %v2567_v8 }
 0x197   : > { %v2585_v33 = vmax.f32 %v2579_v36, 0.0 }
 0x198   : > { %v2518_v22 = vpop.f32.mrf.mxu1  ;;  %v2489_v9 = vpop.f32.mrf.mxu3 }
 0x199   : > { %v2519_v48 = vadd.f32 %v2518_v22, %v2500_v45  ;;  %v2502_v43 = vpop.f32.mrf.mxu0 }
 0x19c   : > { %v2536_v54 = vpop.f32.mrf.mxu2 }
 0x19d   : > { %v2537_v35 = vadd.f32 %v2536_v54, %v2519_v48 }
 0x1a0   : > { %v2520_v59 = vpop.f32.mrf.mxu1  ;;  %v2554_v14 = vpop.f32.mrf.mxu3 }
 0x1a1   : > { %v2555_v57 = vadd.f32 %v2554_v14, %v2537_v35  ;;  %v2521_v7 = vadd.f32 %v2520_v59, %v2502_v43  ;;  %v2505_v6 = vpop.f32.mrf.mxu0 }
 0x1a3   : > { %v2564_v51 = vadd.f32 %v2555_v57, %v1996_v58 }
 0x1a4   : > { %v2538_v16 = vpop.f32.mrf.mxu2 }
 0x1a5   : > { %v2576_v17 = vadd.f32 %v2572_v21, %v2564_v51  ;;  %v2539_v13 = vadd.f32 %v2538_v16, %v2521_v7 }
 0x1a7   : > { %v2582_v20 = vmax.f32 %v2576_v17, 0.0 }
 0x1a8   : > { %v2523_v10 = vpop.f32.mrf.mxu1  ;;  %v2556_v62 = vpop.f32.mrf.mxu3 }
 0x1a9   : > { %v2587_v3 = vpack.c.bf16 %v2582_v20, %v2581_v2  ;;  %v2557_v40 = vadd.f32 %v2556_v62, %v2539_v13  ;;  %v2524_v58 = vadd.f32 %v2523_v10, %v2505_v6  ;;  %v2507_v12 = vpop.f32.mrf.mxu0 }
 0x1ab   : > { %2590 = vst [vmem:[%s170_s28] sm:$0xff] %v2587_v3  ;;  %v2566_v49 = vadd.f32 %v2557_v40, %v6156_v24 }
 0x1ac   : > { %v2541_v32 = vpop.f32.mrf.mxu2 }
 0x1ad   : > { %v2578_v26 = vadd.f32 %v2572_v21, %v2566_v49  ;;  %v2542_v53 = vadd.f32 %v2541_v32, %v2524_v58 }
 0x1af   : > { %v2584_v15 = vmax.f32 %v2578_v26, 0.0 }
 0x1b0   : > { %v2525_v63 = vpop.f32.mrf.mxu1  ;;  %v2559_v5 = vpop.f32.mrf.mxu3 }
 0x1b1   : > { %v2588_v28 = vpack.c.bf16 %v2584_v15, %v2583_v1  ;;  %v2560_v37 = vadd.f32 %v2559_v5, %v2542_v53 }
 0x1b3   : > { %2591 = vst [vmem:[%s170_s28 + $0x8] sm:$0xff] %v2588_v28  ;;  %v2568_v19 = vadd.f32 %v2560_v37, %v6158_v61 }
 0x1b4   : > { %v2543_v38 = vpop.f32.mrf.mxu2 }
 0x1b5   : > { %v2580_v39 = vadd.f32 %v2572_v21, %v2568_v19 }
 0x1b7   : > { %v2586_v24 = vmax.f32 %v2580_v39, 0.0 }
 0x1b8   : > { %v2561_v34 = vpop.f32.mrf.mxu3 }
 0x1b9   : > { %v2589_v4 = vpack.c.bf16 %v2586_v24, %v2585_v33 }
 0x1bb   : > { %2592 = vst [vmem:[%s170_s28 + $0x10] sm:$0x33] %v2589_v4 }
 0x1bc PF: > { %s13_s12 = sadd.s32 1, %s4186_s12  }
 0x1bd   : > { %p10_p4 = scmp.ge.s32.totalorder %s13_s12, 6  }
 0x1bf   :  { %12 = sbr.rel (!%p10_p4) target bundleno = 1 (0x1), region = 65 }

// kernel: observation_encoder_forward.9
= control target key start
LH: loop header
LB: loop body
LE: loop exit
PB: predicated region body
PF: predicated region fallthrough
CT: control target
= control target key end

     0   :  { %s8492_s12 = smov 0   ;;  %s8494_s13 = smov 0   ;;  %s9910_s0 = inlined_call_operand.vmem [shape: bf16[8,4096], index: 0, kind: input, shape index: {}]   ;;  %s9911_s1 = inlined_call_operand.vmem [shape: bf16[4096,256], index: 1, kind: input, shape index: {}]   ;;  %s9912_s2 = inlined_call_operand.vmem [shape: f32[1,256], index: 2, kind: input, shape index: {}]   ;;  %s9913_s3 = inlined_call_operand.vmem [shape: f32[8,256], index: 3, kind: output, shape index: {}]  }
   0x1   :  { %s8496_s14 = smov 0   ;;  %s8498_s15 = smov 0  }
   0x2   :  { %s8500_s16 = smov 0  }
   0x3 LB: > { %s22_s17 = sadd.s32 1, %s8466_s15  ;;  %p65_p1 = scmp.ne.s32.totalorder %s8458_s13, %s8454_s12  ;;  %s8470_s16 = sphi %s8500_s16, %s13_s16   ;;  %s8466_s15 = sphi %s8498_s15, %s9917_s15   ;;  %s8462_s14 = sphi %s8496_s14, %s9916_s14   ;;  %s8458_s13 = sphi %s8494_s13, %s9915_s13   ;;  %s8454_s12 = sphi %s8492_s12, %s9914_s12  }
   0x4   : > { %p23_p0 = scmp.ge.s32.totalorder %s22_s17, 2  ;;  %p66_p2 = scmp.eq.s32.totalorder %s8470_s16, 0 }
   0x5   : > { %s58_s19 = sadd.s32 1, %s8458_s13  ;;  %p7103_p5 = scmp.ge.s32.totalorder %s8470_s16, 2 }
   0x6   : > { %s9919_s17 = smov (%p23_p0, %s22_s17), 0  ;;  %p67_p3 = por %p66_p2, %p65_p1 }
   0x7   : > { %s55_s18 = ssub.s32 %s8466_s15, %s9919_s17  ;;  %153 = sbr.rel (%p7103_p5) target bundleno = 528 (0x210), region = 20 }
   0x8   : > { %p56_p4 = scmp.eq.s32.totalorder %s55_s18, 0 }
   0xa   : > { %s8527_s20 = scalar_select %p56_p4, %s8458_s13, %s58_s19  }
   0xc   : > { %156 = sbr.rel (!%p67_p3) target bundleno = 528 (0x210), region = 24  ;;  %s158_s21 = sand.u32 (%p67_p3), 1, %s8458_s13  }
   0xd   : > { %s7105_s22 = sshll.u32 (%p67_p3), %s8466_s15, 2  ;;  %s7104_s23 = sshll.u32 (%p67_p3), %s158_s21, 11 }
   0xe   : > { %s8535_s26 = scalar_lea.vmem (%p67_p3), %s9911_s1, %s7105_s22  ;;  %s8539_s27 = scalar_lea.vmem (%p67_p3), [#allocation2], %s7104_s23 }
   0xf   : > { %v179_v0 = vld [vmem:[%s8535_s26] sm:$0xf] (%p67_p3)  ;;  %v181_v1 = vld [vmem:[%s8535_s26 + $0x8] sm:$0xf] (%p67_p3)  ;;  %v183_v2 = vld [vmem:[%s8535_s26 + $0x10] sm:$0xf] (%p67_p3) }
  0x10   : > { %180 = vst [vmem:[%s8539_s27] sm:$0xf] (%p67_p3), %v179_v0  ;;  %v185_v3 = vld [vmem:[%s8535_s26 + $0x18] sm:$0xf] (%p67_p3)  ;;  %v187_v4 = vld [vmem:[%s8535_s26 + $0x20] sm:$0xf] (%p67_p3) }
  0x11   : > { %182 = vst [vmem:[%s8539_s27 + $0x4] sm:$0xf] %v181_v1  ;;  %v189_v5 = vld [vmem:[%s8535_s26 + $0x28] sm:$0xf]  ;;  %v191_v6 = vld [vmem:[%s8535_s26 + $0x30] sm:$0xf] }
  0x12   : > { %184 = vst [vmem:[%s8539_s27 + $0x8] sm:$0xf] %v183_v2  ;;  %v193_v7 = vld [vmem:[%s8535_s26 + $0x38] sm:$0xf]  ;;  %v195_v8 = vld [vmem:[%s8535_s26 + $0x40] sm:$0xf] }
  0x13   : > { %186 = vst [vmem:[%s8539_s27 + $0xc] sm:$0xf] %v185_v3  ;;  %v197_v9 = vld [vmem:[%s8535_s26 + $0x48] sm:$0xf]  ;;  %v199_v10 = vld [vmem:[%s8535_s26 + $0x50] sm:$0xf] }
  0x14   : > { %188 = vst [vmem:[%s8539_s27 + $0x10] sm:$0xf] %v187_v4  ;;  %v201_v11 = vld [vmem:[%s8535_s26 + $0x58] sm:$0xf]  ;;  %v203_v12 = vld [vmem:[%s8535_s26 + $0x60] sm:$0xf] }
  0x15   : > { %190 = vst [vmem:[%s8539_s27 + $0x14] sm:$0xf] %v189_v5  ;;  %v205_v13 = vld [vmem:[%s8535_s26 + $0x68] sm:$0xf]  ;;  %v207_v14 = vld [vmem:[%s8535_s26 + $0x70] sm:$0xf] }
  0x16   : > { %192 = vst [vmem:[%s8539_s27 + $0x18] sm:$0xf] %v191_v6  ;;  %v209_v15 = vld [vmem:[%s8535_s26 + $0x78] sm:$0xf]  ;;  %v211_v16 = vld [vmem:[%s8535_s26 + $0x80] sm:$0xf] }
  0x17   : > { %194 = vst [vmem:[%s8539_s27 + $0x1c] sm:$0xf] %v193_v7  ;;  %v213_v17 = vld [vmem:[%s8535_s26 + $0x88] sm:$0xf]  ;;  %v215_v18 = vld [vmem:[%s8535_s26 + $0x90] sm:$0xf] }
  0x18   : > { %196 = vst [vmem:[%s8539_s27 + $0x20] sm:$0xf] %v195_v8  ;;  %v217_v19 = vld [vmem:[%s8535_s26 + $0x98] sm:$0xf]  ;;  %v219_v20 = vld [vmem:[%s8535_s26 + $0xa0] sm:$0xf] }
  0x19   : > { %198 = vst [vmem:[%s8539_s27 + $0x24] sm:$0xf] %v197_v9  ;;  %v221_v21 = vld [vmem:[%s8535_s26 + $0xa8] sm:$0xf]  ;;  %v223_v22 = vld [vmem:[%s8535_s26 + $0xb0] sm:$0xf] }
  0x1a   : > { %200 = vst [vmem:[%s8539_s27 + $0x28] sm:$0xf] %v199_v10  ;;  %v225_v23 = vld [vmem:[%s8535_s26 + $0xb8] sm:$0xf]  ;;  %v227_v24 = vld [vmem:[%s8535_s26 + $0xc0] sm:$0xf] }
  0x1b   : > { %202 = vst [vmem:[%s8539_s27 + $0x2c] sm:$0xf] %v201_v11  ;;  %v229_v25 = vld [vmem:[%s8535_s26 + $0xc8] sm:$0xf]  ;;  %v231_v26 = vld [vmem:[%s8535_s26 + $0xd0] sm:$0xf] }
  0x1c   : > { %204 = vst [vmem:[%s8539_s27 + $0x30] sm:$0xf] %v203_v12  ;;  %v233_v27 = vld [vmem:[%s8535_s26 + $0xd8] sm:$0xf]  ;;  %v235_v28 = vld [vmem:[%s8535_s26 + $0xe0] sm:$0xf] }
  0x1d   : > { %206 = vst [vmem:[%s8539_s27 + $0x34] sm:$0xf] %v205_v13  ;;  %v237_v29 = vld [vmem:[%s8535_s26 + $0xe8] sm:$0xf]  ;;  %v239_v30 = vld [vmem:[%s8535_s26 + $0xf0] sm:$0xf] }
  0x1e   : > { %208 = vst [vmem:[%s8539_s27 + $0x38] sm:$0xf] %v207_v14  ;;  %v241_v31 = vld [vmem:[%s8535_s26 + $0xf8] sm:$0xf]  ;;  %v243_v32 = vld [vmem:[%s8535_s26 + $0x100] sm:$0xf] }
  0x1f   : > { %210 = vst [vmem:[%s8539_s27 + $0x3c] sm:$0xf] %v209_v15  ;;  %v245_v33 = vld [vmem:[%s8535_s26 + $0x108] sm:$0xf]  ;;  %v247_v34 = vld [vmem:[%s8535_s26 + $0x110] sm:$0xf] }
  0x20   : > { %212 = vst [vmem:[%s8539_s27 + $0x40] sm:$0xf] %v211_v16  ;;  %v249_v35 = vld [vmem:[%s8535_s26 + $0x118] sm:$0xf]  ;;  %v251_v36 = vld [vmem:[%s8535_s26 + $0x120] sm:$0xf] }
  0x21   : > { %214 = vst [vmem:[%s8539_s27 + $0x44] sm:$0xf] %v213_v17  ;;  %v253_v37 = vld [vmem:[%s8535_s26 + $0x128] sm:$0xf]  ;;  %v255_v38 = vld [vmem:[%s8535_s26 + $0x130] sm:$0xf] }
  0x22   : > { %216 = vst [vmem:[%s8539_s27 + $0x48] sm:$0xf] %v215_v18  ;;  %v257_v39 = vld [vmem:[%s8535_s26 + $0x138] sm:$0xf]  ;;  %v259_v40 = vld [vmem:[%s8535_s26 + $0x140] sm:$0xf] }
  0x23   : > { %218 = vst [vmem:[%s8539_s27 + $0x4c] sm:$0xf] %v217_v19  ;;  %v261_v41 = vld [vmem:[%s8535_s26 + $0x148] sm:$0xf]  ;;  %v263_v42 = vld [vmem:[%s8535_s26 + $0x150] sm:$0xf] }
  0x24   : > { %220 = vst [vmem:[%s8539_s27 + $0x50] sm:$0xf] %v219_v20  ;;  %v265_v43 = vld [vmem:[%s8535_s26 + $0x158] sm:$0xf]  ;;  %v267_v44 = vld [vmem:[%s8535_s26 + $0x160] sm:$0xf] }
  0x25   : > { %222 = vst [vmem:[%s8539_s27 + $0x54] sm:$0xf] %v221_v21  ;;  %v269_v45 = vld [vmem:[%s8535_s26 + $0x168] sm:$0xf]  ;;  %v271_v46 = vld [vmem:[%s8535_s26 + $0x170] sm:$0xf] }
  0x26   : > { %224 = vst [vmem:[%s8539_s27 + $0x58] sm:$0xf] %v223_v22  ;;  %v273_v47 = vld [vmem:[%s8535_s26 + $0x178] sm:$0xf]  ;;  %v275_v48 = vld [vmem:[%s8535_s26 + $0x180] sm:$0xf] }
  0x27   : > { %226 = vst [vmem:[%s8539_s27 + $0x5c] sm:$0xf] %v225_v23  ;;  %v277_v49 = vld [vmem:[%s8535_s26 + $0x188] sm:$0xf]  ;;  %v279_v50 = vld [vmem:[%s8535_s26 + $0x190] sm:$0xf] }
  0x28   : > { %228 = vst [vmem:[%s8539_s27 + $0x60] sm:$0xf] %v227_v24  ;;  %v281_v51 = vld [vmem:[%s8535_s26 + $0x198] sm:$0xf]  ;;  %v283_v52 = vld [vmem:[%s8535_s26 + $0x1a0] sm:$0xf] }
  0x29   : > { %230 = vst [vmem:[%s8539_s27 + $0x64] sm:$0xf] %v229_v25  ;;  %v285_v53 = vld [vmem:[%s8535_s26 + $0x1a8] sm:$0xf]  ;;  %v287_v54 = vld [vmem:[%s8535_s26 + $0x1b0] sm:$0xf] }
  0x2a   : > { %232 = vst [vmem:[%s8539_s27 + $0x68] sm:$0xf] %v231_v26  ;;  %v289_v55 = vld [vmem:[%s8535_s26 + $0x1b8] sm:$0xf]  ;;  %v291_v56 = vld [vmem:[%s8535_s26 + $0x1c0] sm:$0xf] }
  0x2b   : > { %234 = vst [vmem:[%s8539_s27 + $0x6c] sm:$0xf] %v233_v27  ;;  %v293_v57 = vld [vmem:[%s8535_s26 + $0x1c8] sm:$0xf]  ;;  %v295_v58 = vld [vmem:[%s8535_s26 + $0x1d0] sm:$0xf] }
  0x2c   : > { %236 = vst [vmem:[%s8539_s27 + $0x70] sm:$0xf] %v235_v28  ;;  %v297_v59 = vld [vmem:[%s8535_s26 + $0x1d8] sm:$0xf]  ;;  %v299_v60 = vld [vmem:[%s8535_s26 + $0x1e0] sm:$0xf] }
  0x2d   : > { %238 = vst [vmem:[%s8539_s27 + $0x74] sm:$0xf] %v237_v29  ;;  %v301_v61 = vld [vmem:[%s8535_s26 + $0x1e8] sm:$0xf]  ;;  %v303_v62 = vld [vmem:[%s8535_s26 + $0x1f0] sm:$0xf] }
  0x2e   : > { %240 = vst [vmem:[%s8539_s27 + $0x78] sm:$0xf] %v239_v30  ;;  %v305_v63 = vld [vmem:[%s8535_s26 + $0x1f8] sm:$0xf]  ;;  %v307_v0 = vld [vmem:[%s8535_s26 + $0x200] sm:$0xf] }
  0x2f   : > { %242 = vst [vmem:[%s8539_s27 + $0x7c] sm:$0xf] %v241_v31  ;;  %v309_v1 = vld [vmem:[%s8535_s26 + $0x208] sm:$0xf]  ;;  %v311_v2 = vld [vmem:[%s8535_s26 + $0x210] sm:$0xf] }
  0x30   : > { %244 = vst [vmem:[%s8539_s27 + $0x80] sm:$0xf] %v243_v32  ;;  %v313_v3 = vld [vmem:[%s8535_s26 + $0x218] sm:$0xf]  ;;  %v315_v4 = vld [vmem:[%s8535_s26 + $0x220] sm:$0xf] }
  0x31   : > { %246 = vst [vmem:[%s8539_s27 + $0x84] sm:$0xf] %v245_v33  ;;  %v317_v5 = vld [vmem:[%s8535_s26 + $0x228] sm:$0xf]  ;;  %v319_v6 = vld [vmem:[%s8535_s26 + $0x230] sm:$0xf] }
  0x32   : > { %248 = vst [vmem:[%s8539_s27 + $0x88] sm:$0xf] %v247_v34  ;;  %v321_v7 = vld [vmem:[%s8535_s26 + $0x238] sm:$0xf]  ;;  %v323_v8 = vld [vmem:[%s8535_s26 + $0x240] sm:$0xf] }
  0x33   : > { %250 = vst [vmem:[%s8539_s27 + $0x8c] sm:$0xf] %v249_v35  ;;  %v325_v9 = vld [vmem:[%s8535_s26 + $0x248] sm:$0xf]  ;;  %v327_v10 = vld [vmem:[%s8535_s26 + $0x250] sm:$0xf] }
  0x34   : > { %252 = vst [vmem:[%s8539_s27 + $0x90] sm:$0xf] %v251_v36  ;;  %v329_v11 = vld [vmem:[%s8535_s26 + $0x258] sm:$0xf]  ;;  %v331_v12 = vld [vmem:[%s8535_s26 + $0x260] sm:$0xf] }
  0x35   : > { %254 = vst [vmem:[%s8539_s27 + $0x94] sm:$0xf] %v253_v37  ;;  %v333_v13 = vld [vmem:[%s8535_s26 + $0x268] sm:$0xf]  ;;  %v335_v14 = vld [vmem:[%s8535_s26 + $0x270] sm:$0xf] }
  0x36   : > { %256 = vst [vmem:[%s8539_s27 + $0x98] sm:$0xf] %v255_v38  ;;  %v337_v15 = vld [vmem:[%s8535_s26 + $0x278] sm:$0xf]  ;;  %v339_v16 = vld [vmem:[%s8535_s26 + $0x280] sm:$0xf] }
  0x37   : > { %258 = vst [vmem:[%s8539_s27 + $0x9c] sm:$0xf] %v257_v39  ;;  %v341_v17 = vld [vmem:[%s8535_s26 + $0x288] sm:$0xf]  ;;  %v343_v18 = vld [vmem:[%s8535_s26 + $0x290] sm:$0xf] }
  0x38   : > { %260 = vst [vmem:[%s8539_s27 + $0xa0] sm:$0xf] %v259_v40  ;;  %v345_v19 = vld [vmem:[%s8535_s26 + $0x298] sm:$0xf]  ;;  %v347_v20 = vld [vmem:[%s8535_s26 + $0x2a0] sm:$0xf] }
  0x39   : > { %262 = vst [vmem:[%s8539_s27 + $0xa4] sm:$0xf] %v261_v41  ;;  %v349_v21 = vld [vmem:[%s8535_s26 + $0x2a8] sm:$0xf]  ;;  %v351_v22 = vld [vmem:[%s8535_s26 + $0x2b0] sm:$0xf] }
  0x3a   : > { %264 = vst [vmem:[%s8539_s27 + $0xa8] sm:$0xf] %v263_v42  ;;  %v353_v23 = vld [vmem:[%s8535_s26 + $0x2b8] sm:$0xf]  ;;  %v355_v24 = vld [vmem:[%s8535_s26 + $0x2c0] sm:$0xf] }
  0x3b   : > { %266 = vst [vmem:[%s8539_s27 + $0xac] sm:$0xf] %v265_v43  ;;  %v357_v25 = vld [vmem:[%s8535_s26 + $0x2c8] sm:$0xf]  ;;  %v359_v26 = vld [vmem:[%s8535_s26 + $0x2d0] sm:$0xf] }
  0x3c   : > { %268 = vst [vmem:[%s8539_s27 + $0xb0] sm:$0xf] %v267_v44  ;;  %v361_v27 = vld [vmem:[%s8535_s26 + $0x2d8] sm:$0xf]  ;;  %v363_v28 = vld [vmem:[%s8535_s26 + $0x2e0] sm:$0xf] }
  0x3d   : > { %270 = vst [vmem:[%s8539_s27 + $0xb4] sm:$0xf] %v269_v45  ;;  %v365_v29 = vld [vmem:[%s8535_s26 + $0x2e8] sm:$0xf]  ;;  %v367_v30 = vld [vmem:[%s8535_s26 + $0x2f0] sm:$0xf] }
  0x3e   : > { %272 = vst [vmem:[%s8539_s27 + $0xb8] sm:$0xf] %v271_v46  ;;  %v369_v31 = vld [vmem:[%s8535_s26 + $0x2f8] sm:$0xf]  ;;  %v371_v32 = vld [vmem:[%s8535_s26 + $0x300] sm:$0xf] }
  0x3f   : > { %274 = vst [vmem:[%s8539_s27 + $0xbc] sm:$0xf] %v273_v47  ;;  %v373_v33 = vld [vmem:[%s8535_s26 + $0x308] sm:$0xf]  ;;  %v375_v34 = vld [vmem:[%s8535_s26 + $0x310] sm:$0xf] }
  0x40   : > { %276 = vst [vmem:[%s8539_s27 + $0xc0] sm:$0xf] %v275_v48  ;;  %v377_v35 = vld [vmem:[%s8535_s26 + $0x318] sm:$0xf]  ;;  %v379_v36 = vld [vmem:[%s8535_s26 + $0x320] sm:$0xf] }
  0x41   : > { %278 = vst [vmem:[%s8539_s27 + $0xc4] sm:$0xf] %v277_v49  ;;  %v381_v37 = vld [vmem:[%s8535_s26 + $0x328] sm:$0xf]  ;;  %v383_v38 = vld [vmem:[%s8535_s26 + $0x330] sm:$0xf] }
  0x42   : > { %280 = vst [vmem:[%s8539_s27 + $0xc8] sm:$0xf] %v279_v50  ;;  %v385_v39 = vld [vmem:[%s8535_s26 + $0x338] sm:$0xf]  ;;  %v387_v40 = vld [vmem:[%s8535_s26 + $0x340] sm:$0xf] }
  0x43   : > { %282 = vst [vmem:[%s8539_s27 + $0xcc] sm:$0xf] %v281_v51  ;;  %v389_v41 = vld [vmem:[%s8535_s26 + $0x348] sm:$0xf]  ;;  %v391_v42 = vld [vmem:[%s8535_s26 + $0x350] sm:$0xf] }
  0x44   : > { %284 = vst [vmem:[%s8539_s27 + $0xd0] sm:$0xf] %v283_v52  ;;  %v393_v43 = vld [vmem:[%s8535_s26 + $0x358] sm:$0xf]  ;;  %v395_v44 = vld [vmem:[%s8535_s26 + $0x360] sm:$0xf] }
  0x45   : > { %286 = vst [vmem:[%s8539_s27 + $0xd4] sm:$0xf] %v285_v53  ;;  %v397_v45 = vld [vmem:[%s8535_s26 + $0x368] sm:$0xf]  ;;  %v399_v46 = vld [vmem:[%s8535_s26 + $0x370] sm:$0xf] }
  0x46   : > { %288 = vst [vmem:[%s8539_s27 + $0xd8] sm:$0xf] %v287_v54  ;;  %v401_v47 = vld [vmem:[%s8535_s26 + $0x378] sm:$0xf]  ;;  %v403_v48 = vld [vmem:[%s8535_s26 + $0x380] sm:$0xf] }
  0x47   : > { %290 = vst [vmem:[%s8539_s27 + $0xdc] sm:$0xf] %v289_v55  ;;  %v405_v49 = vld [vmem:[%s8535_s26 + $0x388] sm:$0xf]  ;;  %v407_v50 = vld [vmem:[%s8535_s26 + $0x390] sm:$0xf] }
  0x48   : > { %292 = vst [vmem:[%s8539_s27 + $0xe0] sm:$0xf] %v291_v56  ;;  %v409_v51 = vld [vmem:[%s8535_s26 + $0x398] sm:$0xf]  ;;  %v411_v52 = vld [vmem:[%s8535_s26 + $0x3a0] sm:$0xf] }
  0x49   : > { %294 = vst [vmem:[%s8539_s27 + $0xe4] sm:$0xf] %v293_v57  ;;  %v413_v53 = vld [vmem:[%s8535_s26 + $0x3a8] sm:$0xf]  ;;  %v415_v54 = vld [vmem:[%s8535_s26 + $0x3b0] sm:$0xf] }
  0x4a   : > { %296 = vst [vmem:[%s8539_s27 + $0xe8] sm:$0xf] %v295_v58  ;;  %v417_v55 = vld [vmem:[%s8535_s26 + $0x3b8] sm:$0xf]  ;;  %v419_v56 = vld [vmem:[%s8535_s26 + $0x3c0] sm:$0xf] }
  0x4b   : > { %298 = vst [vmem:[%s8539_s27 + $0xec] sm:$0xf] %v297_v59  ;;  %v421_v57 = vld [vmem:[%s8535_s26 + $0x3c8] sm:$0xf]  ;;  %v423_v58 = vld [vmem:[%s8535_s26 + $0x3d0] sm:$0xf] }
  0x4c   : > { %300 = vst [vmem:[%s8539_s27 + $0xf0] sm:$0xf] %v299_v60  ;;  %v425_v59 = vld [vmem:[%s8535_s26 + $0x3d8] sm:$0xf]  ;;  %v427_v60 = vld [vmem:[%s8535_s26 + $0x3e0] sm:$0xf] }
  0x4d   : > { %302 = vst [vmem:[%s8539_s27 + $0xf4] sm:$0xf] %v301_v61  ;;  %v429_v61 = vld [vmem:[%s8535_s26 + $0x3e8] sm:$0xf] }
  0x4e   : > { %304 = vst [vmem:[%s8539_s27 + $0xf8] sm:$0xf] %v303_v62  ;;  %v431_v62 = vld [vmem:[%s8535_s26 + $0x3f0] sm:$0xf] }
  0x4f   : > { %306 = vst [vmem:[%s8539_s27 + $0xfc] sm:$0xf] %v305_v63  ;;  %v433_v63 = vld [vmem:[%s8535_s26 + $0x3f8] sm:$0xf] }
  0x50   : > { %308 = vst [vmem:[%s8539_s27 + $0x100] sm:$0xf] %v307_v0  ;;  %v435_v0 = vld [vmem:[%s8535_s26 + $0x400] sm:$0xf] }
  0x51   : > { %310 = vst [vmem:[%s8539_s27 + $0x104] sm:$0xf] %v309_v1  ;;  %v437_v1 = vld [vmem:[%s8535_s26 + $0x408] sm:$0xf] }
  0x52   : > { %312 = vst [vmem:[%s8539_s27 + $0x108] sm:$0xf] %v311_v2  ;;  %v439_v2 = vld [vmem:[%s8535_s26 + $0x410] sm:$0xf] }
  0x53   : > { %314 = vst [vmem:[%s8539_s27 + $0x10c] sm:$0xf] %v313_v3  ;;  %v441_v3 = vld [vmem:[%s8535_s26 + $0x418] sm:$0xf] }
  0x54   : > { %316 = vst [vmem:[%s8539_s27 + $0x110] sm:$0xf] %v315_v4  ;;  %v443_v4 = vld [vmem:[%s8535_s26 + $0x420] sm:$0xf] }
  0x55   : > { %318 = vst [vmem:[%s8539_s27 + $0x114] sm:$0xf] %v317_v5  ;;  %v445_v5 = vld [vmem:[%s8535_s26 + $0x428] sm:$0xf] }
  0x56   : > { %320 = vst [vmem:[%s8539_s27 + $0x118] sm:$0xf] %v319_v6  ;;  %v447_v6 = vld [vmem:[%s8535_s26 + $0x430] sm:$0xf] }
  0x57   : > { %322 = vst [vmem:[%s8539_s27 + $0x11c] sm:$0xf] %v321_v7  ;;  %v449_v7 = vld [vmem:[%s8535_s26 + $0x438] sm:$0xf] }
  0x58   : > { %324 = vst [vmem:[%s8539_s27 + $0x120] sm:$0xf] %v323_v8  ;;  %v451_v8 = vld [vmem:[%s8535_s26 + $0x440] sm:$0xf] }
  0x59   : > { %326 = vst [vmem:[%s8539_s27 + $0x124] sm:$0xf] %v325_v9  ;;  %v453_v9 = vld [vmem:[%s8535_s26 + $0x448] sm:$0xf] }
  0x5a   : > { %328 = vst [vmem:[%s8539_s27 + $0x128] sm:$0xf] %v327_v10  ;;  %v455_v10 = vld [vmem:[%s8535_s26 + $0x450] sm:$0xf] }
  0x5b   : > { %330 = vst [vmem:[%s8539_s27 + $0x12c] sm:$0xf] %v329_v11  ;;  %v457_v11 = vld [vmem:[%s8535_s26 + $0x458] sm:$0xf] }
  0x5c   : > { %332 = vst [vmem:[%s8539_s27 + $0x130] sm:$0xf] %v331_v12  ;;  %v459_v12 = vld [vmem:[%s8535_s26 + $0x460] sm:$0xf] }
  0x5d   : > { %334 = vst [vmem:[%s8539_s27 + $0x134] sm:$0xf] %v333_v13  ;;  %v461_v13 = vld [vmem:[%s8535_s26 + $0x468] sm:$0xf] }
  0x5e   : > { %336 = vst [vmem:[%s8539_s27 + $0x138] sm:$0xf] %v335_v14  ;;  %v463_v14 = vld [vmem:[%s8535_s26 + $0x470] sm:$0xf] }
  0x5f   : > { %338 = vst [vmem:[%s8539_s27 + $0x13c] sm:$0xf] %v337_v15  ;;  %v465_v15 = vld [vmem:[%s8535_s26 + $0x478] sm:$0xf] }
  0x60   : > { %340 = vst [vmem:[%s8539_s27 + $0x140] sm:$0xf] %v339_v16  ;;  %v467_v16 = vld [vmem:[%s8535_s26 + $0x480] sm:$0xf] }
  0x61   : > { %342 = vst [vmem:[%s8539_s27 + $0x144] sm:$0xf] %v341_v17  ;;  %v469_v17 = vld [vmem:[%s8535_s26 + $0x488] sm:$0xf] }
  0x62   : > { %344 = vst [vmem:[%s8539_s27 + $0x148] sm:$0xf] %v343_v18  ;;  %v471_v18 = vld [vmem:[%s8535_s26 + $0x490] sm:$0xf] }
  0x63   : > { %346 = vst [vmem:[%s8539_s27 + $0x14c] sm:$0xf] %v345_v19  ;;  %v473_v19 = vld [vmem:[%s8535_s26 + $0x498] sm:$0xf] }
  0x64   : > { %348 = vst [vmem:[%s8539_s27 + $0x150] sm:$0xf] %v347_v20  ;;  %v475_v20 = vld [vmem:[%s8535_s26 + $0x4a0] sm:$0xf] }
  0x65   : > { %350 = vst [vmem:[%s8539_s27 + $0x154] sm:$0xf] %v349_v21  ;;  %v477_v21 = vld [vmem:[%s8535_s26 + $0x4a8] sm:$0xf] }
  0x66   : > { %352 = vst [vmem:[%s8539_s27 + $0x158] sm:$0xf] %v351_v22  ;;  %v479_v22 = vld [vmem:[%s8535_s26 + $0x4b0] sm:$0xf] }
  0x67   : > { %354 = vst [vmem:[%s8539_s27 + $0x15c] sm:$0xf] %v353_v23  ;;  %v481_v23 = vld [vmem:[%s8535_s26 + $0x4b8] sm:$0xf] }
  0x68   : > { %356 = vst [vmem:[%s8539_s27 + $0x160] sm:$0xf] %v355_v24  ;;  %v483_v24 = vld [vmem:[%s8535_s26 + $0x4c0] sm:$0xf] }
  0x69   : > { %358 = vst [vmem:[%s8539_s27 + $0x164] sm:$0xf] %v357_v25  ;;  %v485_v25 = vld [vmem:[%s8535_s26 + $0x4c8] sm:$0xf] }
  0x6a   : > { %360 = vst [vmem:[%s8539_s27 + $0x168] sm:$0xf] %v359_v26  ;;  %v487_v26 = vld [vmem:[%s8535_s26 + $0x4d0] sm:$0xf] }
  0x6b   : > { %362 = vst [vmem:[%s8539_s27 + $0x16c] sm:$0xf] %v361_v27  ;;  %v489_v27 = vld [vmem:[%s8535_s26 + $0x4d8] sm:$0xf] }
  0x6c   : > { %364 = vst [vmem:[%s8539_s27 + $0x170] sm:$0xf] %v363_v28  ;;  %v491_v28 = vld [vmem:[%s8535_s26 + $0x4e0] sm:$0xf] }
  0x6d   : > { %366 = vst [vmem:[%s8539_s27 + $0x174] sm:$0xf] %v365_v29  ;;  %v493_v29 = vld [vmem:[%s8535_s26 + $0x4e8] sm:$0xf] }
  0x6e   : > { %368 = vst [vmem:[%s8539_s27 + $0x178] sm:$0xf] %v367_v30  ;;  %v495_v30 = vld [vmem:[%s8535_s26 + $0x4f0] sm:$0xf] }
  0x6f   : > { %370 = vst [vmem:[%s8539_s27 + $0x17c] sm:$0xf] %v369_v31  ;;  %v497_v31 = vld [vmem:[%s8535_s26 + $0x4f8] sm:$0xf] }
  0x70   : > { %372 = vst [vmem:[%s8539_s27 + $0x180] sm:$0xf] %v371_v32  ;;  %v499_v32 = vld [vmem:[%s8535_s26 + $0x500] sm:$0xf] }
  0x71   : > { %374 = vst [vmem:[%s8539_s27 + $0x184] sm:$0xf] %v373_v33  ;;  %v501_v33 = vld [vmem:[%s8535_s26 + $0x508] sm:$0xf] }
  0x72   : > { %376 = vst [vmem:[%s8539_s27 + $0x188] sm:$0xf] %v375_v34  ;;  %v503_v34 = vld [vmem:[%s8535_s26 + $0x510] sm:$0xf] }
  0x73   : > { %378 = vst [vmem:[%s8539_s27 + $0x18c] sm:$0xf] %v377_v35  ;;  %v505_v35 = vld [vmem:[%s8535_s26 + $0x518] sm:$0xf] }
  0x74   : > { %380 = vst [vmem:[%s8539_s27 + $0x190] sm:$0xf] %v379_v36  ;;  %v507_v36 = vld [vmem:[%s8535_s26 + $0x520] sm:$0xf] }
  0x75   : > { %382 = vst [vmem:[%s8539_s27 + $0x194] sm:$0xf] %v381_v37  ;;  %v509_v37 = vld [vmem:[%s8535_s26 + $0x528] sm:$0xf] }
  0x76   : > { %384 = vst [vmem:[%s8539_s27 + $0x198] sm:$0xf] %v383_v38  ;;  %v511_v38 = vld [vmem:[%s8535_s26 + $0x530] sm:$0xf] }
  0x77   : > { %386 = vst [vmem:[%s8539_s27 + $0x19c] sm:$0xf] %v385_v39  ;;  %v513_v39 = vld [vmem:[%s8535_s26 + $0x538] sm:$0xf] }
  0x78   : > { %388 = vst [vmem:[%s8539_s27 + $0x1a0] sm:$0xf] %v387_v40  ;;  %v515_v40 = vld [vmem:[%s8535_s26 + $0x540] sm:$0xf] }
  0x79   : > { %390 = vst [vmem:[%s8539_s27 + $0x1a4] sm:$0xf] %v389_v41  ;;  %v517_v41 = vld [vmem:[%s8535_s26 + $0x548] sm:$0xf] }
  0x7a   : > { %392 = vst [vmem:[%s8539_s27 + $0x1a8] sm:$0xf] %v391_v42  ;;  %v519_v42 = vld [vmem:[%s8535_s26 + $0x550] sm:$0xf] }
  0x7b   : > { %394 = vst [vmem:[%s8539_s27 + $0x1ac] sm:$0xf] %v393_v43  ;;  %v521_v43 = vld [vmem:[%s8535_s26 + $0x558] sm:$0xf] }
  0x7c   : > { %396 = vst [vmem:[%s8539_s27 + $0x1b0] sm:$0xf] %v395_v44  ;;  %v523_v44 = vld [vmem:[%s8535_s26 + $0x560] sm:$0xf] }
  0x7d   : > { %398 = vst [vmem:[%s8539_s27 + $0x1b4] sm:$0xf] %v397_v45  ;;  %v525_v45 = vld [vmem:[%s8535_s26 + $0x568] sm:$0xf] }
  0x7e   : > { %400 = vst [vmem:[%s8539_s27 + $0x1b8] sm:$0xf] %v399_v46  ;;  %v527_v46 = vld [vmem:[%s8535_s26 + $0x570] sm:$0xf] }
  0x7f   : > { %402 = vst [vmem:[%s8539_s27 + $0x1bc] sm:$0xf] %v401_v47  ;;  %v529_v47 = vld [vmem:[%s8535_s26 + $0x578] sm:$0xf] }
  0x80   : > { %404 = vst [vmem:[%s8539_s27 + $0x1c0] sm:$0xf] %v403_v48  ;;  %v531_v48 = vld [vmem:[%s8535_s26 + $0x580] sm:$0xf] }
  0x81   : > { %406 = vst [vmem:[%s8539_s27 + $0x1c4] sm:$0xf] %v405_v49  ;;  %v533_v49 = vld [vmem:[%s8535_s26 + $0x588] sm:$0xf] }
  0x82   : > { %408 = vst [vmem:[%s8539_s27 + $0x1c8] sm:$0xf] %v407_v50  ;;  %v535_v50 = vld [vmem:[%s8535_s26 + $0x590] sm:$0xf] }
  0x83   : > { %410 = vst [vmem:[%s8539_s27 + $0x1cc] sm:$0xf] %v409_v51  ;;  %v537_v51 = vld [vmem:[%s8535_s26 + $0x598] sm:$0xf] }
  0x84   : > { %412 = vst [vmem:[%s8539_s27 + $0x1d0] sm:$0xf] %v411_v52  ;;  %v539_v52 = vld [vmem:[%s8535_s26 + $0x5a0] sm:$0xf] }
  0x85   : > { %414 = vst [vmem:[%s8539_s27 + $0x1d4] sm:$0xf] %v413_v53  ;;  %v541_v53 = vld [vmem:[%s8535_s26 + $0x5a8] sm:$0xf] }
  0x86   : > { %416 = vst [vmem:[%s8539_s27 + $0x1d8] sm:$0xf] %v415_v54  ;;  %v543_v54 = vld [vmem:[%s8535_s26 + $0x5b0] sm:$0xf] }
  0x87   : > { %418 = vst [vmem:[%s8539_s27 + $0x1dc] sm:$0xf] %v417_v55  ;;  %v545_v55 = vld [vmem:[%s8535_s26 + $0x5b8] sm:$0xf] }
  0x88   : > { %420 = vst [vmem:[%s8539_s27 + $0x1e0] sm:$0xf] %v419_v56  ;;  %v547_v56 = vld [vmem:[%s8535_s26 + $0x5c0] sm:$0xf] }
  0x89   : > { %422 = vst [vmem:[%s8539_s27 + $0x1e4] sm:$0xf] %v421_v57  ;;  %v549_v57 = vld [vmem:[%s8535_s26 + $0x5c8] sm:$0xf] }
  0x8a   : > { %424 = vst [vmem:[%s8539_s27 + $0x1e8] sm:$0xf] %v423_v58  ;;  %v551_v58 = vld [vmem:[%s8535_s26 + $0x5d0] sm:$0xf] }
  0x8b   : > { %426 = vst [vmem:[%s8539_s27 + $0x1ec] sm:$0xf] %v425_v59  ;;  %v553_v59 = vld [vmem:[%s8535_s26 + $0x5d8] sm:$0xf] }
  0x8c   : > { %428 = vst [vmem:[%s8539_s27 + $0x1f0] sm:$0xf] %v427_v60  ;;  %v555_v60 = vld [vmem:[%s8535_s26 + $0x5e0] sm:$0xf] }
  0x8d   : > { %430 = vst [vmem:[%s8539_s27 + $0x1f4] sm:$0xf] %v429_v61  ;;  %v557_v61 = vld [vmem:[%s8535_s26 + $0x5e8] sm:$0xf] }
  0x8e   : > { %432 = vst [vmem:[%s8539_s27 + $0x1f8] sm:$0xf] %v431_v62  ;;  %v559_v62 = vld [vmem:[%s8535_s26 + $0x5f0] sm:$0xf] }
  0x8f   : > { %434 = vst [vmem:[%s8539_s27 + $0x1fc] sm:$0xf] %v433_v63  ;;  %v561_v63 = vld [vmem:[%s8535_s26 + $0x5f8] sm:$0xf] }
  0x90   : > { %436 = vst [vmem:[%s8539_s27 + $0x200] sm:$0xf] %v435_v0  ;;  %v563_v0 = vld [vmem:[%s8535_s26 + $0x600] sm:$0xf] }
  0x91   : > { %438 = vst [vmem:[%s8539_s27 + $0x204] sm:$0xf] %v437_v1  ;;  %v565_v1 = vld [vmem:[%s8535_s26 + $0x608] sm:$0xf] }
  0x92   : > { %440 = vst [vmem:[%s8539_s27 + $0x208] sm:$0xf] %v439_v2  ;;  %v567_v2 = vld [vmem:[%s8535_s26 + $0x610] sm:$0xf] }
  0x93   : > { %442 = vst [vmem:[%s8539_s27 + $0x20c] sm:$0xf] %v441_v3  ;;  %v569_v3 = vld [vmem:[%s8535_s26 + $0x618] sm:$0xf] }
  0x94   : > { %444 = vst [vmem:[%s8539_s27 + $0x210] sm:$0xf] %v443_v4  ;;  %v571_v4 = vld [vmem:[%s8535_s26 + $0x620] sm:$0xf] }
  0x95   : > { %446 = vst [vmem:[%s8539_s27 + $0x214] sm:$0xf] %v445_v5  ;;  %v573_v5 = vld [vmem:[%s8535_s26 + $0x628] sm:$0xf] }
  0x96   : > { %448 = vst [vmem:[%s8539_s27 + $0x218] sm:$0xf] %v447_v6  ;;  %v575_v6 = vld [vmem:[%s8535_s26 + $0x630] sm:$0xf] }
  0x97   : > { %450 = vst [vmem:[%s8539_s27 + $0x21c] sm:$0xf] %v449_v7  ;;  %v577_v7 = vld [vmem:[%s8535_s26 + $0x638] sm:$0xf] }
  0x98   : > { %452 = vst [vmem:[%s8539_s27 + $0x220] sm:$0xf] %v451_v8  ;;  %v579_v8 = vld [vmem:[%s8535_s26 + $0x640] sm:$0xf] }
  0x99   : > { %454 = vst [vmem:[%s8539_s27 + $0x224] sm:$0xf] %v453_v9  ;;  %v581_v9 = vld [vmem:[%s8535_s26 + $0x648] sm:$0xf] }
  0x9a   : > { %456 = vst [vmem:[%s8539_s27 + $0x228] sm:$0xf] %v455_v10  ;;  %v583_v10 = vld [vmem:[%s8535_s26 + $0x650] sm:$0xf] }
  0x9b   : > { %458 = vst [vmem:[%s8539_s27 + $0x22c] sm:$0xf] %v457_v11  ;;  %v585_v11 = vld [vmem:[%s8535_s26 + $0x658] sm:$0xf] }
  0x9c   : > { %460 = vst [vmem:[%s8539_s27 + $0x230] sm:$0xf] %v459_v12  ;;  %v587_v12 = vld [vmem:[%s8535_s26 + $0x660] sm:$0xf] }
  0x9d   : > { %462 = vst [vmem:[%s8539_s27 + $0x234] sm:$0xf] %v461_v13  ;;  %v589_v13 = vld [vmem:[%s8535_s26 + $0x668] sm:$0xf] }
  0x9e   : > { %464 = vst [vmem:[%s8539_s27 + $0x238] sm:$0xf] %v463_v14  ;;  %v591_v14 = vld [vmem:[%s8535_s26 + $0x670] sm:$0xf] }
  0x9f   : > { %466 = vst [vmem:[%s8539_s27 + $0x23c] sm:$0xf] %v465_v15  ;;  %v593_v15 = vld [vmem:[%s8535_s26 + $0x678] sm:$0xf] }
  0xa0   : > { %468 = vst [vmem:[%s8539_s27 + $0x240] sm:$0xf] %v467_v16  ;;  %v595_v16 = vld [vmem:[%s8535_s26 + $0x680] sm:$0xf] }
  0xa1   : > { %470 = vst [vmem:[%s8539_s27 + $0x244] sm:$0xf] %v469_v17  ;;  %v597_v17 = vld [vmem:[%s8535_s26 + $0x688] sm:$0xf] }
  0xa2   : > { %472 = vst [vmem:[%s8539_s27 + $0x248] sm:$0xf] %v471_v18  ;;  %v599_v18 = vld [vmem:[%s8535_s26 + $0x690] sm:$0xf] }
  0xa3   : > { %474 = vst [vmem:[%s8539_s27 + $0x24c] sm:$0xf] %v473_v19  ;;  %v601_v19 = vld [vmem:[%s8535_s26 + $0x698] sm:$0xf] }
  0xa4   : > { %476 = vst [vmem:[%s8539_s27 + $0x250] sm:$0xf] %v475_v20  ;;  %v603_v20 = vld [vmem:[%s8535_s26 + $0x6a0] sm:$0xf] }
  0xa5   : > { %478 = vst [vmem:[%s8539_s27 + $0x254] sm:$0xf] %v477_v21  ;;  %v605_v21 = vld [vmem:[%s8535_s26 + $0x6a8] sm:$0xf] }
  0xa6   : > { %480 = vst [vmem:[%s8539_s27 + $0x258] sm:$0xf] %v479_v22  ;;  %v607_v22 = vld [vmem:[%s8535_s26 + $0x6b0] sm:$0xf] }
  0xa7   : > { %482 = vst [vmem:[%s8539_s27 + $0x25c] sm:$0xf] %v481_v23  ;;  %v609_v23 = vld [vmem:[%s8535_s26 + $0x6b8] sm:$0xf] }
  0xa8   : > { %484 = vst [vmem:[%s8539_s27 + $0x260] sm:$0xf] %v483_v24  ;;  %v611_v24 = vld [vmem:[%s8535_s26 + $0x6c0] sm:$0xf] }
  0xa9   : > { %486 = vst [vmem:[%s8539_s27 + $0x264] sm:$0xf] %v485_v25  ;;  %v613_v25 = vld [vmem:[%s8535_s26 + $0x6c8] sm:$0xf] }
  0xaa   : > { %488 = vst [vmem:[%s8539_s27 + $0x268] sm:$0xf] %v487_v26  ;;  %v615_v26 = vld [vmem:[%s8535_s26 + $0x6d0] sm:$0xf] }
  0xab   : > { %490 = vst [vmem:[%s8539_s27 + $0x26c] sm:$0xf] %v489_v27  ;;  %v617_v27 = vld [vmem:[%s8535_s26 + $0x6d8] sm:$0xf] }
  0xac   : > { %492 = vst [vmem:[%s8539_s27 + $0x270] sm:$0xf] %v491_v28  ;;  %v619_v28 = vld [vmem:[%s8535_s26 + $0x6e0] sm:$0xf] }
  0xad   : > { %494 = vst [vmem:[%s8539_s27 + $0x274] sm:$0xf] %v493_v29  ;;  %v621_v29 = vld [vmem:[%s8535_s26 + $0x6e8] sm:$0xf] }
  0xae   : > { %496 = vst [vmem:[%s8539_s27 + $0x278] sm:$0xf] %v495_v30  ;;  %v623_v30 = vld [vmem:[%s8535_s26 + $0x6f0] sm:$0xf] }
  0xaf   : > { %498 = vst [vmem:[%s8539_s27 + $0x27c] sm:$0xf] %v497_v31  ;;  %v625_v31 = vld [vmem:[%s8535_s26 + $0x6f8] sm:$0xf] }
  0xb0   : > { %500 = vst [vmem:[%s8539_s27 + $0x280] sm:$0xf] %v499_v32  ;;  %v627_v32 = vld [vmem:[%s8535_s26 + $0x700] sm:$0xf] }
  0xb1   : > { %502 = vst [vmem:[%s8539_s27 + $0x284] sm:$0xf] %v501_v33  ;;  %v629_v33 = vld [vmem:[%s8535_s26 + $0x708] sm:$0xf] }
  0xb2   : > { %504 = vst [vmem:[%s8539_s27 + $0x288] sm:$0xf] %v503_v34  ;;  %v631_v34 = vld [vmem:[%s8535_s26 + $0x710] sm:$0xf] }
  0xb3   : > { %506 = vst [vmem:[%s8539_s27 + $0x28c] sm:$0xf] %v505_v35  ;;  %v633_v35 = vld [vmem:[%s8535_s26 + $0x718] sm:$0xf] }
  0xb4   : > { %508 = vst [vmem:[%s8539_s27 + $0x290] sm:$0xf] %v507_v36  ;;  %v635_v36 = vld [vmem:[%s8535_s26 + $0x720] sm:$0xf] }
  0xb5   : > { %510 = vst [vmem:[%s8539_s27 + $0x294] sm:$0xf] %v509_v37  ;;  %v637_v37 = vld [vmem:[%s8535_s26 + $0x728] sm:$0xf] }
  0xb6   : > { %512 = vst [vmem:[%s8539_s27 + $0x298] sm:$0xf] %v511_v38  ;;  %v639_v38 = vld [vmem:[%s8535_s26 + $0x730] sm:$0xf] }
  0xb7   : > { %514 = vst [vmem:[%s8539_s27 + $0x29c] sm:$0xf] %v513_v39  ;;  %v641_v39 = vld [vmem:[%s8535_s26 + $0x738] sm:$0xf] }
  0xb8   : > { %516 = vst [vmem:[%s8539_s27 + $0x2a0] sm:$0xf] %v515_v40  ;;  %v643_v40 = vld [vmem:[%s8535_s26 + $0x740] sm:$0xf] }
  0xb9   : > { %518 = vst [vmem:[%s8539_s27 + $0x2a4] sm:$0xf] %v517_v41  ;;  %v645_v41 = vld [vmem:[%s8535_s26 + $0x748] sm:$0xf] }
  0xba   : > { %520 = vst [vmem:[%s8539_s27 + $0x2a8] sm:$0xf] %v519_v42  ;;  %v647_v42 = vld [vmem:[%s8535_s26 + $0x750] sm:$0xf] }
  0xbb   : > { %522 = vst [vmem:[%s8539_s27 + $0x2ac] sm:$0xf] %v521_v43  ;;  %v649_v43 = vld [vmem:[%s8535_s26 + $0x758] sm:$0xf] }
  0xbc   : > { %524 = vst [vmem:[%s8539_s27 + $0x2b0] sm:$0xf] %v523_v44  ;;  %v651_v44 = vld [vmem:[%s8535_s26 + $0x760] sm:$0xf] }
  0xbd   : > { %526 = vst [vmem:[%s8539_s27 + $0x2b4] sm:$0xf] %v525_v45  ;;  %v653_v45 = vld [vmem:[%s8535_s26 + $0x768] sm:$0xf] }
  0xbe   : > { %528 = vst [vmem:[%s8539_s27 + $0x2b8] sm:$0xf] %v527_v46  ;;  %v655_v46 = vld [vmem:[%s8535_s26 + $0x770] sm:$0xf] }
  0xbf   : > { %530 = vst [vmem:[%s8539_s27 + $0x2bc] sm:$0xf] %v529_v47  ;;  %v657_v47 = vld [vmem:[%s8535_s26 + $0x778] sm:$0xf] }
  0xc0   : > { %532 = vst [vmem:[%s8539_s27 + $0x2c0] sm:$0xf] %v531_v48  ;;  %v659_v48 = vld [vmem:[%s8535_s26 + $0x780] sm:$0xf] }
  0xc1   : > { %534 = vst [vmem:[%s8539_s27 + $0x2c4] sm:$0xf] %v533_v49  ;;  %v661_v49 = vld [vmem:[%s8535_s26 + $0x788] sm:$0xf] }
  0xc2   : > { %536 = vst [vmem:[%s8539_s27 + $0x2c8] sm:$0xf] %v535_v50  ;;  %v663_v50 = vld [vmem:[%s8535_s26 + $0x790] sm:$0xf] }
  0xc3   : > { %538 = vst [vmem:[%s8539_s27 + $0x2cc] sm:$0xf] %v537_v51  ;;  %v665_v51 = vld [vmem:[%s8535_s26 + $0x798] sm:$0xf] }
  0xc4   : > { %540 = vst [vmem:[%s8539_s27 + $0x2d0] sm:$0xf] %v539_v52  ;;  %v667_v52 = vld [vmem:[%s8535_s26 + $0x7a0] sm:$0xf] }
  0xc5   : > { %542 = vst [vmem:[%s8539_s27 + $0x2d4] sm:$0xf] %v541_v53  ;;  %v669_v53 = vld [vmem:[%s8535_s26 + $0x7a8] sm:$0xf] }
  0xc6   : > { %544 = vst [vmem:[%s8539_s27 + $0x2d8] sm:$0xf] %v543_v54  ;;  %v671_v54 = vld [vmem:[%s8535_s26 + $0x7b0] sm:$0xf] }
  0xc7   : > { %546 = vst [vmem:[%s8539_s27 + $0x2dc] sm:$0xf] %v545_v55  ;;  %v673_v55 = vld [vmem:[%s8535_s26 + $0x7b8] sm:$0xf] }
  0xc8   : > { %548 = vst [vmem:[%s8539_s27 + $0x2e0] sm:$0xf] %v547_v56  ;;  %v675_v56 = vld [vmem:[%s8535_s26 + $0x7c0] sm:$0xf] }
  0xc9   : > { %550 = vst [vmem:[%s8539_s27 + $0x2e4] sm:$0xf] %v549_v57  ;;  %v677_v57 = vld [vmem:[%s8535_s26 + $0x7c8] sm:$0xf] }
  0xca   : > { %552 = vst [vmem:[%s8539_s27 + $0x2e8] sm:$0xf] %v551_v58  ;;  %v679_v58 = vld [vmem:[%s8535_s26 + $0x7d0] sm:$0xf] }
  0xcb   : > { %554 = vst [vmem:[%s8539_s27 + $0x2ec] sm:$0xf] %v553_v59  ;;  %v681_v59 = vld [vmem:[%s8535_s26 + $0x7d8] sm:$0xf] }
  0xcc   : > { %556 = vst [vmem:[%s8539_s27 + $0x2f0] sm:$0xf] %v555_v60  ;;  %v683_v60 = vld [vmem:[%s8535_s26 + $0x7e0] sm:$0xf] }
  0xcd   : > { %558 = vst [vmem:[%s8539_s27 + $0x2f4] sm:$0xf] %v557_v61  ;;  %v685_v61 = vld [vmem:[%s8535_s26 + $0x7e8] sm:$0xf] }
  0xce   : > { %560 = vst [vmem:[%s8539_s27 + $0x2f8] sm:$0xf] %v559_v62  ;;  %v687_v62 = vld [vmem:[%s8535_s26 + $0x7f0] sm:$0xf] }
  0xcf   : > { %562 = vst [vmem:[%s8539_s27 + $0x2fc] sm:$0xf] %v561_v63  ;;  %v689_v63 = vld [vmem:[%s8535_s26 + $0x7f8] sm:$0xf] }
  0xd0   : > { %564 = vst [vmem:[%s8539_s27 + $0x300] sm:$0xf] %v563_v0  ;;  %v691_v0 = vld [vmem:[%s8535_s26 + $0x800] sm:$0xf] }
  0xd1   : > { %566 = vst [vmem:[%s8539_s27 + $0x304] sm:$0xf] %v565_v1  ;;  %v693_v1 = vld [vmem:[%s8535_s26 + $0x808] sm:$0xf] }
  0xd2   : > { %568 = vst [vmem:[%s8539_s27 + $0x308] sm:$0xf] %v567_v2  ;;  %v695_v2 = vld [vmem:[%s8535_s26 + $0x810] sm:$0xf] }
  0xd3   : > { %570 = vst [vmem:[%s8539_s27 + $0x30c] sm:$0xf] %v569_v3  ;;  %v697_v3 = vld [vmem:[%s8535_s26 + $0x818] sm:$0xf] }
  0xd4   : > { %572 = vst [vmem:[%s8539_s27 + $0x310] sm:$0xf] %v571_v4  ;;  %v699_v4 = vld [vmem:[%s8535_s26 + $0x820] sm:$0xf] }
  0xd5   : > { %574 = vst [vmem:[%s8539_s27 + $0x314] sm:$0xf] %v573_v5  ;;  %v701_v5 = vld [vmem:[%s8535_s26 + $0x828] sm:$0xf] }
  0xd6   : > { %576 = vst [vmem:[%s8539_s27 + $0x318] sm:$0xf] %v575_v6  ;;  %v703_v6 = vld [vmem:[%s8535_s26 + $0x830] sm:$0xf] }
  0xd7   : > { %578 = vst [vmem:[%s8539_s27 + $0x31c] sm:$0xf] %v577_v7  ;;  %v705_v7 = vld [vmem:[%s8535_s26 + $0x838] sm:$0xf] }
  0xd8   : > { %580 = vst [vmem:[%s8539_s27 + $0x320] sm:$0xf] %v579_v8  ;;  %v707_v8 = vld [vmem:[%s8535_s26 + $0x840] sm:$0xf] }
  0xd9   : > { %582 = vst [vmem:[%s8539_s27 + $0x324] sm:$0xf] %v581_v9  ;;  %v709_v9 = vld [vmem:[%s8535_s26 + $0x848] sm:$0xf] }
  0xda   : > { %584 = vst [vmem:[%s8539_s27 + $0x328] sm:$0xf] %v583_v10  ;;  %v711_v10 = vld [vmem:[%s8535_s26 + $0x850] sm:$0xf] }
  0xdb   : > { %586 = vst [vmem:[%s8539_s27 + $0x32c] sm:$0xf] %v585_v11  ;;  %v713_v11 = vld [vmem:[%s8535_s26 + $0x858] sm:$0xf] }
  0xdc   : > { %588 = vst [vmem:[%s8539_s27 + $0x330] sm:$0xf] %v587_v12  ;;  %v715_v12 = vld [vmem:[%s8535_s26 + $0x860] sm:$0xf] }
  0xdd   : > { %590 = vst [vmem:[%s8539_s27 + $0x334] sm:$0xf] %v589_v13  ;;  %v717_v13 = vld [vmem:[%s8535_s26 + $0x868] sm:$0xf] }
  0xde   : > { %592 = vst [vmem:[%s8539_s27 + $0x338] sm:$0xf] %v591_v14  ;;  %v719_v14 = vld [vmem:[%s8535_s26 + $0x870] sm:$0xf] }
  0xdf   : > { %594 = vst [vmem:[%s8539_s27 + $0x33c] sm:$0xf] %v593_v15  ;;  %v721_v15 = vld [vmem:[%s8535_s26 + $0x878] sm:$0xf] }
  0xe0   : > { %596 = vst [vmem:[%s8539_s27 + $0x340] sm:$0xf] %v595_v16  ;;  %v723_v16 = vld [vmem:[%s8535_s26 + $0x880] sm:$0xf] }
  0xe1   : > { %598 = vst [vmem:[%s8539_s27 + $0x344] sm:$0xf] %v597_v17  ;;  %v725_v17 = vld [vmem:[%s8535_s26 + $0x888] sm:$0xf] }
  0xe2   : > { %600 = vst [vmem:[%s8539_s27 + $0x348] sm:$0xf] %v599_v18  ;;  %v727_v18 = vld [vmem:[%s8535_s26 + $0x890] sm:$0xf] }
  0xe3   : > { %602 = vst [vmem:[%s8539_s27 + $0x34c] sm:$0xf] %v601_v19  ;;  %v729_v19 = vld [vmem:[%s8535_s26 + $0x898] sm:$0xf] }
  0xe4   : > { %604 = vst [vmem:[%s8539_s27 + $0x350] sm:$0xf] %v603_v20  ;;  %v731_v20 = vld [vmem:[%s8535_s26 + $0x8a0] sm:$0xf] }
  0xe5   : > { %606 = vst [vmem:[%s8539_s27 + $0x354] sm:$0xf] %v605_v21  ;;  %v733_v21 = vld [vmem:[%s8535_s26 + $0x8a8] sm:$0xf] }
  0xe6   : > { %608 = vst [vmem:[%s8539_s27 + $0x358] sm:$0xf] %v607_v22  ;;  %v735_v22 = vld [vmem:[%s8535_s26 + $0x8b0] sm:$0xf] }
  0xe7   : > { %610 = vst [vmem:[%s8539_s27 + $0x35c] sm:$0xf] %v609_v23  ;;  %v737_v23 = vld [vmem:[%s8535_s26 + $0x8b8] sm:$0xf] }
  0xe8   : > { %612 = vst [vmem:[%s8539_s27 + $0x360] sm:$0xf] %v611_v24  ;;  %v739_v24 = vld [vmem:[%s8535_s26 + $0x8c0] sm:$0xf] }
  0xe9   : > { %614 = vst [vmem:[%s8539_s27 + $0x364] sm:$0xf] %v613_v25  ;;  %v741_v25 = vld [vmem:[%s8535_s26 + $0x8c8] sm:$0xf] }
  0xea   : > { %616 = vst [vmem:[%s8539_s27 + $0x368] sm:$0xf] %v615_v26  ;;  %v743_v26 = vld [vmem:[%s8535_s26 + $0x8d0] sm:$0xf] }
  0xeb   : > { %618 = vst [vmem:[%s8539_s27 + $0x36c] sm:$0xf] %v617_v27  ;;  %v745_v27 = vld [vmem:[%s8535_s26 + $0x8d8] sm:$0xf] }
  0xec   : > { %620 = vst [vmem:[%s8539_s27 + $0x370] sm:$0xf] %v619_v28  ;;  %v747_v28 = vld [vmem:[%s8535_s26 + $0x8e0] sm:$0xf] }
  0xed   : > { %622 = vst [vmem:[%s8539_s27 + $0x374] sm:$0xf] %v621_v29  ;;  %v749_v29 = vld [vmem:[%s8535_s26 + $0x8e8] sm:$0xf] }
  0xee   : > { %624 = vst [vmem:[%s8539_s27 + $0x378] sm:$0xf] %v623_v30  ;;  %v751_v30 = vld [vmem:[%s8535_s26 + $0x8f0] sm:$0xf] }
  0xef   : > { %626 = vst [vmem:[%s8539_s27 + $0x37c] sm:$0xf] %v625_v31  ;;  %v753_v31 = vld [vmem:[%s8535_s26 + $0x8f8] sm:$0xf] }
  0xf0   : > { %628 = vst [vmem:[%s8539_s27 + $0x380] sm:$0xf] %v627_v32  ;;  %v755_v32 = vld [vmem:[%s8535_s26 + $0x900] sm:$0xf] }
  0xf1   : > { %630 = vst [vmem:[%s8539_s27 + $0x384] sm:$0xf] %v629_v33  ;;  %v757_v33 = vld [vmem:[%s8535_s26 + $0x908] sm:$0xf] }
  0xf2   : > { %632 = vst [vmem:[%s8539_s27 + $0x388] sm:$0xf] %v631_v34  ;;  %v759_v34 = vld [vmem:[%s8535_s26 + $0x910] sm:$0xf] }
  0xf3   : > { %634 = vst [vmem:[%s8539_s27 + $0x38c] sm:$0xf] %v633_v35  ;;  %v761_v35 = vld [vmem:[%s8535_s26 + $0x918] sm:$0xf] }
  0xf4   : > { %636 = vst [vmem:[%s8539_s27 + $0x390] sm:$0xf] %v635_v36  ;;  %v763_v36 = vld [vmem:[%s8535_s26 + $0x920] sm:$0xf] }
  0xf5   : > { %638 = vst [vmem:[%s8539_s27 + $0x394] sm:$0xf] %v637_v37  ;;  %v765_v37 = vld [vmem:[%s8535_s26 + $0x928] sm:$0xf] }
  0xf6   : > { %640 = vst [vmem:[%s8539_s27 + $0x398] sm:$0xf] %v639_v38  ;;  %v767_v38 = vld [vmem:[%s8535_s26 + $0x930] sm:$0xf] }
  0xf7   : > { %642 = vst [vmem:[%s8539_s27 + $0x39c] sm:$0xf] %v641_v39  ;;  %v769_v39 = vld [vmem:[%s8535_s26 + $0x938] sm:$0xf] }
  0xf8   : > { %644 = vst [vmem:[%s8539_s27 + $0x3a0] sm:$0xf] %v643_v40  ;;  %v771_v40 = vld [vmem:[%s8535_s26 + $0x940] sm:$0xf] }
  0xf9   : > { %646 = vst [vmem:[%s8539_s27 + $0x3a4] sm:$0xf] %v645_v41  ;;  %v773_v41 = vld [vmem:[%s8535_s26 + $0x948] sm:$0xf] }
  0xfa   : > { %648 = vst [vmem:[%s8539_s27 + $0x3a8] sm:$0xf] %v647_v42  ;;  %v775_v42 = vld [vmem:[%s8535_s26 + $0x950] sm:$0xf] }
  0xfb   : > { %650 = vst [vmem:[%s8539_s27 + $0x3ac] sm:$0xf] %v649_v43  ;;  %v777_v43 = vld [vmem:[%s8535_s26 + $0x958] sm:$0xf] }
  0xfc   : > { %652 = vst [vmem:[%s8539_s27 + $0x3b0] sm:$0xf] %v651_v44  ;;  %v779_v44 = vld [vmem:[%s8535_s26 + $0x960] sm:$0xf] }
  0xfd   : > { %654 = vst [vmem:[%s8539_s27 + $0x3b4] sm:$0xf] %v653_v45  ;;  %v781_v45 = vld [vmem:[%s8535_s26 + $0x968] sm:$0xf] }
  0xfe   : > { %656 = vst [vmem:[%s8539_s27 + $0x3b8] sm:$0xf] %v655_v46  ;;  %v783_v46 = vld [vmem:[%s8535_s26 + $0x970] sm:$0xf] }
  0xff   : > { %658 = vst [vmem:[%s8539_s27 + $0x3bc] sm:$0xf] %v657_v47  ;;  %v785_v47 = vld [vmem:[%s8535_s26 + $0x978] sm:$0xf] }
 0x100   : > { %660 = vst [vmem:[%s8539_s27 + $0x3c0] sm:$0xf] %v659_v48  ;;  %v787_v48 = vld [vmem:[%s8535_s26 + $0x980] sm:$0xf] }
 0x101   : > { %662 = vst [vmem:[%s8539_s27 + $0x3c4] sm:$0xf] %v661_v49  ;;  %v789_v49 = vld [vmem:[%s8535_s26 + $0x988] sm:$0xf] }
 0x102   : > { %664 = vst [vmem:[%s8539_s27 + $0x3c8] sm:$0xf] %v663_v50  ;;  %v791_v50 = vld [vmem:[%s8535_s26 + $0x990] sm:$0xf] }
 0x103   : > { %666 = vst [vmem:[%s8539_s27 + $0x3cc] sm:$0xf] %v665_v51  ;;  %v793_v51 = vld [vmem:[%s8535_s26 + $0x998] sm:$0xf] }
 0x104   : > { %668 = vst [vmem:[%s8539_s27 + $0x3d0] sm:$0xf] %v667_v52  ;;  %v795_v52 = vld [vmem:[%s8535_s26 + $0x9a0] sm:$0xf] }
 0x105   : > { %670 = vst [vmem:[%s8539_s27 + $0x3d4] sm:$0xf] %v669_v53  ;;  %v797_v53 = vld [vmem:[%s8535_s26 + $0x9a8] sm:$0xf] }
 0x106   : > { %672 = vst [vmem:[%s8539_s27 + $0x3d8] sm:$0xf] %v671_v54  ;;  %v799_v54 = vld [vmem:[%s8535_s26 + $0x9b0] sm:$0xf] }
 0x107   : > { %674 = vst [vmem:[%s8539_s27 + $0x3dc] sm:$0xf] %v673_v55  ;;  %v801_v55 = vld [vmem:[%s8535_s26 + $0x9b8] sm:$0xf] }
 0x108   : > { %676 = vst [vmem:[%s8539_s27 + $0x3e0] sm:$0xf] %v675_v56  ;;  %v803_v56 = vld [vmem:[%s8535_s26 + $0x9c0] sm:$0xf] }
 0x109   : > { %678 = vst [vmem:[%s8539_s27 + $0x3e4] sm:$0xf] %v677_v57  ;;  %v805_v57 = vld [vmem:[%s8535_s26 + $0x9c8] sm:$0xf] }
 0x10a   : > { %680 = vst [vmem:[%s8539_s27 + $0x3e8] sm:$0xf] %v679_v58  ;;  %v807_v58 = vld [vmem:[%s8535_s26 + $0x9d0] sm:$0xf] }
 0x10b   : > { %682 = vst [vmem:[%s8539_s27 + $0x3ec] sm:$0xf] %v681_v59  ;;  %v809_v59 = vld [vmem:[%s8535_s26 + $0x9d8] sm:$0xf] }
 0x10c   : > { %684 = vst [vmem:[%s8539_s27 + $0x3f0] sm:$0xf] %v683_v60  ;;  %v811_v60 = vld [vmem:[%s8535_s26 + $0x9e0] sm:$0xf] }
 0x10d   : > { %686 = vst [vmem:[%s8539_s27 + $0x3f4] sm:$0xf] %v685_v61  ;;  %v813_v61 = vld [vmem:[%s8535_s26 + $0x9e8] sm:$0xf] }
 0x10e   : > { %688 = vst [vmem:[%s8539_s27 + $0x3f8] sm:$0xf] %v687_v62  ;;  %v815_v62 = vld [vmem:[%s8535_s26 + $0x9f0] sm:$0xf] }
 0x10f   : > { %690 = vst [vmem:[%s8539_s27 + $0x3fc] sm:$0xf] %v689_v63  ;;  %v817_v63 = vld [vmem:[%s8535_s26 + $0x9f8] sm:$0xf] }
 0x110   : > { %692 = vst [vmem:[%s8539_s27 + $0x400] sm:$0xf] %v691_v0  ;;  %v819_v0 = vld [vmem:[%s8535_s26 + $0xa00] sm:$0xf] }
 0x111   : > { %694 = vst [vmem:[%s8539_s27 + $0x404] sm:$0xf] %v693_v1  ;;  %v821_v1 = vld [vmem:[%s8535_s26 + $0xa08] sm:$0xf] }
 0x112   : > { %696 = vst [vmem:[%s8539_s27 + $0x408] sm:$0xf] %v695_v2  ;;  %v823_v2 = vld [vmem:[%s8535_s26 + $0xa10] sm:$0xf] }
 0x113   : > { %698 = vst [vmem:[%s8539_s27 + $0x40c] sm:$0xf] %v697_v3  ;;  %v825_v3 = vld [vmem:[%s8535_s26 + $0xa18] sm:$0xf] }
 0x114   : > { %700 = vst [vmem:[%s8539_s27 + $0x410] sm:$0xf] %v699_v4  ;;  %v827_v4 = vld [vmem:[%s8535_s26 + $0xa20] sm:$0xf] }
 0x115   : > { %702 = vst [vmem:[%s8539_s27 + $0x414] sm:$0xf] %v701_v5  ;;  %v829_v5 = vld [vmem:[%s8535_s26 + $0xa28] sm:$0xf] }
 0x116   : > { %704 = vst [vmem:[%s8539_s27 + $0x418] sm:$0xf] %v703_v6  ;;  %v831_v6 = vld [vmem:[%s8535_s26 + $0xa30] sm:$0xf] }
 0x117   : > { %706 = vst [vmem:[%s8539_s27 + $0x41c] sm:$0xf] %v705_v7  ;;  %v833_v7 = vld [vmem:[%s8535_s26 + $0xa38] sm:$0xf] }
 0x118   : > { %708 = vst [vmem:[%s8539_s27 + $0x420] sm:$0xf] %v707_v8  ;;  %v835_v8 = vld [vmem:[%s8535_s26 + $0xa40] sm:$0xf] }
 0x119   : > { %710 = vst [vmem:[%s8539_s27 + $0x424] sm:$0xf] %v709_v9  ;;  %v837_v9 = vld [vmem:[%s8535_s26 + $0xa48] sm:$0xf] }
 0x11a   : > { %712 = vst [vmem:[%s8539_s27 + $0x428] sm:$0xf] %v711_v10  ;;  %v839_v10 = vld [vmem:[%s8535_s26 + $0xa50] sm:$0xf] }
 0x11b   : > { %714 = vst [vmem:[%s8539_s27 + $0x42c] sm:$0xf] %v713_v11  ;;  %v841_v11 = vld [vmem:[%s8535_s26 + $0xa58] sm:$0xf] }
 0x11c   : > { %716 = vst [vmem:[%s8539_s27 + $0x430] sm:$0xf] %v715_v12  ;;  %v843_v12 = vld [vmem:[%s8535_s26 + $0xa60] sm:$0xf] }
 0x11d   : > { %718 = vst [vmem:[%s8539_s27 + $0x434] sm:$0xf] %v717_v13  ;;  %v845_v13 = vld [vmem:[%s8535_s26 + $0xa68] sm:$0xf] }
 0x11e   : > { %720 = vst [vmem:[%s8539_s27 + $0x438] sm:$0xf] %v719_v14  ;;  %v847_v14 = vld [vmem:[%s8535_s26 + $0xa70] sm:$0xf] }
 0x11f   : > { %722 = vst [vmem:[%s8539_s27 + $0x43c] sm:$0xf] %v721_v15  ;;  %v849_v15 = vld [vmem:[%s8535_s26 + $0xa78] sm:$0xf] }
 0x120   : > { %724 = vst [vmem:[%s8539_s27 + $0x440] sm:$0xf] %v723_v16  ;;  %v851_v16 = vld [vmem:[%s8535_s26 + $0xa80] sm:$0xf] }
 0x121   : > { %726 = vst [vmem:[%s8539_s27 + $0x444] sm:$0xf] %v725_v17  ;;  %v853_v17 = vld [vmem:[%s8535_s26 + $0xa88] sm:$0xf] }
 0x122   : > { %728 = vst [vmem:[%s8539_s27 + $0x448] sm:$0xf] %v727_v18  ;;  %v855_v18 = vld [vmem:[%s8535_s26 + $0xa90] sm:$0xf] }
 0x123   : > { %730 = vst [vmem:[%s8539_s27 + $0x44c] sm:$0xf] %v729_v19  ;;  %v857_v19 = vld [vmem:[%s8535_s26 + $0xa98] sm:$0xf] }
 0x124   : > { %732 = vst [vmem:[%s8539_s27 + $0x450] sm:$0xf] %v731_v20  ;;  %v859_v20 = vld [vmem:[%s8535_s26 + $0xaa0] sm:$0xf] }
 0x125   : > { %734 = vst [vmem:[%s8539_s27 + $0x454] sm:$0xf] %v733_v21  ;;  %v861_v21 = vld [vmem:[%s8535_s26 + $0xaa8] sm:$0xf] }
 0x126   : > { %736 = vst [vmem:[%s8539_s27 + $0x458] sm:$0xf] %v735_v22  ;;  %v863_v22 = vld [vmem:[%s8535_s26 + $0xab0] sm:$0xf] }
 0x127   : > { %738 = vst [vmem:[%s8539_s27 + $0x45c] sm:$0xf] %v737_v23  ;;  %v865_v23 = vld [vmem:[%s8535_s26 + $0xab8] sm:$0xf] }
 0x128   : > { %740 = vst [vmem:[%s8539_s27 + $0x460] sm:$0xf] %v739_v24  ;;  %v867_v24 = vld [vmem:[%s8535_s26 + $0xac0] sm:$0xf] }
 0x129   : > { %742 = vst [vmem:[%s8539_s27 + $0x464] sm:$0xf] %v741_v25  ;;  %v869_v25 = vld [vmem:[%s8535_s26 + $0xac8] sm:$0xf] }
 0x12a   : > { %744 = vst [vmem:[%s8539_s27 + $0x468] sm:$0xf] %v743_v26  ;;  %v871_v26 = vld [vmem:[%s8535_s26 + $0xad0] sm:$0xf] }
 0x12b   : > { %746 = vst [vmem:[%s8539_s27 + $0x46c] sm:$0xf] %v745_v27  ;;  %v873_v27 = vld [vmem:[%s8535_s26 + $0xad8] sm:$0xf] }
 0x12c   : > { %748 = vst [vmem:[%s8539_s27 + $0x470] sm:$0xf] %v747_v28  ;;  %v875_v28 = vld [vmem:[%s8535_s26 + $0xae0] sm:$0xf] }
 0x12d   : > { %750 = vst [vmem:[%s8539_s27 + $0x474] sm:$0xf] %v749_v29  ;;  %v877_v29 = vld [vmem:[%s8535_s26 + $0xae8] sm:$0xf] }
 0x12e   : > { %752 = vst [vmem:[%s8539_s27 + $0x478] sm:$0xf] %v751_v30  ;;  %v879_v30 = vld [vmem:[%s8535_s26 + $0xaf0] sm:$0xf] }
 0x12f   : > { %754 = vst [vmem:[%s8539_s27 + $0x47c] sm:$0xf] %v753_v31  ;;  %v881_v31 = vld [vmem:[%s8535_s26 + $0xaf8] sm:$0xf] }
 0x130   : > { %756 = vst [vmem:[%s8539_s27 + $0x480] sm:$0xf] %v755_v32  ;;  %v883_v32 = vld [vmem:[%s8535_s26 + $0xb00] sm:$0xf] }
 0x131   : > { %758 = vst [vmem:[%s8539_s27 + $0x484] sm:$0xf] %v757_v33  ;;  %v885_v33 = vld [vmem:[%s8535_s26 + $0xb08] sm:$0xf] }
 0x132   : > { %760 = vst [vmem:[%s8539_s27 + $0x488] sm:$0xf] %v759_v34  ;;  %v887_v34 = vld [vmem:[%s8535_s26 + $0xb10] sm:$0xf] }
 0x133   : > { %762 = vst [vmem:[%s8539_s27 + $0x48c] sm:$0xf] %v761_v35  ;;  %v889_v35 = vld [vmem:[%s8535_s26 + $0xb18] sm:$0xf] }
 0x134   : > { %764 = vst [vmem:[%s8539_s27 + $0x490] sm:$0xf] %v763_v36  ;;  %v891_v36 = vld [vmem:[%s8535_s26 + $0xb20] sm:$0xf] }
 0x135   : > { %766 = vst [vmem:[%s8539_s27 + $0x494] sm:$0xf] %v765_v37  ;;  %v893_v37 = vld [vmem:[%s8535_s26 + $0xb28] sm:$0xf] }
 0x136   : > { %768 = vst [vmem:[%s8539_s27 + $0x498] sm:$0xf] %v767_v38  ;;  %v895_v38 = vld [vmem:[%s8535_s26 + $0xb30] sm:$0xf] }
 0x137   : > { %770 = vst [vmem:[%s8539_s27 + $0x49c] sm:$0xf] %v769_v39  ;;  %v897_v39 = vld [vmem:[%s8535_s26 + $0xb38] sm:$0xf] }
 0x138   : > { %772 = vst [vmem:[%s8539_s27 + $0x4a0] sm:$0xf] %v771_v40  ;;  %v899_v40 = vld [vmem:[%s8535_s26 + $0xb40] sm:$0xf] }
 0x139   : > { %774 = vst [vmem:[%s8539_s27 + $0x4a4] sm:$0xf] %v773_v41  ;;  %v901_v41 = vld [vmem:[%s8535_s26 + $0xb48] sm:$0xf] }
 0x13a   : > { %776 = vst [vmem:[%s8539_s27 + $0x4a8] sm:$0xf] %v775_v42  ;;  %v903_v42 = vld [vmem:[%s8535_s26 + $0xb50] sm:$0xf] }
 0x13b   : > { %778 = vst [vmem:[%s8539_s27 + $0x4ac] sm:$0xf] %v777_v43  ;;  %v905_v43 = vld [vmem:[%s8535_s26 + $0xb58] sm:$0xf] }
 0x13c   : > { %780 = vst [vmem:[%s8539_s27 + $0x4b0] sm:$0xf] %v779_v44  ;;  %v907_v44 = vld [vmem:[%s8535_s26 + $0xb60] sm:$0xf] }
 0x13d   : > { %782 = vst [vmem:[%s8539_s27 + $0x4b4] sm:$0xf] %v781_v45  ;;  %v909_v45 = vld [vmem:[%s8535_s26 + $0xb68] sm:$0xf] }
 0x13e   : > { %784 = vst [vmem:[%s8539_s27 + $0x4b8] sm:$0xf] %v783_v46  ;;  %v911_v46 = vld [vmem:[%s8535_s26 + $0xb70] sm:$0xf] }
 0x13f   : > { %786 = vst [vmem:[%s8539_s27 + $0x4bc] sm:$0xf] %v785_v47  ;;  %v913_v47 = vld [vmem:[%s8535_s26 + $0xb78] sm:$0xf] }
 0x140   : > { %788 = vst [vmem:[%s8539_s27 + $0x4c0] sm:$0xf] %v787_v48  ;;  %v915_v48 = vld [vmem:[%s8535_s26 + $0xb80] sm:$0xf] }
 0x141   : > { %790 = vst [vmem:[%s8539_s27 + $0x4c4] sm:$0xf] %v789_v49  ;;  %v917_v49 = vld [vmem:[%s8535_s26 + $0xb88] sm:$0xf] }
 0x142   : > { %792 = vst [vmem:[%s8539_s27 + $0x4c8] sm:$0xf] %v791_v50  ;;  %v919_v50 = vld [vmem:[%s8535_s26 + $0xb90] sm:$0xf] }
 0x143   : > { %794 = vst [vmem:[%s8539_s27 + $0x4cc] sm:$0xf] %v793_v51  ;;  %v921_v51 = vld [vmem:[%s8535_s26 + $0xb98] sm:$0xf] }
 0x144   : > { %796 = vst [vmem:[%s8539_s27 + $0x4d0] sm:$0xf] %v795_v52  ;;  %v923_v52 = vld [vmem:[%s8535_s26 + $0xba0] sm:$0xf] }
 0x145   : > { %798 = vst [vmem:[%s8539_s27 + $0x4d4] sm:$0xf] %v797_v53  ;;  %v925_v53 = vld [vmem:[%s8535_s26 + $0xba8] sm:$0xf] }
 0x146   : > { %800 = vst [vmem:[%s8539_s27 + $0x4d8] sm:$0xf] %v799_v54  ;;  %v927_v54 = vld [vmem:[%s8535_s26 + $0xbb0] sm:$0xf] }
 0x147   : > { %802 = vst [vmem:[%s8539_s27 + $0x4dc] sm:$0xf] %v801_v55  ;;  %v929_v55 = vld [vmem:[%s8535_s26 + $0xbb8] sm:$0xf] }
 0x148   : > { %804 = vst [vmem:[%s8539_s27 + $0x4e0] sm:$0xf] %v803_v56  ;;  %v931_v56 = vld [vmem:[%s8535_s26 + $0xbc0] sm:$0xf] }
 0x149   : > { %806 = vst [vmem:[%s8539_s27 + $0x4e4] sm:$0xf] %v805_v57  ;;  %v933_v57 = vld [vmem:[%s8535_s26 + $0xbc8] sm:$0xf] }
 0x14a   : > { %808 = vst [vmem:[%s8539_s27 + $0x4e8] sm:$0xf] %v807_v58  ;;  %v935_v58 = vld [vmem:[%s8535_s26 + $0xbd0] sm:$0xf] }
 0x14b   : > { %810 = vst [vmem:[%s8539_s27 + $0x4ec] sm:$0xf] %v809_v59  ;;  %v937_v59 = vld [vmem:[%s8535_s26 + $0xbd8] sm:$0xf] }
 0x14c   : > { %812 = vst [vmem:[%s8539_s27 + $0x4f0] sm:$0xf] %v811_v60  ;;  %v939_v60 = vld [vmem:[%s8535_s26 + $0xbe0] sm:$0xf] }
 0x14d   : > { %814 = vst [vmem:[%s8539_s27 + $0x4f4] sm:$0xf] %v813_v61  ;;  %v941_v61 = vld [vmem:[%s8535_s26 + $0xbe8] sm:$0xf] }
 0x14e   : > { %816 = vst [vmem:[%s8539_s27 + $0x4f8] sm:$0xf] %v815_v62  ;;  %v943_v62 = vld [vmem:[%s8535_s26 + $0xbf0] sm:$0xf] }
 0x14f   : > { %818 = vst [vmem:[%s8539_s27 + $0x4fc] sm:$0xf] %v817_v63  ;;  %v945_v63 = vld [vmem:[%s8535_s26 + $0xbf8] sm:$0xf] }
 0x150   : > { %820 = vst [vmem:[%s8539_s27 + $0x500] sm:$0xf] %v819_v0  ;;  %v947_v0 = vld [vmem:[%s8535_s26 + $0xc00] sm:$0xf] }
 0x151   : > { %822 = vst [vmem:[%s8539_s27 + $0x504] sm:$0xf] %v821_v1  ;;  %v949_v1 = vld [vmem:[%s8535_s26 + $0xc08] sm:$0xf] }
 0x152   : > { %824 = vst [vmem:[%s8539_s27 + $0x508] sm:$0xf] %v823_v2  ;;  %v951_v2 = vld [vmem:[%s8535_s26 + $0xc10] sm:$0xf] }
 0x153   : > { %826 = vst [vmem:[%s8539_s27 + $0x50c] sm:$0xf] %v825_v3  ;;  %v953_v3 = vld [vmem:[%s8535_s26 + $0xc18] sm:$0xf] }
 0x154   : > { %828 = vst [vmem:[%s8539_s27 + $0x510] sm:$0xf] %v827_v4  ;;  %v955_v4 = vld [vmem:[%s8535_s26 + $0xc20] sm:$0xf] }
 0x155   : > { %830 = vst [vmem:[%s8539_s27 + $0x514] sm:$0xf] %v829_v5  ;;  %v957_v5 = vld [vmem:[%s8535_s26 + $0xc28] sm:$0xf] }
 0x156   : > { %832 = vst [vmem:[%s8539_s27 + $0x518] sm:$0xf] %v831_v6  ;;  %v959_v6 = vld [vmem:[%s8535_s26 + $0xc30] sm:$0xf] }
 0x157   : > { %834 = vst [vmem:[%s8539_s27 + $0x51c] sm:$0xf] %v833_v7  ;;  %v961_v7 = vld [vmem:[%s8535_s26 + $0xc38] sm:$0xf] }
 0x158   : > { %836 = vst [vmem:[%s8539_s27 + $0x520] sm:$0xf] %v835_v8  ;;  %v963_v8 = vld [vmem:[%s8535_s26 + $0xc40] sm:$0xf] }
 0x159   : > { %838 = vst [vmem:[%s8539_s27 + $0x524] sm:$0xf] %v837_v9  ;;  %v965_v9 = vld [vmem:[%s8535_s26 + $0xc48] sm:$0xf] }
 0x15a   : > { %840 = vst [vmem:[%s8539_s27 + $0x528] sm:$0xf] %v839_v10  ;;  %v967_v10 = vld [vmem:[%s8535_s26 + $0xc50] sm:$0xf] }
 0x15b   : > { %842 = vst [vmem:[%s8539_s27 + $0x52c] sm:$0xf] %v841_v11  ;;  %v969_v11 = vld [vmem:[%s8535_s26 + $0xc58] sm:$0xf] }
 0x15c   : > { %844 = vst [vmem:[%s8539_s27 + $0x530] sm:$0xf] %v843_v12  ;;  %v971_v12 = vld [vmem:[%s8535_s26 + $0xc60] sm:$0xf] }
 0x15d   : > { %846 = vst [vmem:[%s8539_s27 + $0x534] sm:$0xf] %v845_v13  ;;  %v973_v13 = vld [vmem:[%s8535_s26 + $0xc68] sm:$0xf] }
 0x15e   : > { %848 = vst [vmem:[%s8539_s27 + $0x538] sm:$0xf] %v847_v14  ;;  %v975_v14 = vld [vmem:[%s8535_s26 + $0xc70] sm:$0xf] }
 0x15f   : > { %850 = vst [vmem:[%s8539_s27 + $0x53c] sm:$0xf] %v849_v15  ;;  %v977_v15 = vld [vmem:[%s8535_s26 + $0xc78] sm:$0xf] }
 0x160   : > { %852 = vst [vmem:[%s8539_s27 + $0x540] sm:$0xf] %v851_v16  ;;  %v979_v16 = vld [vmem:[%s8535_s26 + $0xc80] sm:$0xf] }
 0x161   : > { %854 = vst [vmem:[%s8539_s27 + $0x544] sm:$0xf] %v853_v17  ;;  %v981_v17 = vld [vmem:[%s8535_s26 + $0xc88] sm:$0xf] }
 0x162   : > { %856 = vst [vmem:[%s8539_s27 + $0x548] sm:$0xf] %v855_v18  ;;  %v983_v18 = vld [vmem:[%s8535_s26 + $0xc90] sm:$0xf] }
 0x163   : > { %858 = vst [vmem:[%s8539_s27 + $0x54c] sm:$0xf] %v857_v19  ;;  %v985_v19 = vld [vmem:[%s8535_s26 + $0xc98] sm:$0xf] }
 0x164   : > { %860 = vst [vmem:[%s8539_s27 + $0x550] sm:$0xf] %v859_v20  ;;  %v987_v20 = vld [vmem:[%s8535_s26 + $0xca0] sm:$0xf] }
 0x165   : > { %862 = vst [vmem:[%s8539_s27 + $0x554] sm:$0xf] %v861_v21  ;;  %v989_v21 = vld [vmem:[%s8535_s26 + $0xca8] sm:$0xf] }
 0x166   : > { %864 = vst [vmem:[%s8539_s27 + $0x558] sm:$0xf] %v863_v22  ;;  %v991_v22 = vld [vmem:[%s8535_s26 + $0xcb0] sm:$0xf] }
 0x167   : > { %866 = vst [vmem:[%s8539_s27 + $0x55c] sm:$0xf] %v865_v23  ;;  %v993_v23 = vld [vmem:[%s8535_s26 + $0xcb8] sm:$0xf] }
 0x168   : > { %868 = vst [vmem:[%s8539_s27 + $0x560] sm:$0xf] %v867_v24  ;;  %v995_v24 = vld [vmem:[%s8535_s26 + $0xcc0] sm:$0xf] }
 0x169   : > { %870 = vst [vmem:[%s8539_s27 + $0x564] sm:$0xf] %v869_v25  ;;  %v997_v25 = vld [vmem:[%s8535_s26 + $0xcc8] sm:$0xf] }
 0x16a   : > { %872 = vst [vmem:[%s8539_s27 + $0x568] sm:$0xf] %v871_v26  ;;  %v999_v26 = vld [vmem:[%s8535_s26 + $0xcd0] sm:$0xf] }
 0x16b   : > { %874 = vst [vmem:[%s8539_s27 + $0x56c] sm:$0xf] %v873_v27  ;;  %v1001_v27 = vld [vmem:[%s8535_s26 + $0xcd8] sm:$0xf] }
 0x16c   : > { %876 = vst [vmem:[%s8539_s27 + $0x570] sm:$0xf] %v875_v28  ;;  %v1003_v28 = vld [vmem:[%s8535_s26 + $0xce0] sm:$0xf] }
 0x16d   : > { %878 = vst [vmem:[%s8539_s27 + $0x574] sm:$0xf] %v877_v29  ;;  %v1005_v29 = vld [vmem:[%s8535_s26 + $0xce8] sm:$0xf] }
 0x16e   : > { %880 = vst [vmem:[%s8539_s27 + $0x578] sm:$0xf] %v879_v30  ;;  %v1007_v30 = vld [vmem:[%s8535_s26 + $0xcf0] sm:$0xf] }
 0x16f   : > { %882 = vst [vmem:[%s8539_s27 + $0x57c] sm:$0xf] %v881_v31  ;;  %v1009_v31 = vld [vmem:[%s8535_s26 + $0xcf8] sm:$0xf] }
 0x170   : > { %884 = vst [vmem:[%s8539_s27 + $0x580] sm:$0xf] %v883_v32  ;;  %v1011_v32 = vld [vmem:[%s8535_s26 + $0xd00] sm:$0xf] }
 0x171   : > { %886 = vst [vmem:[%s8539_s27 + $0x584] sm:$0xf] %v885_v33  ;;  %v1013_v33 = vld [vmem:[%s8535_s26 + $0xd08] sm:$0xf] }
 0x172   : > { %888 = vst [vmem:[%s8539_s27 + $0x588] sm:$0xf] %v887_v34  ;;  %v1015_v34 = vld [vmem:[%s8535_s26 + $0xd10] sm:$0xf] }
 0x173   : > { %890 = vst [vmem:[%s8539_s27 + $0x58c] sm:$0xf] %v889_v35  ;;  %v1017_v35 = vld [vmem:[%s8535_s26 + $0xd18] sm:$0xf] }
 0x174   : > { %892 = vst [vmem:[%s8539_s27 + $0x590] sm:$0xf] %v891_v36  ;;  %v1019_v36 = vld [vmem:[%s8535_s26 + $0xd20] sm:$0xf] }
 0x175   : > { %894 = vst [vmem:[%s8539_s27 + $0x594] sm:$0xf] %v893_v37  ;;  %v1021_v37 = vld [vmem:[%s8535_s26 + $0xd28] sm:$0xf] }
 0x176   : > { %896 = vst [vmem:[%s8539_s27 + $0x598] sm:$0xf] %v895_v38  ;;  %v1023_v38 = vld [vmem:[%s8535_s26 + $0xd30] sm:$0xf] }
 0x177   : > { %898 = vst [vmem:[%s8539_s27 + $0x59c] sm:$0xf] %v897_v39  ;;  %v1025_v39 = vld [vmem:[%s8535_s26 + $0xd38] sm:$0xf] }
 0x178   : > { %900 = vst [vmem:[%s8539_s27 + $0x5a0] sm:$0xf] %v899_v40  ;;  %v1027_v40 = vld [vmem:[%s8535_s26 + $0xd40] sm:$0xf] }
 0x179   : > { %902 = vst [vmem:[%s8539_s27 + $0x5a4] sm:$0xf] %v901_v41  ;;  %v1029_v41 = vld [vmem:[%s8535_s26 + $0xd48] sm:$0xf] }
 0x17a   : > { %904 = vst [vmem:[%s8539_s27 + $0x5a8] sm:$0xf] %v903_v42  ;;  %v1031_v42 = vld [vmem:[%s8535_s26 + $0xd50] sm:$0xf] }
 0x17b   : > { %906 = vst [vmem:[%s8539_s27 + $0x5ac] sm:$0xf] %v905_v43  ;;  %v1033_v43 = vld [vmem:[%s8535_s26 + $0xd58] sm:$0xf] }
 0x17c   : > { %908 = vst [vmem:[%s8539_s27 + $0x5b0] sm:$0xf] %v907_v44  ;;  %v1035_v44 = vld [vmem:[%s8535_s26 + $0xd60] sm:$0xf] }
 0x17d   : > { %910 = vst [vmem:[%s8539_s27 + $0x5b4] sm:$0xf] %v909_v45  ;;  %v1037_v45 = vld [vmem:[%s8535_s26 + $0xd68] sm:$0xf] }
 0x17e   : > { %912 = vst [vmem:[%s8539_s27 + $0x5b8] sm:$0xf] %v911_v46  ;;  %v1039_v46 = vld [vmem:[%s8535_s26 + $0xd70] sm:$0xf] }
 0x17f   : > { %914 = vst [vmem:[%s8539_s27 + $0x5bc] sm:$0xf] %v913_v47  ;;  %v1041_v47 = vld [vmem:[%s8535_s26 + $0xd78] sm:$0xf] }
 0x180   : > { %916 = vst [vmem:[%s8539_s27 + $0x5c0] sm:$0xf] %v915_v48  ;;  %v1043_v48 = vld [vmem:[%s8535_s26 + $0xd80] sm:$0xf] }
 0x181   : > { %918 = vst [vmem:[%s8539_s27 + $0x5c4] sm:$0xf] %v917_v49  ;;  %v1045_v49 = vld [vmem:[%s8535_s26 + $0xd88] sm:$0xf] }
 0x182   : > { %920 = vst [vmem:[%s8539_s27 + $0x5c8] sm:$0xf] %v919_v50  ;;  %v1047_v50 = vld [vmem:[%s8535_s26 + $0xd90] sm:$0xf] }
 0x183   : > { %922 = vst [vmem:[%s8539_s27 + $0x5cc] sm:$0xf] %v921_v51  ;;  %v1049_v51 = vld [vmem:[%s8535_s26 + $0xd98] sm:$0xf] }
 0x184   : > { %924 = vst [vmem:[%s8539_s27 + $0x5d0] sm:$0xf] %v923_v52  ;;  %v1051_v52 = vld [vmem:[%s8535_s26 + $0xda0] sm:$0xf] }
 0x185   : > { %926 = vst [vmem:[%s8539_s27 + $0x5d4] sm:$0xf] %v925_v53  ;;  %v1053_v53 = vld [vmem:[%s8535_s26 + $0xda8] sm:$0xf] }
 0x186   : > { %928 = vst [vmem:[%s8539_s27 + $0x5d8] sm:$0xf] %v927_v54  ;;  %v1055_v54 = vld [vmem:[%s8535_s26 + $0xdb0] sm:$0xf] }
 0x187   : > { %930 = vst [vmem:[%s8539_s27 + $0x5dc] sm:$0xf] %v929_v55  ;;  %v1057_v55 = vld [vmem:[%s8535_s26 + $0xdb8] sm:$0xf] }
 0x188   : > { %932 = vst [vmem:[%s8539_s27 + $0x5e0] sm:$0xf] %v931_v56  ;;  %v1059_v56 = vld [vmem:[%s8535_s26 + $0xdc0] sm:$0xf] }
 0x189   : > { %934 = vst [vmem:[%s8539_s27 + $0x5e4] sm:$0xf] %v933_v57  ;;  %v1061_v57 = vld [vmem:[%s8535_s26 + $0xdc8] sm:$0xf] }
 0x18a   : > { %936 = vst [vmem:[%s8539_s27 + $0x5e8] sm:$0xf] %v935_v58  ;;  %v1063_v58 = vld [vmem:[%s8535_s26 + $0xdd0] sm:$0xf] }
 0x18b   : > { %938 = vst [vmem:[%s8539_s27 + $0x5ec] sm:$0xf] %v937_v59  ;;  %v1065_v59 = vld [vmem:[%s8535_s26 + $0xdd8] sm:$0xf] }
 0x18c   : > { %940 = vst [vmem:[%s8539_s27 + $0x5f0] sm:$0xf] %v939_v60  ;;  %v1067_v60 = vld [vmem:[%s8535_s26 + $0xde0] sm:$0xf] }
 0x18d   : > { %942 = vst [vmem:[%s8539_s27 + $0x5f4] sm:$0xf] %v941_v61  ;;  %v1069_v61 = vld [vmem:[%s8535_s26 + $0xde8] sm:$0xf] }
 0x18e   : > { %944 = vst [vmem:[%s8539_s27 + $0x5f8] sm:$0xf] %v943_v62  ;;  %v1071_v62 = vld [vmem:[%s8535_s26 + $0xdf0] sm:$0xf] }
 0x18f   : > { %946 = vst [vmem:[%s8539_s27 + $0x5fc] sm:$0xf] %v945_v63  ;;  %v1073_v63 = vld [vmem:[%s8535_s26 + $0xdf8] sm:$0xf] }
 0x190   : > { %948 = vst [vmem:[%s8539_s27 + $0x600] sm:$0xf] %v947_v0  ;;  %v1075_v0 = vld [vmem:[%s8535_s26 + $0xe00] sm:$0xf] }
 0x191   : > { %950 = vst [vmem:[%s8539_s27 + $0x604] sm:$0xf] %v949_v1  ;;  %v1077_v1 = vld [vmem:[%s8535_s26 + $0xe08] sm:$0xf] }
 0x192   : > { %952 = vst [vmem:[%s8539_s27 + $0x608] sm:$0xf] %v951_v2  ;;  %v1079_v2 = vld [vmem:[%s8535_s26 + $0xe10] sm:$0xf] }
 0x193   : > { %954 = vst [vmem:[%s8539_s27 + $0x60c] sm:$0xf] %v953_v3  ;;  %v1081_v3 = vld [vmem:[%s8535_s26 + $0xe18] sm:$0xf] }
 0x194   : > { %956 = vst [vmem:[%s8539_s27 + $0x610] sm:$0xf] %v955_v4  ;;  %v1083_v4 = vld [vmem:[%s8535_s26 + $0xe20] sm:$0xf] }
 0x195   : > { %958 = vst [vmem:[%s8539_s27 + $0x614] sm:$0xf] %v957_v5  ;;  %v1085_v5 = vld [vmem:[%s8535_s26 + $0xe28] sm:$0xf] }
 0x196   : > { %960 = vst [vmem:[%s8539_s27 + $0x618] sm:$0xf] %v959_v6  ;;  %v1087_v6 = vld [vmem:[%s8535_s26 + $0xe30] sm:$0xf] }
 0x197   : > { %962 = vst [vmem:[%s8539_s27 + $0x61c] sm:$0xf] %v961_v7  ;;  %v1089_v7 = vld [vmem:[%s8535_s26 + $0xe38] sm:$0xf] }
 0x198   : > { %964 = vst [vmem:[%s8539_s27 + $0x620] sm:$0xf] %v963_v8  ;;  %v1091_v8 = vld [vmem:[%s8535_s26 + $0xe40] sm:$0xf] }
 0x199   : > { %966 = vst [vmem:[%s8539_s27 + $0x624] sm:$0xf] %v965_v9  ;;  %v1093_v9 = vld [vmem:[%s8535_s26 + $0xe48] sm:$0xf] }
 0x19a   : > { %968 = vst [vmem:[%s8539_s27 + $0x628] sm:$0xf] %v967_v10  ;;  %v1095_v10 = vld [vmem:[%s8535_s26 + $0xe50] sm:$0xf] }
 0x19b   : > { %970 = vst [vmem:[%s8539_s27 + $0x62c] sm:$0xf] %v969_v11  ;;  %v1097_v11 = vld [vmem:[%s8535_s26 + $0xe58] sm:$0xf] }
 0x19c   : > { %972 = vst [vmem:[%s8539_s27 + $0x630] sm:$0xf] %v971_v12  ;;  %v1099_v12 = vld [vmem:[%s8535_s26 + $0xe60] sm:$0xf] }
 0x19d   : > { %974 = vst [vmem:[%s8539_s27 + $0x634] sm:$0xf] %v973_v13  ;;  %v1101_v13 = vld [vmem:[%s8535_s26 + $0xe68] sm:$0xf] }
 0x19e   : > { %976 = vst [vmem:[%s8539_s27 + $0x638] sm:$0xf] %v975_v14  ;;  %v1103_v14 = vld [vmem:[%s8535_s26 + $0xe70] sm:$0xf] }
 0x19f   : > { %978 = vst [vmem:[%s8539_s27 + $0x63c] sm:$0xf] %v977_v15  ;;  %v1105_v15 = vld [vmem:[%s8535_s26 + $0xe78] sm:$0xf] }
 0x1a0   : > { %980 = vst [vmem:[%s8539_s27 + $0x640] sm:$0xf] %v979_v16  ;;  %v1107_v16 = vld [vmem:[%s8535_s26 + $0xe80] sm:$0xf] }
 0x1a1   : > { %982 = vst [vmem:[%s8539_s27 + $0x644] sm:$0xf] %v981_v17  ;;  %v1109_v17 = vld [vmem:[%s8535_s26 + $0xe88] sm:$0xf] }
 0x1a2   : > { %984 = vst [vmem:[%s8539_s27 + $0x648] sm:$0xf] %v983_v18  ;;  %v1111_v18 = vld [vmem:[%s8535_s26 + $0xe90] sm:$0xf] }
 0x1a3   : > { %986 = vst [vmem:[%s8539_s27 + $0x64c] sm:$0xf] %v985_v19  ;;  %v1113_v19 = vld [vmem:[%s8535_s26 + $0xe98] sm:$0xf] }
 0x1a4   : > { %988 = vst [vmem:[%s8539_s27 + $0x650] sm:$0xf] %v987_v20  ;;  %v1115_v20 = vld [vmem:[%s8535_s26 + $0xea0] sm:$0xf] }
 0x1a5   : > { %990 = vst [vmem:[%s8539_s27 + $0x654] sm:$0xf] %v989_v21  ;;  %v1117_v21 = vld [vmem:[%s8535_s26 + $0xea8] sm:$0xf] }
 0x1a6   : > { %992 = vst [vmem:[%s8539_s27 + $0x658] sm:$0xf] %v991_v22  ;;  %v1119_v22 = vld [vmem:[%s8535_s26 + $0xeb0] sm:$0xf] }
 0x1a7   : > { %994 = vst [vmem:[%s8539_s27 + $0x65c] sm:$0xf] %v993_v23  ;;  %v1121_v23 = vld [vmem:[%s8535_s26 + $0xeb8] sm:$0xf] }
 0x1a8   : > { %996 = vst [vmem:[%s8539_s27 + $0x660] sm:$0xf] %v995_v24  ;;  %v1123_v24 = vld [vmem:[%s8535_s26 + $0xec0] sm:$0xf] }
 0x1a9   : > { %998 = vst [vmem:[%s8539_s27 + $0x664] sm:$0xf] %v997_v25  ;;  %v1125_v25 = vld [vmem:[%s8535_s26 + $0xec8] sm:$0xf] }
 0x1aa   : > { %1000 = vst [vmem:[%s8539_s27 + $0x668] sm:$0xf] %v999_v26  ;;  %v1127_v26 = vld [vmem:[%s8535_s26 + $0xed0] sm:$0xf] }
 0x1ab   : > { %1002 = vst [vmem:[%s8539_s27 + $0x66c] sm:$0xf] %v1001_v27  ;;  %v1129_v27 = vld [vmem:[%s8535_s26 + $0xed8] sm:$0xf] }
 0x1ac   : > { %1004 = vst [vmem:[%s8539_s27 + $0x670] sm:$0xf] %v1003_v28  ;;  %v1131_v28 = vld [vmem:[%s8535_s26 + $0xee0] sm:$0xf] }
 0x1ad   : > { %1006 = vst [vmem:[%s8539_s27 + $0x674] sm:$0xf] %v1005_v29  ;;  %v1133_v29 = vld [vmem:[%s8535_s26 + $0xee8] sm:$0xf] }
 0x1ae   : > { %1008 = vst [vmem:[%s8539_s27 + $0x678] sm:$0xf] %v1007_v30  ;;  %v1135_v30 = vld [vmem:[%s8535_s26 + $0xef0] sm:$0xf] }
 0x1af   : > { %1010 = vst [vmem:[%s8539_s27 + $0x67c] sm:$0xf] %v1009_v31  ;;  %v1137_v31 = vld [vmem:[%s8535_s26 + $0xef8] sm:$0xf] }
 0x1b0   : > { %1012 = vst [vmem:[%s8539_s27 + $0x680] sm:$0xf] %v1011_v32  ;;  %v1139_v32 = vld [vmem:[%s8535_s26 + $0xf00] sm:$0xf] }
 0x1b1   : > { %1014 = vst [vmem:[%s8539_s27 + $0x684] sm:$0xf] %v1013_v33  ;;  %v1141_v33 = vld [vmem:[%s8535_s26 + $0xf08] sm:$0xf] }
 0x1b2   : > { %1016 = vst [vmem:[%s8539_s27 + $0x688] sm:$0xf] %v1015_v34  ;;  %v1143_v34 = vld [vmem:[%s8535_s26 + $0xf10] sm:$0xf] }
 0x1b3   : > { %1018 = vst [vmem:[%s8539_s27 + $0x68c] sm:$0xf] %v1017_v35  ;;  %v1145_v35 = vld [vmem:[%s8535_s26 + $0xf18] sm:$0xf] }
 0x1b4   : > { %1020 = vst [vmem:[%s8539_s27 + $0x690] sm:$0xf] %v1019_v36  ;;  %v1147_v36 = vld [vmem:[%s8535_s26 + $0xf20] sm:$0xf] }
 0x1b5   : > { %1022 = vst [vmem:[%s8539_s27 + $0x694] sm:$0xf] %v1021_v37  ;;  %v1149_v37 = vld [vmem:[%s8535_s26 + $0xf28] sm:$0xf] }
 0x1b6   : > { %1024 = vst [vmem:[%s8539_s27 + $0x698] sm:$0xf] %v1023_v38  ;;  %v1151_v38 = vld [vmem:[%s8535_s26 + $0xf30] sm:$0xf] }
 0x1b7   : > { %1026 = vst [vmem:[%s8539_s27 + $0x69c] sm:$0xf] %v1025_v39  ;;  %v1153_v39 = vld [vmem:[%s8535_s26 + $0xf38] sm:$0xf] }
 0x1b8   : > { %1028 = vst [vmem:[%s8539_s27 + $0x6a0] sm:$0xf] %v1027_v40  ;;  %v1155_v40 = vld [vmem:[%s8535_s26 + $0xf40] sm:$0xf] }
 0x1b9   : > { %1030 = vst [vmem:[%s8539_s27 + $0x6a4] sm:$0xf] %v1029_v41  ;;  %v1157_v41 = vld [vmem:[%s8535_s26 + $0xf48] sm:$0xf] }
 0x1ba   : > { %1032 = vst [vmem:[%s8539_s27 + $0x6a8] sm:$0xf] %v1031_v42  ;;  %v1159_v42 = vld [vmem:[%s8535_s26 + $0xf50] sm:$0xf] }
 0x1bb   : > { %1034 = vst [vmem:[%s8539_s27 + $0x6ac] sm:$0xf] %v1033_v43  ;;  %v1161_v43 = vld [vmem:[%s8535_s26 + $0xf58] sm:$0xf] }
 0x1bc   : > { %1036 = vst [vmem:[%s8539_s27 + $0x6b0] sm:$0xf] %v1035_v44  ;;  %v1163_v44 = vld [vmem:[%s8535_s26 + $0xf60] sm:$0xf] }
 0x1bd   : > { %1038 = vst [vmem:[%s8539_s27 + $0x6b4] sm:$0xf] %v1037_v45  ;;  %v1165_v45 = vld [vmem:[%s8535_s26 + $0xf68] sm:$0xf] }
 0x1be   : > { %1040 = vst [vmem:[%s8539_s27 + $0x6b8] sm:$0xf] %v1039_v46  ;;  %v1167_v46 = vld [vmem:[%s8535_s26 + $0xf70] sm:$0xf] }
 0x1bf   : > { %1042 = vst [vmem:[%s8539_s27 + $0x6bc] sm:$0xf] %v1041_v47  ;;  %v1169_v47 = vld [vmem:[%s8535_s26 + $0xf78] sm:$0xf] }
 0x1c0   : > { %1044 = vst [vmem:[%s8539_s27 + $0x6c0] sm:$0xf] %v1043_v48  ;;  %v1171_v48 = vld [vmem:[%s8535_s26 + $0xf80] sm:$0xf] }
 0x1c1   : > { %1046 = vst [vmem:[%s8539_s27 + $0x6c4] sm:$0xf] %v1045_v49  ;;  %v1173_v49 = vld [vmem:[%s8535_s26 + $0xf88] sm:$0xf] }
 0x1c2   : > { %1048 = vst [vmem:[%s8539_s27 + $0x6c8] sm:$0xf] %v1047_v50  ;;  %v1175_v50 = vld [vmem:[%s8535_s26 + $0xf90] sm:$0xf] }
 0x1c3   : > { %1050 = vst [vmem:[%s8539_s27 + $0x6cc] sm:$0xf] %v1049_v51  ;;  %v1177_v51 = vld [vmem:[%s8535_s26 + $0xf98] sm:$0xf] }
 0x1c4   : > { %1052 = vst [vmem:[%s8539_s27 + $0x6d0] sm:$0xf] %v1051_v52  ;;  %v1179_v52 = vld [vmem:[%s8535_s26 + $0xfa0] sm:$0xf] }
 0x1c5   : > { %1054 = vst [vmem:[%s8539_s27 + $0x6d4] sm:$0xf] %v1053_v53  ;;  %v1181_v53 = vld [vmem:[%s8535_s26 + $0xfa8] sm:$0xf] }
 0x1c6   : > { %1056 = vst [vmem:[%s8539_s27 + $0x6d8] sm:$0xf] %v1055_v54  ;;  %v1183_v54 = vld [vmem:[%s8535_s26 + $0xfb0] sm:$0xf] }
 0x1c7   : > { %1058 = vst [vmem:[%s8539_s27 + $0x6dc] sm:$0xf] %v1057_v55  ;;  %v1185_v55 = vld [vmem:[%s8535_s26 + $0xfb8] sm:$0xf] }
 0x1c8   : > { %1060 = vst [vmem:[%s8539_s27 + $0x6e0] sm:$0xf] %v1059_v56  ;;  %v1187_v56 = vld [vmem:[%s8535_s26 + $0xfc0] sm:$0xf] }
 0x1c9   : > { %1062 = vst [vmem:[%s8539_s27 + $0x6e4] sm:$0xf] %v1061_v57  ;;  %v1189_v57 = vld [vmem:[%s8535_s26 + $0xfc8] sm:$0xf] }
 0x1ca   : > { %1064 = vst [vmem:[%s8539_s27 + $0x6e8] sm:$0xf] %v1063_v58  ;;  %v1191_v58 = vld [vmem:[%s8535_s26 + $0xfd0] sm:$0xf] }
 0x1cb   : > { %1066 = vst [vmem:[%s8539_s27 + $0x6ec] sm:$0xf] %v1065_v59  ;;  %v1193_v59 = vld [vmem:[%s8535_s26 + $0xfd8] sm:$0xf] }
 0x1cc   : > { %1068 = vst [vmem:[%s8539_s27 + $0x6f0] sm:$0xf] %v1067_v60  ;;  %v1195_v60 = vld [vmem:[%s8535_s26 + $0xfe0] sm:$0xf] }
 0x1cd   : > { %1070 = vst [vmem:[%s8539_s27 + $0x6f4] sm:$0xf] %v1069_v61  ;;  %v1197_v61 = vld [vmem:[%s8535_s26 + $0xfe8] sm:$0xf] }
 0x1ce   : > { %1072 = vst [vmem:[%s8539_s27 + $0x6f8] sm:$0xf] %v1071_v62  ;;  %v1199_v62 = vld [vmem:[%s8535_s26 + $0xff0] sm:$0xf] }
 0x1cf   : > { %1074 = vst [vmem:[%s8539_s27 + $0x6fc] sm:$0xf] %v1073_v63  ;;  %v1201_v63 = vld [vmem:[%s8535_s26 + $0xff8] sm:$0xf] }
 0x1d0   : > { %1076 = vst [vmem:[%s8539_s27 + $0x700] sm:$0xf] %v1075_v0 }
 0x1d1   : > { %1078 = vst [vmem:[%s8539_s27 + $0x704] sm:$0xf] %v1077_v1 }
 0x1d2   : > { %1080 = vst [vmem:[%s8539_s27 + $0x708] sm:$0xf] %v1079_v2 }
 0x1d3   : > { %1082 = vst [vmem:[%s8539_s27 + $0x70c] sm:$0xf] %v1081_v3 }
 0x1d4   : > { %1084 = vst [vmem:[%s8539_s27 + $0x710] sm:$0xf] %v1083_v4 }
 0x1d5   : > { %1086 = vst [vmem:[%s8539_s27 + $0x714] sm:$0xf] %v1085_v5 }
 0x1d6   : > { %1088 = vst [vmem:[%s8539_s27 + $0x718] sm:$0xf] %v1087_v6 }
 0x1d7   : > { %1090 = vst [vmem:[%s8539_s27 + $0x71c] sm:$0xf] %v1089_v7 }
 0x1d8   : > { %1092 = vst [vmem:[%s8539_s27 + $0x720] sm:$0xf] %v1091_v8 }
 0x1d9   : > { %1094 = vst [vmem:[%s8539_s27 + $0x724] sm:$0xf] %v1093_v9 }
 0x1da   : > { %1096 = vst [vmem:[%s8539_s27 + $0x728] sm:$0xf] %v1095_v10 }
 0x1db   : > { %1098 = vst [vmem:[%s8539_s27 + $0x72c] sm:$0xf] %v1097_v11 }
 0x1dc   : > { %1100 = vst [vmem:[%s8539_s27 + $0x730] sm:$0xf] %v1099_v12 }
 0x1dd   : > { %1102 = vst [vmem:[%s8539_s27 + $0x734] sm:$0xf] %v1101_v13 }
 0x1de   : > { %1104 = vst [vmem:[%s8539_s27 + $0x738] sm:$0xf] %v1103_v14 }
 0x1df   : > { %1106 = vst [vmem:[%s8539_s27 + $0x73c] sm:$0xf] %v1105_v15 }
 0x1e0   : > { %1108 = vst [vmem:[%s8539_s27 + $0x740] sm:$0xf] %v1107_v16 }
 0x1e1   : > { %1110 = vst [vmem:[%s8539_s27 + $0x744] sm:$0xf] %v1109_v17 }
 0x1e2   : > { %1112 = vst [vmem:[%s8539_s27 + $0x748] sm:$0xf] %v1111_v18 }
 0x1e3   : > { %1114 = vst [vmem:[%s8539_s27 + $0x74c] sm:$0xf] %v1113_v19 }
 0x1e4   : > { %1116 = vst [vmem:[%s8539_s27 + $0x750] sm:$0xf] %v1115_v20 }
 0x1e5   : > { %1118 = vst [vmem:[%s8539_s27 + $0x754] sm:$0xf] %v1117_v21 }
 0x1e6   : > { %1120 = vst [vmem:[%s8539_s27 + $0x758] sm:$0xf] %v1119_v22 }
 0x1e7   : > { %1122 = vst [vmem:[%s8539_s27 + $0x75c] sm:$0xf] %v1121_v23 }
 0x1e8   : > { %1124 = vst [vmem:[%s8539_s27 + $0x760] sm:$0xf] %v1123_v24 }
 0x1e9   : > { %1126 = vst [vmem:[%s8539_s27 + $0x764] sm:$0xf] %v1125_v25 }
 0x1ea   : > { %1128 = vst [vmem:[%s8539_s27 + $0x768] sm:$0xf] %v1127_v26 }
 0x1eb   : > { %1130 = vst [vmem:[%s8539_s27 + $0x76c] sm:$0xf] %v1129_v27 }
 0x1ec   : > { %1132 = vst [vmem:[%s8539_s27 + $0x770] sm:$0xf] %v1131_v28 }
 0x1ed   : > { %1134 = vst [vmem:[%s8539_s27 + $0x774] sm:$0xf] %v1133_v29 }
 0x1ee   : > { %1136 = vst [vmem:[%s8539_s27 + $0x778] sm:$0xf] %v1135_v30 }
 0x1ef   : > { %1138 = vst [vmem:[%s8539_s27 + $0x77c] sm:$0xf] %v1137_v31 }
 0x1f0   : > { %1140 = vst [vmem:[%s8539_s27 + $0x780] sm:$0xf] %v1139_v32 }
 0x1f1   : > { %1142 = vst [vmem:[%s8539_s27 + $0x784] sm:$0xf] %v1141_v33 }
 0x1f2   : > { %1144 = vst [vmem:[%s8539_s27 + $0x788] sm:$0xf] %v1143_v34 }
 0x1f3   : > { %1146 = vst [vmem:[%s8539_s27 + $0x78c] sm:$0xf] %v1145_v35 }
 0x1f4   : > { %1148 = vst [vmem:[%s8539_s27 + $0x790] sm:$0xf] %v1147_v36 }
 0x1f5   : > { %1150 = vst [vmem:[%s8539_s27 + $0x794] sm:$0xf] %v1149_v37 }
 0x1f6   : > { %1152 = vst [vmem:[%s8539_s27 + $0x798] sm:$0xf] %v1151_v38 }
 0x1f7   : > { %1154 = vst [vmem:[%s8539_s27 + $0x79c] sm:$0xf] %v1153_v39 }
 0x1f8   : > { %1156 = vst [vmem:[%s8539_s27 + $0x7a0] sm:$0xf] %v1155_v40 }
 0x1f9   : > { %1158 = vst [vmem:[%s8539_s27 + $0x7a4] sm:$0xf] %v1157_v41 }
 0x1fa   : > { %1160 = vst [vmem:[%s8539_s27 + $0x7a8] sm:$0xf] %v1159_v42 }
 0x1fb   : > { %1162 = vst [vmem:[%s8539_s27 + $0x7ac] sm:$0xf] %v1161_v43 }
 0x1fc   : > { %1164 = vst [vmem:[%s8539_s27 + $0x7b0] sm:$0xf] %v1163_v44 }
 0x1fd   : > { %1166 = vst [vmem:[%s8539_s27 + $0x7b4] sm:$0xf] %v1165_v45 }
 0x1fe   : > { %1168 = vst [vmem:[%s8539_s27 + $0x7b8] sm:$0xf] %v1167_v46 }
 0x1ff   : > { %1170 = vst [vmem:[%s8539_s27 + $0x7bc] sm:$0xf] %v1169_v47 }
 0x200   : > { %1172 = vst [vmem:[%s8539_s27 + $0x7c0] sm:$0xf] %v1171_v48 }
 0x201   : > { %1174 = vst [vmem:[%s8539_s27 + $0x7c4] sm:$0xf] %v1173_v49 }
 0x202   : > { %1176 = vst [vmem:[%s8539_s27 + $0x7c8] sm:$0xf] %v1175_v50 }
 0x203   : > { %1178 = vst [vmem:[%s8539_s27 + $0x7cc] sm:$0xf] %v1177_v51 }
 0x204   : > { %1180 = vst [vmem:[%s8539_s27 + $0x7d0] sm:$0xf] %v1179_v52 }
 0x205   : > { %1182 = vst [vmem:[%s8539_s27 + $0x7d4] sm:$0xf] %v1181_v53 }
 0x206   : > { %1184 = vst [vmem:[%s8539_s27 + $0x7d8] sm:$0xf] %v1183_v54 }
 0x207   : > { %1186 = vst [vmem:[%s8539_s27 + $0x7dc] sm:$0xf] %v1185_v55 }
 0x208   : > { %1188 = vst [vmem:[%s8539_s27 + $0x7e0] sm:$0xf] %v1187_v56 }
 0x209   : > { %1190 = vst [vmem:[%s8539_s27 + $0x7e4] sm:$0xf] %v1189_v57 }
 0x20a   : > { %1192 = vst [vmem:[%s8539_s27 + $0x7e8] sm:$0xf] %v1191_v58 }
 0x20b   : > { %1194 = vst [vmem:[%s8539_s27 + $0x7ec] sm:$0xf] %v1193_v59 }
 0x20c   : > { %1196 = vst [vmem:[%s8539_s27 + $0x7f0] sm:$0xf] %v1195_v60 }
 0x20d   : > { %1198 = vst [vmem:[%s8539_s27 + $0x7f4] sm:$0xf] %v1197_v61 }
 0x20e   : > { %1200 = vst [vmem:[%s8539_s27 + $0x7f8] sm:$0xf] %v1199_v62 }
 0x20f   : > { %1202 = vst [vmem:[%s8539_s27 + $0x7fc] sm:$0xf] %v1201_v63 }
 0x210 PF: > { %p7106_p6 = scmp.ge.s32.totalorder %s8470_s16, 1  ;;  %p4329_p7 = scmp.lt.s32.totalorder %s8470_s16, 3 }
 0x212   : > { %p4330_p8 = pnand %p7106_p6, %p4329_p7 }
 0x213   : > { %s4336_s28 = sand.u32 (!%p4330_p8), 1, %s8454_s12   ;;  %p4375_p9 = scmp.lt.s32.totalorder (!%p4330_p8), %s8462_s14, 1 }
 0x214   : > { %4333 = sbr.rel (%p4330_p8) target bundleno = 936 (0x3a8), region = 80  ;;  %s7107_s29 = sshll.u32 (!%p4330_p8), %s4336_s28, 11 }
 0x215   : > { %s9566_s30 = scalar_lea.vmem (!%p4330_p8), [#allocation2], %s7107_s29 }
 0x219   : > { %v8142_v0 = vld [vmem:[%s9566_s30 + $0x38] sm:$0xff]  ;;  %v8141_v4 = vld [vmem:[%s9566_s30 + $0x30] sm:$0xff]  ;;  %v8140_v8 = vld [vmem:[%s9566_s30 + $0x28] sm:$0xff]  ;;  %s9921_s14 = smov (!%p4375_p9, %s8462_s14), 1 }
 0x21a   : > { %v8150_v1 = vld [vmem:[%s9566_s30 + $0x78] sm:$0xff]  ;;  %6566 = vmatpush.bf16.msra.mxu0 %v8142_v0  ;;  %v8149_v5 = vld [vmem:[%s9566_s30 + $0x70] sm:$0xff]  ;;  %v8148_v9 = vld [vmem:[%s9566_s30 + $0x68] sm:$0xff]  ;;  %s4377_s19 = scalar_lea.vmem %s9912_s2, %s9921_s14 }
 0x21b   : > { %v8158_v2 = vld [vmem:[%s9566_s30 + $0xb8] sm:$0xff]  ;;  %6579 = vmatpush.bf16.msra.mxu1 %v8150_v1  ;;  %v8157_v6 = vld [vmem:[%s9566_s30 + $0xb0] sm:$0xff]  ;;  %v8156_v10 = vld [vmem:[%s9566_s30 + $0xa8] sm:$0xff] }
 0x21c   : > { %v8166_v3 = vld [vmem:[%s9566_s30 + $0xf8] sm:$0xff]  ;;  %6592 = vmatpush.bf16.msra.mxu2 %v8158_v2  ;;  %v8165_v7 = vld [vmem:[%s9566_s30 + $0xf0] sm:$0xff]  ;;  %v8164_v11 = vld [vmem:[%s9566_s30 + $0xe8] sm:$0xff] }
 0x21d   : > { %6605 = vmatpush.bf16.msra.mxu3 %v8166_v3  ;;  %v8139_v12 = vld [vmem:[%s9566_s30 + $0x20] sm:$0xff]  ;;  %v8138_v16 = vld [vmem:[%s9566_s30 + $0x18] sm:$0xff]  ;;  %v8137_v20 = vld [vmem:[%s9566_s30 + $0x10] sm:$0xff] }
 0x21e   : > { %6567 = vmatpush.bf16.msra.mxu0 %v8141_v4  ;;  %v8147_v13 = vld [vmem:[%s9566_s30 + $0x60] sm:$0xff]  ;;  %v8146_v17 = vld [vmem:[%s9566_s30 + $0x58] sm:$0xff]  ;;  %v8145_v21 = vld [vmem:[%s9566_s30 + $0x50] sm:$0xff] }
 0x21f   : > { %6580 = vmatpush.bf16.msra.mxu1 %v8149_v5  ;;  %v8155_v14 = vld [vmem:[%s9566_s30 + $0xa0] sm:$0xff]  ;;  %v8154_v18 = vld [vmem:[%s9566_s30 + $0x98] sm:$0xff]  ;;  %v8153_v22 = vld [vmem:[%s9566_s30 + $0x90] sm:$0xff] }
 0x220   : > { %6593 = vmatpush.bf16.msra.mxu2 %v8157_v6  ;;  %v8163_v15 = vld [vmem:[%s9566_s30 + $0xe0] sm:$0xff]  ;;  %v8162_v19 = vld [vmem:[%s9566_s30 + $0xd8] sm:$0xff]  ;;  %v8161_v23 = vld [vmem:[%s9566_s30 + $0xd0] sm:$0xff] }
 0x221   : > { %6606 = vmatpush.bf16.msra.mxu3 %v8165_v7  ;;  %v8136_v24 = vld [vmem:[%s9566_s30 + $0x8] sm:$0xff]  ;;  %v4386_v29 = vld [vmem:[%s9910_s0] sm:$0xff]  ;;  %v8174_v38 = vld [vmem:[%s9566_s30 + $0x138] sm:$0xff] }
 0x222   : > { %6568 = vmatpush.bf16.msra.mxu0 %v8140_v8  ;;  %v8144_v25 = vld [vmem:[%s9566_s30 + $0x48] sm:$0xff]  ;;  %v8135_v30 = vld [vmem:[%s9566_s30] sm:$0xff]  ;;  %v4934_v33 = vunpack.c.l.b16 %v4386_v29  ;;  %v4935_v37 = vunpack.c.h.b16 %v4386_v29  ;;  %v8182_v39 = vld [vmem:[%s9566_s30 + $0x178] sm:$0xff] }
 0x223   : > { %6581 = vmatpush.bf16.msra.mxu1 %v8148_v9  ;;  %v8152_v26 = vld [vmem:[%s9566_s30 + $0x88] sm:$0xff]  ;;  %v8143_v31 = vld [vmem:[%s9566_s30 + $0x40] sm:$0xff]  ;;  %v8190_v40 = vld [vmem:[%s9566_s30 + $0x1b8] sm:$0xff] }
 0x224   : > { %6594 = vmatpush.bf16.msra.mxu2 %v8156_v10  ;;  %v8160_v27 = vld [vmem:[%s9566_s30 + $0xc8] sm:$0xff]  ;;  %v8151_v34 = vld [vmem:[%s9566_s30 + $0x80] sm:$0xff]  ;;  %v8198_v41 = vld [vmem:[%s9566_s30 + $0x1f8] sm:$0xff]  ;;  %v4966_v43 = vpack.c.b16 %v4934_v33, %v4934_v33  ;;  %v4967_v45 = vpack.c.b16 %v4935_v37, %v4935_v37 }
 0x225   : > { %6607 = vmatpush.bf16.msra.mxu3 %v8164_v11  ;;  %v4387_v28 = vld [vmem:[%s9910_s0 + $0x8] sm:$0xff]  ;;  %v8159_v35 = vld [vmem:[%s9566_s30 + $0xc0] sm:$0xff]  ;;  %v8173_v46 = vld [vmem:[%s9566_s30 + $0x130] sm:$0xff] }
 0x226   : > { %6569 = vmatpush.bf16.msra.mxu0 %v8139_v12  ;;  %v4936_v32 = vunpack.c.l.b16 %v4387_v28  ;;  %v4937_v36 = vunpack.c.h.b16 %v4387_v28  ;;  %v8181_v47 = vld [vmem:[%s9566_s30 + $0x170] sm:$0xff]  ;;  %v8172_v50 = vld [vmem:[%s9566_s30 + $0x128] sm:$0xff]  ;;  %v8171_v54 = vld [vmem:[%s9566_s30 + $0x120] sm:$0xff] }
 0x227   : > { %6582 = vmatpush.bf16.msra.mxu1 %v8147_v13  ;;  %v8189_v48 = vld [vmem:[%s9566_s30 + $0x1b0] sm:$0xff]  ;;  %v8180_v51 = vld [vmem:[%s9566_s30 + $0x168] sm:$0xff]  ;;  %v8179_v55 = vld [vmem:[%s9566_s30 + $0x160] sm:$0xff] }
 0x228   : > { %6595 = vmatpush.bf16.msra.mxu2 %v8155_v14  ;;  %v4968_v42 = vpack.c.b16 %v4936_v32, %v4936_v32  ;;  %v4969_v44 = vpack.c.b16 %v4937_v36, %v4937_v36  ;;  %v8197_v49 = vld [vmem:[%s9566_s30 + $0x1f0] sm:$0xff]  ;;  %v8188_v52 = vld [vmem:[%s9566_s30 + $0x1a8] sm:$0xff]  ;;  %v8187_v56 = vld [vmem:[%s9566_s30 + $0x1a0] sm:$0xff] }
 0x229   : > { %6608 = vmatpush.bf16.msra.mxu3 %v8163_v15  ;;  %v8196_v53 = vld [vmem:[%s9566_s30 + $0x1e8] sm:$0xff]  ;;  %v8195_v57 = vld [vmem:[%s9566_s30 + $0x1e0] sm:$0xff]  ;;  %v8170_v58 = vld [vmem:[%s9566_s30 + $0x118] sm:$0xff] }
 0x22a   : > { %6570 = vmatpush.bf16.msra.mxu0 %v8138_v16  ;;  %v8178_v59 = vld [vmem:[%s9566_s30 + $0x158] sm:$0xff]  ;;  %v8169_v62 = vld [vmem:[%s9566_s30 + $0x110] sm:$0xff]  ;;  %v8168_v2 = vld [vmem:[%s9566_s30 + $0x108] sm:$0xff] }
 0x22b   : > { %6583 = vmatpush.bf16.msra.mxu1 %v8146_v17  ;;  %v8186_v60 = vld [vmem:[%s9566_s30 + $0x198] sm:$0xff]  ;;  %v8177_v63 = vld [vmem:[%s9566_s30 + $0x150] sm:$0xff]  ;;  %v8176_v3 = vld [vmem:[%s9566_s30 + $0x148] sm:$0xff] }
 0x22c   : > { %6596 = vmatpush.bf16.msra.mxu2 %v8154_v18  ;;  %v8194_v61 = vld [vmem:[%s9566_s30 + $0x1d8] sm:$0xff]  ;;  %v8185_v0 = vld [vmem:[%s9566_s30 + $0x190] sm:$0xff]  ;;  %v8184_v4 = vld [vmem:[%s9566_s30 + $0x188] sm:$0xff] }
 0x22d   : > { %6609 = vmatpush.bf16.msra.mxu3 %v8162_v19  ;;  %v8193_v1 = vld [vmem:[%s9566_s30 + $0x1d0] sm:$0xff]  ;;  %v8192_v5 = vld [vmem:[%s9566_s30 + $0x1c8] sm:$0xff]  ;;  %v4389_v6 = vld [vmem:[%s9910_s0 + $0x18] sm:$0xff] }
 0x22e   : > { %6571 = vmatpush.bf16.msra.mxu0 %v8137_v20  ;;  %v4388_v7 = vld [vmem:[%s9910_s0 + $0x10] sm:$0xff]  ;;  %v8167_v8 = vld [vmem:[%s9566_s30 + $0x100] sm:$0xff]  ;;  %v4940_v10 = vunpack.c.l.b16 %v4389_v6  ;;  %v4941_v14 = vunpack.c.h.b16 %v4389_v6  ;;  %v8206_v16 = vld [vmem:[%s9566_s30 + $0x238] sm:$0xff] }
 0x22f   : > { %6584 = vmatpush.bf16.msra.mxu1 %v8145_v21  ;;  %v8175_v9 = vld [vmem:[%s9566_s30 + $0x140] sm:$0xff]  ;;  %v4938_v11 = vunpack.c.l.b16 %v4388_v7  ;;  %v4939_v15 = vunpack.c.h.b16 %v4388_v7  ;;  %v8214_v17 = vld [vmem:[%s9566_s30 + $0x278] sm:$0xff]  ;;  %v8204_v28 = vld [vmem:[%s9566_s30 + $0x228] sm:$0xff] }
 0x230   : > { %6597 = vmatpush.bf16.msra.mxu2 %v8153_v22  ;;  %v8183_v12 = vld [vmem:[%s9566_s30 + $0x180] sm:$0xff]  ;;  %v8222_v18 = vld [vmem:[%s9566_s30 + $0x2b8] sm:$0xff]  ;;  %v4972_v20 = vpack.c.b16 %v4940_v10, %v4940_v10  ;;  %v4973_v22 = vpack.c.b16 %v4941_v14, %v4941_v14  ;;  %v8212_v29 = vld [vmem:[%s9566_s30 + $0x268] sm:$0xff] }
 0x231   : > { %6610 = vmatpush.bf16.msra.mxu3 %v8161_v23  ;;  %v8191_v13 = vld [vmem:[%s9566_s30 + $0x1c0] sm:$0xff]  ;;  %v8230_v19 = vld [vmem:[%s9566_s30 + $0x2f8] sm:$0xff]  ;;  %v4970_v21 = vpack.c.b16 %v4938_v11, %v4938_v11  ;;  %v4971_v23 = vpack.c.b16 %v4939_v15, %v4939_v15  ;;  %v8236_v6 = vld [vmem:[%s9566_s30 + $0x328] sm:$0xff] }
 0x232   : > { %6572 = vmatpush.bf16.msra.mxu0 %v8136_v24  ;;  %v8205_v24 = vld [vmem:[%s9566_s30 + $0x230] sm:$0xff]  ;;  %v8203_v32 = vld [vmem:[%s9566_s30 + $0x220] sm:$0xff]  ;;  %v8202_v36 = vld [vmem:[%s9566_s30 + $0x218] sm:$0xff] }
 0x233   : > { %6585 = vmatpush.bf16.msra.mxu1 %v8144_v25  ;;  %v8213_v25 = vld [vmem:[%s9566_s30 + $0x270] sm:$0xff]  ;;  %v8211_v33 = vld [vmem:[%s9566_s30 + $0x260] sm:$0xff]  ;;  %v8210_v37 = vld [vmem:[%s9566_s30 + $0x258] sm:$0xff] }
 0x234   : > { %6598 = vmatpush.bf16.msra.mxu2 %v8152_v26  ;;  %v8221_v26 = vld [vmem:[%s9566_s30 + $0x2b0] sm:$0xff]  ;;  %v8244_v7 = vld [vmem:[%s9566_s30 + $0x368] sm:$0xff]  ;;  %v8235_v10 = vld [vmem:[%s9566_s30 + $0x320] sm:$0xff] }
 0x235   : > { %6611 = vmatpush.bf16.msra.mxu3 %v8160_v27  ;;  %v8229_v27 = vld [vmem:[%s9566_s30 + $0x2f0] sm:$0xff]  ;;  %v8243_v11 = vld [vmem:[%s9566_s30 + $0x360] sm:$0xff]  ;;  %v8234_v14 = vld [vmem:[%s9566_s30 + $0x318] sm:$0xff] }
 0x236   : > { %6573 = vmatpush.bf16.msra.mxu0 %v8135_v30  ;;  %v8220_v30 = vld [vmem:[%s9566_s30 + $0x2a8] sm:$0xff]  ;;  %v8242_v15 = vld [vmem:[%s9566_s30 + $0x358] sm:$0xff] }
 0x237   : > { %6586 = vmatpush.bf16.msra.mxu1 %v8143_v31  ;;  %v8228_v31 = vld [vmem:[%s9566_s30 + $0x2e8] sm:$0xff] }
 0x238   : > { %6599 = vmatpush.bf16.msra.mxu2 %v8151_v34  ;;  %v8219_v34 = vld [vmem:[%s9566_s30 + $0x2a0] sm:$0xff] }
 0x239   : > { %6612 = vmatpush.bf16.msra.mxu3 %v8159_v35  ;;  %6574 = vmatmul.bf16.vlgmr.msra.gmra.mxu0 %v4966_v43  ;;  %v8227_v35 = vld [vmem:[%s9566_s30 + $0x2e0] sm:$0xff]  ;;  %v8225_v43 = vld [vmem:[%s9566_s30 + $0x2d0] sm:$0xff] }
 0x23a   : > { %6618 = vmatpush.bf16.msrb.mxu0 %v8174_v38  ;;  %6587 = vmatmul.bf16.vlgmr.msra.gmra.mxu1 %v4967_v45  ;;  %v8218_v38 = vld [vmem:[%s9566_s30 + $0x298] sm:$0xff]  ;;  %v8208_v45 = vld [vmem:[%s9566_s30 + $0x248] sm:$0xff] }
 0x23b   : > { %6631 = vmatpush.bf16.msrb.mxu1 %v8182_v39  ;;  %6600 = vmatmul.bf16.vlgmr.msra.gmra.mxu2 %v4968_v42  ;;  %v8226_v39 = vld [vmem:[%s9566_s30 + $0x2d8] sm:$0xff]  ;;  %v8217_v42 = vld [vmem:[%s9566_s30 + $0x290] sm:$0xff] }
 0x23c   : > { %6644 = vmatpush.bf16.msrb.mxu2 %v8190_v40  ;;  %6613 = vmatmul.bf16.vlgmr.msra.gmra.mxu3 %v4969_v44  ;;  %v8201_v40 = vld [vmem:[%s9566_s30 + $0x210] sm:$0xff]  ;;  %v8200_v44 = vld [vmem:[%s9566_s30 + $0x208] sm:$0xff] }
 0x23d   : > { %6657 = vmatpush.bf16.msrb.mxu3 %v8198_v41  ;;  %v8209_v41 = vld [vmem:[%s9566_s30 + $0x250] sm:$0xff] }
 0x23e   : > { %6619 = vmatpush.bf16.msrb.mxu0 %v8173_v46  ;;  %v8216_v46 = vld [vmem:[%s9566_s30 + $0x288] sm:$0xff] }
 0x23f   : > { %6632 = vmatpush.bf16.msrb.mxu1 %v8181_v47  ;;  %v8224_v47 = vld [vmem:[%s9566_s30 + $0x2c8] sm:$0xff] }
 0x240   : > { %6645 = vmatpush.bf16.msrb.mxu2 %v8189_v48  ;;  %v4390_v48 = vld [vmem:[%s9910_s0 + $0x20] sm:$0xff] }
 0x241   : > { %6658 = vmatpush.bf16.msrb.mxu3 %v8197_v49  ;;  %v4391_v49 = vld [vmem:[%s9910_s0 + $0x28] sm:$0xff] }
 0x242   : > { %6620 = vmatpush.bf16.msrb.mxu0 %v8172_v50  ;;  %v8199_v50 = vld [vmem:[%s9566_s30 + $0x200] sm:$0xff] }
 0x243   : > { %6633 = vmatpush.bf16.msrb.mxu1 %v8180_v51  ;;  %v8207_v51 = vld [vmem:[%s9566_s30 + $0x240] sm:$0xff] }
 0x244   : > { %6646 = vmatpush.bf16.msrb.mxu2 %v8188_v52  ;;  %v4942_v52 = vunpack.c.l.b16 %v4390_v48 }
 0x245   : > { %6659 = vmatpush.bf16.msrb.mxu3 %v8196_v53  ;;  %v4944_v53 = vunpack.c.l.b16 %v4391_v49 }
 0x246   : > { %6621 = vmatpush.bf16.msrb.mxu0 %v8171_v54  ;;  %v8215_v54 = vld [vmem:[%s9566_s30 + $0x280] sm:$0xff] }
 0x247   : > { %6634 = vmatpush.bf16.msrb.mxu1 %v8179_v55  ;;  %v8223_v55 = vld [vmem:[%s9566_s30 + $0x2c0] sm:$0xff] }
 0x248   : > { %6647 = vmatpush.bf16.msrb.mxu2 %v8187_v56  ;;  %v4943_v56 = vunpack.c.h.b16 %v4390_v48  ;;  %v8268_v48 = vld [vmem:[%s9566_s30 + $0x428] sm:$0xff] }
 0x249   : > { %6660 = vmatpush.bf16.msrb.mxu3 %v8195_v57  ;;  %v4945_v57 = vunpack.c.h.b16 %v4391_v49  ;;  %v8276_v49 = vld [vmem:[%s9566_s30 + $0x468] sm:$0xff] }
 0x24a   : > { %6622 = vmatpush.bf16.msrb.mxu0 %v8170_v58  ;;  %v8238_v58 = vld [vmem:[%s9566_s30 + $0x338] sm:$0xff] }
 0x24b   : > { %6635 = vmatpush.bf16.msrb.mxu1 %v8178_v59  ;;  %v8246_v59 = vld [vmem:[%s9566_s30 + $0x378] sm:$0xff] }
 0x24c   : > { %6648 = vmatpush.bf16.msrb.mxu2 %v8186_v60  ;;  %v8254_v60 = vld [vmem:[%s9566_s30 + $0x3b8] sm:$0xff] }
 0x24d   : > { %6661 = vmatpush.bf16.msrb.mxu3 %v8194_v61  ;;  %v8262_v61 = vld [vmem:[%s9566_s30 + $0x3f8] sm:$0xff] }
 0x24e   : > { %6623 = vmatpush.bf16.msrb.mxu0 %v8169_v62  ;;  %v4974_v62 = vpack.c.b16 %v4942_v52, %v4942_v52  ;;  %v8267_v52 = vld [vmem:[%s9566_s30 + $0x420] sm:$0xff] }
 0x24f   : > { %6636 = vmatpush.bf16.msrb.mxu1 %v8177_v63  ;;  %v4976_v63 = vpack.c.b16 %v4944_v53, %v4944_v53  ;;  %v8275_v53 = vld [vmem:[%s9566_s30 + $0x460] sm:$0xff] }
 0x250   : > { %6649 = vmatpush.bf16.msrb.mxu2 %v8185_v0  ;;  %v4975_v0 = vpack.c.b16 %v4943_v56, %v4943_v56  ;;  %v8266_v56 = vld [vmem:[%s9566_s30 + $0x418] sm:$0xff] }
 0x251   : > { %6662 = vmatpush.bf16.msrb.mxu3 %v8193_v1  ;;  %v4977_v1 = vpack.c.b16 %v4945_v57, %v4945_v57  ;;  %v8274_v57 = vld [vmem:[%s9566_s30 + $0x458] sm:$0xff] }
 0x252   : > { %6624 = vmatpush.bf16.msrb.mxu0 %v8168_v2  ;;  %v8237_v2 = vld [vmem:[%s9566_s30 + $0x330] sm:$0xff] }
 0x253   : > { %6637 = vmatpush.bf16.msrb.mxu1 %v8176_v3  ;;  %v8245_v3 = vld [vmem:[%s9566_s30 + $0x370] sm:$0xff] }
 0x254   : > { %6650 = vmatpush.bf16.msrb.mxu2 %v8184_v4  ;;  %v8253_v4 = vld [vmem:[%s9566_s30 + $0x3b0] sm:$0xff] }
 0x255   : > { %6663 = vmatpush.bf16.msrb.mxu3 %v8192_v5  ;;  %v8261_v5 = vld [vmem:[%s9566_s30 + $0x3f0] sm:$0xff] }
 0x256   : > { %6625 = vmatpush.bf16.msrb.mxu0 %v8167_v8  ;;  %v8252_v8 = vld [vmem:[%s9566_s30 + $0x3a8] sm:$0xff] }
 0x257   : > { %6638 = vmatpush.bf16.msrb.mxu1 %v8175_v9  ;;  %v8260_v9 = vld [vmem:[%s9566_s30 + $0x3e8] sm:$0xff] }
 0x258   : > { %6651 = vmatpush.bf16.msrb.mxu2 %v8183_v12  ;;  %v8251_v12 = vld [vmem:[%s9566_s30 + $0x3a0] sm:$0xff] }
 0x259   : > { %6664 = vmatpush.bf16.msrb.mxu3 %v8191_v13  ;;  %6626 = vmatmul.bf16.vlgmr.msrb.gmra.mxu0 %v4970_v21  ;;  %v8259_v13 = vld [vmem:[%s9566_s30 + $0x3e0] sm:$0xff]  ;;  %v8257_v21 = vld [vmem:[%s9566_s30 + $0x3d0] sm:$0xff] }
 0x25a   : > { %6670 = vmatpush.bf16.msra.mxu0 %v8206_v16  ;;  %6639 = vmatmul.bf16.vlgmr.msrb.gmra.mxu1 %v4971_v23  ;;  %v8250_v16 = vld [vmem:[%s9566_s30 + $0x398] sm:$0xff]  ;;  %v8240_v23 = vld [vmem:[%s9566_s30 + $0x348] sm:$0xff] }
 0x25b   : > { %6683 = vmatpush.bf16.msra.mxu1 %v8214_v17  ;;  %6652 = vmatmul.bf16.vlgmr.msrb.gmra.mxu2 %v4972_v20  ;;  %v8258_v17 = vld [vmem:[%s9566_s30 + $0x3d8] sm:$0xff]  ;;  %v8249_v20 = vld [vmem:[%s9566_s30 + $0x390] sm:$0xff] }
 0x25c   : > { %6696 = vmatpush.bf16.msra.mxu2 %v8222_v18  ;;  %6665 = vmatmul.bf16.vlgmr.msrb.gmra.mxu3 %v4973_v22  ;;  %v8233_v18 = vld [vmem:[%s9566_s30 + $0x310] sm:$0xff]  ;;  %v8232_v22 = vld [vmem:[%s9566_s30 + $0x308] sm:$0xff] }
 0x25d   : > { %6709 = vmatpush.bf16.msra.mxu3 %v8230_v19  ;;  %v8241_v19 = vld [vmem:[%s9566_s30 + $0x350] sm:$0xff] }
 0x25e   : > { %6671 = vmatpush.bf16.msra.mxu0 %v8205_v24  ;;  %v8248_v24 = vld [vmem:[%s9566_s30 + $0x388] sm:$0xff] }
 0x25f   : > { %6684 = vmatpush.bf16.msra.mxu1 %v8213_v25  ;;  %v8256_v25 = vld [vmem:[%s9566_s30 + $0x3c8] sm:$0xff] }
 0x260   : > { %6697 = vmatpush.bf16.msra.mxu2 %v8221_v26  ;;  %v4392_v26 = vld [vmem:[%s9910_s0 + $0x30] sm:$0xff] }
 0x261   : > { %6710 = vmatpush.bf16.msra.mxu3 %v8229_v27  ;;  %v4393_v27 = vld [vmem:[%s9910_s0 + $0x38] sm:$0xff] }
 0x262   : > { %6672 = vmatpush.bf16.msra.mxu0 %v8204_v28  ;;  %v8231_v28 = vld [vmem:[%s9566_s30 + $0x300] sm:$0xff] }
 0x263   : > { %6685 = vmatpush.bf16.msra.mxu1 %v8212_v29  ;;  %v8239_v29 = vld [vmem:[%s9566_s30 + $0x340] sm:$0xff] }
 0x264   : > { %6698 = vmatpush.bf16.msra.mxu2 %v8220_v30  ;;  %v4946_v30 = vunpack.c.l.b16 %v4392_v26 }
 0x265   : > { %6711 = vmatpush.bf16.msra.mxu3 %v8228_v31  ;;  %v4948_v31 = vunpack.c.l.b16 %v4393_v27 }
 0x266   : > { %6673 = vmatpush.bf16.msra.mxu0 %v8203_v32  ;;  %v8247_v32 = vld [vmem:[%s9566_s30 + $0x380] sm:$0xff] }
 0x267   : > { %6686 = vmatpush.bf16.msra.mxu1 %v8211_v33  ;;  %v8255_v33 = vld [vmem:[%s9566_s30 + $0x3c0] sm:$0xff] }
 0x268   : > { %6699 = vmatpush.bf16.msra.mxu2 %v8219_v34  ;;  %v4947_v34 = vunpack.c.h.b16 %v4392_v26  ;;  %v8300_v26 = vld [vmem:[%s9566_s30 + $0x528] sm:$0xff] }
 0x269   : > { %6712 = vmatpush.bf16.msra.mxu3 %v8227_v35  ;;  %v4949_v35 = vunpack.c.h.b16 %v4393_v27  ;;  %v8308_v27 = vld [vmem:[%s9566_s30 + $0x568] sm:$0xff] }
 0x26a   : > { %6674 = vmatpush.bf16.msra.mxu0 %v8202_v36  ;;  %v8270_v36 = vld [vmem:[%s9566_s30 + $0x438] sm:$0xff] }
 0x26b   : > { %6687 = vmatpush.bf16.msra.mxu1 %v8210_v37  ;;  %v8278_v37 = vld [vmem:[%s9566_s30 + $0x478] sm:$0xff] }
 0x26c   : > { %6700 = vmatpush.bf16.msra.mxu2 %v8218_v38  ;;  %v8286_v38 = vld [vmem:[%s9566_s30 + $0x4b8] sm:$0xff] }
 0x26d   : > { %6713 = vmatpush.bf16.msra.mxu3 %v8226_v39  ;;  %v8294_v39 = vld [vmem:[%s9566_s30 + $0x4f8] sm:$0xff] }
 0x26e   : > { %6675 = vmatpush.bf16.msra.mxu0 %v8201_v40  ;;  %v4978_v40 = vpack.c.b16 %v4946_v30, %v4946_v30  ;;  %v8324_v30 = vld [vmem:[%s9566_s30 + $0x5e8] sm:$0xff] }
 0x26f   : > { %6688 = vmatpush.bf16.msra.mxu1 %v8209_v41  ;;  %v4980_v41 = vpack.c.b16 %v4948_v31, %v4948_v31 }
 0x270   : > { %6701 = vmatpush.bf16.msra.mxu2 %v8217_v42  ;;  %v4979_v42 = vpack.c.b16 %v4947_v34, %v4947_v34 }
 0x271   : > { %6714 = vmatpush.bf16.msra.mxu3 %v8225_v43  ;;  %v4981_v43 = vpack.c.b16 %v4949_v35, %v4949_v35 }
 0x272   : > { %6676 = vmatpush.bf16.msra.mxu0 %v8200_v44  ;;  %v8269_v44 = vld [vmem:[%s9566_s30 + $0x430] sm:$0xff] }
 0x273   : > { %6689 = vmatpush.bf16.msra.mxu1 %v8208_v45  ;;  %v8277_v45 = vld [vmem:[%s9566_s30 + $0x470] sm:$0xff] }
 0x274   : > { %6702 = vmatpush.bf16.msra.mxu2 %v8216_v46  ;;  %v8285_v46 = vld [vmem:[%s9566_s30 + $0x4b0] sm:$0xff] }
 0x275   : > { %6715 = vmatpush.bf16.msra.mxu3 %v8224_v47  ;;  %v8293_v47 = vld [vmem:[%s9566_s30 + $0x4f0] sm:$0xff] }
 0x276   : > { %6677 = vmatpush.bf16.msra.mxu0 %v8199_v50  ;;  %v8284_v50 = vld [vmem:[%s9566_s30 + $0x4a8] sm:$0xff] }
 0x277   : > { %6690 = vmatpush.bf16.msra.mxu1 %v8207_v51  ;;  %v8292_v51 = vld [vmem:[%s9566_s30 + $0x4e8] sm:$0xff] }
 0x278   : > { %6703 = vmatpush.bf16.msra.mxu2 %v8215_v54  ;;  %v8283_v54 = vld [vmem:[%s9566_s30 + $0x4a0] sm:$0xff] }
 0x279   : > { %6716 = vmatpush.bf16.msra.mxu3 %v8223_v55  ;;  %6678 = vmatmul.bf16.vlgmr.msra.gmra.mxu0 %v4974_v62  ;;  %v8291_v55 = vld [vmem:[%s9566_s30 + $0x4e0] sm:$0xff]  ;;  %v8281_v62 = vld [vmem:[%s9566_s30 + $0x490] sm:$0xff] }
 0x27a   : > { %6722 = vmatpush.bf16.msrb.mxu0 %v8238_v58  ;;  %6691 = vmatmul.bf16.vlgmr.msra.gmra.mxu1 %v4975_v0  ;;  %v8282_v58 = vld [vmem:[%s9566_s30 + $0x498] sm:$0xff]  ;;  %v8264_v0 = vld [vmem:[%s9566_s30 + $0x408] sm:$0xff] }
 0x27b   : > { %6735 = vmatpush.bf16.msrb.mxu1 %v8246_v59  ;;  %6704 = vmatmul.bf16.vlgmr.msra.gmra.mxu2 %v4976_v63  ;;  %v8290_v59 = vld [vmem:[%s9566_s30 + $0x4d8] sm:$0xff]  ;;  %v8289_v63 = vld [vmem:[%s9566_s30 + $0x4d0] sm:$0xff] }
 0x27c   : > { %6748 = vmatpush.bf16.msrb.mxu2 %v8254_v60  ;;  %6717 = vmatmul.bf16.vlgmr.msra.gmra.mxu3 %v4977_v1  ;;  %v8265_v60 = vld [vmem:[%s9566_s30 + $0x410] sm:$0xff]  ;;  %v8272_v1 = vld [vmem:[%s9566_s30 + $0x448] sm:$0xff] }
 0x27d   : > { %6761 = vmatpush.bf16.msrb.mxu3 %v8262_v61  ;;  %v8273_v61 = vld [vmem:[%s9566_s30 + $0x450] sm:$0xff] }
 0x27e   : > { %6723 = vmatpush.bf16.msrb.mxu0 %v8237_v2  ;;  %v8280_v2 = vld [vmem:[%s9566_s30 + $0x488] sm:$0xff] }
 0x27f   : > { %6736 = vmatpush.bf16.msrb.mxu1 %v8245_v3  ;;  %v8288_v3 = vld [vmem:[%s9566_s30 + $0x4c8] sm:$0xff] }
 0x280   : > { %6749 = vmatpush.bf16.msrb.mxu2 %v8253_v4  ;;  %v4394_v4 = vld [vmem:[%s9910_s0 + $0x40] sm:$0xff] }
 0x281   : > { %6762 = vmatpush.bf16.msrb.mxu3 %v8261_v5  ;;  %v4395_v5 = vld [vmem:[%s9910_s0 + $0x48] sm:$0xff] }
 0x282   : > { %6724 = vmatpush.bf16.msrb.mxu0 %v8236_v6  ;;  %v8263_v6 = vld [vmem:[%s9566_s30 + $0x400] sm:$0xff] }
 0x283   : > { %6737 = vmatpush.bf16.msrb.mxu1 %v8244_v7  ;;  %v8271_v7 = vld [vmem:[%s9566_s30 + $0x440] sm:$0xff] }
 0x284   : > { %6750 = vmatpush.bf16.msrb.mxu2 %v8252_v8  ;;  %v4950_v8 = vunpack.c.l.b16 %v4394_v4 }
 0x285   : > { %6763 = vmatpush.bf16.msrb.mxu3 %v8260_v9  ;;  %v4952_v9 = vunpack.c.l.b16 %v4395_v5 }
 0x286   : > { %6725 = vmatpush.bf16.msrb.mxu0 %v8235_v10  ;;  %v8279_v10 = vld [vmem:[%s9566_s30 + $0x480] sm:$0xff] }
 0x287   : > { %6738 = vmatpush.bf16.msrb.mxu1 %v8243_v11  ;;  %v8287_v11 = vld [vmem:[%s9566_s30 + $0x4c0] sm:$0xff] }
 0x288   : > { %6751 = vmatpush.bf16.msrb.mxu2 %v8251_v12  ;;  %v4951_v12 = vunpack.c.h.b16 %v4394_v4 }
 0x289   : > { %6764 = vmatpush.bf16.msrb.mxu3 %v8259_v13  ;;  %v4953_v13 = vunpack.c.h.b16 %v4395_v5  ;;  %v8334_v5 = vld [vmem:[%s9566_s30 + $0x638] sm:$0xff] }
 0x28a   : > { %6726 = vmatpush.bf16.msrb.mxu0 %v8234_v14  ;;  %v8302_v14 = vld [vmem:[%s9566_s30 + $0x538] sm:$0xff] }
 0x28b   : > { %6739 = vmatpush.bf16.msrb.mxu1 %v8242_v15  ;;  %v8310_v15 = vld [vmem:[%s9566_s30 + $0x578] sm:$0xff] }
 0x28c   : > { %6752 = vmatpush.bf16.msrb.mxu2 %v8250_v16  ;;  %v8318_v16 = vld [vmem:[%s9566_s30 + $0x5b8] sm:$0xff] }
 0x28d   : > { %6765 = vmatpush.bf16.msrb.mxu3 %v8258_v17  ;;  %v8326_v17 = vld [vmem:[%s9566_s30 + $0x5f8] sm:$0xff] }
 0x28e   : > { %6727 = vmatpush.bf16.msrb.mxu0 %v8233_v18  ;;  %v4982_v18 = vpack.c.b16 %v4950_v8, %v4950_v8  ;;  %v8358_v8 = vld [vmem:[%s9566_s30 + $0x6f8] sm:$0xff] }
 0x28f   : > { %6740 = vmatpush.bf16.msrb.mxu1 %v8241_v19  ;;  %v4984_v19 = vpack.c.b16 %v4952_v9, %v4952_v9 }
 0x290   : > { %6753 = vmatpush.bf16.msrb.mxu2 %v8249_v20  ;;  %v4983_v20 = vpack.c.b16 %v4951_v12, %v4951_v12 }
 0x291   : > { %6766 = vmatpush.bf16.msrb.mxu3 %v8257_v21  ;;  %v4985_v21 = vpack.c.b16 %v4953_v13, %v4953_v13  ;;  %v8333_v13 = vld [vmem:[%s9566_s30 + $0x630] sm:$0xff] }
 0x292   : > { %6728 = vmatpush.bf16.msrb.mxu0 %v8232_v22  ;;  %v8301_v22 = vld [vmem:[%s9566_s30 + $0x530] sm:$0xff] }
 0x293   : > { %6741 = vmatpush.bf16.msrb.mxu1 %v8240_v23  ;;  %v8309_v23 = vld [vmem:[%s9566_s30 + $0x570] sm:$0xff] }
 0x294   : > { %6754 = vmatpush.bf16.msrb.mxu2 %v8248_v24  ;;  %v8317_v24 = vld [vmem:[%s9566_s30 + $0x5b0] sm:$0xff] }
 0x295   : > { %6767 = vmatpush.bf16.msrb.mxu3 %v8256_v25  ;;  %v8325_v25 = vld [vmem:[%s9566_s30 + $0x5f0] sm:$0xff] }
 0x296   : > { %6729 = vmatpush.bf16.msrb.mxu0 %v8231_v28  ;;  %v8431_v28 = vld [vmem:[%s4377_s19] ss:$0 sm:$0xff] }
 0x297   : > { %6742 = vmatpush.bf16.msrb.mxu1 %v8239_v29  ;;  %v8316_v29 = vld [vmem:[%s9566_s30 + $0x5a8] sm:$0xff] }
 0x298   : > { %6755 = vmatpush.bf16.msrb.mxu2 %v8247_v32  ;;  %v8299_v32 = vld [vmem:[%s9566_s30 + $0x520] sm:$0xff] }
 0x299   : > { %6768 = vmatpush.bf16.msrb.mxu3 %v8255_v33  ;;  %6730 = vmatmul.bf16.vlgmr.msrb.gmra.mxu0 %v4978_v40  ;;  %v8307_v33 = vld [vmem:[%s9566_s30 + $0x560] sm:$0xff]  ;;  %v8306_v40 = vld [vmem:[%s9566_s30 + $0x558] sm:$0xff] }
 0x29a   : > { %6774 = vmatpush.bf16.msra.mxu0 %v8270_v36  ;;  %6743 = vmatmul.bf16.vlgmr.msrb.gmra.mxu1 %v4979_v42  ;;  %v8315_v36 = vld [vmem:[%s9566_s30 + $0x5a0] sm:$0xff]  ;;  %v8322_v42 = vld [vmem:[%s9566_s30 + $0x5d8] sm:$0xff] }
 0x29b   : > { %6787 = vmatpush.bf16.msra.mxu1 %v8278_v37  ;;  %6756 = vmatmul.bf16.vlgmr.msrb.gmra.mxu2 %v4980_v41  ;;  %v8323_v37 = vld [vmem:[%s9566_s30 + $0x5e0] sm:$0xff]  ;;  %v8314_v41 = vld [vmem:[%s9566_s30 + $0x598] sm:$0xff] }
 0x29c   : > { %6800 = vmatpush.bf16.msra.mxu2 %v8286_v38  ;;  %6769 = vmatmul.bf16.vlgmr.msrb.gmra.mxu3 %v4981_v43 }
 0x29d   : > { %6813 = vmatpush.bf16.msra.mxu3 %v8294_v39  ;;  %v8298_v39 = vld [vmem:[%s9566_s30 + $0x518] sm:$0xff] }
 0x29e   : > { %6775 = vmatpush.bf16.msra.mxu0 %v8269_v44 }
 0x29f   : > { %6788 = vmatpush.bf16.msra.mxu1 %v8277_v45 }
 0x2a0   : > { %6801 = vmatpush.bf16.msra.mxu2 %v8285_v46 }
 0x2a1   : > { %6814 = vmatpush.bf16.msra.mxu3 %v8293_v47  ;;  %v8297_v47 = vld [vmem:[%s9566_s30 + $0x510] sm:$0xff] }
 0x2a2   : > { %6776 = vmatpush.bf16.msra.mxu0 %v8268_v48  ;;  %v8305_v48 = vld [vmem:[%s9566_s30 + $0x550] sm:$0xff] }
 0x2a3   : > { %6789 = vmatpush.bf16.msra.mxu1 %v8276_v49 }
 0x2a4   : > { %6802 = vmatpush.bf16.msra.mxu2 %v8284_v50 }
 0x2a5   : > { %6815 = vmatpush.bf16.msra.mxu3 %v8292_v51  ;;  %v8313_v51 = vld [vmem:[%s9566_s30 + $0x590] sm:$0xff] }
 0x2a6   : > { %6777 = vmatpush.bf16.msra.mxu0 %v8267_v52  ;;  %v8321_v52 = vld [vmem:[%s9566_s30 + $0x5d0] sm:$0xff] }
 0x2a7   : > { %6790 = vmatpush.bf16.msra.mxu1 %v8275_v53  ;;  %v8296_v53 = vld [vmem:[%s9566_s30 + $0x508] sm:$0xff] }
 0x2a8   : > { %6803 = vmatpush.bf16.msra.mxu2 %v8283_v54  ;;  %v8304_v54 = vld [vmem:[%s9566_s30 + $0x548] sm:$0xff] }
 0x2a9   : > { %6816 = vmatpush.bf16.msra.mxu3 %v8291_v55  ;;  %v8312_v55 = vld [vmem:[%s9566_s30 + $0x588] sm:$0xff] }
 0x2aa   : > { %6778 = vmatpush.bf16.msra.mxu0 %v8266_v56  ;;  %v8320_v56 = vld [vmem:[%s9566_s30 + $0x5c8] sm:$0xff] }
 0x2ab   : > { %6791 = vmatpush.bf16.msra.mxu1 %v8274_v57  ;;  %v4396_v57 = vld [vmem:[%s9910_s0 + $0x50] sm:$0xff] }
 0x2ac   : > { %6804 = vmatpush.bf16.msra.mxu2 %v8282_v58  ;;  %v4397_v58 = vld [vmem:[%s9910_s0 + $0x58] sm:$0xff] }
 0x2ad   : > { %6817 = vmatpush.bf16.msra.mxu3 %v8290_v59  ;;  %v4957_v4 = vunpack.c.h.b16 %v4397_v58 }
 0x2ae   : > { %6779 = vmatpush.bf16.msra.mxu0 %v8265_v60 }
 0x2af   : > { %6792 = vmatpush.bf16.msra.mxu1 %v8273_v61  ;;  %v8295_v61 = vld [vmem:[%s9566_s30 + $0x500] sm:$0xff]  ;;  %v4989_v12 = vpack.c.b16 %v4957_v4, %v4957_v4  ;;  %v8373_v4 = vld [vmem:[%s9566_s30 + $0x770] sm:$0xff] }
 0x2b0   : > { %6805 = vmatpush.bf16.msra.mxu2 %v8281_v62  ;;  %v8303_v62 = vld [vmem:[%s9566_s30 + $0x540] sm:$0xff] }
 0x2b1   : > { %6818 = vmatpush.bf16.msra.mxu3 %v8289_v63  ;;  %v4954_v63 = vunpack.c.l.b16 %v4396_v57 }
 0x2b2   : > { %6780 = vmatpush.bf16.msra.mxu0 %v8264_v0  ;;  %v4956_v0 = vunpack.c.l.b16 %v4397_v58 }
 0x2b3   : > { %6793 = vmatpush.bf16.msra.mxu1 %v8272_v1  ;;  %v8311_v1 = vld [vmem:[%s9566_s30 + $0x580] sm:$0xff]  ;;  %v4986_v9 = vpack.c.b16 %v4954_v63, %v4954_v63 }
 0x2b4   : > { %6806 = vmatpush.bf16.msra.mxu2 %v8280_v2  ;;  %v8319_v2 = vld [vmem:[%s9566_s30 + $0x5c0] sm:$0xff] }
 0x2b5   : > { %6819 = vmatpush.bf16.msra.mxu3 %v8288_v3  ;;  %v4955_v3 = vunpack.c.h.b16 %v4396_v57 }
 0x2b6   : > { %6781 = vmatpush.bf16.msra.mxu0 %v8263_v6  ;;  %v6575_v31 = vpop.f32.mrf.mxu0  ;;  %v8342_v6 = vld [vmem:[%s9566_s30 + $0x678] sm:$0xff] }
 0x2b7   : > { %6794 = vmatpush.bf16.msra.mxu1 %v8271_v7  ;;  %v6576_v34 = vadd.f32 %v8431_v28, %v6575_v31  ;;  %v6588_v35 = vpop.f32.mrf.mxu1  ;;  %v8350_v7 = vld [vmem:[%s9566_s30 + $0x6b8] sm:$0xff] }
 0x2b8   : > { %6807 = vmatpush.bf16.msra.mxu2 %v8279_v10  ;;  %v4988_v10 = vpack.c.b16 %v4956_v0, %v4956_v0  ;;  %v8346_v31 = vld [vmem:[%s9566_s30 + $0x698] sm:$0xff] }
 0x2b9   : > { %6820 = vmatpush.bf16.msra.mxu3 %v8287_v11  ;;  %6782 = vmatmul.bf16.vlgmr.msra.gmra.mxu0 %v4982_v18  ;;  %v6589_v38 = vadd.f32 %v6588_v35, %v6576_v34  ;;  %v4987_v11 = vpack.c.b16 %v4955_v3, %v4955_v3  ;;  %v8340_v18 = vld [vmem:[%s9566_s30 + $0x668] sm:$0xff]  ;;  %v8365_v3 = vld [vmem:[%s9566_s30 + $0x730] sm:$0xff] }
 0x2ba   : > { %6826 = vmatpush.bf16.msrb.mxu0 %v8302_v14  ;;  %6795 = vmatmul.bf16.vlgmr.msra.gmra.mxu1 %v4983_v20  ;;  %v8341_v14 = vld [vmem:[%s9566_s30 + $0x670] sm:$0xff]  ;;  %v8356_v20 = vld [vmem:[%s9566_s30 + $0x6e8] sm:$0xff] }
 0x2bb   : > { %6839 = vmatpush.bf16.msrb.mxu1 %v8310_v15  ;;  %6808 = vmatmul.bf16.vlgmr.msra.gmra.mxu2 %v4984_v19  ;;  %v8349_v15 = vld [vmem:[%s9566_s30 + $0x6b0] sm:$0xff]  ;;  %v8348_v19 = vld [vmem:[%s9566_s30 + $0x6a8] sm:$0xff] }
 0x2bc   : > { %6852 = vmatpush.bf16.msrb.mxu2 %v8318_v16  ;;  %6821 = vmatmul.bf16.vlgmr.msra.gmra.mxu3 %v4985_v21  ;;  %v8357_v16 = vld [vmem:[%s9566_s30 + $0x6f0] sm:$0xff] }
 0x2bd   : > { %6865 = vmatpush.bf16.msrb.mxu3 %v8326_v17  ;;  %v8332_v17 = vld [vmem:[%s9566_s30 + $0x628] sm:$0xff] }
 0x2be   : > { %6827 = vmatpush.bf16.msrb.mxu0 %v8301_v22  ;;  %v6601_v43 = vpop.f32.mrf.mxu2  ;;  %v6577_v46 = vpop.f32.mrf.mxu0  ;;  %v8331_v22 = vld [vmem:[%s9566_s30 + $0x620] sm:$0xff] }
 0x2bf   : > { %6840 = vmatpush.bf16.msrb.mxu1 %v8309_v23  ;;  %v6602_v44 = vadd.f32 %v6601_v43, %v6589_v38  ;;  %v6614_v45 = vpop.f32.mrf.mxu3  ;;  %v6590_v50 = vpop.f32.mrf.mxu1  ;;  %v8339_v23 = vld [vmem:[%s9566_s30 + $0x660] sm:$0xff]  ;;  %v8337_v38 = vld [vmem:[%s9566_s30 + $0x650] sm:$0xff]  ;;  %v8328_v43 = vld [vmem:[%s9566_s30 + $0x608] sm:$0xff] }
 0x2c0   : > { %6853 = vmatpush.bf16.msrb.mxu2 %v8317_v24  ;;  %v8352_v46 = vld [vmem:[%s9566_s30 + $0x6c8] sm:$0xff] }
 0x2c1   : > { %6866 = vmatpush.bf16.msrb.mxu3 %v8325_v25  ;;  %v9793_v49 = vadd.f32 %v6614_v45, %v6602_v44  ;;  %v8336_v44 = vld [vmem:[%s9566_s30 + $0x648] sm:$0xff] }
 0x2c2   : > { %6828 = vmatpush.bf16.msrb.mxu0 %v8300_v26  ;;  %v8347_v26 = vld [vmem:[%s9566_s30 + $0x6a0] sm:$0xff]  ;;  %v8344_v45 = vld [vmem:[%s9566_s30 + $0x688] sm:$0xff] }
 0x2c3   : > { %6841 = vmatpush.bf16.msrb.mxu1 %v8308_v27  ;;  %v8355_v27 = vld [vmem:[%s9566_s30 + $0x6e0] sm:$0xff] }
 0x2c4   : > { %6854 = vmatpush.bf16.msrb.mxu2 %v8316_v29  ;;  %v8330_v29 = vld [vmem:[%s9566_s30 + $0x618] sm:$0xff] }
 0x2c5   : > { %6867 = vmatpush.bf16.msrb.mxu3 %v8324_v30  ;;  %v8338_v30 = vld [vmem:[%s9566_s30 + $0x658] sm:$0xff] }
 0x2c6   : > { %6829 = vmatpush.bf16.msrb.mxu0 %v8299_v32  ;;  %v6603_v59 = vpop.f32.mrf.mxu2  ;;  %v8354_v32 = vld [vmem:[%s9566_s30 + $0x6d8] sm:$0xff] }
 0x2c7   : > { %6842 = vmatpush.bf16.msrb.mxu1 %v8307_v33  ;;  %v6616_v60 = vpop.f32.mrf.mxu3  ;;  %v8366_v59 = vld [vmem:[%s9566_s30 + $0x738] sm:$0xff] }
 0x2c8   : > { %6855 = vmatpush.bf16.msrb.mxu2 %v8315_v36  ;;  %v8374_v60 = vld [vmem:[%s9566_s30 + $0x778] sm:$0xff] }
 0x2c9   : > { %6868 = vmatpush.bf16.msrb.mxu3 %v8323_v37  ;;  %v8329_v37 = vld [vmem:[%s9566_s30 + $0x610] sm:$0xff] }
 0x2ca   : > { %6830 = vmatpush.bf16.msrb.mxu0 %v8298_v39 }
 0x2cb   : > { %6843 = vmatpush.bf16.msrb.mxu1 %v8306_v40 }
 0x2cc   : > { %6856 = vmatpush.bf16.msrb.mxu2 %v8314_v41  ;;  %v8345_v41 = vld [vmem:[%s9566_s30 + $0x690] sm:$0xff] }
 0x2cd   : > { %6869 = vmatpush.bf16.msrb.mxu3 %v8322_v42  ;;  %v8353_v42 = vld [vmem:[%s9566_s30 + $0x6d0] sm:$0xff] }
 0x2ce   : > { %6831 = vmatpush.bf16.msrb.mxu0 %v8297_v47  ;;  %v4398_v47 = vld [vmem:[%s9910_s0 + $0x60] sm:$0xff] }
 0x2cf   : > { %6844 = vmatpush.bf16.msrb.mxu1 %v8305_v48  ;;  %v4399_v48 = vld [vmem:[%s9910_s0 + $0x68] sm:$0xff]  ;;  %v4959_v57 = vunpack.c.h.b16 %v4398_v47 }
 0x2d0   : > { %6857 = vmatpush.bf16.msrb.mxu2 %v8313_v51  ;;  %v8327_v51 = vld [vmem:[%s9566_s30 + $0x600] sm:$0xff]  ;;  %v4961_v58 = vunpack.c.h.b16 %v4399_v48 }
 0x2d1   : > { %6870 = vmatpush.bf16.msrb.mxu3 %v8321_v52  ;;  %v8335_v52 = vld [vmem:[%s9566_s30 + $0x640] sm:$0xff] }
 0x2d2   : > { %6832 = vmatpush.bf16.msrb.mxu0 %v8296_v53  ;;  %v4958_v53 = vunpack.c.l.b16 %v4398_v47  ;;  %v8375_v47 = vld [vmem:[%s9566_s30 + $0x780] sm:$0xff] }
 0x2d3   : > { %6845 = vmatpush.bf16.msrb.mxu1 %v8304_v54  ;;  %v4960_v54 = vunpack.c.l.b16 %v4399_v48  ;;  %v8383_v48 = vld [vmem:[%s9566_s30 + $0x7c0] sm:$0xff] }
 0x2d4   : > { %6858 = vmatpush.bf16.msrb.mxu2 %v8312_v55  ;;  %v8343_v55 = vld [vmem:[%s9566_s30 + $0x680] sm:$0xff]  ;;  %v4990_v63 = vpack.c.b16 %v4958_v53, %v4958_v53 }
 0x2d5   : > { %6871 = vmatpush.bf16.msrb.mxu3 %v8320_v56  ;;  %v8351_v56 = vld [vmem:[%s9566_s30 + $0x6c0] sm:$0xff]  ;;  %v4992_v0 = vpack.c.b16 %v4960_v54, %v4960_v54 }
 0x2d6   : > { %6833 = vmatpush.bf16.msrb.mxu0 %v8295_v61  ;;  %v6627_v21 = vpop.f32.mrf.mxu0  ;;  %v8382_v61 = vld [vmem:[%s9566_s30 + $0x7b8] sm:$0xff] }
 0x2d7   : > { %6846 = vmatpush.bf16.msrb.mxu1 %v8303_v62  ;;  %v6628_v24 = vadd.f32 %v6627_v21, %v9793_v49  ;;  %v6640_v25 = vpop.f32.mrf.mxu1  ;;  %v8390_v62 = vld [vmem:[%s9566_s30 + $0x7f8] sm:$0xff] }
 0x2d8   : > { %6859 = vmatpush.bf16.msrb.mxu2 %v8311_v1  ;;  %v4991_v1 = vpack.c.b16 %v4959_v57, %v4959_v57  ;;  %v8378_v21 = vld [vmem:[%s9566_s30 + $0x798] sm:$0xff] }
 0x2d9   : > { %6872 = vmatpush.bf16.msrb.mxu3 %v8319_v2  ;;  %6834 = vmatmul.bf16.vlgmr.msrb.gmra.mxu0 %v4986_v9  ;;  %v6641_v28 = vadd.f32 %v6640_v25, %v6628_v24  ;;  %v4993_v2 = vpack.c.b16 %v4961_v58, %v4961_v58  ;;  %v8380_v9 = vld [vmem:[%s9566_s30 + $0x7a8] sm:$0xff] }
 0x2da   : > { %6878 = vmatpush.bf16.msra.mxu0 %v8334_v5  ;;  %6847 = vmatmul.bf16.vlgmr.msrb.gmra.mxu1 %v4987_v11  ;;  %v8381_v5 = vld [vmem:[%s9566_s30 + $0x7b0] sm:$0xff] }
 0x2db   : > { %6891 = vmatpush.bf16.msra.mxu1 %v8342_v6  ;;  %6860 = vmatmul.bf16.vlgmr.msrb.gmra.mxu2 %v4988_v10  ;;  %v8389_v6 = vld [vmem:[%s9566_s30 + $0x7f0] sm:$0xff]  ;;  %v8388_v10 = vld [vmem:[%s9566_s30 + $0x7e8] sm:$0xff] }
 0x2dc   : > { %6904 = vmatpush.bf16.msra.mxu2 %v8350_v7  ;;  %6873 = vmatmul.bf16.vlgmr.msrb.gmra.mxu3 %v4989_v12  ;;  %v8364_v7 = vld [vmem:[%s9566_s30 + $0x728] sm:$0xff] }
 0x2dd   : > { %6917 = vmatpush.bf16.msra.mxu3 %v8358_v8  ;;  %v8372_v8 = vld [vmem:[%s9566_s30 + $0x768] sm:$0xff] }
 0x2de   : > { %6879 = vmatpush.bf16.msra.mxu0 %v8333_v13  ;;  %v6653_v33 = vpop.f32.mrf.mxu2  ;;  %v6629_v36 = vpop.f32.mrf.mxu0  ;;  %v8363_v13 = vld [vmem:[%s9566_s30 + $0x720] sm:$0xff] }
 0x2df   : > { %6892 = vmatpush.bf16.msra.mxu1 %v8341_v14  ;;  %v6654_v34 = vadd.f32 %v6653_v33, %v6641_v28  ;;  %v6666_v35 = vpop.f32.mrf.mxu3  ;;  %v6642_v40 = vpop.f32.mrf.mxu1  ;;  %v8371_v14 = vld [vmem:[%s9566_s30 + $0x760] sm:$0xff]  ;;  %v8361_v28 = vld [vmem:[%s9566_s30 + $0x710] sm:$0xff]  ;;  %v8360_v33 = vld [vmem:[%s9566_s30 + $0x708] sm:$0xff] }
 0x2e0   : > { %6905 = vmatpush.bf16.msra.mxu2 %v8349_v15  ;;  %v8376_v36 = vld [vmem:[%s9566_s30 + $0x788] sm:$0xff] }
 0x2e1   : > { %6918 = vmatpush.bf16.msra.mxu3 %v8357_v16  ;;  %v9834_v39 = vadd.f32 %v6666_v35, %v6654_v34  ;;  %v8379_v16 = vld [vmem:[%s9566_s30 + $0x7a0] sm:$0xff]  ;;  %v8368_v34 = vld [vmem:[%s9566_s30 + $0x748] sm:$0xff]  ;;  %v4400_v35 = vld [vmem:[%s9910_s0 + $0x70] sm:$0xff] }
 0x2e2   : > { %6880 = vmatpush.bf16.msra.mxu0 %v8332_v17  ;;  %v8387_v17 = vld [vmem:[%s9566_s30 + $0x7e0] sm:$0xff] }
 0x2e3   : > { %6893 = vmatpush.bf16.msra.mxu1 %v8340_v18 }
 0x2e4   : > { %6906 = vmatpush.bf16.msra.mxu2 %v8348_v19  ;;  %v8362_v19 = vld [vmem:[%s9566_s30 + $0x718] sm:$0xff] }
 0x2e5   : > { %6919 = vmatpush.bf16.msra.mxu3 %v8356_v20  ;;  %v8370_v20 = vld [vmem:[%s9566_s30 + $0x758] sm:$0xff] }
 0x2e6   : > { %6881 = vmatpush.bf16.msra.mxu0 %v8331_v22  ;;  %v6655_v49 = vpop.f32.mrf.mxu2  ;;  %v8386_v22 = vld [vmem:[%s9566_s30 + $0x7d8] sm:$0xff] }
 0x2e7   : > { %6894 = vmatpush.bf16.msra.mxu1 %v8339_v23  ;;  %v6668_v50 = vpop.f32.mrf.mxu3 }
 0x2e8   : > { %6907 = vmatpush.bf16.msra.mxu2 %v8347_v26 }
 0x2e9   : > { %6920 = vmatpush.bf16.msra.mxu3 %v8355_v27 }
 0x2ea   : > { %6882 = vmatpush.bf16.msra.mxu0 %v8330_v29  ;;  %v8369_v29 = vld [vmem:[%s9566_s30 + $0x750] sm:$0xff] }
 0x2eb   : > { %6895 = vmatpush.bf16.msra.mxu1 %v8338_v30 }
 0x2ec   : > { %6908 = vmatpush.bf16.msra.mxu2 %v8346_v31  ;;  %v8377_v31 = vld [vmem:[%s9566_s30 + $0x790] sm:$0xff] }
 0x2ed   : > { %6921 = vmatpush.bf16.msra.mxu3 %v8354_v32  ;;  %v8385_v32 = vld [vmem:[%s9566_s30 + $0x7d0] sm:$0xff] }
 0x2ee   : > { %6883 = vmatpush.bf16.msra.mxu0 %v8329_v37  ;;  %v8384_v37 = vld [vmem:[%s9566_s30 + $0x7c8] sm:$0xff] }
 0x2ef   : > { %6896 = vmatpush.bf16.msra.mxu1 %v8337_v38  ;;  %v4401_v38 = vld [vmem:[%s9910_s0 + $0x78] sm:$0xff] }
 0x2f0   : > { %6909 = vmatpush.bf16.msra.mxu2 %v8345_v41  ;;  %v4962_v41 = vunpack.c.l.b16 %v4400_v35 }
 0x2f1   : > { %6922 = vmatpush.bf16.msra.mxu3 %v8353_v42  ;;  %v4963_v42 = vunpack.c.h.b16 %v4400_v35 }
 0x2f2   : > { %6884 = vmatpush.bf16.msra.mxu0 %v8328_v43  ;;  %v8359_v43 = vld [vmem:[%s9566_s30 + $0x700] sm:$0xff]  ;;  %v4994_v49 = vpack.c.b16 %v4962_v41, %v4962_v41 }
 0x2f3   : > { %6897 = vmatpush.bf16.msra.mxu1 %v8336_v44  ;;  %v8367_v44 = vld [vmem:[%s9566_s30 + $0x740] sm:$0xff]  ;;  %v4995_v50 = vpack.c.b16 %v4963_v42, %v4963_v42  ;;  %s7108_s30 = sshll.u32 %s9921_s14, 3 }
 0x2f4   : > { %6910 = vmatpush.bf16.msra.mxu2 %v8344_v45  ;;  %v4964_v45 = vunpack.c.l.b16 %v4401_v38  ;;  %s4385_s29 = scalar_lea.vmem %s9913_s3, %s7108_s30 }
 0x2f5   : > { %6923 = vmatpush.bf16.msra.mxu3 %v8352_v46  ;;  %v4965_v46 = vunpack.c.h.b16 %v4401_v38 }
 0x2f6   : > { %6885 = vmatpush.bf16.msra.mxu0 %v8327_v51  ;;  %v6679_v11 = vpop.f32.mrf.mxu0  ;;  %v4996_v51 = vpack.c.b16 %v4964_v45, %v4964_v45 }
 0x2f7   : > { %6898 = vmatpush.bf16.msra.mxu1 %v8335_v52  ;;  %v6680_v12 = vadd.f32 %v6679_v11, %v9834_v39  ;;  %v6692_v15 = vpop.f32.mrf.mxu1  ;;  %v4997_v52 = vpack.c.b16 %v4965_v46, %v4965_v46 }
 0x2f8   : > { %6911 = vmatpush.bf16.msra.mxu2 %v8343_v55 }
 0x2f9   : > { %6924 = vmatpush.bf16.msra.mxu3 %v8351_v56  ;;  %6886 = vmatmul.bf16.vlgmr.msra.gmra.mxu0 %v4990_v63  ;;  %v6693_v18 = vadd.f32 %v6692_v15, %v6680_v12 }
 0x2fa   : > { %6930 = vmatpush.bf16.msrb.mxu0 %v8366_v59  ;;  %6899 = vmatmul.bf16.vlgmr.msra.gmra.mxu1 %v4991_v1 }
 0x2fb   : > { %6943 = vmatpush.bf16.msrb.mxu1 %v8374_v60  ;;  %6912 = vmatmul.bf16.vlgmr.msra.gmra.mxu2 %v4992_v0 }
 0x2fc   : > { %6956 = vmatpush.bf16.msrb.mxu2 %v8382_v61  ;;  %6925 = vmatmul.bf16.vlgmr.msra.gmra.mxu3 %v4993_v2 }
 0x2fd   : > { %6969 = vmatpush.bf16.msrb.mxu3 %v8390_v62 }
 0x2fe   : > { %6931 = vmatpush.bf16.msrb.mxu0 %v8365_v3  ;;  %v6705_v23 = vpop.f32.mrf.mxu2  ;;  %v6681_v26 = vpop.f32.mrf.mxu0 }
 0x2ff   : > { %6944 = vmatpush.bf16.msrb.mxu1 %v8373_v4  ;;  %v6706_v24 = vadd.f32 %v6705_v23, %v6693_v18  ;;  %v6718_v25 = vpop.f32.mrf.mxu3  ;;  %v6694_v30 = vpop.f32.mrf.mxu1 }
 0x300   : > { %6957 = vmatpush.bf16.msrb.mxu2 %v8381_v5 }
 0x301   : > { %6970 = vmatpush.bf16.msrb.mxu3 %v8389_v6  ;;  %v6719_v27 = vadd.f32 %v6718_v25, %v6706_v24 }
 0x302   : > { %6932 = vmatpush.bf16.msrb.mxu0 %v8364_v7 }
 0x303   : > { %6945 = vmatpush.bf16.msrb.mxu1 %v8372_v8 }
 0x304   : > { %6958 = vmatpush.bf16.msrb.mxu2 %v8380_v9 }
 0x305   : > { %6971 = vmatpush.bf16.msrb.mxu3 %v8388_v10 }
 0x306   : > { %6933 = vmatpush.bf16.msrb.mxu0 %v8363_v13  ;;  %v6707_v39 = vpop.f32.mrf.mxu2 }
 0x307   : > { %6946 = vmatpush.bf16.msrb.mxu1 %v8371_v14  ;;  %v6720_v40 = vpop.f32.mrf.mxu3 }
 0x308   : > { %6959 = vmatpush.bf16.msrb.mxu2 %v8379_v16 }
 0x309   : > { %6972 = vmatpush.bf16.msrb.mxu3 %v8387_v17 }
 0x30a   : > { %6934 = vmatpush.bf16.msrb.mxu0 %v8362_v19 }
 0x30b   : > { %6947 = vmatpush.bf16.msrb.mxu1 %v8370_v20 }
 0x30c   : > { %6960 = vmatpush.bf16.msrb.mxu2 %v8378_v21 }
 0x30d   : > { %6973 = vmatpush.bf16.msrb.mxu3 %v8386_v22 }
 0x30e   : > { %6935 = vmatpush.bf16.msrb.mxu0 %v8361_v28 }
 0x30f   : > { %6948 = vmatpush.bf16.msrb.mxu1 %v8369_v29 }
 0x310   : > { %6961 = vmatpush.bf16.msrb.mxu2 %v8377_v31 }
 0x311   : > { %6974 = vmatpush.bf16.msrb.mxu3 %v8385_v32 }
 0x312   : > { %6936 = vmatpush.bf16.msrb.mxu0 %v8360_v33 }
 0x313   : > { %6949 = vmatpush.bf16.msrb.mxu1 %v8368_v34 }
 0x314   : > { %6962 = vmatpush.bf16.msrb.mxu2 %v8376_v36 }
 0x315   : > { %6975 = vmatpush.bf16.msrb.mxu3 %v8384_v37 }
 0x316   : > { %6937 = vmatpush.bf16.msrb.mxu0 %v8359_v43  ;;  %v6731_v53 = vpop.f32.mrf.mxu0 }
 0x317   : > { %6950 = vmatpush.bf16.msrb.mxu1 %v8367_v44  ;;  %v6732_v54 = vadd.f32 %v6731_v53, %v6719_v27  ;;  %v6744_v55 = vpop.f32.mrf.mxu1 }
 0x318   : > { %6963 = vmatpush.bf16.msrb.mxu2 %v8375_v47 }
 0x319   : > { %6976 = vmatpush.bf16.msrb.mxu3 %v8383_v48  ;;  %6938 = vmatmul.bf16.vlgmr.msrb.gmra.mxu0 %v4994_v49  ;;  %v6745_v56 = vadd.f32 %v6744_v55, %v6732_v54 }
 0x31a   : > { %6951 = vmatmul.bf16.vlgmr.msrb.gmra.mxu1 %v4995_v50 }
 0x31b   : > { %6964 = vmatmul.bf16.vlgmr.msrb.gmra.mxu2 %v4996_v51 }
 0x31c   : > { %6977 = vmatmul.bf16.vlgmr.msrb.gmra.mxu3 %v4997_v52 }
 0x31e   : > { %v6757_v57 = vpop.f32.mrf.mxu2  ;;  %v6733_v60 = vpop.f32.mrf.mxu0 }
 0x31f   : > { %v6758_v58 = vadd.f32 %v6757_v57, %v6745_v56  ;;  %v6770_v59 = vpop.f32.mrf.mxu3  ;;  %v6746_v62 = vpop.f32.mrf.mxu1 }
 0x321   : > { %v6771_v61 = vadd.f32 %v6770_v59, %v6758_v58 }
 0x326   : > { %v6759_v63 = vpop.f32.mrf.mxu2 }
 0x327   : > { %v6772_v0 = vpop.f32.mrf.mxu3 }
 0x336   : > { %v6783_v1 = vpop.f32.mrf.mxu0 }
 0x337   : > { %v6784_v2 = vadd.f32 %v6783_v1, %v6771_v61  ;;  %v6796_v3 = vpop.f32.mrf.mxu1 }
 0x339   : > { %v6797_v4 = vadd.f32 %v6796_v3, %v6784_v2 }
 0x33e   : > { %v6809_v5 = vpop.f32.mrf.mxu2  ;;  %v6785_v8 = vpop.f32.mrf.mxu0 }
 0x33f   : > { %v6810_v6 = vadd.f32 %v6809_v5, %v6797_v4  ;;  %v6822_v7 = vpop.f32.mrf.mxu3  ;;  %v6798_v10 = vpop.f32.mrf.mxu1 }
 0x341   : > { %v6823_v9 = vadd.f32 %v6822_v7, %v6810_v6 }
 0x346   : > { %v6811_v11 = vpop.f32.mrf.mxu2 }
 0x347   : > { %v6824_v12 = vpop.f32.mrf.mxu3 }
 0x356   : > { %v6835_v13 = vpop.f32.mrf.mxu0 }
 0x357   : > { %v6848_v14 = vpop.f32.mrf.mxu1  ;;  %v6836_v24 = vadd.f32 %v6835_v13, %v6823_v9 }
 0x359   : > { %v6849_v28 = vadd.f32 %v6848_v14, %v6836_v24 }
 0x35e   : > { %v6861_v15 = vpop.f32.mrf.mxu2  ;;  %v6837_v17 = vpop.f32.mrf.mxu0 }
 0x35f   : > { %v6874_v16 = vpop.f32.mrf.mxu3  ;;  %v6850_v18 = vpop.f32.mrf.mxu1  ;;  %v6862_v29 = vadd.f32 %v6861_v15, %v6849_v28 }
 0x361   : > { %v6875_v32 = vadd.f32 %v6874_v16, %v6862_v29 }
 0x366   : > { %v6863_v19 = vpop.f32.mrf.mxu2 }
 0x367   : > { %v6876_v20 = vpop.f32.mrf.mxu3 }
 0x376   : > { %v6887_v21 = vpop.f32.mrf.mxu0 }
 0x377   : > { %v6900_v22 = vpop.f32.mrf.mxu1  ;;  %v6888_v33 = vadd.f32 %v6887_v21, %v6875_v32 }
 0x379   : > { %v6901_v34 = vadd.f32 %v6900_v22, %v6888_v33 }
 0x37e   : > { %v6913_v23 = vpop.f32.mrf.mxu2  ;;  %v6889_v26 = vpop.f32.mrf.mxu0 }
 0x37f   : > { %v6926_v25 = vpop.f32.mrf.mxu3  ;;  %v6902_v27 = vpop.f32.mrf.mxu1  ;;  %v6914_v35 = vadd.f32 %v6913_v23, %v6901_v34 }
 0x381   : > { %v6927_v36 = vadd.f32 %v6926_v25, %v6914_v35 }
 0x386   : > { %v6915_v30 = vpop.f32.mrf.mxu2 }
 0x387   : > { %v6928_v31 = vpop.f32.mrf.mxu3 }
 0x396   : > { %v6939_v37 = vpop.f32.mrf.mxu0 }
 0x397   : > { %v6952_v38 = vpop.f32.mrf.mxu1  ;;  %v6940_v39 = vadd.f32 %v6939_v37, %v6927_v36 }
 0x399   : > { %v6953_v40 = vadd.f32 %v6952_v38, %v6940_v39 }
 0x39e   : > { %v6965_v41 = vpop.f32.mrf.mxu2  ;;  %v6941_v44 = vpop.f32.mrf.mxu0 }
 0x39f   : > { %v6978_v42 = vpop.f32.mrf.mxu3  ;;  %v6966_v43 = vadd.f32 %v6965_v41, %v6953_v40  ;;  %v6954_v45 = vpop.f32.mrf.mxu1 }
 0x3a1   : > { %v6979_v46 = vadd.f32 %v6978_v42, %v6966_v43 }
 0x3a3   : > { %6982 = vst [vmem:[%s4385_s29] sm:$0xff] %v6979_v46 }
 0x3a6   : > { %v6967_v47 = vpop.f32.mrf.mxu2 }
 0x3a7   : > { %v6980_v48 = vpop.f32.mrf.mxu3 }
 0x3a8 PF: > { %s13_s16 = sadd.s32 1, %s8470_s16   ;;  %s9914_s12 = smov %s8458_s13 }
 0x3a9   : > { %p10_p10 = scmp.ge.s32.totalorder %s13_s16, 4   ;;  %s9915_s13 = smov %s8527_s20 }
 0x3aa   : > { %s9916_s14 = smov %s8466_s15  ;;  %s9917_s15 = smov %s9919_s17 }
 0x3ab   :  { %12 = sbr.rel (!%p10_p10) target bundleno = 3 (0x3), region = 129 }

</bundles_post_ra>
